<compile_context>
chip_gen: v7x
topology: tpu7x:2x2x1
jax: 0.10.0
libtpu: 0.0.40
codegen_flags: <defaults>
</compile_context>

<pallas_src>
import numpy as np
import jax
import jax.numpy as jnp
from jax.experimental import pallas as pl
from jax.experimental.pallas import tpu as pltpu

_T = 7      # LSTM sequence length produced by the conv trunk
_H = 128    # LSTM hidden size


# ------------------------------------------------------------------
# The single fused kernel
# ------------------------------------------------------------------
def _smalllstm_kernel(x_ref, vec_ref, w2f_ref, w3f_ref, seltm_ref,
                      wih0_ref, wrec_ref, wfc_ref, out_ref):
    f32, bf16 = jnp.float32, jnp.bfloat16
    N = x_ref.shape[0]
    H = _H

    # ---- whole-array loads; everything below is value math -----------------
    xv = x_ref[...]                    # (N, 32, 10) f32
    vec = vec_ref[...]                 # (16, 512)  f32 packed small vectors
    w2f = w2f_ref[...]                 # (256, 64)  bf16 K-folded conv2 weight
    w3f = w3f_ref[...]                 # (256, 32)  bf16 K-folded conv3 weight
    seltm = seltm_ref[...]             # (7N, 14N)  bf16 pool3 + time-major interleave
    wih0 = wih0_ref[...]               # (32, 512)  bf16
    wrec = wrec_ref[...]               # (256,1024) bf16 fused [Whh0|0 ; Wih1|Whh1]
    wfc = wfc_ref[...]                 # (128, 10)  bf16

    # packed small vectors (conv1 taps / biases / BN affine / LSTM biases)
    w00, w01 = vec[0:1, 0:64], vec[1:2, 0:64]
    w10, w11 = vec[2:3, 0:64], vec[3:4, 0:64]
    c1b, s1, t1 = vec[4:5, 0:64], vec[5:6, 0:64], vec[6:7, 0:64]
    c2b, s2, t2 = vec[7:8, 0:64], vec[8:9, 0:64], vec[9:10, 0:64]
    c3b, s3, t3 = vec[10:11, 0:32], vec[11:12, 0:32], vec[12:13, 0:32]
    b0 = vec[13:14, :]                 # (1, 512) layer-0 LSTM bias (i,f,o,g)
    b1c = vec[14:15, :]                # (1, 512) layer-1 LSTM bias (i,f,o,g)
    bfc = vec[15:16, 0:10]             # (1, 10)  fc2 bias

    # pool2 even-row selection matrix (14, 28): sel[r, 2r] = 1 (built via iota)
    r14 = jax.lax.broadcasted_iota(jnp.int32, (14, 28), 0)
    c14 = jax.lax.broadcasted_iota(jnp.int32, (14, 28), 1)
    sel14 = jnp.where(c14 == 2 * r14, 1.0, 0.0).astype(bf16)

    # ---- conv1 (1->64, 2x2, pure VPU) + ReLU + BN1 + pool1 (1,3) ------------
    p1 = []                            # p1[n][wg] : (31, 64) bf16
    for n in range(N):
        xn = xv[n]                                          # (32, 10)
        cols = [jnp.broadcast_to(xn[:, w:w + 1], (32, 64)) for w in range(10)]
        groups = []
        for wg in range(3):
            acc = None
            for j in range(3):
                wo = 3 * wg + j
                a, b = cols[wo], cols[wo + 1]
                conv = (a[0:31, :] * w00 + b[0:31, :] * w01
                        + a[1:32, :] * w10 + b[1:32, :] * w11)
                y = jnp.maximum(conv + c1b, 0.0) * s1 + t1   # ReLU then BN1
                acc = y if acc is None else jnp.maximum(acc, y)
            groups.append(acc.astype(bf16))                  # single bf16 cast
        p1.append(groups)

    # ---- conv2 (64->64, 2x2): one K=256 GEMM per output column -------------
    y2 = []                            # 2N blocks of (30, 64) f32, block b = 2n + wo
    for n in range(N):
        for wo in range(2):
            pa, pb = p1[n][wo], p1[n][wo + 1]
            a2 = jnp.concatenate([pa[0:30, :], pb[0:30, :],
                                  pa[1:31, :], pb[1:31, :]], axis=1)   # (30, 256)
            d = jnp.dot(a2, w2f, preferred_element_type=f32)           # (30, 64)
            y2.append(jnp.maximum(d + c2b, 0.0) * s2 + t2)             # ReLU, BN2
    y2c = jnp.concatenate(y2, axis=1)  # (30, 128N), lane block b = (sample, column)

    # ---- pool2 ((2,2) stride 2, pad (1,1)) for all blocks at once -----------
    # out rows: [in0, max(in1,in2), ..., max(in27,in28), in29]; W is unchanged.
    m2 = jnp.maximum(y2c[1:29, :], y2c[2:30, :])                        # (28, 128N)
    mid = jnp.dot(sel14, m2.astype(bf16), preferred_element_type=f32)   # (14, 128N)
    p2 = jnp.concatenate([y2c[0:1, :], mid, y2c[29:30, :]],
                         axis=0).astype(bf16)                           # (16, 128N)

    # ---- conv3 (64->32, 2x2): one K=256 GEMM per sample + BN3 + pool3 -------
    m3 = []                            # per sample (14, 32): pairwise row maxes
    for n in range(N):
        a0 = p2[:, (2 * n) * 64:(2 * n + 1) * 64]           # W column 0
        a1 = p2[:, (2 * n + 1) * 64:(2 * n + 2) * 64]       # W column 1
        a3 = jnp.concatenate([a0[0:15, :], a1[0:15, :],
                              a0[1:16, :], a1[1:16, :]], axis=1)        # (15, 256)
        d = jnp.dot(a3, w3f, preferred_element_type=f32)                # (15, 32)
        y3 = jnp.maximum(d + c3b, 0.0) * s3 + t3
        m3.append(jnp.maximum(y3[0:14, :], y3[1:15, :]))
    m3c = jnp.concatenate(m3, axis=0).astype(bf16)                      # (14N, 32)

    # pool3 even-row selection + time-major sample interleave in ONE matmul:
    # seq[t*N + n] = m3[n][2t]
    seq = jnp.dot(seltm, m3c, preferred_element_type=f32).astype(bf16)  # (7N, 32)

    # ---- hoisted layer-0 input projection: one GEMM for all (t, n) ----------
    xz = jnp.dot(seq, wih0, preferred_element_type=f32) + b0            # (7N, 512)

    # ---- 2-layer LSTM, T=7 unrolled, ONE fused MXU push per timestep --------
    def gates(z, c_prev):              # gate columns pre-permuted to [i, f, o, g]
        sg = jax.nn.sigmoid(z[:, 0:3 * H])
        g = jnp.tanh(z[:, 3 * H:4 * H])
        c_new = sg[:, H:2 * H] * c_prev + sg[:, 0:H] * g
        h_new = sg[:, 2 * H:3 * H] * jnp.tanh(c_new)
        return h_new, c_new

    zeros = jnp.zeros((N, H), f32)
    c0, h1, c1 = zeros, zeros, zeros
    rec0 = None                        # h0(t-1) @ Whh0; None at t=0 (h0 starts at 0)
    for t in range(_T):
        xz_t = xz[t * N:(t + 1) * N, :]                     # contiguous row slice
        z0 = xz_t if rec0 is None else xz_t + rec0
        h0, c0 = gates(z0, c0)
        hcat = jnp.concatenate([h0, h1], axis=1).astype(bf16)           # (N, 256)
        zz = jnp.dot(hcat, wrec, preferred_element_type=f32)            # (N, 1024)
        rec0 = zz[:, 0:4 * H]          # recurrent part of layer-0 z at t+1
        z1 = zz[:, 4 * H:8 * H] + b1c
        h1, c1 = gates(z1, c1)

    # ---- fc2 + log_softmax ---------------------------------------------------
    logits = jnp.dot(h1.astype(bf16), wfc, preferred_element_type=f32) + bfc
    mx = jnp.max(logits, axis=1, keepdims=True)
    lse = mx + jnp.log(jnp.sum(jnp.exp(logits - mx), axis=1, keepdims=True))
    out_ref[...] = logits - lse


# ------------------------------------------------------------------
# Wrapper: one pallas_call, whole-array VMEM residency (< 1 MiB total)
# ------------------------------------------------------------------
def _make_seltm(n_batch):
    """(7N, 14N) selection matrix: row t*N+n picks m3 row 14n+2t (pool3 +
    time-major interleave)."""
    sel = np.zeros((_T * n_batch, 14 * n_batch), np.float32)
    for t in range(_T):
        for n in range(n_batch):
            sel[t * n_batch + n, 14 * n + 2 * t] = 1.0
    return jnp.asarray(sel, dtype=jnp.bfloat16)


def smalllstm_forward(x, w):
    """x: (N, 1, 32, 10) float32 -> log_softmax logits (N, 10)."""
    N = x.shape[0]
    assert x.shape[1:] == (1, 32, 10), "kernel specialized to 1x32x10 input"
    assert 1 <= N <= 8, "batch is unrolled in-kernel; keep it small"
    x3 = x.reshape(N, 32, 10).astype(jnp.float32)
    seltm = _make_seltm(N)

    vmem = pl.BlockSpec(memory_space=pltpu.MemorySpace.VMEM)
    return pl.pallas_call(
        _smalllstm_kernel,
        out_shape=jax.ShapeDtypeStruct((N, 10), jnp.float32),
        in_specs=[vmem] * 8,
        out_specs=vmem,
    )(x3, w["vecs"], w["w2f"], w["w3f"], seltm, w["wih0"], w["wrec"], w["wfc"])


# ------------------------------------------------------------------
# One-time weight preparation (layout / gate permutation / bf16 casts)
# ------------------------------------------------------------------
def prepare_params(p, eps=1e-5):
    f32, bf16 = jnp.float32, jnp.bfloat16

    def bn_affine(g, b, m, v):
        s = g / jnp.sqrt(v + eps)
        return s, b - m * s

    def tapcat(wc):     # (Co, Ci, 2, 2) -> (4*Ci, Co), taps (0,0),(0,1),(1,0),(1,1)
        return jnp.concatenate(
            [wc[:, :, dh, dw].T for dh in (0, 1) for dw in (0, 1)], axis=0)

    def gate_perm(a):   # PyTorch gate rows [i, f, g, o] -> [i, f, o, g]
        h = a.shape[0] // 4
        return jnp.concatenate([a[0:2 * h], a[3 * h:4 * h], a[2 * h:3 * h]], axis=0)

    def row(v):         # pack a small vector into one 512-lane f32 row
        v = jnp.asarray(v, f32).reshape(-1)
        return jnp.pad(v, (0, 512 - v.shape[0])).reshape(1, 512)

    s1, t1 = bn_affine(p["bn1_g"], p["bn1_b"], p["bn1_m"], p["bn1_v"])
    s2, t2 = bn_affine(p["bn2_g"], p["bn2_b"], p["bn2_m"], p["bn2_v"])
    s3, t3 = bn_affine(p["bn3_g"], p["bn3_b"], p["bn3_m"], p["bn3_v"])

    c1w = p["conv1_w"]
    vecs = jnp.concatenate([
        row(c1w[:, 0, 0, 0]), row(c1w[:, 0, 0, 1]),
        row(c1w[:, 0, 1, 0]), row(c1w[:, 0, 1, 1]),
        row(p["conv1_b"]), row(s1), row(t1),
        row(p["conv2_b"]), row(s2), row(t2),
        row(p["conv3_b"]), row(s3), row(t3),
        row(gate_perm(p["b_ih_l0"] + p["b_hh_l0"])),
        row(gate_perm(p["b_ih_l1"] + p["b_hh_l1"])),
        row(p["fc2_b"]),
    ], axis=0)                                              # (16, 512) f32

    H = _H
    whh0_t = gate_perm(p["w_hh_l0"]).T                      # (128, 512)
    wih1_t = gate_perm(p["w_ih_l1"]).T                      # (128, 512)
    whh1_t = gate_perm(p["w_hh_l1"]).T                      # (128, 512)
    wrec = jnp.concatenate([
        jnp.concatenate([whh0_t, jnp.zeros((H, 4 * H), jnp.float32)], axis=0),
        jnp.concatenate([wih1_t, whh1_t], axis=0),
    ], axis=1).astype(bf16)                                 # (256, 1024)

    return dict(
        vecs=vecs,
        w2f=tapcat(p["conv2_w"]).astype(bf16),              # (256, 64)
        w3f=tapcat(p["conv3_w"]).astype(bf16),              # (256, 32)
        wih0=gate_perm(p["w_ih_l0"]).T.astype(bf16),        # (32, 512)
        wrec=wrec,
        wfc=p["fc2_w"].T.astype(bf16),                      # (128, 10)
    )


# ------------------------------------------------------------------
# Deterministic PyTorch-layout parameters
# ------------------------------------------------------------------
def make_params(key):
    ks = iter(jax.random.split(key, 32))

    def u(shape, scale):
        return jax.random.uniform(next(ks), shape, jnp.float32, -scale, scale)

    def bn(c):
        return (1.0 + 0.1 * u((c,), 1.0), 0.1 * u((c,), 1.0),
                0.05 * u((c,), 1.0), 1.0 + 0.1 * jnp.abs(u((c,), 1.0)))

    p = {}
    p["conv1_w"], p["conv1_b"] = u((64, 1, 2, 2), 0.5), u((64,), 0.5)
    p["bn1_g"], p["bn1_b"], p["bn1_m"], p["bn1_v"] = bn(64)
    sc = 1.0 / (64 * 4) ** 0.5
    p["conv2_w"], p["conv2_b"] = u((64, 64, 2, 2), sc), u((64,), sc)
    p["bn2_g"], p["bn2_b"], p["bn2_m"], p["bn2_v"] = bn(64)
    p["conv3_w"], p["conv3_b"] = u((32, 64, 2, 2), sc), u((32,), sc)
    p["bn3_g"], p["bn3_b"], p["bn3_m"], p["bn3_v"] = bn(32)
    H = _H
    sl = 1.0 / H ** 0.5
    p["w_ih_l0"], p["w_hh_l0"] = u((4 * H, 32), sl), u((4 * H, H), sl)
    p["b_ih_l0"], p["b_hh_l0"] = u((4 * H,), sl), u((4 * H,), sl)
    p["w_ih_l1"], p["w_hh_l1"] = u((4 * H, H), sl), u((4 * H, H), sl)
    p["b_ih_l1"], p["b_hh_l1"] = u((4 * H,), sl), u((4 * H,), sl)
    sf = 1.0 / 128 ** 0.5
    p["fc2_w"], p["fc2_b"] = u((10, 128), sf), u((10,), sf)
    return p


if __name__ == "__main__":
    key = jax.random.PRNGKey(0)
    kx, kp = jax.random.split(key)
    # Input consistent with the module: 32x10 spatial -> LSTM sequence of
    # length 7 with 32 features (matches fc1's in_features = 224 = 7*1*32).
    x = jax.random.normal(kx, (2, 1, 32, 10), jnp.float32)
    params = make_params(kp)
    weights = prepare_params(params)

    # TODO(synk): drop1/drop2 are inference-mode identity; fc1/flat/softmax
    # members of the module are unused by the reference forward().
    fwd = jax.jit(smalllstm_forward)
    out = jax.block_until_ready(fwd(x, weights))

    assert out.shape == (2, 10), out.shape
    assert bool(jnp.all(jnp.isfinite(out))), "non-finite output"
    sums = jnp.sum(jnp.exp(out), axis=1)        # rows of exp(log_softmax) == 1
    assert jnp.allclose(sums, 1.0, atol=1e-3), sums
    print("KERNEL_OK")
</pallas_src>

<mosaic_0001>
module attributes {stable_mosaic.version = 11 : i64} {
  func.func @_smalllstm_kernel(%arg0: memref<2x32x10xf32, #tpu.memory_space<vmem>>, %arg1: memref<16x512xf32, #tpu.memory_space<vmem>>, %arg2: memref<256x64xbf16, #tpu.memory_space<vmem>>, %arg3: memref<256x32xbf16, #tpu.memory_space<vmem>>, %arg4: memref<14x28xbf16, #tpu.memory_space<vmem>>, %arg5: memref<32x512xbf16, #tpu.memory_space<vmem>>, %arg6: memref<256x1024xbf16, #tpu.memory_space<vmem>>, %arg7: memref<128x10xbf16, #tpu.memory_space<vmem>>, %arg8: memref<2x10xf32, #tpu.memory_space<vmem>>) attributes {dimension_semantics = [], scalar_prefetch = 0 : i64, scratch_operands = 0 : i64, tpu.core_type = #tpu.core_type<tc>} {
    %c0 = arith.constant 0 : index
    %c0_0 = arith.constant 0 : index
    %c0_1 = arith.constant 0 : index
    %0 = vector.load %arg0[%c0, %c0_0, %c0_1] : memref<2x32x10xf32, #tpu.memory_space<vmem>>, vector<2x32x10xf32>
    %c0_2 = arith.constant 0 : index
    %c0_3 = arith.constant 0 : index
    %1 = vector.load %arg1[%c0_2, %c0_3] : memref<16x512xf32, #tpu.memory_space<vmem>>, vector<16x512xf32>
    %c0_4 = arith.constant 0 : index
    %c0_5 = arith.constant 0 : index
    %2 = vector.load %arg2[%c0_4, %c0_5] : memref<256x64xbf16, #tpu.memory_space<vmem>>, vector<256x64xbf16>
    %c0_6 = arith.constant 0 : index
    %c0_7 = arith.constant 0 : index
    %3 = vector.load %arg3[%c0_6, %c0_7] : memref<256x32xbf16, #tpu.memory_space<vmem>>, vector<256x32xbf16>
    %c0_8 = arith.constant 0 : index
    %c0_9 = arith.constant 0 : index
    %4 = vector.load %arg4[%c0_8, %c0_9] : memref<14x28xbf16, #tpu.memory_space<vmem>>, vector<14x28xbf16>
    %c0_10 = arith.constant 0 : index
    %c0_11 = arith.constant 0 : index
    %5 = vector.load %arg5[%c0_10, %c0_11] : memref<32x512xbf16, #tpu.memory_space<vmem>>, vector<32x512xbf16>
    %c0_12 = arith.constant 0 : index
    %c0_13 = arith.constant 0 : index
    %6 = vector.load %arg6[%c0_12, %c0_13] : memref<256x1024xbf16, #tpu.memory_space<vmem>>, vector<256x1024xbf16>
    %c0_14 = arith.constant 0 : index
    %c0_15 = arith.constant 0 : index
    %7 = vector.load %arg7[%c0_14, %c0_15] : memref<128x10xbf16, #tpu.memory_space<vmem>>, vector<128x10xbf16>
    %8 = vector.extract_strided_slice %1 {offsets = [0, 0], sizes = [1, 64], strides = [1, 1]} : vector<16x512xf32> to vector<1x64xf32>
    %9 = vector.extract_strided_slice %1 {offsets = [1, 0], sizes = [1, 64], strides = [1, 1]} : vector<16x512xf32> to vector<1x64xf32>
    %10 = vector.extract_strided_slice %1 {offsets = [2, 0], sizes = [1, 64], strides = [1, 1]} : vector<16x512xf32> to vector<1x64xf32>
    %11 = vector.extract_strided_slice %1 {offsets = [3, 0], sizes = [1, 64], strides = [1, 1]} : vector<16x512xf32> to vector<1x64xf32>
    %12 = vector.extract_strided_slice %1 {offsets = [4, 0], sizes = [1, 64], strides = [1, 1]} : vector<16x512xf32> to vector<1x64xf32>
    %13 = vector.extract_strided_slice %1 {offsets = [5, 0], sizes = [1, 64], strides = [1, 1]} : vector<16x512xf32> to vector<1x64xf32>
    %14 = vector.extract_strided_slice %1 {offsets = [6, 0], sizes = [1, 64], strides = [1, 1]} : vector<16x512xf32> to vector<1x64xf32>
    %15 = vector.extract_strided_slice %1 {offsets = [7, 0], sizes = [1, 64], strides = [1, 1]} : vector<16x512xf32> to vector<1x64xf32>
    %16 = vector.extract_strided_slice %1 {offsets = [8, 0], sizes = [1, 64], strides = [1, 1]} : vector<16x512xf32> to vector<1x64xf32>
    %17 = vector.extract_strided_slice %1 {offsets = [9, 0], sizes = [1, 64], strides = [1, 1]} : vector<16x512xf32> to vector<1x64xf32>
    %18 = vector.extract_strided_slice %1 {offsets = [10, 0], sizes = [1, 32], strides = [1, 1]} : vector<16x512xf32> to vector<1x32xf32>
    %19 = vector.extract_strided_slice %1 {offsets = [11, 0], sizes = [1, 32], strides = [1, 1]} : vector<16x512xf32> to vector<1x32xf32>
    %20 = vector.extract_strided_slice %1 {offsets = [12, 0], sizes = [1, 32], strides = [1, 1]} : vector<16x512xf32> to vector<1x32xf32>
    %21 = vector.extract_strided_slice %1 {offsets = [13, 0], sizes = [1, 512], strides = [1, 1]} : vector<16x512xf32> to vector<1x512xf32>
    %22 = vector.extract_strided_slice %1 {offsets = [14, 0], sizes = [1, 512], strides = [1, 1]} : vector<16x512xf32> to vector<1x512xf32>
    %23 = vector.extract_strided_slice %1 {offsets = [15, 0], sizes = [1, 10], strides = [1, 1]} : vector<16x512xf32> to vector<1x10xf32>
    %24 = tpu.iota {dimensions = array<i32: 0>} : vector<14x28xi32>
    %25 = tpu.iota {dimensions = array<i32: 1>} : vector<14x28xi32>
    %c2_i32 = arith.constant 2 : i32
    %26 = vector.broadcast %c2_i32 : i32 to vector<14x28xi32>
    %27 = arith.muli %26, %24 : vector<14x28xi32>
    %28 = arith.cmpi eq, %25, %27 : vector<14x28xi32>
    %cst = arith.constant 1.000000e+00 : f32
    %cst_16 = arith.constant 0.000000e+00 : f32
    %29 = vector.broadcast %cst : f32 to vector<14x28xf32>
    %30 = vector.broadcast %cst_16 : f32 to vector<14x28xf32>
    %31 = arith.select %28, %29, %30 : vector<14x28xi1>, vector<14x28xf32>
    %32 = arith.truncf %31 : vector<14x28xf32> to vector<14x28xbf16>
    %33 = vector.extract_strided_slice %0 {offsets = [0, 0, 0], sizes = [1, 32, 10], strides = [1, 1, 1]} : vector<2x32x10xf32> to vector<1x32x10xf32>
    %34 = vector.shape_cast %33 : vector<1x32x10xf32> to vector<32x10xf32>
    %35 = vector.extract_strided_slice %34 {offsets = [0, 0], sizes = [32, 1], strides = [1, 1]} : vector<32x10xf32> to vector<32x1xf32>
    %36 = vector.shape_cast %35 : vector<32x1xf32> to vector<32x1xf32>
    %37 = vector.broadcast %36 : vector<32x1xf32> to vector<32x64xf32>
    %38 = vector.extract_strided_slice %34 {offsets = [0, 1], sizes = [32, 1], strides = [1, 1]} : vector<32x10xf32> to vector<32x1xf32>
    %39 = vector.shape_cast %38 : vector<32x1xf32> to vector<32x1xf32>
    %40 = vector.broadcast %39 : vector<32x1xf32> to vector<32x64xf32>
    %41 = vector.extract_strided_slice %34 {offsets = [0, 2], sizes = [32, 1], strides = [1, 1]} : vector<32x10xf32> to vector<32x1xf32>
    %42 = vector.shape_cast %41 : vector<32x1xf32> to vector<32x1xf32>
    %43 = vector.broadcast %42 : vector<32x1xf32> to vector<32x64xf32>
    %44 = vector.extract_strided_slice %34 {offsets = [0, 3], sizes = [32, 1], strides = [1, 1]} : vector<32x10xf32> to vector<32x1xf32>
    %45 = vector.shape_cast %44 : vector<32x1xf32> to vector<32x1xf32>
    %46 = vector.broadcast %45 : vector<32x1xf32> to vector<32x64xf32>
    %47 = vector.extract_strided_slice %34 {offsets = [0, 4], sizes = [32, 1], strides = [1, 1]} : vector<32x10xf32> to vector<32x1xf32>
    %48 = vector.shape_cast %47 : vector<32x1xf32> to vector<32x1xf32>
    %49 = vector.broadcast %48 : vector<32x1xf32> to vector<32x64xf32>
    %50 = vector.extract_strided_slice %34 {offsets = [0, 5], sizes = [32, 1], strides = [1, 1]} : vector<32x10xf32> to vector<32x1xf32>
    %51 = vector.shape_cast %50 : vector<32x1xf32> to vector<32x1xf32>
    %52 = vector.broadcast %51 : vector<32x1xf32> to vector<32x64xf32>
    %53 = vector.extract_strided_slice %34 {offsets = [0, 6], sizes = [32, 1], strides = [1, 1]} : vector<32x10xf32> to vector<32x1xf32>
    %54 = vector.shape_cast %53 : vector<32x1xf32> to vector<32x1xf32>
    %55 = vector.broadcast %54 : vector<32x1xf32> to vector<32x64xf32>
    %56 = vector.extract_strided_slice %34 {offsets = [0, 7], sizes = [32, 1], strides = [1, 1]} : vector<32x10xf32> to vector<32x1xf32>
    %57 = vector.shape_cast %56 : vector<32x1xf32> to vector<32x1xf32>
    %58 = vector.broadcast %57 : vector<32x1xf32> to vector<32x64xf32>
    %59 = vector.extract_strided_slice %34 {offsets = [0, 8], sizes = [32, 1], strides = [1, 1]} : vector<32x10xf32> to vector<32x1xf32>
    %60 = vector.shape_cast %59 : vector<32x1xf32> to vector<32x1xf32>
    %61 = vector.broadcast %60 : vector<32x1xf32> to vector<32x64xf32>
    %62 = vector.extract_strided_slice %34 {offsets = [0, 9], sizes = [32, 1], strides = [1, 1]} : vector<32x10xf32> to vector<32x1xf32>
    %63 = vector.shape_cast %62 : vector<32x1xf32> to vector<32x1xf32>
    %64 = vector.broadcast %63 : vector<32x1xf32> to vector<32x64xf32>
    %65 = vector.extract_strided_slice %37 {offsets = [0, 0], sizes = [31, 64], strides = [1, 1]} : vector<32x64xf32> to vector<31x64xf32>
    %66 = vector.broadcast %8 : vector<1x64xf32> to vector<31x64xf32>
    %67 = arith.mulf %65, %66 : vector<31x64xf32>
    %68 = vector.extract_strided_slice %40 {offsets = [0, 0], sizes = [31, 64], strides = [1, 1]} : vector<32x64xf32> to vector<31x64xf32>
    %69 = vector.broadcast %9 : vector<1x64xf32> to vector<31x64xf32>
    %70 = arith.mulf %68, %69 : vector<31x64xf32>
    %71 = arith.addf %67, %70 : vector<31x64xf32>
    %72 = vector.extract_strided_slice %37 {offsets = [1, 0], sizes = [31, 64], strides = [1, 1]} : vector<32x64xf32> to vector<31x64xf32>
    %73 = vector.broadcast %10 : vector<1x64xf32> to vector<31x64xf32>
    %74 = arith.mulf %72, %73 : vector<31x64xf32>
    %75 = arith.addf %71, %74 : vector<31x64xf32>
    %76 = vector.extract_strided_slice %40 {offsets = [1, 0], sizes = [31, 64], strides = [1, 1]} : vector<32x64xf32> to vector<31x64xf32>
    %77 = vector.broadcast %11 : vector<1x64xf32> to vector<31x64xf32>
    %78 = arith.mulf %76, %77 : vector<31x64xf32>
    %79 = arith.addf %75, %78 : vector<31x64xf32>
    %80 = vector.broadcast %12 : vector<1x64xf32> to vector<31x64xf32>
    %81 = arith.addf %79, %80 : vector<31x64xf32>
    %cst_17 = arith.constant 0.000000e+00 : f32
    %82 = vector.broadcast %cst_17 : f32 to vector<31x64xf32>
    %83 = arith.maximumf %81, %82 : vector<31x64xf32>
    %84 = vector.broadcast %13 : vector<1x64xf32> to vector<31x64xf32>
    %85 = arith.mulf %83, %84 : vector<31x64xf32>
    %86 = vector.broadcast %14 : vector<1x64xf32> to vector<31x64xf32>
    %87 = arith.addf %85, %86 : vector<31x64xf32>
    %88 = vector.extract_strided_slice %40 {offsets = [0, 0], sizes = [31, 64], strides = [1, 1]} : vector<32x64xf32> to vector<31x64xf32>
    %89 = vector.broadcast %8 : vector<1x64xf32> to vector<31x64xf32>
    %90 = arith.mulf %88, %89 : vector<31x64xf32>
    %91 = vector.extract_strided_slice %43 {offsets = [0, 0], sizes = [31, 64], strides = [1, 1]} : vector<32x64xf32> to vector<31x64xf32>
    %92 = vector.broadcast %9 : vector<1x64xf32> to vector<31x64xf32>
    %93 = arith.mulf %91, %92 : vector<31x64xf32>
    %94 = arith.addf %90, %93 : vector<31x64xf32>
    %95 = vector.extract_strided_slice %40 {offsets = [1, 0], sizes = [31, 64], strides = [1, 1]} : vector<32x64xf32> to vector<31x64xf32>
    %96 = vector.broadcast %10 : vector<1x64xf32> to vector<31x64xf32>
    %97 = arith.mulf %95, %96 : vector<31x64xf32>
    %98 = arith.addf %94, %97 : vector<31x64xf32>
    %99 = vector.extract_strided_slice %43 {offsets = [1, 0], sizes = [31, 64], strides = [1, 1]} : vector<32x64xf32> to vector<31x64xf32>
    %100 = vector.broadcast %11 : vector<1x64xf32> to vector<31x64xf32>
    %101 = arith.mulf %99, %100 : vector<31x64xf32>
    %102 = arith.addf %98, %101 : vector<31x64xf32>
    %103 = vector.broadcast %12 : vector<1x64xf32> to vector<31x64xf32>
    %104 = arith.addf %102, %103 : vector<31x64xf32>
    %cst_18 = arith.constant 0.000000e+00 : f32
    %105 = vector.broadcast %cst_18 : f32 to vector<31x64xf32>
    %106 = arith.maximumf %104, %105 : vector<31x64xf32>
    %107 = vector.broadcast %13 : vector<1x64xf32> to vector<31x64xf32>
    %108 = arith.mulf %106, %107 : vector<31x64xf32>
    %109 = vector.broadcast %14 : vector<1x64xf32> to vector<31x64xf32>
    %110 = arith.addf %108, %109 : vector<31x64xf32>
    %111 = arith.maximumf %87, %110 : vector<31x64xf32>
    %112 = vector.extract_strided_slice %43 {offsets = [0, 0], sizes = [31, 64], strides = [1, 1]} : vector<32x64xf32> to vector<31x64xf32>
    %113 = vector.broadcast %8 : vector<1x64xf32> to vector<31x64xf32>
    %114 = arith.mulf %112, %113 : vector<31x64xf32>
    %115 = vector.extract_strided_slice %46 {offsets = [0, 0], sizes = [31, 64], strides = [1, 1]} : vector<32x64xf32> to vector<31x64xf32>
    %116 = vector.broadcast %9 : vector<1x64xf32> to vector<31x64xf32>
    %117 = arith.mulf %115, %116 : vector<31x64xf32>
    %118 = arith.addf %114, %117 : vector<31x64xf32>
    %119 = vector.extract_strided_slice %43 {offsets = [1, 0], sizes = [31, 64], strides = [1, 1]} : vector<32x64xf32> to vector<31x64xf32>
    %120 = vector.broadcast %10 : vector<1x64xf32> to vector<31x64xf32>
    %121 = arith.mulf %119, %120 : vector<31x64xf32>
    %122 = arith.addf %118, %121 : vector<31x64xf32>
    %123 = vector.extract_strided_slice %46 {offsets = [1, 0], sizes = [31, 64], strides = [1, 1]} : vector<32x64xf32> to vector<31x64xf32>
    %124 = vector.broadcast %11 : vector<1x64xf32> to vector<31x64xf32>
    %125 = arith.mulf %123, %124 : vector<31x64xf32>
    %126 = arith.addf %122, %125 : vector<31x64xf32>
    %127 = vector.broadcast %12 : vector<1x64xf32> to vector<31x64xf32>
    %128 = arith.addf %126, %127 : vector<31x64xf32>
    %cst_19 = arith.constant 0.000000e+00 : f32
    %129 = vector.broadcast %cst_19 : f32 to vector<31x64xf32>
    %130 = arith.maximumf %128, %129 : vector<31x64xf32>
    %131 = vector.broadcast %13 : vector<1x64xf32> to vector<31x64xf32>
    %132 = arith.mulf %130, %131 : vector<31x64xf32>
    %133 = vector.broadcast %14 : vector<1x64xf32> to vector<31x64xf32>
    %134 = arith.addf %132, %133 : vector<31x64xf32>
    %135 = arith.maximumf %111, %134 : vector<31x64xf32>
    %136 = arith.truncf %135 : vector<31x64xf32> to vector<31x64xbf16>
    %137 = vector.extract_strided_slice %46 {offsets = [0, 0], sizes = [31, 64], strides = [1, 1]} : vector<32x64xf32> to vector<31x64xf32>
    %138 = vector.broadcast %8 : vector<1x64xf32> to vector<31x64xf32>
    %139 = arith.mulf %137, %138 : vector<31x64xf32>
    %140 = vector.extract_strided_slice %49 {offsets = [0, 0], sizes = [31, 64], strides = [1, 1]} : vector<32x64xf32> to vector<31x64xf32>
    %141 = vector.broadcast %9 : vector<1x64xf32> to vector<31x64xf32>
    %142 = arith.mulf %140, %141 : vector<31x64xf32>
    %143 = arith.addf %139, %142 : vector<31x64xf32>
    %144 = vector.extract_strided_slice %46 {offsets = [1, 0], sizes = [31, 64], strides = [1, 1]} : vector<32x64xf32> to vector<31x64xf32>
    %145 = vector.broadcast %10 : vector<1x64xf32> to vector<31x64xf32>
    %146 = arith.mulf %144, %145 : vector<31x64xf32>
    %147 = arith.addf %143, %146 : vector<31x64xf32>
    %148 = vector.extract_strided_slice %49 {offsets = [1, 0], sizes = [31, 64], strides = [1, 1]} : vector<32x64xf32> to vector<31x64xf32>
    %149 = vector.broadcast %11 : vector<1x64xf32> to vector<31x64xf32>
    %150 = arith.mulf %148, %149 : vector<31x64xf32>
    %151 = arith.addf %147, %150 : vector<31x64xf32>
    %152 = vector.broadcast %12 : vector<1x64xf32> to vector<31x64xf32>
    %153 = arith.addf %151, %152 : vector<31x64xf32>
    %cst_20 = arith.constant 0.000000e+00 : f32
    %154 = vector.broadcast %cst_20 : f32 to vector<31x64xf32>
    %155 = arith.maximumf %153, %154 : vector<31x64xf32>
    %156 = vector.broadcast %13 : vector<1x64xf32> to vector<31x64xf32>
    %157 = arith.mulf %155, %156 : vector<31x64xf32>
    %158 = vector.broadcast %14 : vector<1x64xf32> to vector<31x64xf32>
    %159 = arith.addf %157, %158 : vector<31x64xf32>
    %160 = vector.extract_strided_slice %49 {offsets = [0, 0], sizes = [31, 64], strides = [1, 1]} : vector<32x64xf32> to vector<31x64xf32>
    %161 = vector.broadcast %8 : vector<1x64xf32> to vector<31x64xf32>
    %162 = arith.mulf %160, %161 : vector<31x64xf32>
    %163 = vector.extract_strided_slice %52 {offsets = [0, 0], sizes = [31, 64], strides = [1, 1]} : vector<32x64xf32> to vector<31x64xf32>
    %164 = vector.broadcast %9 : vector<1x64xf32> to vector<31x64xf32>
    %165 = arith.mulf %163, %164 : vector<31x64xf32>
    %166 = arith.addf %162, %165 : vector<31x64xf32>
    %167 = vector.extract_strided_slice %49 {offsets = [1, 0], sizes = [31, 64], strides = [1, 1]} : vector<32x64xf32> to vector<31x64xf32>
    %168 = vector.broadcast %10 : vector<1x64xf32> to vector<31x64xf32>
    %169 = arith.mulf %167, %168 : vector<31x64xf32>
    %170 = arith.addf %166, %169 : vector<31x64xf32>
    %171 = vector.extract_strided_slice %52 {offsets = [1, 0], sizes = [31, 64], strides = [1, 1]} : vector<32x64xf32> to vector<31x64xf32>
    %172 = vector.broadcast %11 : vector<1x64xf32> to vector<31x64xf32>
    %173 = arith.mulf %171, %172 : vector<31x64xf32>
    %174 = arith.addf %170, %173 : vector<31x64xf32>
    %175 = vector.broadcast %12 : vector<1x64xf32> to vector<31x64xf32>
    %176 = arith.addf %174, %175 : vector<31x64xf32>
    %cst_21 = arith.constant 0.000000e+00 : f32
    %177 = vector.broadcast %cst_21 : f32 to vector<31x64xf32>
    %178 = arith.maximumf %176, %177 : vector<31x64xf32>
    %179 = vector.broadcast %13 : vector<1x64xf32> to vector<31x64xf32>
    %180 = arith.mulf %178, %179 : vector<31x64xf32>
    %181 = vector.broadcast %14 : vector<1x64xf32> to vector<31x64xf32>
    %182 = arith.addf %180, %181 : vector<31x64xf32>
    %183 = arith.maximumf %159, %182 : vector<31x64xf32>
    %184 = vector.extract_strided_slice %52 {offsets = [0, 0], sizes = [31, 64], strides = [1, 1]} : vector<32x64xf32> to vector<31x64xf32>
    %185 = vector.broadcast %8 : vector<1x64xf32> to vector<31x64xf32>
    %186 = arith.mulf %184, %185 : vector<31x64xf32>
    %187 = vector.extract_strided_slice %55 {offsets = [0, 0], sizes = [31, 64], strides = [1, 1]} : vector<32x64xf32> to vector<31x64xf32>
    %188 = vector.broadcast %9 : vector<1x64xf32> to vector<31x64xf32>
    %189 = arith.mulf %187, %188 : vector<31x64xf32>
    %190 = arith.addf %186, %189 : vector<31x64xf32>
    %191 = vector.extract_strided_slice %52 {offsets = [1, 0], sizes = [31, 64], strides = [1, 1]} : vector<32x64xf32> to vector<31x64xf32>
    %192 = vector.broadcast %10 : vector<1x64xf32> to vector<31x64xf32>
    %193 = arith.mulf %191, %192 : vector<31x64xf32>
    %194 = arith.addf %190, %193 : vector<31x64xf32>
    %195 = vector.extract_strided_slice %55 {offsets = [1, 0], sizes = [31, 64], strides = [1, 1]} : vector<32x64xf32> to vector<31x64xf32>
    %196 = vector.broadcast %11 : vector<1x64xf32> to vector<31x64xf32>
    %197 = arith.mulf %195, %196 : vector<31x64xf32>
    %198 = arith.addf %194, %197 : vector<31x64xf32>
    %199 = vector.broadcast %12 : vector<1x64xf32> to vector<31x64xf32>
    %200 = arith.addf %198, %199 : vector<31x64xf32>
    %cst_22 = arith.constant 0.000000e+00 : f32
    %201 = vector.broadcast %cst_22 : f32 to vector<31x64xf32>
    %202 = arith.maximumf %200, %201 : vector<31x64xf32>
    %203 = vector.broadcast %13 : vector<1x64xf32> to vector<31x64xf32>
    %204 = arith.mulf %202, %203 : vector<31x64xf32>
    %205 = vector.broadcast %14 : vector<1x64xf32> to vector<31x64xf32>
    %206 = arith.addf %204, %205 : vector<31x64xf32>
    %207 = arith.maximumf %183, %206 : vector<31x64xf32>
    %208 = arith.truncf %207 : vector<31x64xf32> to vector<31x64xbf16>
    %209 = vector.extract_strided_slice %55 {offsets = [0, 0], sizes = [31, 64], strides = [1, 1]} : vector<32x64xf32> to vector<31x64xf32>
    %210 = vector.broadcast %8 : vector<1x64xf32> to vector<31x64xf32>
    %211 = arith.mulf %209, %210 : vector<31x64xf32>
    %212 = vector.extract_strided_slice %58 {offsets = [0, 0], sizes = [31, 64], strides = [1, 1]} : vector<32x64xf32> to vector<31x64xf32>
    %213 = vector.broadcast %9 : vector<1x64xf32> to vector<31x64xf32>
    %214 = arith.mulf %212, %213 : vector<31x64xf32>
    %215 = arith.addf %211, %214 : vector<31x64xf32>
    %216 = vector.extract_strided_slice %55 {offsets = [1, 0], sizes = [31, 64], strides = [1, 1]} : vector<32x64xf32> to vector<31x64xf32>
    %217 = vector.broadcast %10 : vector<1x64xf32> to vector<31x64xf32>
    %218 = arith.mulf %216, %217 : vector<31x64xf32>
    %219 = arith.addf %215, %218 : vector<31x64xf32>
    %220 = vector.extract_strided_slice %58 {offsets = [1, 0], sizes = [31, 64], strides = [1, 1]} : vector<32x64xf32> to vector<31x64xf32>
    %221 = vector.broadcast %11 : vector<1x64xf32> to vector<31x64xf32>
    %222 = arith.mulf %220, %221 : vector<31x64xf32>
    %223 = arith.addf %219, %222 : vector<31x64xf32>
    %224 = vector.broadcast %12 : vector<1x64xf32> to vector<31x64xf32>
    %225 = arith.addf %223, %224 : vector<31x64xf32>
    %cst_23 = arith.constant 0.000000e+00 : f32
    %226 = vector.broadcast %cst_23 : f32 to vector<31x64xf32>
    %227 = arith.maximumf %225, %226 : vector<31x64xf32>
    %228 = vector.broadcast %13 : vector<1x64xf32> to vector<31x64xf32>
    %229 = arith.mulf %227, %228 : vector<31x64xf32>
    %230 = vector.broadcast %14 : vector<1x64xf32> to vector<31x64xf32>
    %231 = arith.addf %229, %230 : vector<31x64xf32>
    %232 = vector.extract_strided_slice %58 {offsets = [0, 0], sizes = [31, 64], strides = [1, 1]} : vector<32x64xf32> to vector<31x64xf32>
    %233 = vector.broadcast %8 : vector<1x64xf32> to vector<31x64xf32>
    %234 = arith.mulf %232, %233 : vector<31x64xf32>
    %235 = vector.extract_strided_slice %61 {offsets = [0, 0], sizes = [31, 64], strides = [1, 1]} : vector<32x64xf32> to vector<31x64xf32>
    %236 = vector.broadcast %9 : vector<1x64xf32> to vector<31x64xf32>
    %237 = arith.mulf %235, %236 : vector<31x64xf32>
    %238 = arith.addf %234, %237 : vector<31x64xf32>
    %239 = vector.extract_strided_slice %58 {offsets = [1, 0], sizes = [31, 64], strides = [1, 1]} : vector<32x64xf32> to vector<31x64xf32>
    %240 = vector.broadcast %10 : vector<1x64xf32> to vector<31x64xf32>
    %241 = arith.mulf %239, %240 : vector<31x64xf32>
    %242 = arith.addf %238, %241 : vector<31x64xf32>
    %243 = vector.extract_strided_slice %61 {offsets = [1, 0], sizes = [31, 64], strides = [1, 1]} : vector<32x64xf32> to vector<31x64xf32>
    %244 = vector.broadcast %11 : vector<1x64xf32> to vector<31x64xf32>
    %245 = arith.mulf %243, %244 : vector<31x64xf32>
    %246 = arith.addf %242, %245 : vector<31x64xf32>
    %247 = vector.broadcast %12 : vector<1x64xf32> to vector<31x64xf32>
    %248 = arith.addf %246, %247 : vector<31x64xf32>
    %cst_24 = arith.constant 0.000000e+00 : f32
    %249 = vector.broadcast %cst_24 : f32 to vector<31x64xf32>
    %250 = arith.maximumf %248, %249 : vector<31x64xf32>
    %251 = vector.broadcast %13 : vector<1x64xf32> to vector<31x64xf32>
    %252 = arith.mulf %250, %251 : vector<31x64xf32>
    %253 = vector.broadcast %14 : vector<1x64xf32> to vector<31x64xf32>
    %254 = arith.addf %252, %253 : vector<31x64xf32>
    %255 = arith.maximumf %231, %254 : vector<31x64xf32>
    %256 = vector.extract_strided_slice %61 {offsets = [0, 0], sizes = [31, 64], strides = [1, 1]} : vector<32x64xf32> to vector<31x64xf32>
    %257 = vector.broadcast %8 : vector<1x64xf32> to vector<31x64xf32>
    %258 = arith.mulf %256, %257 : vector<31x64xf32>
    %259 = vector.extract_strided_slice %64 {offsets = [0, 0], sizes = [31, 64], strides = [1, 1]} : vector<32x64xf32> to vector<31x64xf32>
    %260 = vector.broadcast %9 : vector<1x64xf32> to vector<31x64xf32>
    %261 = arith.mulf %259, %260 : vector<31x64xf32>
    %262 = arith.addf %258, %261 : vector<31x64xf32>
    %263 = vector.extract_strided_slice %61 {offsets = [1, 0], sizes = [31, 64], strides = [1, 1]} : vector<32x64xf32> to vector<31x64xf32>
    %264 = vector.broadcast %10 : vector<1x64xf32> to vector<31x64xf32>
    %265 = arith.mulf %263, %264 : vector<31x64xf32>
    %266 = arith.addf %262, %265 : vector<31x64xf32>
    %267 = vector.extract_strided_slice %64 {offsets = [1, 0], sizes = [31, 64], strides = [1, 1]} : vector<32x64xf32> to vector<31x64xf32>
    %268 = vector.broadcast %11 : vector<1x64xf32> to vector<31x64xf32>
    %269 = arith.mulf %267, %268 : vector<31x64xf32>
    %270 = arith.addf %266, %269 : vector<31x64xf32>
    %271 = vector.broadcast %12 : vector<1x64xf32> to vector<31x64xf32>
    %272 = arith.addf %270, %271 : vector<31x64xf32>
    %cst_25 = arith.constant 0.000000e+00 : f32
    %273 = vector.broadcast %cst_25 : f32 to vector<31x64xf32>
    %274 = arith.maximumf %272, %273 : vector<31x64xf32>
    %275 = vector.broadcast %13 : vector<1x64xf32> to vector<31x64xf32>
    %276 = arith.mulf %274, %275 : vector<31x64xf32>
    %277 = vector.broadcast %14 : vector<1x64xf32> to vector<31x64xf32>
    %278 = arith.addf %276, %277 : vector<31x64xf32>
    %279 = arith.maximumf %255, %278 : vector<31x64xf32>
    %280 = arith.truncf %279 : vector<31x64xf32> to vector<31x64xbf16>
    %281 = vector.extract_strided_slice %0 {offsets = [1, 0, 0], sizes = [1, 32, 10], strides = [1, 1, 1]} : vector<2x32x10xf32> to vector<1x32x10xf32>
    %282 = vector.shape_cast %281 : vector<1x32x10xf32> to vector<32x10xf32>
    %283 = vector.extract_strided_slice %282 {offsets = [0, 0], sizes = [32, 1], strides = [1, 1]} : vector<32x10xf32> to vector<32x1xf32>
    %284 = vector.shape_cast %283 : vector<32x1xf32> to vector<32x1xf32>
    %285 = vector.broadcast %284 : vector<32x1xf32> to vector<32x64xf32>
    %286 = vector.extract_strided_slice %282 {offsets = [0, 1], sizes = [32, 1], strides = [1, 1]} : vector<32x10xf32> to vector<32x1xf32>
    %287 = vector.shape_cast %286 : vector<32x1xf32> to vector<32x1xf32>
    %288 = vector.broadcast %287 : vector<32x1xf32> to vector<32x64xf32>
    %289 = vector.extract_strided_slice %282 {offsets = [0, 2], sizes = [32, 1], strides = [1, 1]} : vector<32x10xf32> to vector<32x1xf32>
    %290 = vector.shape_cast %289 : vector<32x1xf32> to vector<32x1xf32>
    %291 = vector.broadcast %290 : vector<32x1xf32> to vector<32x64xf32>
    %292 = vector.extract_strided_slice %282 {offsets = [0, 3], sizes = [32, 1], strides = [1, 1]} : vector<32x10xf32> to vector<32x1xf32>
    %293 = vector.shape_cast %292 : vector<32x1xf32> to vector<32x1xf32>
    %294 = vector.broadcast %293 : vector<32x1xf32> to vector<32x64xf32>
    %295 = vector.extract_strided_slice %282 {offsets = [0, 4], sizes = [32, 1], strides = [1, 1]} : vector<32x10xf32> to vector<32x1xf32>
    %296 = vector.shape_cast %295 : vector<32x1xf32> to vector<32x1xf32>
    %297 = vector.broadcast %296 : vector<32x1xf32> to vector<32x64xf32>
    %298 = vector.extract_strided_slice %282 {offsets = [0, 5], sizes = [32, 1], strides = [1, 1]} : vector<32x10xf32> to vector<32x1xf32>
    %299 = vector.shape_cast %298 : vector<32x1xf32> to vector<32x1xf32>
    %300 = vector.broadcast %299 : vector<32x1xf32> to vector<32x64xf32>
    %301 = vector.extract_strided_slice %282 {offsets = [0, 6], sizes = [32, 1], strides = [1, 1]} : vector<32x10xf32> to vector<32x1xf32>
    %302 = vector.shape_cast %301 : vector<32x1xf32> to vector<32x1xf32>
    %303 = vector.broadcast %302 : vector<32x1xf32> to vector<32x64xf32>
    %304 = vector.extract_strided_slice %282 {offsets = [0, 7], sizes = [32, 1], strides = [1, 1]} : vector<32x10xf32> to vector<32x1xf32>
    %305 = vector.shape_cast %304 : vector<32x1xf32> to vector<32x1xf32>
    %306 = vector.broadcast %305 : vector<32x1xf32> to vector<32x64xf32>
    %307 = vector.extract_strided_slice %282 {offsets = [0, 8], sizes = [32, 1], strides = [1, 1]} : vector<32x10xf32> to vector<32x1xf32>
    %308 = vector.shape_cast %307 : vector<32x1xf32> to vector<32x1xf32>
    %309 = vector.broadcast %308 : vector<32x1xf32> to vector<32x64xf32>
    %310 = vector.extract_strided_slice %282 {offsets = [0, 9], sizes = [32, 1], strides = [1, 1]} : vector<32x10xf32> to vector<32x1xf32>
    %311 = vector.shape_cast %310 : vector<32x1xf32> to vector<32x1xf32>
    %312 = vector.broadcast %311 : vector<32x1xf32> to vector<32x64xf32>
    %313 = vector.extract_strided_slice %285 {offsets = [0, 0], sizes = [31, 64], strides = [1, 1]} : vector<32x64xf32> to vector<31x64xf32>
    %314 = vector.broadcast %8 : vector<1x64xf32> to vector<31x64xf32>
    %315 = arith.mulf %313, %314 : vector<31x64xf32>
    %316 = vector.extract_strided_slice %288 {offsets = [0, 0], sizes = [31, 64], strides = [1, 1]} : vector<32x64xf32> to vector<31x64xf32>
    %317 = vector.broadcast %9 : vector<1x64xf32> to vector<31x64xf32>
    %318 = arith.mulf %316, %317 : vector<31x64xf32>
    %319 = arith.addf %315, %318 : vector<31x64xf32>
    %320 = vector.extract_strided_slice %285 {offsets = [1, 0], sizes = [31, 64], strides = [1, 1]} : vector<32x64xf32> to vector<31x64xf32>
    %321 = vector.broadcast %10 : vector<1x64xf32> to vector<31x64xf32>
    %322 = arith.mulf %320, %321 : vector<31x64xf32>
    %323 = arith.addf %319, %322 : vector<31x64xf32>
    %324 = vector.extract_strided_slice %288 {offsets = [1, 0], sizes = [31, 64], strides = [1, 1]} : vector<32x64xf32> to vector<31x64xf32>
    %325 = vector.broadcast %11 : vector<1x64xf32> to vector<31x64xf32>
    %326 = arith.mulf %324, %325 : vector<31x64xf32>
    %327 = arith.addf %323, %326 : vector<31x64xf32>
    %328 = vector.broadcast %12 : vector<1x64xf32> to vector<31x64xf32>
    %329 = arith.addf %327, %328 : vector<31x64xf32>
    %cst_26 = arith.constant 0.000000e+00 : f32
    %330 = vector.broadcast %cst_26 : f32 to vector<31x64xf32>
    %331 = arith.maximumf %329, %330 : vector<31x64xf32>
    %332 = vector.broadcast %13 : vector<1x64xf32> to vector<31x64xf32>
    %333 = arith.mulf %331, %332 : vector<31x64xf32>
    %334 = vector.broadcast %14 : vector<1x64xf32> to vector<31x64xf32>
    %335 = arith.addf %333, %334 : vector<31x64xf32>
    %336 = vector.extract_strided_slice %288 {offsets = [0, 0], sizes = [31, 64], strides = [1, 1]} : vector<32x64xf32> to vector<31x64xf32>
    %337 = vector.broadcast %8 : vector<1x64xf32> to vector<31x64xf32>
    %338 = arith.mulf %336, %337 : vector<31x64xf32>
    %339 = vector.extract_strided_slice %291 {offsets = [0, 0], sizes = [31, 64], strides = [1, 1]} : vector<32x64xf32> to vector<31x64xf32>
    %340 = vector.broadcast %9 : vector<1x64xf32> to vector<31x64xf32>
    %341 = arith.mulf %339, %340 : vector<31x64xf32>
    %342 = arith.addf %338, %341 : vector<31x64xf32>
    %343 = vector.extract_strided_slice %288 {offsets = [1, 0], sizes = [31, 64], strides = [1, 1]} : vector<32x64xf32> to vector<31x64xf32>
    %344 = vector.broadcast %10 : vector<1x64xf32> to vector<31x64xf32>
    %345 = arith.mulf %343, %344 : vector<31x64xf32>
    %346 = arith.addf %342, %345 : vector<31x64xf32>
    %347 = vector.extract_strided_slice %291 {offsets = [1, 0], sizes = [31, 64], strides = [1, 1]} : vector<32x64xf32> to vector<31x64xf32>
    %348 = vector.broadcast %11 : vector<1x64xf32> to vector<31x64xf32>
    %349 = arith.mulf %347, %348 : vector<31x64xf32>
    %350 = arith.addf %346, %349 : vector<31x64xf32>
    %351 = vector.broadcast %12 : vector<1x64xf32> to vector<31x64xf32>
    %352 = arith.addf %350, %351 : vector<31x64xf32>
    %cst_27 = arith.constant 0.000000e+00 : f32
    %353 = vector.broadcast %cst_27 : f32 to vector<31x64xf32>
    %354 = arith.maximumf %352, %353 : vector<31x64xf32>
    %355 = vector.broadcast %13 : vector<1x64xf32> to vector<31x64xf32>
    %356 = arith.mulf %354, %355 : vector<31x64xf32>
    %357 = vector.broadcast %14 : vector<1x64xf32> to vector<31x64xf32>
    %358 = arith.addf %356, %357 : vector<31x64xf32>
    %359 = arith.maximumf %335, %358 : vector<31x64xf32>
    %360 = vector.extract_strided_slice %291 {offsets = [0, 0], sizes = [31, 64], strides = [1, 1]} : vector<32x64xf32> to vector<31x64xf32>
    %361 = vector.broadcast %8 : vector<1x64xf32> to vector<31x64xf32>
    %362 = arith.mulf %360, %361 : vector<31x64xf32>
    %363 = vector.extract_strided_slice %294 {offsets = [0, 0], sizes = [31, 64], strides = [1, 1]} : vector<32x64xf32> to vector<31x64xf32>
    %364 = vector.broadcast %9 : vector<1x64xf32> to vector<31x64xf32>
    %365 = arith.mulf %363, %364 : vector<31x64xf32>
    %366 = arith.addf %362, %365 : vector<31x64xf32>
    %367 = vector.extract_strided_slice %291 {offsets = [1, 0], sizes = [31, 64], strides = [1, 1]} : vector<32x64xf32> to vector<31x64xf32>
    %368 = vector.broadcast %10 : vector<1x64xf32> to vector<31x64xf32>
    %369 = arith.mulf %367, %368 : vector<31x64xf32>
    %370 = arith.addf %366, %369 : vector<31x64xf32>
    %371 = vector.extract_strided_slice %294 {offsets = [1, 0], sizes = [31, 64], strides = [1, 1]} : vector<32x64xf32> to vector<31x64xf32>
    %372 = vector.broadcast %11 : vector<1x64xf32> to vector<31x64xf32>
    %373 = arith.mulf %371, %372 : vector<31x64xf32>
    %374 = arith.addf %370, %373 : vector<31x64xf32>
    %375 = vector.broadcast %12 : vector<1x64xf32> to vector<31x64xf32>
    %376 = arith.addf %374, %375 : vector<31x64xf32>
    %cst_28 = arith.constant 0.000000e+00 : f32
    %377 = vector.broadcast %cst_28 : f32 to vector<31x64xf32>
    %378 = arith.maximumf %376, %377 : vector<31x64xf32>
    %379 = vector.broadcast %13 : vector<1x64xf32> to vector<31x64xf32>
    %380 = arith.mulf %378, %379 : vector<31x64xf32>
    %381 = vector.broadcast %14 : vector<1x64xf32> to vector<31x64xf32>
    %382 = arith.addf %380, %381 : vector<31x64xf32>
    %383 = arith.maximumf %359, %382 : vector<31x64xf32>
    %384 = arith.truncf %383 : vector<31x64xf32> to vector<31x64xbf16>
    %385 = vector.extract_strided_slice %294 {offsets = [0, 0], sizes = [31, 64], strides = [1, 1]} : vector<32x64xf32> to vector<31x64xf32>
    %386 = vector.broadcast %8 : vector<1x64xf32> to vector<31x64xf32>
    %387 = arith.mulf %385, %386 : vector<31x64xf32>
    %388 = vector.extract_strided_slice %297 {offsets = [0, 0], sizes = [31, 64], strides = [1, 1]} : vector<32x64xf32> to vector<31x64xf32>
    %389 = vector.broadcast %9 : vector<1x64xf32> to vector<31x64xf32>
    %390 = arith.mulf %388, %389 : vector<31x64xf32>
    %391 = arith.addf %387, %390 : vector<31x64xf32>
    %392 = vector.extract_strided_slice %294 {offsets = [1, 0], sizes = [31, 64], strides = [1, 1]} : vector<32x64xf32> to vector<31x64xf32>
    %393 = vector.broadcast %10 : vector<1x64xf32> to vector<31x64xf32>
    %394 = arith.mulf %392, %393 : vector<31x64xf32>
    %395 = arith.addf %391, %394 : vector<31x64xf32>
    %396 = vector.extract_strided_slice %297 {offsets = [1, 0], sizes = [31, 64], strides = [1, 1]} : vector<32x64xf32> to vector<31x64xf32>
    %397 = vector.broadcast %11 : vector<1x64xf32> to vector<31x64xf32>
    %398 = arith.mulf %396, %397 : vector<31x64xf32>
    %399 = arith.addf %395, %398 : vector<31x64xf32>
    %400 = vector.broadcast %12 : vector<1x64xf32> to vector<31x64xf32>
    %401 = arith.addf %399, %400 : vector<31x64xf32>
    %cst_29 = arith.constant 0.000000e+00 : f32
    %402 = vector.broadcast %cst_29 : f32 to vector<31x64xf32>
    %403 = arith.maximumf %401, %402 : vector<31x64xf32>
    %404 = vector.broadcast %13 : vector<1x64xf32> to vector<31x64xf32>
    %405 = arith.mulf %403, %404 : vector<31x64xf32>
    %406 = vector.broadcast %14 : vector<1x64xf32> to vector<31x64xf32>
    %407 = arith.addf %405, %406 : vector<31x64xf32>
    %408 = vector.extract_strided_slice %297 {offsets = [0, 0], sizes = [31, 64], strides = [1, 1]} : vector<32x64xf32> to vector<31x64xf32>
    %409 = vector.broadcast %8 : vector<1x64xf32> to vector<31x64xf32>
    %410 = arith.mulf %408, %409 : vector<31x64xf32>
    %411 = vector.extract_strided_slice %300 {offsets = [0, 0], sizes = [31, 64], strides = [1, 1]} : vector<32x64xf32> to vector<31x64xf32>
    %412 = vector.broadcast %9 : vector<1x64xf32> to vector<31x64xf32>
    %413 = arith.mulf %411, %412 : vector<31x64xf32>
    %414 = arith.addf %410, %413 : vector<31x64xf32>
    %415 = vector.extract_strided_slice %297 {offsets = [1, 0], sizes = [31, 64], strides = [1, 1]} : vector<32x64xf32> to vector<31x64xf32>
    %416 = vector.broadcast %10 : vector<1x64xf32> to vector<31x64xf32>
    %417 = arith.mulf %415, %416 : vector<31x64xf32>
    %418 = arith.addf %414, %417 : vector<31x64xf32>
    %419 = vector.extract_strided_slice %300 {offsets = [1, 0], sizes = [31, 64], strides = [1, 1]} : vector<32x64xf32> to vector<31x64xf32>
    %420 = vector.broadcast %11 : vector<1x64xf32> to vector<31x64xf32>
    %421 = arith.mulf %419, %420 : vector<31x64xf32>
    %422 = arith.addf %418, %421 : vector<31x64xf32>
    %423 = vector.broadcast %12 : vector<1x64xf32> to vector<31x64xf32>
    %424 = arith.addf %422, %423 : vector<31x64xf32>
    %cst_30 = arith.constant 0.000000e+00 : f32
    %425 = vector.broadcast %cst_30 : f32 to vector<31x64xf32>
    %426 = arith.maximumf %424, %425 : vector<31x64xf32>
    %427 = vector.broadcast %13 : vector<1x64xf32> to vector<31x64xf32>
    %428 = arith.mulf %426, %427 : vector<31x64xf32>
    %429 = vector.broadcast %14 : vector<1x64xf32> to vector<31x64xf32>
    %430 = arith.addf %428, %429 : vector<31x64xf32>
    %431 = arith.maximumf %407, %430 : vector<31x64xf32>
    %432 = vector.extract_strided_slice %300 {offsets = [0, 0], sizes = [31, 64], strides = [1, 1]} : vector<32x64xf32> to vector<31x64xf32>
    %433 = vector.broadcast %8 : vector<1x64xf32> to vector<31x64xf32>
    %434 = arith.mulf %432, %433 : vector<31x64xf32>
    %435 = vector.extract_strided_slice %303 {offsets = [0, 0], sizes = [31, 64], strides = [1, 1]} : vector<32x64xf32> to vector<31x64xf32>
    %436 = vector.broadcast %9 : vector<1x64xf32> to vector<31x64xf32>
    %437 = arith.mulf %435, %436 : vector<31x64xf32>
    %438 = arith.addf %434, %437 : vector<31x64xf32>
    %439 = vector.extract_strided_slice %300 {offsets = [1, 0], sizes = [31, 64], strides = [1, 1]} : vector<32x64xf32> to vector<31x64xf32>
    %440 = vector.broadcast %10 : vector<1x64xf32> to vector<31x64xf32>
    %441 = arith.mulf %439, %440 : vector<31x64xf32>
    %442 = arith.addf %438, %441 : vector<31x64xf32>
    %443 = vector.extract_strided_slice %303 {offsets = [1, 0], sizes = [31, 64], strides = [1, 1]} : vector<32x64xf32> to vector<31x64xf32>
    %444 = vector.broadcast %11 : vector<1x64xf32> to vector<31x64xf32>
    %445 = arith.mulf %443, %444 : vector<31x64xf32>
    %446 = arith.addf %442, %445 : vector<31x64xf32>
    %447 = vector.broadcast %12 : vector<1x64xf32> to vector<31x64xf32>
    %448 = arith.addf %446, %447 : vector<31x64xf32>
    %cst_31 = arith.constant 0.000000e+00 : f32
    %449 = vector.broadcast %cst_31 : f32 to vector<31x64xf32>
    %450 = arith.maximumf %448, %449 : vector<31x64xf32>
    %451 = vector.broadcast %13 : vector<1x64xf32> to vector<31x64xf32>
    %452 = arith.mulf %450, %451 : vector<31x64xf32>
    %453 = vector.broadcast %14 : vector<1x64xf32> to vector<31x64xf32>
    %454 = arith.addf %452, %453 : vector<31x64xf32>
    %455 = arith.maximumf %431, %454 : vector<31x64xf32>
    %456 = arith.truncf %455 : vector<31x64xf32> to vector<31x64xbf16>
    %457 = vector.extract_strided_slice %303 {offsets = [0, 0], sizes = [31, 64], strides = [1, 1]} : vector<32x64xf32> to vector<31x64xf32>
    %458 = vector.broadcast %8 : vector<1x64xf32> to vector<31x64xf32>
    %459 = arith.mulf %457, %458 : vector<31x64xf32>
    %460 = vector.extract_strided_slice %306 {offsets = [0, 0], sizes = [31, 64], strides = [1, 1]} : vector<32x64xf32> to vector<31x64xf32>
    %461 = vector.broadcast %9 : vector<1x64xf32> to vector<31x64xf32>
    %462 = arith.mulf %460, %461 : vector<31x64xf32>
    %463 = arith.addf %459, %462 : vector<31x64xf32>
    %464 = vector.extract_strided_slice %303 {offsets = [1, 0], sizes = [31, 64], strides = [1, 1]} : vector<32x64xf32> to vector<31x64xf32>
    %465 = vector.broadcast %10 : vector<1x64xf32> to vector<31x64xf32>
    %466 = arith.mulf %464, %465 : vector<31x64xf32>
    %467 = arith.addf %463, %466 : vector<31x64xf32>
    %468 = vector.extract_strided_slice %306 {offsets = [1, 0], sizes = [31, 64], strides = [1, 1]} : vector<32x64xf32> to vector<31x64xf32>
    %469 = vector.broadcast %11 : vector<1x64xf32> to vector<31x64xf32>
    %470 = arith.mulf %468, %469 : vector<31x64xf32>
    %471 = arith.addf %467, %470 : vector<31x64xf32>
    %472 = vector.broadcast %12 : vector<1x64xf32> to vector<31x64xf32>
    %473 = arith.addf %471, %472 : vector<31x64xf32>
    %cst_32 = arith.constant 0.000000e+00 : f32
    %474 = vector.broadcast %cst_32 : f32 to vector<31x64xf32>
    %475 = arith.maximumf %473, %474 : vector<31x64xf32>
    %476 = vector.broadcast %13 : vector<1x64xf32> to vector<31x64xf32>
    %477 = arith.mulf %475, %476 : vector<31x64xf32>
    %478 = vector.broadcast %14 : vector<1x64xf32> to vector<31x64xf32>
    %479 = arith.addf %477, %478 : vector<31x64xf32>
    %480 = vector.extract_strided_slice %306 {offsets = [0, 0], sizes = [31, 64], strides = [1, 1]} : vector<32x64xf32> to vector<31x64xf32>
    %481 = vector.broadcast %8 : vector<1x64xf32> to vector<31x64xf32>
    %482 = arith.mulf %480, %481 : vector<31x64xf32>
    %483 = vector.extract_strided_slice %309 {offsets = [0, 0], sizes = [31, 64], strides = [1, 1]} : vector<32x64xf32> to vector<31x64xf32>
    %484 = vector.broadcast %9 : vector<1x64xf32> to vector<31x64xf32>
    %485 = arith.mulf %483, %484 : vector<31x64xf32>
    %486 = arith.addf %482, %485 : vector<31x64xf32>
    %487 = vector.extract_strided_slice %306 {offsets = [1, 0], sizes = [31, 64], strides = [1, 1]} : vector<32x64xf32> to vector<31x64xf32>
    %488 = vector.broadcast %10 : vector<1x64xf32> to vector<31x64xf32>
    %489 = arith.mulf %487, %488 : vector<31x64xf32>
    %490 = arith.addf %486, %489 : vector<31x64xf32>
    %491 = vector.extract_strided_slice %309 {offsets = [1, 0], sizes = [31, 64], strides = [1, 1]} : vector<32x64xf32> to vector<31x64xf32>
    %492 = vector.broadcast %11 : vector<1x64xf32> to vector<31x64xf32>
    %493 = arith.mulf %491, %492 : vector<31x64xf32>
    %494 = arith.addf %490, %493 : vector<31x64xf32>
    %495 = vector.broadcast %12 : vector<1x64xf32> to vector<31x64xf32>
    %496 = arith.addf %494, %495 : vector<31x64xf32>
    %cst_33 = arith.constant 0.000000e+00 : f32
    %497 = vector.broadcast %cst_33 : f32 to vector<31x64xf32>
    %498 = arith.maximumf %496, %497 : vector<31x64xf32>
    %499 = vector.broadcast %13 : vector<1x64xf32> to vector<31x64xf32>
    %500 = arith.mulf %498, %499 : vector<31x64xf32>
    %501 = vector.broadcast %14 : vector<1x64xf32> to vector<31x64xf32>
    %502 = arith.addf %500, %501 : vector<31x64xf32>
    %503 = arith.maximumf %479, %502 : vector<31x64xf32>
    %504 = vector.extract_strided_slice %309 {offsets = [0, 0], sizes = [31, 64], strides = [1, 1]} : vector<32x64xf32> to vector<31x64xf32>
    %505 = vector.broadcast %8 : vector<1x64xf32> to vector<31x64xf32>
    %506 = arith.mulf %504, %505 : vector<31x64xf32>
    %507 = vector.extract_strided_slice %312 {offsets = [0, 0], sizes = [31, 64], strides = [1, 1]} : vector<32x64xf32> to vector<31x64xf32>
    %508 = vector.broadcast %9 : vector<1x64xf32> to vector<31x64xf32>
    %509 = arith.mulf %507, %508 : vector<31x64xf32>
    %510 = arith.addf %506, %509 : vector<31x64xf32>
    %511 = vector.extract_strided_slice %309 {offsets = [1, 0], sizes = [31, 64], strides = [1, 1]} : vector<32x64xf32> to vector<31x64xf32>
    %512 = vector.broadcast %10 : vector<1x64xf32> to vector<31x64xf32>
    %513 = arith.mulf %511, %512 : vector<31x64xf32>
    %514 = arith.addf %510, %513 : vector<31x64xf32>
    %515 = vector.extract_strided_slice %312 {offsets = [1, 0], sizes = [31, 64], strides = [1, 1]} : vector<32x64xf32> to vector<31x64xf32>
    %516 = vector.broadcast %11 : vector<1x64xf32> to vector<31x64xf32>
    %517 = arith.mulf %515, %516 : vector<31x64xf32>
    %518 = arith.addf %514, %517 : vector<31x64xf32>
    %519 = vector.broadcast %12 : vector<1x64xf32> to vector<31x64xf32>
    %520 = arith.addf %518, %519 : vector<31x64xf32>
    %cst_34 = arith.constant 0.000000e+00 : f32
    %521 = vector.broadcast %cst_34 : f32 to vector<31x64xf32>
    %522 = arith.maximumf %520, %521 : vector<31x64xf32>
    %523 = vector.broadcast %13 : vector<1x64xf32> to vector<31x64xf32>
    %524 = arith.mulf %522, %523 : vector<31x64xf32>
    %525 = vector.broadcast %14 : vector<1x64xf32> to vector<31x64xf32>
    %526 = arith.addf %524, %525 : vector<31x64xf32>
    %527 = arith.maximumf %503, %526 : vector<31x64xf32>
    %528 = arith.truncf %527 : vector<31x64xf32> to vector<31x64xbf16>
    %529 = vector.extract_strided_slice %136 {offsets = [0, 0], sizes = [30, 64], strides = [1, 1]} : vector<31x64xbf16> to vector<30x64xbf16>
    %530 = vector.extract_strided_slice %208 {offsets = [0, 0], sizes = [30, 64], strides = [1, 1]} : vector<31x64xbf16> to vector<30x64xbf16>
    %531 = vector.extract_strided_slice %136 {offsets = [1, 0], sizes = [30, 64], strides = [1, 1]} : vector<31x64xbf16> to vector<30x64xbf16>
    %532 = vector.extract_strided_slice %208 {offsets = [1, 0], sizes = [30, 64], strides = [1, 1]} : vector<31x64xbf16> to vector<30x64xbf16>
    %533 = tpu.concatenate %529, %530, %531, %532 in 1 : vector<30x64xbf16>, vector<30x64xbf16>, vector<30x64xbf16>, vector<30x64xbf16> -> vector<30x256xbf16>
    %cst_35 = arith.constant dense<0.000000e+00> : vector<30x64xf32>
    %534 = tpu.matmul %533, %2, %cst_35 {dimension_numbers = #tpu.dot_dimension_numbers<[1], [0], [0], [1], [0, 0, 1, 1], [], []>} : vector<30x256xbf16>, vector<256x64xbf16>, vector<30x64xf32> -> vector<30x64xf32>
    %535 = vector.broadcast %15 : vector<1x64xf32> to vector<30x64xf32>
    %536 = arith.addf %534, %535 : vector<30x64xf32>
    %cst_36 = arith.constant 0.000000e+00 : f32
    %537 = vector.broadcast %cst_36 : f32 to vector<30x64xf32>
    %538 = arith.maximumf %536, %537 : vector<30x64xf32>
    %539 = vector.broadcast %16 : vector<1x64xf32> to vector<30x64xf32>
    %540 = arith.mulf %538, %539 : vector<30x64xf32>
    %541 = vector.broadcast %17 : vector<1x64xf32> to vector<30x64xf32>
    %542 = arith.addf %540, %541 : vector<30x64xf32>
    %543 = vector.extract_strided_slice %208 {offsets = [0, 0], sizes = [30, 64], strides = [1, 1]} : vector<31x64xbf16> to vector<30x64xbf16>
    %544 = vector.extract_strided_slice %280 {offsets = [0, 0], sizes = [30, 64], strides = [1, 1]} : vector<31x64xbf16> to vector<30x64xbf16>
    %545 = vector.extract_strided_slice %208 {offsets = [1, 0], sizes = [30, 64], strides = [1, 1]} : vector<31x64xbf16> to vector<30x64xbf16>
    %546 = vector.extract_strided_slice %280 {offsets = [1, 0], sizes = [30, 64], strides = [1, 1]} : vector<31x64xbf16> to vector<30x64xbf16>
    %547 = tpu.concatenate %543, %544, %545, %546 in 1 : vector<30x64xbf16>, vector<30x64xbf16>, vector<30x64xbf16>, vector<30x64xbf16> -> vector<30x256xbf16>
    %cst_37 = arith.constant dense<0.000000e+00> : vector<30x64xf32>
    %548 = tpu.matmul %547, %2, %cst_37 {dimension_numbers = #tpu.dot_dimension_numbers<[1], [0], [0], [1], [0, 0, 1, 1], [], []>} : vector<30x256xbf16>, vector<256x64xbf16>, vector<30x64xf32> -> vector<30x64xf32>
    %549 = vector.broadcast %15 : vector<1x64xf32> to vector<30x64xf32>
    %550 = arith.addf %548, %549 : vector<30x64xf32>
    %cst_38 = arith.constant 0.000000e+00 : f32
    %551 = vector.broadcast %cst_38 : f32 to vector<30x64xf32>
    %552 = arith.maximumf %550, %551 : vector<30x64xf32>
    %553 = vector.broadcast %16 : vector<1x64xf32> to vector<30x64xf32>
    %554 = arith.mulf %552, %553 : vector<30x64xf32>
    %555 = vector.broadcast %17 : vector<1x64xf32> to vector<30x64xf32>
    %556 = arith.addf %554, %555 : vector<30x64xf32>
    %557 = vector.extract_strided_slice %384 {offsets = [0, 0], sizes = [30, 64], strides = [1, 1]} : vector<31x64xbf16> to vector<30x64xbf16>
    %558 = vector.extract_strided_slice %456 {offsets = [0, 0], sizes = [30, 64], strides = [1, 1]} : vector<31x64xbf16> to vector<30x64xbf16>
    %559 = vector.extract_strided_slice %384 {offsets = [1, 0], sizes = [30, 64], strides = [1, 1]} : vector<31x64xbf16> to vector<30x64xbf16>
    %560 = vector.extract_strided_slice %456 {offsets = [1, 0], sizes = [30, 64], strides = [1, 1]} : vector<31x64xbf16> to vector<30x64xbf16>
    %561 = tpu.concatenate %557, %558, %559, %560 in 1 : vector<30x64xbf16>, vector<30x64xbf16>, vector<30x64xbf16>, vector<30x64xbf16> -> vector<30x256xbf16>
    %cst_39 = arith.constant dense<0.000000e+00> : vector<30x64xf32>
    %562 = tpu.matmul %561, %2, %cst_39 {dimension_numbers = #tpu.dot_dimension_numbers<[1], [0], [0], [1], [0, 0, 1, 1], [], []>} : vector<30x256xbf16>, vector<256x64xbf16>, vector<30x64xf32> -> vector<30x64xf32>
    %563 = vector.broadcast %15 : vector<1x64xf32> to vector<30x64xf32>
    %564 = arith.addf %562, %563 : vector<30x64xf32>
    %cst_40 = arith.constant 0.000000e+00 : f32
    %565 = vector.broadcast %cst_40 : f32 to vector<30x64xf32>
    %566 = arith.maximumf %564, %565 : vector<30x64xf32>
    %567 = vector.broadcast %16 : vector<1x64xf32> to vector<30x64xf32>
    %568 = arith.mulf %566, %567 : vector<30x64xf32>
    %569 = vector.broadcast %17 : vector<1x64xf32> to vector<30x64xf32>
    %570 = arith.addf %568, %569 : vector<30x64xf32>
    %571 = vector.extract_strided_slice %456 {offsets = [0, 0], sizes = [30, 64], strides = [1, 1]} : vector<31x64xbf16> to vector<30x64xbf16>
    %572 = vector.extract_strided_slice %528 {offsets = [0, 0], sizes = [30, 64], strides = [1, 1]} : vector<31x64xbf16> to vector<30x64xbf16>
    %573 = vector.extract_strided_slice %456 {offsets = [1, 0], sizes = [30, 64], strides = [1, 1]} : vector<31x64xbf16> to vector<30x64xbf16>
    %574 = vector.extract_strided_slice %528 {offsets = [1, 0], sizes = [30, 64], strides = [1, 1]} : vector<31x64xbf16> to vector<30x64xbf16>
    %575 = tpu.concatenate %571, %572, %573, %574 in 1 : vector<30x64xbf16>, vector<30x64xbf16>, vector<30x64xbf16>, vector<30x64xbf16> -> vector<30x256xbf16>
    %cst_41 = arith.constant dense<0.000000e+00> : vector<30x64xf32>
    %576 = tpu.matmul %575, %2, %cst_41 {dimension_numbers = #tpu.dot_dimension_numbers<[1], [0], [0], [1], [0, 0, 1, 1], [], []>} : vector<30x256xbf16>, vector<256x64xbf16>, vector<30x64xf32> -> vector<30x64xf32>
    %577 = vector.broadcast %15 : vector<1x64xf32> to vector<30x64xf32>
    %578 = arith.addf %576, %577 : vector<30x64xf32>
    %cst_42 = arith.constant 0.000000e+00 : f32
    %579 = vector.broadcast %cst_42 : f32 to vector<30x64xf32>
    %580 = arith.maximumf %578, %579 : vector<30x64xf32>
    %581 = vector.broadcast %16 : vector<1x64xf32> to vector<30x64xf32>
    %582 = arith.mulf %580, %581 : vector<30x64xf32>
    %583 = vector.broadcast %17 : vector<1x64xf32> to vector<30x64xf32>
    %584 = arith.addf %582, %583 : vector<30x64xf32>
    %585 = tpu.concatenate %542, %556, %570, %584 in 1 : vector<30x64xf32>, vector<30x64xf32>, vector<30x64xf32>, vector<30x64xf32> -> vector<30x256xf32>
    %586 = vector.extract_strided_slice %585 {offsets = [1, 0], sizes = [28, 256], strides = [1, 1]} : vector<30x256xf32> to vector<28x256xf32>
    %587 = vector.extract_strided_slice %585 {offsets = [2, 0], sizes = [28, 256], strides = [1, 1]} : vector<30x256xf32> to vector<28x256xf32>
    %588 = arith.maximumf %586, %587 : vector<28x256xf32>
    %589 = arith.truncf %588 : vector<28x256xf32> to vector<28x256xbf16>
    %cst_43 = arith.constant dense<0.000000e+00> : vector<14x256xf32>
    %590 = tpu.matmul %32, %589, %cst_43 {dimension_numbers = #tpu.dot_dimension_numbers<[1], [0], [0], [1], [0, 0, 1, 1], [], []>} : vector<14x28xbf16>, vector<28x256xbf16>, vector<14x256xf32> -> vector<14x256xf32>
    %591 = vector.extract_strided_slice %585 {offsets = [0, 0], sizes = [1, 256], strides = [1, 1]} : vector<30x256xf32> to vector<1x256xf32>
    %592 = vector.extract_strided_slice %585 {offsets = [29, 0], sizes = [1, 256], strides = [1, 1]} : vector<30x256xf32> to vector<1x256xf32>
    %593 = tpu.concatenate %591, %590, %592 in 0 : vector<1x256xf32>, vector<14x256xf32>, vector<1x256xf32> -> vector<16x256xf32>
    %594 = arith.truncf %593 : vector<16x256xf32> to vector<16x256xbf16>
    %595 = vector.extract_strided_slice %594 {offsets = [0, 0], sizes = [16, 64], strides = [1, 1]} : vector<16x256xbf16> to vector<16x64xbf16>
    %596 = vector.extract_strided_slice %594 {offsets = [0, 64], sizes = [16, 64], strides = [1, 1]} : vector<16x256xbf16> to vector<16x64xbf16>
    %597 = vector.extract_strided_slice %595 {offsets = [0, 0], sizes = [15, 64], strides = [1, 1]} : vector<16x64xbf16> to vector<15x64xbf16>
    %598 = vector.extract_strided_slice %596 {offsets = [0, 0], sizes = [15, 64], strides = [1, 1]} : vector<16x64xbf16> to vector<15x64xbf16>
    %599 = vector.extract_strided_slice %595 {offsets = [1, 0], sizes = [15, 64], strides = [1, 1]} : vector<16x64xbf16> to vector<15x64xbf16>
    %600 = vector.extract_strided_slice %596 {offsets = [1, 0], sizes = [15, 64], strides = [1, 1]} : vector<16x64xbf16> to vector<15x64xbf16>
    %601 = tpu.concatenate %597, %598, %599, %600 in 1 : vector<15x64xbf16>, vector<15x64xbf16>, vector<15x64xbf16>, vector<15x64xbf16> -> vector<15x256xbf16>
    %cst_44 = arith.constant dense<0.000000e+00> : vector<15x32xf32>
    %602 = tpu.matmul %601, %3, %cst_44 {dimension_numbers = #tpu.dot_dimension_numbers<[1], [0], [0], [1], [0, 0, 1, 1], [], []>} : vector<15x256xbf16>, vector<256x32xbf16>, vector<15x32xf32> -> vector<15x32xf32>
    %603 = vector.broadcast %18 : vector<1x32xf32> to vector<15x32xf32>
    %604 = arith.addf %602, %603 : vector<15x32xf32>
    %cst_45 = arith.constant 0.000000e+00 : f32
    %605 = vector.broadcast %cst_45 : f32 to vector<15x32xf32>
    %606 = arith.maximumf %604, %605 : vector<15x32xf32>
    %607 = vector.broadcast %19 : vector<1x32xf32> to vector<15x32xf32>
    %608 = arith.mulf %606, %607 : vector<15x32xf32>
    %609 = vector.broadcast %20 : vector<1x32xf32> to vector<15x32xf32>
    %610 = arith.addf %608, %609 : vector<15x32xf32>
    %611 = vector.extract_strided_slice %610 {offsets = [0, 0], sizes = [14, 32], strides = [1, 1]} : vector<15x32xf32> to vector<14x32xf32>
    %612 = vector.extract_strided_slice %610 {offsets = [1, 0], sizes = [14, 32], strides = [1, 1]} : vector<15x32xf32> to vector<14x32xf32>
    %613 = arith.maximumf %611, %612 : vector<14x32xf32>
    %614 = vector.extract_strided_slice %594 {offsets = [0, 128], sizes = [16, 64], strides = [1, 1]} : vector<16x256xbf16> to vector<16x64xbf16>
    %615 = vector.extract_strided_slice %594 {offsets = [0, 192], sizes = [16, 64], strides = [1, 1]} : vector<16x256xbf16> to vector<16x64xbf16>
    %616 = vector.extract_strided_slice %614 {offsets = [0, 0], sizes = [15, 64], strides = [1, 1]} : vector<16x64xbf16> to vector<15x64xbf16>
    %617 = vector.extract_strided_slice %615 {offsets = [0, 0], sizes = [15, 64], strides = [1, 1]} : vector<16x64xbf16> to vector<15x64xbf16>
    %618 = vector.extract_strided_slice %614 {offsets = [1, 0], sizes = [15, 64], strides = [1, 1]} : vector<16x64xbf16> to vector<15x64xbf16>
    %619 = vector.extract_strided_slice %615 {offsets = [1, 0], sizes = [15, 64], strides = [1, 1]} : vector<16x64xbf16> to vector<15x64xbf16>
    %620 = tpu.concatenate %616, %617, %618, %619 in 1 : vector<15x64xbf16>, vector<15x64xbf16>, vector<15x64xbf16>, vector<15x64xbf16> -> vector<15x256xbf16>
    %cst_46 = arith.constant dense<0.000000e+00> : vector<15x32xf32>
    %621 = tpu.matmul %620, %3, %cst_46 {dimension_numbers = #tpu.dot_dimension_numbers<[1], [0], [0], [1], [0, 0, 1, 1], [], []>} : vector<15x256xbf16>, vector<256x32xbf16>, vector<15x32xf32> -> vector<15x32xf32>
    %622 = vector.broadcast %18 : vector<1x32xf32> to vector<15x32xf32>
    %623 = arith.addf %621, %622 : vector<15x32xf32>
    %cst_47 = arith.constant 0.000000e+00 : f32
    %624 = vector.broadcast %cst_47 : f32 to vector<15x32xf32>
    %625 = arith.maximumf %623, %624 : vector<15x32xf32>
    %626 = vector.broadcast %19 : vector<1x32xf32> to vector<15x32xf32>
    %627 = arith.mulf %625, %626 : vector<15x32xf32>
    %628 = vector.broadcast %20 : vector<1x32xf32> to vector<15x32xf32>
    %629 = arith.addf %627, %628 : vector<15x32xf32>
    %630 = vector.extract_strided_slice %629 {offsets = [0, 0], sizes = [14, 32], strides = [1, 1]} : vector<15x32xf32> to vector<14x32xf32>
    %631 = vector.extract_strided_slice %629 {offsets = [1, 0], sizes = [14, 32], strides = [1, 1]} : vector<15x32xf32> to vector<14x32xf32>
    %632 = arith.maximumf %630, %631 : vector<14x32xf32>
    %633 = tpu.concatenate %613, %632 in 0 : vector<14x32xf32>, vector<14x32xf32> -> vector<28x32xf32>
    %634 = arith.truncf %633 : vector<28x32xf32> to vector<28x32xbf16>
    %cst_48 = arith.constant dense<0.000000e+00> : vector<14x32xf32>
    %635 = tpu.matmul %4, %634, %cst_48 {dimension_numbers = #tpu.dot_dimension_numbers<[1], [0], [0], [1], [0, 0, 1, 1], [], []>} : vector<14x28xbf16>, vector<28x32xbf16>, vector<14x32xf32> -> vector<14x32xf32>
    %636 = arith.truncf %635 : vector<14x32xf32> to vector<14x32xbf16>
    %cst_49 = arith.constant dense<0.000000e+00> : vector<14x512xf32>
    %637 = tpu.matmul %636, %5, %cst_49 {dimension_numbers = #tpu.dot_dimension_numbers<[1], [0], [0], [1], [0, 0, 1, 1], [], []>} : vector<14x32xbf16>, vector<32x512xbf16>, vector<14x512xf32> -> vector<14x512xf32>
    %638 = vector.broadcast %21 : vector<1x512xf32> to vector<14x512xf32>
    %639 = arith.addf %637, %638 : vector<14x512xf32>
    %cst_50 = arith.constant 0.000000e+00 : f32
    %640 = vector.broadcast %cst_50 : f32 to vector<2x128xf32>
    %641 = vector.extract_strided_slice %639 {offsets = [0, 0], sizes = [2, 512], strides = [1, 1]} : vector<14x512xf32> to vector<2x512xf32>
    %642 = vector.extract_strided_slice %641 {offsets = [0, 0], sizes = [2, 384], strides = [1, 1]} : vector<2x512xf32> to vector<2x384xf32>
    %643 = arith.negf %642 : vector<2x384xf32>
    %644 = math.exp %643 : vector<2x384xf32>
    %cst_51 = arith.constant 1.000000e+00 : f32
    %645 = vector.broadcast %cst_51 : f32 to vector<2x384xf32>
    %646 = arith.addf %645, %644 : vector<2x384xf32>
    %647 = arith.divf %645, %646 : vector<2x384xf32>
    %648 = vector.extract_strided_slice %641 {offsets = [0, 384], sizes = [2, 128], strides = [1, 1]} : vector<2x512xf32> to vector<2x128xf32>
    %649 = math.tanh %648 : vector<2x128xf32>
    %650 = vector.extract_strided_slice %647 {offsets = [0, 128], sizes = [2, 128], strides = [1, 1]} : vector<2x384xf32> to vector<2x128xf32>
    %651 = arith.mulf %650, %640 : vector<2x128xf32>
    %652 = vector.extract_strided_slice %647 {offsets = [0, 0], sizes = [2, 128], strides = [1, 1]} : vector<2x384xf32> to vector<2x128xf32>
    %653 = arith.mulf %652, %649 : vector<2x128xf32>
    %654 = arith.addf %651, %653 : vector<2x128xf32>
    %655 = vector.extract_strided_slice %647 {offsets = [0, 256], sizes = [2, 128], strides = [1, 1]} : vector<2x384xf32> to vector<2x128xf32>
    %656 = math.tanh %654 : vector<2x128xf32>
    %657 = arith.mulf %655, %656 : vector<2x128xf32>
    %658 = tpu.concatenate %657, %640 in 1 : vector<2x128xf32>, vector<2x128xf32> -> vector<2x256xf32>
    %659 = arith.truncf %658 : vector<2x256xf32> to vector<2x256xbf16>
    %cst_52 = arith.constant dense<0.000000e+00> : vector<2x1024xf32>
    %660 = tpu.matmul %659, %6, %cst_52 {dimension_numbers = #tpu.dot_dimension_numbers<[1], [0], [0], [1], [0, 0, 1, 1], [], []>} : vector<2x256xbf16>, vector<256x1024xbf16>, vector<2x1024xf32> -> vector<2x1024xf32>
    %661 = vector.extract_strided_slice %660 {offsets = [0, 0], sizes = [2, 512], strides = [1, 1]} : vector<2x1024xf32> to vector<2x512xf32>
    %662 = vector.extract_strided_slice %660 {offsets = [0, 512], sizes = [2, 512], strides = [1, 1]} : vector<2x1024xf32> to vector<2x512xf32>
    %663 = vector.broadcast %22 : vector<1x512xf32> to vector<2x512xf32>
    %664 = arith.addf %662, %663 : vector<2x512xf32>
    %665 = vector.extract_strided_slice %664 {offsets = [0, 0], sizes = [2, 384], strides = [1, 1]} : vector<2x512xf32> to vector<2x384xf32>
    %666 = arith.negf %665 : vector<2x384xf32>
    %667 = math.exp %666 : vector<2x384xf32>
    %cst_53 = arith.constant 1.000000e+00 : f32
    %668 = vector.broadcast %cst_53 : f32 to vector<2x384xf32>
    %669 = arith.addf %668, %667 : vector<2x384xf32>
    %670 = arith.divf %668, %669 : vector<2x384xf32>
    %671 = vector.extract_strided_slice %664 {offsets = [0, 384], sizes = [2, 128], strides = [1, 1]} : vector<2x512xf32> to vector<2x128xf32>
    %672 = math.tanh %671 : vector<2x128xf32>
    %673 = vector.extract_strided_slice %670 {offsets = [0, 128], sizes = [2, 128], strides = [1, 1]} : vector<2x384xf32> to vector<2x128xf32>
    %674 = arith.mulf %673, %640 : vector<2x128xf32>
    %675 = vector.extract_strided_slice %670 {offsets = [0, 0], sizes = [2, 128], strides = [1, 1]} : vector<2x384xf32> to vector<2x128xf32>
    %676 = arith.mulf %675, %672 : vector<2x128xf32>
    %677 = arith.addf %674, %676 : vector<2x128xf32>
    %678 = vector.extract_strided_slice %670 {offsets = [0, 256], sizes = [2, 128], strides = [1, 1]} : vector<2x384xf32> to vector<2x128xf32>
    %679 = math.tanh %677 : vector<2x128xf32>
    %680 = arith.mulf %678, %679 : vector<2x128xf32>
    %681 = vector.extract_strided_slice %639 {offsets = [2, 0], sizes = [2, 512], strides = [1, 1]} : vector<14x512xf32> to vector<2x512xf32>
    %682 = arith.addf %681, %661 : vector<2x512xf32>
    %683 = vector.extract_strided_slice %682 {offsets = [0, 0], sizes = [2, 384], strides = [1, 1]} : vector<2x512xf32> to vector<2x384xf32>
    %684 = arith.negf %683 : vector<2x384xf32>
    %685 = math.exp %684 : vector<2x384xf32>
    %cst_54 = arith.constant 1.000000e+00 : f32
    %686 = vector.broadcast %cst_54 : f32 to vector<2x384xf32>
    %687 = arith.addf %686, %685 : vector<2x384xf32>
    %688 = arith.divf %686, %687 : vector<2x384xf32>
    %689 = vector.extract_strided_slice %682 {offsets = [0, 384], sizes = [2, 128], strides = [1, 1]} : vector<2x512xf32> to vector<2x128xf32>
    %690 = math.tanh %689 : vector<2x128xf32>
    %691 = vector.extract_strided_slice %688 {offsets = [0, 128], sizes = [2, 128], strides = [1, 1]} : vector<2x384xf32> to vector<2x128xf32>
    %692 = arith.mulf %691, %654 : vector<2x128xf32>
    %693 = vector.extract_strided_slice %688 {offsets = [0, 0], sizes = [2, 128], strides = [1, 1]} : vector<2x384xf32> to vector<2x128xf32>
    %694 = arith.mulf %693, %690 : vector<2x128xf32>
    %695 = arith.addf %692, %694 : vector<2x128xf32>
    %696 = vector.extract_strided_slice %688 {offsets = [0, 256], sizes = [2, 128], strides = [1, 1]} : vector<2x384xf32> to vector<2x128xf32>
    %697 = math.tanh %695 : vector<2x128xf32>
    %698 = arith.mulf %696, %697 : vector<2x128xf32>
    %699 = tpu.concatenate %698, %680 in 1 : vector<2x128xf32>, vector<2x128xf32> -> vector<2x256xf32>
    %700 = arith.truncf %699 : vector<2x256xf32> to vector<2x256xbf16>
    %cst_55 = arith.constant dense<0.000000e+00> : vector<2x1024xf32>
    %701 = tpu.matmul %700, %6, %cst_55 {dimension_numbers = #tpu.dot_dimension_numbers<[1], [0], [0], [1], [0, 0, 1, 1], [], []>} : vector<2x256xbf16>, vector<256x1024xbf16>, vector<2x1024xf32> -> vector<2x1024xf32>
    %702 = vector.extract_strided_slice %701 {offsets = [0, 0], sizes = [2, 512], strides = [1, 1]} : vector<2x1024xf32> to vector<2x512xf32>
    %703 = vector.extract_strided_slice %701 {offsets = [0, 512], sizes = [2, 512], strides = [1, 1]} : vector<2x1024xf32> to vector<2x512xf32>
    %704 = vector.broadcast %22 : vector<1x512xf32> to vector<2x512xf32>
    %705 = arith.addf %703, %704 : vector<2x512xf32>
    %706 = vector.extract_strided_slice %705 {offsets = [0, 0], sizes = [2, 384], strides = [1, 1]} : vector<2x512xf32> to vector<2x384xf32>
    %707 = arith.negf %706 : vector<2x384xf32>
    %708 = math.exp %707 : vector<2x384xf32>
    %cst_56 = arith.constant 1.000000e+00 : f32
    %709 = vector.broadcast %cst_56 : f32 to vector<2x384xf32>
    %710 = arith.addf %709, %708 : vector<2x384xf32>
    %711 = arith.divf %709, %710 : vector<2x384xf32>
    %712 = vector.extract_strided_slice %705 {offsets = [0, 384], sizes = [2, 128], strides = [1, 1]} : vector<2x512xf32> to vector<2x128xf32>
    %713 = math.tanh %712 : vector<2x128xf32>
    %714 = vector.extract_strided_slice %711 {offsets = [0, 128], sizes = [2, 128], strides = [1, 1]} : vector<2x384xf32> to vector<2x128xf32>
    %715 = arith.mulf %714, %677 : vector<2x128xf32>
    %716 = vector.extract_strided_slice %711 {offsets = [0, 0], sizes = [2, 128], strides = [1, 1]} : vector<2x384xf32> to vector<2x128xf32>
    %717 = arith.mulf %716, %713 : vector<2x128xf32>
    %718 = arith.addf %715, %717 : vector<2x128xf32>
    %719 = vector.extract_strided_slice %711 {offsets = [0, 256], sizes = [2, 128], strides = [1, 1]} : vector<2x384xf32> to vector<2x128xf32>
    %720 = math.tanh %718 : vector<2x128xf32>
    %721 = arith.mulf %719, %720 : vector<2x128xf32>
    %722 = vector.extract_strided_slice %639 {offsets = [4, 0], sizes = [2, 512], strides = [1, 1]} : vector<14x512xf32> to vector<2x512xf32>
    %723 = arith.addf %722, %702 : vector<2x512xf32>
    %724 = vector.extract_strided_slice %723 {offsets = [0, 0], sizes = [2, 384], strides = [1, 1]} : vector<2x512xf32> to vector<2x384xf32>
    %725 = arith.negf %724 : vector<2x384xf32>
    %726 = math.exp %725 : vector<2x384xf32>
    %cst_57 = arith.constant 1.000000e+00 : f32
    %727 = vector.broadcast %cst_57 : f32 to vector<2x384xf32>
    %728 = arith.addf %727, %726 : vector<2x384xf32>
    %729 = arith.divf %727, %728 : vector<2x384xf32>
    %730 = vector.extract_strided_slice %723 {offsets = [0, 384], sizes = [2, 128], strides = [1, 1]} : vector<2x512xf32> to vector<2x128xf32>
    %731 = math.tanh %730 : vector<2x128xf32>
    %732 = vector.extract_strided_slice %729 {offsets = [0, 128], sizes = [2, 128], strides = [1, 1]} : vector<2x384xf32> to vector<2x128xf32>
    %733 = arith.mulf %732, %695 : vector<2x128xf32>
    %734 = vector.extract_strided_slice %729 {offsets = [0, 0], sizes = [2, 128], strides = [1, 1]} : vector<2x384xf32> to vector<2x128xf32>
    %735 = arith.mulf %734, %731 : vector<2x128xf32>
    %736 = arith.addf %733, %735 : vector<2x128xf32>
    %737 = vector.extract_strided_slice %729 {offsets = [0, 256], sizes = [2, 128], strides = [1, 1]} : vector<2x384xf32> to vector<2x128xf32>
    %738 = math.tanh %736 : vector<2x128xf32>
    %739 = arith.mulf %737, %738 : vector<2x128xf32>
    %740 = tpu.concatenate %739, %721 in 1 : vector<2x128xf32>, vector<2x128xf32> -> vector<2x256xf32>
    %741 = arith.truncf %740 : vector<2x256xf32> to vector<2x256xbf16>
    %cst_58 = arith.constant dense<0.000000e+00> : vector<2x1024xf32>
    %742 = tpu.matmul %741, %6, %cst_58 {dimension_numbers = #tpu.dot_dimension_numbers<[1], [0], [0], [1], [0, 0, 1, 1], [], []>} : vector<2x256xbf16>, vector<256x1024xbf16>, vector<2x1024xf32> -> vector<2x1024xf32>
    %743 = vector.extract_strided_slice %742 {offsets = [0, 0], sizes = [2, 512], strides = [1, 1]} : vector<2x1024xf32> to vector<2x512xf32>
    %744 = vector.extract_strided_slice %742 {offsets = [0, 512], sizes = [2, 512], strides = [1, 1]} : vector<2x1024xf32> to vector<2x512xf32>
    %745 = vector.broadcast %22 : vector<1x512xf32> to vector<2x512xf32>
    %746 = arith.addf %744, %745 : vector<2x512xf32>
    %747 = vector.extract_strided_slice %746 {offsets = [0, 0], sizes = [2, 384], strides = [1, 1]} : vector<2x512xf32> to vector<2x384xf32>
    %748 = arith.negf %747 : vector<2x384xf32>
    %749 = math.exp %748 : vector<2x384xf32>
    %cst_59 = arith.constant 1.000000e+00 : f32
    %750 = vector.broadcast %cst_59 : f32 to vector<2x384xf32>
    %751 = arith.addf %750, %749 : vector<2x384xf32>
    %752 = arith.divf %750, %751 : vector<2x384xf32>
    %753 = vector.extract_strided_slice %746 {offsets = [0, 384], sizes = [2, 128], strides = [1, 1]} : vector<2x512xf32> to vector<2x128xf32>
    %754 = math.tanh %753 : vector<2x128xf32>
    %755 = vector.extract_strided_slice %752 {offsets = [0, 128], sizes = [2, 128], strides = [1, 1]} : vector<2x384xf32> to vector<2x128xf32>
    %756 = arith.mulf %755, %718 : vector<2x128xf32>
    %757 = vector.extract_strided_slice %752 {offsets = [0, 0], sizes = [2, 128], strides = [1, 1]} : vector<2x384xf32> to vector<2x128xf32>
    %758 = arith.mulf %757, %754 : vector<2x128xf32>
    %759 = arith.addf %756, %758 : vector<2x128xf32>
    %760 = vector.extract_strided_slice %752 {offsets = [0, 256], sizes = [2, 128], strides = [1, 1]} : vector<2x384xf32> to vector<2x128xf32>
    %761 = math.tanh %759 : vector<2x128xf32>
    %762 = arith.mulf %760, %761 : vector<2x128xf32>
    %763 = vector.extract_strided_slice %639 {offsets = [6, 0], sizes = [2, 512], strides = [1, 1]} : vector<14x512xf32> to vector<2x512xf32>
    %764 = arith.addf %763, %743 : vector<2x512xf32>
    %765 = vector.extract_strided_slice %764 {offsets = [0, 0], sizes = [2, 384], strides = [1, 1]} : vector<2x512xf32> to vector<2x384xf32>
    %766 = arith.negf %765 : vector<2x384xf32>
    %767 = math.exp %766 : vector<2x384xf32>
    %cst_60 = arith.constant 1.000000e+00 : f32
    %768 = vector.broadcast %cst_60 : f32 to vector<2x384xf32>
    %769 = arith.addf %768, %767 : vector<2x384xf32>
    %770 = arith.divf %768, %769 : vector<2x384xf32>
    %771 = vector.extract_strided_slice %764 {offsets = [0, 384], sizes = [2, 128], strides = [1, 1]} : vector<2x512xf32> to vector<2x128xf32>
    %772 = math.tanh %771 : vector<2x128xf32>
    %773 = vector.extract_strided_slice %770 {offsets = [0, 128], sizes = [2, 128], strides = [1, 1]} : vector<2x384xf32> to vector<2x128xf32>
    %774 = arith.mulf %773, %736 : vector<2x128xf32>
    %775 = vector.extract_strided_slice %770 {offsets = [0, 0], sizes = [2, 128], strides = [1, 1]} : vector<2x384xf32> to vector<2x128xf32>
    %776 = arith.mulf %775, %772 : vector<2x128xf32>
    %777 = arith.addf %774, %776 : vector<2x128xf32>
    %778 = vector.extract_strided_slice %770 {offsets = [0, 256], sizes = [2, 128], strides = [1, 1]} : vector<2x384xf32> to vector<2x128xf32>
    %779 = math.tanh %777 : vector<2x128xf32>
    %780 = arith.mulf %778, %779 : vector<2x128xf32>
    %781 = tpu.concatenate %780, %762 in 1 : vector<2x128xf32>, vector<2x128xf32> -> vector<2x256xf32>
    %782 = arith.truncf %781 : vector<2x256xf32> to vector<2x256xbf16>
    %cst_61 = arith.constant dense<0.000000e+00> : vector<2x1024xf32>
    %783 = tpu.matmul %782, %6, %cst_61 {dimension_numbers = #tpu.dot_dimension_numbers<[1], [0], [0], [1], [0, 0, 1, 1], [], []>} : vector<2x256xbf16>, vector<256x1024xbf16>, vector<2x1024xf32> -> vector<2x1024xf32>
    %784 = vector.extract_strided_slice %783 {offsets = [0, 0], sizes = [2, 512], strides = [1, 1]} : vector<2x1024xf32> to vector<2x512xf32>
    %785 = vector.extract_strided_slice %783 {offsets = [0, 512], sizes = [2, 512], strides = [1, 1]} : vector<2x1024xf32> to vector<2x512xf32>
    %786 = vector.broadcast %22 : vector<1x512xf32> to vector<2x512xf32>
    %787 = arith.addf %785, %786 : vector<2x512xf32>
    %788 = vector.extract_strided_slice %787 {offsets = [0, 0], sizes = [2, 384], strides = [1, 1]} : vector<2x512xf32> to vector<2x384xf32>
    %789 = arith.negf %788 : vector<2x384xf32>
    %790 = math.exp %789 : vector<2x384xf32>
    %cst_62 = arith.constant 1.000000e+00 : f32
    %791 = vector.broadcast %cst_62 : f32 to vector<2x384xf32>
    %792 = arith.addf %791, %790 : vector<2x384xf32>
    %793 = arith.divf %791, %792 : vector<2x384xf32>
    %794 = vector.extract_strided_slice %787 {offsets = [0, 384], sizes = [2, 128], strides = [1, 1]} : vector<2x512xf32> to vector<2x128xf32>
    %795 = math.tanh %794 : vector<2x128xf32>
    %796 = vector.extract_strided_slice %793 {offsets = [0, 128], sizes = [2, 128], strides = [1, 1]} : vector<2x384xf32> to vector<2x128xf32>
    %797 = arith.mulf %796, %759 : vector<2x128xf32>
    %798 = vector.extract_strided_slice %793 {offsets = [0, 0], sizes = [2, 128], strides = [1, 1]} : vector<2x384xf32> to vector<2x128xf32>
    %799 = arith.mulf %798, %795 : vector<2x128xf32>
    %800 = arith.addf %797, %799 : vector<2x128xf32>
    %801 = vector.extract_strided_slice %793 {offsets = [0, 256], sizes = [2, 128], strides = [1, 1]} : vector<2x384xf32> to vector<2x128xf32>
    %802 = math.tanh %800 : vector<2x128xf32>
    %803 = arith.mulf %801, %802 : vector<2x128xf32>
    %804 = vector.extract_strided_slice %639 {offsets = [8, 0], sizes = [2, 512], strides = [1, 1]} : vector<14x512xf32> to vector<2x512xf32>
    %805 = arith.addf %804, %784 : vector<2x512xf32>
    %806 = vector.extract_strided_slice %805 {offsets = [0, 0], sizes = [2, 384], strides = [1, 1]} : vector<2x512xf32> to vector<2x384xf32>
    %807 = arith.negf %806 : vector<2x384xf32>
    %808 = math.exp %807 : vector<2x384xf32>
    %cst_63 = arith.constant 1.000000e+00 : f32
    %809 = vector.broadcast %cst_63 : f32 to vector<2x384xf32>
    %810 = arith.addf %809, %808 : vector<2x384xf32>
    %811 = arith.divf %809, %810 : vector<2x384xf32>
    %812 = vector.extract_strided_slice %805 {offsets = [0, 384], sizes = [2, 128], strides = [1, 1]} : vector<2x512xf32> to vector<2x128xf32>
    %813 = math.tanh %812 : vector<2x128xf32>
    %814 = vector.extract_strided_slice %811 {offsets = [0, 128], sizes = [2, 128], strides = [1, 1]} : vector<2x384xf32> to vector<2x128xf32>
    %815 = arith.mulf %814, %777 : vector<2x128xf32>
    %816 = vector.extract_strided_slice %811 {offsets = [0, 0], sizes = [2, 128], strides = [1, 1]} : vector<2x384xf32> to vector<2x128xf32>
    %817 = arith.mulf %816, %813 : vector<2x128xf32>
    %818 = arith.addf %815, %817 : vector<2x128xf32>
    %819 = vector.extract_strided_slice %811 {offsets = [0, 256], sizes = [2, 128], strides = [1, 1]} : vector<2x384xf32> to vector<2x128xf32>
    %820 = math.tanh %818 : vector<2x128xf32>
    %821 = arith.mulf %819, %820 : vector<2x128xf32>
    %822 = tpu.concatenate %821, %803 in 1 : vector<2x128xf32>, vector<2x128xf32> -> vector<2x256xf32>
    %823 = arith.truncf %822 : vector<2x256xf32> to vector<2x256xbf16>
    %cst_64 = arith.constant dense<0.000000e+00> : vector<2x1024xf32>
    %824 = tpu.matmul %823, %6, %cst_64 {dimension_numbers = #tpu.dot_dimension_numbers<[1], [0], [0], [1], [0, 0, 1, 1], [], []>} : vector<2x256xbf16>, vector<256x1024xbf16>, vector<2x1024xf32> -> vector<2x1024xf32>
    %825 = vector.extract_strided_slice %824 {offsets = [0, 0], sizes = [2, 512], strides = [1, 1]} : vector<2x1024xf32> to vector<2x512xf32>
    %826 = vector.extract_strided_slice %824 {offsets = [0, 512], sizes = [2, 512], strides = [1, 1]} : vector<2x1024xf32> to vector<2x512xf32>
    %827 = vector.broadcast %22 : vector<1x512xf32> to vector<2x512xf32>
    %828 = arith.addf %826, %827 : vector<2x512xf32>
    %829 = vector.extract_strided_slice %828 {offsets = [0, 0], sizes = [2, 384], strides = [1, 1]} : vector<2x512xf32> to vector<2x384xf32>
    %830 = arith.negf %829 : vector<2x384xf32>
    %831 = math.exp %830 : vector<2x384xf32>
    %cst_65 = arith.constant 1.000000e+00 : f32
    %832 = vector.broadcast %cst_65 : f32 to vector<2x384xf32>
    %833 = arith.addf %832, %831 : vector<2x384xf32>
    %834 = arith.divf %832, %833 : vector<2x384xf32>
    %835 = vector.extract_strided_slice %828 {offsets = [0, 384], sizes = [2, 128], strides = [1, 1]} : vector<2x512xf32> to vector<2x128xf32>
    %836 = math.tanh %835 : vector<2x128xf32>
    %837 = vector.extract_strided_slice %834 {offsets = [0, 128], sizes = [2, 128], strides = [1, 1]} : vector<2x384xf32> to vector<2x128xf32>
    %838 = arith.mulf %837, %800 : vector<2x128xf32>
    %839 = vector.extract_strided_slice %834 {offsets = [0, 0], sizes = [2, 128], strides = [1, 1]} : vector<2x384xf32> to vector<2x128xf32>
    %840 = arith.mulf %839, %836 : vector<2x128xf32>
    %841 = arith.addf %838, %840 : vector<2x128xf32>
    %842 = vector.extract_strided_slice %834 {offsets = [0, 256], sizes = [2, 128], strides = [1, 1]} : vector<2x384xf32> to vector<2x128xf32>
    %843 = math.tanh %841 : vector<2x128xf32>
    %844 = arith.mulf %842, %843 : vector<2x128xf32>
    %845 = vector.extract_strided_slice %639 {offsets = [10, 0], sizes = [2, 512], strides = [1, 1]} : vector<14x512xf32> to vector<2x512xf32>
    %846 = arith.addf %845, %825 : vector<2x512xf32>
    %847 = vector.extract_strided_slice %846 {offsets = [0, 0], sizes = [2, 384], strides = [1, 1]} : vector<2x512xf32> to vector<2x384xf32>
    %848 = arith.negf %847 : vector<2x384xf32>
    %849 = math.exp %848 : vector<2x384xf32>
    %cst_66 = arith.constant 1.000000e+00 : f32
    %850 = vector.broadcast %cst_66 : f32 to vector<2x384xf32>
    %851 = arith.addf %850, %849 : vector<2x384xf32>
    %852 = arith.divf %850, %851 : vector<2x384xf32>
    %853 = vector.extract_strided_slice %846 {offsets = [0, 384], sizes = [2, 128], strides = [1, 1]} : vector<2x512xf32> to vector<2x128xf32>
    %854 = math.tanh %853 : vector<2x128xf32>
    %855 = vector.extract_strided_slice %852 {offsets = [0, 128], sizes = [2, 128], strides = [1, 1]} : vector<2x384xf32> to vector<2x128xf32>
    %856 = arith.mulf %855, %818 : vector<2x128xf32>
    %857 = vector.extract_strided_slice %852 {offsets = [0, 0], sizes = [2, 128], strides = [1, 1]} : vector<2x384xf32> to vector<2x128xf32>
    %858 = arith.mulf %857, %854 : vector<2x128xf32>
    %859 = arith.addf %856, %858 : vector<2x128xf32>
    %860 = vector.extract_strided_slice %852 {offsets = [0, 256], sizes = [2, 128], strides = [1, 1]} : vector<2x384xf32> to vector<2x128xf32>
    %861 = math.tanh %859 : vector<2x128xf32>
    %862 = arith.mulf %860, %861 : vector<2x128xf32>
    %863 = tpu.concatenate %862, %844 in 1 : vector<2x128xf32>, vector<2x128xf32> -> vector<2x256xf32>
    %864 = arith.truncf %863 : vector<2x256xf32> to vector<2x256xbf16>
    %cst_67 = arith.constant dense<0.000000e+00> : vector<2x1024xf32>
    %865 = tpu.matmul %864, %6, %cst_67 {dimension_numbers = #tpu.dot_dimension_numbers<[1], [0], [0], [1], [0, 0, 1, 1], [], []>} : vector<2x256xbf16>, vector<256x1024xbf16>, vector<2x1024xf32> -> vector<2x1024xf32>
    %866 = vector.extract_strided_slice %865 {offsets = [0, 0], sizes = [2, 512], strides = [1, 1]} : vector<2x1024xf32> to vector<2x512xf32>
    %867 = vector.extract_strided_slice %865 {offsets = [0, 512], sizes = [2, 512], strides = [1, 1]} : vector<2x1024xf32> to vector<2x512xf32>
    %868 = vector.broadcast %22 : vector<1x512xf32> to vector<2x512xf32>
    %869 = arith.addf %867, %868 : vector<2x512xf32>
    %870 = vector.extract_strided_slice %869 {offsets = [0, 0], sizes = [2, 384], strides = [1, 1]} : vector<2x512xf32> to vector<2x384xf32>
    %871 = arith.negf %870 : vector<2x384xf32>
    %872 = math.exp %871 : vector<2x384xf32>
    %cst_68 = arith.constant 1.000000e+00 : f32
    %873 = vector.broadcast %cst_68 : f32 to vector<2x384xf32>
    %874 = arith.addf %873, %872 : vector<2x384xf32>
    %875 = arith.divf %873, %874 : vector<2x384xf32>
    %876 = vector.extract_strided_slice %869 {offsets = [0, 384], sizes = [2, 128], strides = [1, 1]} : vector<2x512xf32> to vector<2x128xf32>
    %877 = math.tanh %876 : vector<2x128xf32>
    %878 = vector.extract_strided_slice %875 {offsets = [0, 128], sizes = [2, 128], strides = [1, 1]} : vector<2x384xf32> to vector<2x128xf32>
    %879 = arith.mulf %878, %841 : vector<2x128xf32>
    %880 = vector.extract_strided_slice %875 {offsets = [0, 0], sizes = [2, 128], strides = [1, 1]} : vector<2x384xf32> to vector<2x128xf32>
    %881 = arith.mulf %880, %877 : vector<2x128xf32>
    %882 = arith.addf %879, %881 : vector<2x128xf32>
    %883 = vector.extract_strided_slice %875 {offsets = [0, 256], sizes = [2, 128], strides = [1, 1]} : vector<2x384xf32> to vector<2x128xf32>
    %884 = math.tanh %882 : vector<2x128xf32>
    %885 = arith.mulf %883, %884 : vector<2x128xf32>
    %886 = vector.extract_strided_slice %639 {offsets = [12, 0], sizes = [2, 512], strides = [1, 1]} : vector<14x512xf32> to vector<2x512xf32>
    %887 = arith.addf %886, %866 : vector<2x512xf32>
    %888 = vector.extract_strided_slice %887 {offsets = [0, 0], sizes = [2, 384], strides = [1, 1]} : vector<2x512xf32> to vector<2x384xf32>
    %889 = arith.negf %888 : vector<2x384xf32>
    %890 = math.exp %889 : vector<2x384xf32>
    %cst_69 = arith.constant 1.000000e+00 : f32
    %891 = vector.broadcast %cst_69 : f32 to vector<2x384xf32>
    %892 = arith.addf %891, %890 : vector<2x384xf32>
    %893 = arith.divf %891, %892 : vector<2x384xf32>
    %894 = vector.extract_strided_slice %887 {offsets = [0, 384], sizes = [2, 128], strides = [1, 1]} : vector<2x512xf32> to vector<2x128xf32>
    %895 = math.tanh %894 : vector<2x128xf32>
    %896 = vector.extract_strided_slice %893 {offsets = [0, 128], sizes = [2, 128], strides = [1, 1]} : vector<2x384xf32> to vector<2x128xf32>
    %897 = arith.mulf %896, %859 : vector<2x128xf32>
    %898 = vector.extract_strided_slice %893 {offsets = [0, 0], sizes = [2, 128], strides = [1, 1]} : vector<2x384xf32> to vector<2x128xf32>
    %899 = arith.mulf %898, %895 : vector<2x128xf32>
    %900 = arith.addf %897, %899 : vector<2x128xf32>
    %901 = vector.extract_strided_slice %893 {offsets = [0, 256], sizes = [2, 128], strides = [1, 1]} : vector<2x384xf32> to vector<2x128xf32>
    %902 = math.tanh %900 : vector<2x128xf32>
    %903 = arith.mulf %901, %902 : vector<2x128xf32>
    %904 = tpu.concatenate %903, %885 in 1 : vector<2x128xf32>, vector<2x128xf32> -> vector<2x256xf32>
    %905 = arith.truncf %904 : vector<2x256xf32> to vector<2x256xbf16>
    %cst_70 = arith.constant dense<0.000000e+00> : vector<2x1024xf32>
    %906 = tpu.matmul %905, %6, %cst_70 {dimension_numbers = #tpu.dot_dimension_numbers<[1], [0], [0], [1], [0, 0, 1, 1], [], []>} : vector<2x256xbf16>, vector<256x1024xbf16>, vector<2x1024xf32> -> vector<2x1024xf32>
    %907 = vector.extract_strided_slice %906 {offsets = [0, 512], sizes = [2, 512], strides = [1, 1]} : vector<2x1024xf32> to vector<2x512xf32>
    %908 = vector.broadcast %22 : vector<1x512xf32> to vector<2x512xf32>
    %909 = arith.addf %907, %908 : vector<2x512xf32>
    %910 = vector.extract_strided_slice %909 {offsets = [0, 0], sizes = [2, 384], strides = [1, 1]} : vector<2x512xf32> to vector<2x384xf32>
    %911 = arith.negf %910 : vector<2x384xf32>
    %912 = math.exp %911 : vector<2x384xf32>
    %cst_71 = arith.constant 1.000000e+00 : f32
    %913 = vector.broadcast %cst_71 : f32 to vector<2x384xf32>
    %914 = arith.addf %913, %912 : vector<2x384xf32>
    %915 = arith.divf %913, %914 : vector<2x384xf32>
    %916 = vector.extract_strided_slice %909 {offsets = [0, 384], sizes = [2, 128], strides = [1, 1]} : vector<2x512xf32> to vector<2x128xf32>
    %917 = math.tanh %916 : vector<2x128xf32>
    %918 = vector.extract_strided_slice %915 {offsets = [0, 128], sizes = [2, 128], strides = [1, 1]} : vector<2x384xf32> to vector<2x128xf32>
    %919 = arith.mulf %918, %882 : vector<2x128xf32>
    %920 = vector.extract_strided_slice %915 {offsets = [0, 0], sizes = [2, 128], strides = [1, 1]} : vector<2x384xf32> to vector<2x128xf32>
    %921 = arith.mulf %920, %917 : vector<2x128xf32>
    %922 = arith.addf %919, %921 : vector<2x128xf32>
    %923 = vector.extract_strided_slice %915 {offsets = [0, 256], sizes = [2, 128], strides = [1, 1]} : vector<2x384xf32> to vector<2x128xf32>
    %924 = math.tanh %922 : vector<2x128xf32>
    %925 = arith.mulf %923, %924 : vector<2x128xf32>
    %926 = arith.truncf %925 : vector<2x128xf32> to vector<2x128xbf16>
    %cst_72 = arith.constant dense<0.000000e+00> : vector<2x10xf32>
    %927 = tpu.matmul %926, %7, %cst_72 {dimension_numbers = #tpu.dot_dimension_numbers<[1], [0], [0], [1], [0, 0, 1, 1], [], []>} : vector<2x128xbf16>, vector<128x10xbf16>, vector<2x10xf32> -> vector<2x10xf32>
    %928 = vector.broadcast %23 : vector<1x10xf32> to vector<2x10xf32>
    %929 = arith.addf %927, %928 : vector<2x10xf32>
    %cst_73 = arith.constant dense<0xFF800000> : vector<2xf32>
    %930 = vector.multi_reduction <maximumf>, %929, %cst_73 [1] : vector<2x10xf32> to vector<2xf32>
    %931 = vector.shape_cast %930 : vector<2xf32> to vector<2x1xf32>
    %932 = vector.broadcast %931 : vector<2x1xf32> to vector<2x10xf32>
    %933 = arith.subf %929, %932 : vector<2x10xf32>
    %934 = math.exp %933 : vector<2x10xf32>
    %cst_74 = arith.constant dense<0.000000e+00> : vector<2xf32>
    %935 = vector.multi_reduction <add>, %934, %cst_74 [1] : vector<2x10xf32> to vector<2xf32>
    %936 = vector.shape_cast %935 : vector<2xf32> to vector<2x1xf32>
    %937 = math.log %936 : vector<2x1xf32>
    %938 = arith.addf %931, %937 : vector<2x1xf32>
    %939 = vector.broadcast %938 : vector<2x1xf32> to vector<2x10xf32>
    %940 = arith.subf %929, %939 : vector<2x10xf32>
    %c0_75 = arith.constant 0 : index
    %c0_76 = arith.constant 0 : index
    %941 = vector.load %arg8[%c0_75, %c0_76] : memref<2x10xf32, #tpu.memory_space<vmem>>, vector<2x10xf32>
    tpu.vector_store %arg8[%c0_75, %c0_76], %940 {strides = array<i32>} : memref<2x10xf32, #tpu.memory_space<vmem>>, vector<2x10xf32>,
    return
  }
}

</mosaic_0001>

<bundles_post_ra>
// kernel: smalllstm_forward.1
= control target key start
LH: loop header
LB: loop body
LE: loop exit
PB: predicated region body
PF: predicated region fallthrough
CT: control target
= control target key end

     0   :  { %13 = vsyncpa [#allocation3], 0  ;;  %s10198_s0 = inlined_call_operand.vmem [shape: f32[2,32,10], index: 0, kind: input, shape index: {}]   ;;  %s10199_s1 = inlined_call_operand.vmem [shape: f32[16,512], index: 1, kind: input, shape index: {}]   ;;  %s10200_s2 = inlined_call_operand.vmem [shape: bf16[256,64], index: 2, kind: input, shape index: {}]   ;;  %s10201_s3 = inlined_call_operand.vmem [shape: bf16[256,32], index: 3, kind: input, shape index: {}]   ;;  %s10202_s4 = inlined_call_operand.vmem [shape: bf16[14,28], index: 4, kind: input, shape index: {}]   ;;  %s10203_s5 = inlined_call_operand.vmem [shape: bf16[32,512], index: 5, kind: input, shape index: {}]   ;;  %s10204_s6 = inlined_call_operand.hbm [shape: bf16[256,1024], index: 6, kind: input, shape index: {}]   ;;  %s10205_s7 = inlined_call_operand.vmem [shape: bf16[128,10], index: 7, kind: input, shape index: {}]   ;;  %s10206_s8 = inlined_call_operand.hbm [shape: f32[2,10], index: 8, kind: output, shape index: {}]  }
   0x1   :  { %14 = vsyncpa [#allocation4], 0  ;;  %s6456_s27 = smov [#allocation2]   ;;  %s6408_s9 = scalar_lea.hbm %s10204_s6, 16384 }
   0x2   :  { %s32_s28 = sshll.u32 %s6456_s27, 4  ;;  %p6409_p0 = scmp.ne.s32.totalorder %s10204_s6, %s6408_s9  ;;  %s33_s28 = int_to_ptr.vmem [resolvable:$true] %s32_s28 }
   0x3   :  { %p6412_p1 = scmp.lt.u32.totalorder %s6408_s9, %s10204_s6 }
   0x5   :  { %p6414_p2 = pnand %p6412_p1, %p6409_p0 }
   0x7   :  { %6417 = shalt.err (!%p6414_p2)
}
   0x8   :  { %s6418_s14 = scalar_lea.vmem %s33_s28, 16384  ;;  %p6423_p4 = scmp.lt.s32.totalorder %s33_s28, %s33_s28 }
   0x9   :  { %p6419_p3 = scmp.ne.s32.totalorder %s33_s28, %s6418_s14  ;;  %p6424_p5 = scmp.lt.s32.totalorder %s6418_s14, %s6418_s14 }
   0xb   :  { %p6425_p6 = por %p6424_p5, %p6423_p4 }
   0xd   :  { %p6426_p7 = pnand %p6425_p6, %p6419_p3 }
   0xf   :  { %6429 = shalt.err (!%p6426_p7)
}
  0x10   :  { %s6457_s15 = smov 512   ;;  %s6458_s16 = smov 32  }
  0x11   :  { %38 = dma.hbm_to_vmem [thread:$0]  %s10204_s6, 16384, %s33_s28, [#allocation3], %s6457_s15, %s6457_s15, %s6458_s16  }
  0x12   :  { %6452 = dma.done.wait [#allocation3], 16384  }
  0x13   :  { %6453 = vsyncadd [#allocation3], 4294950912  ;;  %v6459_v0 = vmov 8   ;;  %v6460_v1 = vmov 6   ;;  %v6535_v2 = vld [vmem:[%s10198_s0 + $0x10] sm:$0xff]  ;;  %v6540_v3 = vld [vmem:[%s10198_s0 + $0x8] sm:$0xff]  ;;  %v10210_v16 = vlaneseq }
  0x14   :  { %6031 = vset.pattern.permute.xlu0 %v6459_v0  ;;  %6028 = vset.pattern.permute.xlu1 %v6460_v1  ;;  %v6547_v4 = vld [vmem:[%s10198_s0] sm:$0xff]  ;;  %v6461_v5 = vmov 7   ;;  %v10213_v6 = vmov 9   ;;  %v6555_v7 = vld [vmem:[%s10198_s0 + $0x18] sm:$0xff]  ;;  %v6567_v8 = vld [vmem:[%s10198_s0 + $0x28] sm:$0xff]  ;;  %v6463_v12 = vmov 4  }
  0x15   :  { %814 = vperm.xlu1 %6028, %v6535_v2   ;;  %996 = vperm.xlu0 %6031, %v6540_v3   ;;  %v49_v9 = vld [vmem:[%s10198_s0 + $0x20] sm:$0xff]  ;;  %v6587_v10 = vld [vmem:[%s10198_s0 + $0x30] sm:$0xff]  ;;  %v6595_v11 = vld [vmem:[%s10198_s0 + $0x38] sm:$0xff]  ;;  %v10218_v13 = vmov 5   ;;  %v6465_v14 = vmov 3   ;;  %v10214_v15 = vmov 1  }
  0x16   :  { %v6634_v17 = vshrl.u32 %v10210_v16, 7  ;;  %v53_v21 = vld [vmem:[%s10199_s1] sm:$0xff]  ;;  %vm356_vm0 = vcmask 1046528   ;;  %s6469_s9 = smov 64   ;;  %vm2043_vm1 = vsmask.f32 7424 }
  0x17   :  { %vm2078_vm2 = vcmask 523264   ;;  %vm2695_vm5 = vcmask 1045504   ;;  %vm2691_vm6 = vcmask 228352   ;;  %vm2749_vm7 = vcmask 1040384  }
  0x18   :  { %10580 = vst [vmem:[#allocation8_spill] sm:$0xff] %v6634_v17  ;;  %v10208_v20 = vsub.s32 3, %v6634_v17  ;;  %v10209_v22 = vsub.s32 2, %v6634_v17  ;;  %v10212_v23 = vsub.s32 0, %v6634_v17  ;;  %v10211_v24 = vsub.s32 1, %v6634_v17 }
  0x19   :  { %6029 = vset.pattern.permute.xlu1 %v6461_v5  ;;  %1000 = vperm.xlu0 %6031, %v6535_v2   ;;  %v10207_v29 = vsub.s32 4, %v6634_v17  ;;  %v6656_v30 = vsub.s32 5, %v6634_v17  ;;  %v6667_v33 = vsub.s32 6, %v6634_v17  ;;  %vm6471_vm8 = vmmov 0  }
  0x1a   :  { %902 = vperm.xlu1 %6029, %v6547_v4   ;;  %v6647_v26 = vrot.slane %v53_v21, %v10208_v20  ;;  %v6652_v28 = vrot.slane %v53_v21, %v10209_v22  ;;  %v6660_v31 = vrot.slane %v53_v21, %v10212_v23  ;;  %v6664_v32 = vrot.slane %v53_v21, %v10211_v24 }
  0x1b   :  { %10581 = vst [vmem:[#allocation9_spill] sm:$0xff] %v6656_v30  ;;  %10582 = vst [vmem:[#allocation10_spill] sm:$0xff] %v6667_v33  ;;  %v6685_v40 = vrot.slane %v53_v21, %v10207_v29  ;;  %v6694_v43 = vrot.slane %v53_v21, %v6656_v30  ;;  %v6701_v46 = vrot.slane %v53_v21, %v6667_v33  ;;  %vm3130_vm9 = vcmask 261120  }
  0x1c   :  { %vm5560_vm10 = vcmask 74752  }
  0x1d   :  { %6035 = vset.pattern.permute.xlu0 %v10213_v6  ;;  %10584 = vst [vmem:[#allocation12_spill] sm:$0xff] %v6701_v46 }
  0x1e   :  { %1086 = vperm.xlu0 %6035, %v6547_v4   ;;  %910 = vperm.xlu1 %6029, %v6535_v2  }
  0x22   :  { %1098 = vperm.xlu0 %6035, %v6555_v7   ;;  %6030 = vset.pattern.permute.xlu1 %v6459_v0 }
  0x23   :  { %992 = vperm.xlu1 %6030, %v6547_v4  }
  0x26   :  { %6037 = vset.pattern.permute.xlu0 %v6460_v1 }
  0x27   :  { %806 = vperm.xlu0 %6037, %v6547_v4   ;;  %6032 = vset.pattern.permute.xlu1 %v6460_v1 }
  0x28   :  { %818 = vperm.xlu1 %6032, %v6555_v7  }
  0x2b   :  { %810 = vperm.xlu0 %6037, %v6540_v3  }
  0x2c   :  { %6033 = vset.pattern.permute.xlu1 %v6461_v5 }
  0x2d   :  { %914 = vperm.xlu1 %6033, %v6555_v7  }
  0x2f   :  { %1670 = vperm.xlu0 %6037, %v6567_v8  }
  0x31   :  { %6034 = vset.pattern.permute.xlu1 %v6459_v0 }
  0x32   :  { %1004 = vperm.xlu1 %6034, %v6555_v7  }
  0x33   :  { %6039 = vset.pattern.permute.xlu0 %v6461_v5 }
  0x34   :  { %906 = vperm.xlu0 %6039, %v6540_v3  }
  0x36   :  { %6036 = vset.pattern.permute.xlu1 %v10213_v6 }
  0x37   :  { %1090 = vperm.xlu1 %6036, %v6540_v3  }
  0x38   :  { %1766 = vperm.xlu0 %6039, %v6567_v8  }
  0x3b   :  { %1094 = vperm.xlu1 %6036, %v6535_v2  }
  0x3c   :  { %6042 = vset.pattern.permute.xlu0 %v6459_v0 }
  0x3d   :  { %1856 = vperm.xlu0 %6042, %v6567_v8  }
  0x3f   :  { %6038 = vset.pattern.permute.xlu1 %v6460_v1 }
  0x40   :  { %1666 = vperm.xlu1 %6038, %v49_v9  }
  0x41   :  { %1860 = vperm.xlu0 %6042, %v6587_v10  }
  0x44   :  { %1674 = vperm.xlu1 %6038, %v6587_v10  }
  0x45   :  { %6046 = vset.pattern.permute.xlu0 %v10213_v6 }
  0x46   :  { %1946 = vperm.xlu0 %6046, %v49_v9  }
  0x48   :  { %6040 = vset.pattern.permute.xlu1 %v6461_v5 }
  0x49   :  { %1762 = vperm.xlu1 %6040, %v49_v9  }
  0x4a   :  { %1958 = vperm.xlu0 %6046, %v6595_v11  }
  0x4d   :  { %1770 = vperm.xlu1 %6040, %v6587_v10  }
  0x4e   :  { %6050 = vset.pattern.permute.xlu0 %v6463_v12 }
  0x4f   :  { %626 = vperm.xlu0 %6050, %v6540_v3  }
  0x51   :  { %6041 = vset.pattern.permute.xlu1 %v6459_v0 }
  0x52   :  { %1852 = vperm.xlu1 %6041, %v49_v9  }
  0x53   :  { %6052 = vset.pattern.permute.xlu0 %v10218_v13 }
  0x54   :  { %716 = vperm.xlu0 %6052, %v6540_v3  }
  0x56   :  { %6043 = vset.pattern.permute.xlu1 %v6460_v1 }
  0x57   :  { %1678 = vperm.xlu1 %6043, %v6595_v11  }
  0x58   :  { %720 = vperm.xlu0 %6052, %v6535_v2  }
  0x5b   :  { %6044 = vset.pattern.permute.xlu1 %v6461_v5 }
  0x5c   :  { %6055 = vset.pattern.permute.xlu0 %v6465_v14  ;;  %1774 = vperm.xlu1 %6044, %v6595_v11  }
  0x5d   :  { %530 = vperm.xlu0 %6055, %v6540_v3  }
  0x60   :  { %6045 = vset.pattern.permute.xlu1 %v6459_v0 }
  0x61   :  { %1386 = vperm.xlu0 %6055, %v49_v9   ;;  %1864 = vperm.xlu1 %6045, %v6595_v11  }
  0x65   :  { %6059 = vset.pattern.permute.xlu0 %v10218_v13  ;;  %6047 = vset.pattern.permute.xlu1 %v10213_v6 }
  0x66   :  { %1572 = vperm.xlu0 %6059, %v49_v9   ;;  %1950 = vperm.xlu1 %6047, %v6567_v8  }
  0x6a   :  { %1954 = vperm.xlu1 %6047, %v6587_v10   ;;  %6060 = vset.pattern.permute.xlu0 %v6463_v12 }
  0x6b   :  { %1482 = vperm.xlu0 %6060, %v49_v9  }
  0x6e   :  { %6048 = vset.pattern.permute.xlu1 %v6465_v14 }
  0x6f   :  { %526 = vperm.xlu1 %6048, %v6547_v4   ;;  %1494 = vperm.xlu0 %6060, %v6595_v11  }
  0x73   :  { %534 = vperm.xlu1 %6048, %v6535_v2   ;;  %6065 = vset.pattern.permute.xlu0 %v10214_v15 }
  0x74   :  { %317 = vperm.xlu0 %6065, %v6547_v4  }
  0x77   :  { %6049 = vset.pattern.permute.xlu1 %v6463_v12 }
  0x78   :  { %622 = vperm.xlu1 %6049, %v6547_v4  }
  0x7c   :  { %630 = vperm.xlu1 %6049, %v6535_v2  }
  0x80   :  { %6051 = vset.pattern.permute.xlu1 %v10218_v13 }
  0x81   :  { %712 = vperm.xlu1 %6051, %v6547_v4  }
  0x85   :  { %6053 = vset.pattern.permute.xlu1 %v6465_v14 }
  0x86   :  { %538 = vperm.xlu1 %6053, %v6555_v7  }
  0x8a   :  { %6054 = vset.pattern.permute.xlu1 %v6463_v12 }
  0x8b   :  { %634 = vperm.xlu1 %6054, %v6555_v7  }
  0x8f   :  { %6056 = vset.pattern.permute.xlu1 %v10218_v13 }
  0x90   :  { %724 = vperm.xlu1 %6056, %v6555_v7  }
  0x94   :  { %v815_v18 = vpop.permute.xlu1 %814  ;;  %6057 = vset.pattern.permute.xlu1 %v6465_v14  ;;  %v997_v19 = vpop.permute.xlu0 %996 }
  0x95   :  { %1390 = vperm.xlu1 %6057, %v6567_v8   ;;  %v6670_v34 = vmul.f32 %v815_v18, %v6647_v26  ;;  %v6674_v37 = vmul.f32 %v815_v18, %v6652_v28  ;;  %v6677_v38 = vmul.f32 %v997_v19, %v6647_v26  ;;  %v6680_v39 = vmul.f32 %v997_v19, %v6652_v28 }
  0x96   :  { %v6697_v44 = vmul.f32 %v815_v18, %v6664_v32  ;;  %v899_v45 = vmul.f32 %v815_v18, %v6660_v31  ;;  %v6705_v48 = vmul.f32 %v997_v19, %v6664_v32  ;;  %v6708_v49 = vmul.f32 %v997_v19, %v6660_v31 }
  0x97   :  { %v10223_v52 = vrot.slane %v6674_v37, 1  ;;  %v1047_v53 = vrot.slane %v6677_v38, 1  ;;  %v1118_v54 = vrot.slane %v6680_v39, 1 }
  0x98   :  { %v1001_v25 = vpop.permute.xlu0 %1000  ;;  %10583 = vst [vmem:[#allocation11_spill] sm:$0xff] %v6697_v44 }
  0x99   :  { %1394 = vperm.xlu1 %6057, %v6587_v10   ;;  %v903_v27 = vpop.permute.xlu1 %902  ;;  %v6688_v41 = vmul.f32 %v1001_v25, %v6647_v26  ;;  %v6691_v42 = vmul.f32 %v1001_v25, %v6652_v28  ;;  %v1009_v57 = vmul.f32 %v1001_v25, %v6664_v32  ;;  %v6723_v59 = vmul.f32 %v1001_v25, %v6660_v31 }
  0x9a   :  { %v6711_v50 = vmul.f32 %v903_v27, %v6647_v26  ;;  %v6717_v55 = vmul.f32 %v903_v27, %v6652_v28  ;;  %v917_v61 = vmul.f32 %v903_v27, %v6664_v32  ;;  %v987_v62 = vmul.f32 %v903_v27, %v6660_v31 }
  0x9b   :  { %v10217_v58 = vrot.slane %v6688_v41, 1  ;;  %v10216_v60 = vrot.slane %v6691_v42, 1 }
  0x9d   :  { %6058 = vset.pattern.permute.xlu1 %v6463_v12  ;;  %v911_v35 = vpop.permute.xlu1 %910  ;;  %v1087_v36 = vpop.permute.xlu0 %1086  ;;  %v6750_v25 = vsel %vm356_vm0, %v1047_v53, %v10217_v58  ;;  %v6758_v39 = vsel %vm356_vm0, %v1118_v54, %v10216_v60 }
  0x9e   :  { %1486 = vperm.xlu1 %6058, %v6567_v8   ;;  %v919_v63 = vmul.f32 %v911_v35, %v6664_v32  ;;  %v6730_v0 = vmul.f32 %v911_v35, %v6647_v26  ;;  %v989_v4 = vmul.f32 %v911_v35, %v6660_v31  ;;  %v6735_v5 = vmul.f32 %v911_v35, %v6652_v28 }
  0x9f   :  { %v6738_v7 = vmul.f32 %v1087_v36, %v6647_v26  ;;  %v1101_v22 = vmul.f32 %v1087_v36, %v6664_v32 }
  0xa0   :  { %v923_v29 = vadd.f32 %v919_v63, %v899_v45  ;;  %v1013_v24 = vadd.f32 %v1009_v57, %v989_v4  ;;  %v10590_v44 = vrot.slane %v6730_v0, 1 }
  0xa1   :  { %v1099_v51 = vpop.permute.xlu0 %1098 }
  0xa2   :  { %1490 = vperm.xlu1 %6058, %v6587_v10   ;;  %v993_v56 = vpop.permute.xlu1 %992  ;;  %v6742_v12 = vmul.f32 %v1099_v51, %v6647_v26  ;;  %v1104_v15 = vmul.f32 %v1099_v51, %v6664_v32 }
  0xa3   :  { %v1038_v18 = vmul.f32 %v993_v56, %v6647_v26  ;;  %v1109_v19 = vmul.f32 %v993_v56, %v6652_v28  ;;  %v1007_v27 = vmul.f32 %v993_v56, %v6664_v32  ;;  %v1081_v16 = vmul.f32 %v993_v56, %v6660_v31 }
  0xa5   :  { %v1046_v60 = vrot.slane %v1038_v18, 1  ;;  %v1117_v1 = vrot.slane %v1109_v19, 1  ;;  %v6768_v63 = vadd.f32 %v1007_v27, %v987_v62  ;;  %v1105_v57 = vadd.f32 %v1101_v22, %v1081_v16 }
  0xa6   :  { %v807_v21 = vpop.permute.xlu0 %806  ;;  %6061 = vset.pattern.permute.xlu1 %v10218_v13 }
  0xa7   :  { %v852_v35 = vmul.f32 %v807_v21, %v6647_v26  ;;  %1576 = vperm.xlu1 %6061, %v6567_v8   ;;  %v819_v38 = vpop.permute.xlu1 %818  ;;  %v897_v4 = vmul.f32 %v807_v21, %v6660_v31  ;;  %v925_v6 = vmul.f32 %v807_v21, %v6652_v28  ;;  %v1119_v9 = vsel %vm356_vm0, %v1117_v1, %v1118_v54 }
  0xa8   :  { %v928_v8 = vmul.f32 %v819_v38, %v6652_v28  ;;  %v6777_v51 = vmul.f32 %v819_v38, %v6647_v26  ;;  %v900_v62 = vmul.f32 %v819_v38, %v6660_v31  ;;  %v6804_v33 = vmul.f32 %v819_v38, %v6664_v32 }
  0xa9   :  { %v860_v58 = vrot.slane %v852_v35, 1  ;;  %v921_v13 = vadd.f32 %v917_v61, %v897_v4  ;;  %v10589_v54 = vmov 5   ;;  %v933_v1 = vrot.slane %v925_v6, 1 }
  0xaa   :  { %v811_v45 = vpop.permute.xlu0 %810  ;;  %v938_v36 = vrot.slane %v928_v8, 1  ;;  %10585 = vst [vmem:[#allocation13_spill] sm:$0xff] %v6777_v51  ;;  %10588 = vst [vmem:[#allocation16_spill] sm:$0xff] %v6804_v33  ;;  %v6815_v4 = vadd.f32 %v1119_v9, %v1105_v57  ;;  %v10591_v6 = vrot.slane %v6735_v5, 1  ;;  %v10592_v9 = vrot.slane %v6670_v34, 1 }
  0xab   :  { %v6771_v56 = vmul.f32 %v811_v45, %v6647_v26  ;;  %6062 = vset.pattern.permute.xlu1 %v6465_v14  ;;  %v6785_v14 = vsel %vm356_vm0, %v1046_v60, %v1047_v53  ;;  %v926_v16 = vmul.f32 %v811_v45, %v6652_v28  ;;  %v6801_v60 = vmul.f32 %v807_v21, %v6664_v32 }
  0xac   :  { %1398 = vperm.xlu1 %6062, %v6595_v11   ;;  %v915_v18 = vpop.permute.xlu1 %914  ;;  %v939_v47 = vsel %vm356_vm0, %v10223_v52, %v938_v36  ;;  %v10228_v52 = vrot.slane %v6777_v51, 1  ;;  %v6813_v61 = vmul.f32 %v811_v45, %v6664_v32  ;;  %v10594_v33 = vrot.slane %v6688_v41, 1 }
  0xad   :  { %v10226_v19 = vrot.slane %v6771_v56, 1  ;;  %v920_v27 = vmul.f32 %v915_v18, %v6664_v32  ;;  %v951_v35 = vmul.f32 %v915_v18, %v6647_v26  ;;  %v1018_v22 = vmul.f32 %v915_v18, %v6652_v28  ;;  %10587 = vst [vmem:[#allocation15_spill] sm:$0xff] %v6801_v60 }
  0xae   :  { %v6789_v8 = vpop.permute.xlu0 %1670  ;;  %v946_v21 = vadd.f32 %v939_v47, %v923_v29  ;;  %v934_v38 = vrot.slane %v926_v16, 1  ;;  %v6833_v57 = vsel %vm356_vm0, %v10592_v9, %v10228_v52  ;;  %v10231_v41 = vmov 0  }
  0xaf   :  { %v6798_v23 = vsel %vm356_vm0, %v860_v58, %v10226_v19  ;;  %v924_v20 = vadd.f32 %v920_v27, %v900_v62  ;;  %v961_v53 = vrot.slane %v951_v35, 1  ;;  %v1028_v30 = vrot.slane %v1018_v22, 1  ;;  %10593 = vst [vmem:[#allocation17_spill] sm:$0xff] %v6833_v57 }
  0xb0   :  { %10586 = vst [vmem:[#allocation14_spill] sm:$0xff] %v6798_v23  ;;  %6063 = vset.pattern.permute.xlu1 %v10589_v54  ;;  %v990_v27 = vmul.f32 %v915_v18, %v6660_v31  ;;  %v935_v19 = vsel %vm356_vm0, %v933_v1, %v934_v38 }
  0xb1   :  { %v947_v17 = vadd.f32 %v938_v36, %v924_v20  ;;  %v962_v58 = vsel %vm356_vm0, %v10590_v44, %v961_v53  ;;  %1580 = vperm.xlu1 %6063, %v6587_v10   ;;  %v1005_v62 = vpop.permute.xlu1 %1004  ;;  %v1029_v20 = vsel %vm356_vm0, %v10591_v6, %v1028_v30  ;;  %v898_v10 = vmul.f32 %v811_v45, %v6660_v31 }
  0xb2   :  { %v1010_v36 = vmul.f32 %v1005_v62, %v6664_v32  ;;  %v1041_v44 = vmul.f32 %v1005_v62, %v6647_v26  ;;  %v969_v29 = vadd.f32 %v962_v58, %v946_v21  ;;  %v1084_v47 = vmul.f32 %v1005_v62, %v6660_v31 }
  0xb3   :  { %v907_v35 = vpop.permute.xlu0 %906  ;;  %v6826_v16 = vmul.f32 %v1005_v62, %v6652_v28  ;;  %v970_v18 = vadd.f32 %v961_v53, %v947_v17  ;;  %v1036_v6 = vadd.f32 %v1029_v20, %v1013_v24 }
  0xb4   :  { %v1014_v22 = vadd.f32 %v1010_v36, %v990_v27  ;;  %v1051_v54 = vrot.slane %v1041_v44, 1  ;;  %v1108_v45 = vadd.f32 %v1104_v15, %v1084_v47  ;;  %v918_v21 = vmul.f32 %v907_v35, %v6664_v32 }
  0xb5   :  { %1584 = vperm.xlu1 %6063, %v6595_v11   ;;  %v1122_v58 = vrot.slane %v6826_v16, 1  ;;  %v949_v17 = vmul.f32 %v907_v35, %v6647_v26  ;;  %v973_v53 = vadd.f32 %v969_v29, %v6685_v40  ;;  %v974_v24 = vadd.f32 %v970_v18, %v6685_v40 }
  0xb6   :  { %v1091_v62 = vpop.permute.xlu1 %1090  ;;  %v1037_v51 = vadd.f32 %v1028_v30, %v1014_v22  ;;  %v1052_v9 = vsel %vm356_vm0, %v10594_v33, %v1051_v54  ;;  %v922_v15 = vadd.f32 %v918_v21, %v898_v10  ;;  %v10595_v36 = vrot.slane %v6674_v37, 1 }
  0xb7   :  { %v1059_v27 = vadd.f32 %v1052_v9, %v1036_v6  ;;  %v1131_v11 = vadd.f32 %v1122_v58, %v1108_v45  ;;  %v957_v1 = vrot.slane %v949_v17, 1  ;;  %v10596_v44 = vrot.slane %v6742_v12, 1 }
  0xb8   :  { %v1060_v20 = vadd.f32 %v1051_v54, %v1037_v51  ;;  %v937_v30 = vsel %vm356_vm0, %v934_v38, %v10595_v36  ;;  %v988_v47 = vmul.f32 %v907_v35, %v6660_v31  ;;  %v1016_v10 = vmul.f32 %v907_v35, %v6652_v28 }
  0xb9   :  { %6064 = vset.pattern.permute.xlu1 %v10231_v41  ;;  %v1063_v33 = vadd.f32 %v1059_v27, %v6685_v40  ;;  %v1154_v29 = vadd.f32 %v10596_v44, %v1131_v11  ;;  %v10597_v37 = vrot.slane %v6670_v34, 1  ;;  %v10598_v38 = vrot.slane %v6771_v56, 1 }
  0xba   :  { %295 = vperm.xlu1 %6064, %v6540_v3   ;;  %v1095_v51 = vpop.permute.xlu1 %1094  ;;  %v944_v22 = vadd.f32 %v935_v19, %v921_v13  ;;  %v6866_v54 = vmul.f32 %v6789_v8, %v6647_v26  ;;  %v945_v6 = vadd.f32 %v937_v30, %v922_v15  ;;  %v977_v45 = vmax.f32 %v973_v53, 0.0  ;;  %v1767_v53 = vpop.permute.xlu0 %1766 }
  0xbb   :  { %v6862_v18 = vsel %vm356_vm0, %v10598_v38, %v10597_v37  ;;  %v6870_v35 = vmul.f32 %v6789_v8, %v6652_v28  ;;  %v10599_v21 = vrot.slane %v6711_v50, 1  ;;  %v10600_v56 = vrot.slane %v6730_v0, 1 }
  0xbc   :  { %v1064_v13 = vadd.f32 %v1060_v20, %v6685_v40  ;;  %v1024_v19 = vrot.slane %v1016_v10, 1  ;;  %v1102_v17 = vmul.f32 %v1091_v62, %v6664_v32  ;;  %v1133_v27 = vmul.f32 %v1091_v62, %v6647_v26 }
  0xbd   :  { %v958_v34 = vsel %vm356_vm0, %v10599_v21, %v957_v1  ;;  %v960_v9 = vsel %vm356_vm0, %v957_v1, %v10600_v56  ;;  %v978_v11 = vmax.f32 %v974_v24, 0.0  ;;  %v1067_v15 = vmax.f32 %v1063_v33, 0.0 }
  0xbe   :  { %v6882_v36 = vadd.f32 %v1154_v29, %v6685_v40  ;;  %v1012_v50 = vadd.f32 %v6705_v48, %v988_v47  ;;  %300 = vperm.xlu1 %6064, %v6535_v2   ;;  %v967_v0 = vadd.f32 %v958_v34, %v944_v22  ;;  %v968_v30 = vadd.f32 %v960_v9, %v945_v6  ;;  %v6906_v38 = vpop.permute.xlu0 %1856 }
  0xbf   :  { %v10601_v1 = vrot.slane %v6717_v55, 1  ;;  %v10602_v44 = vrot.slane %v6735_v5, 1  ;;  %v6892_v10 = vpop.permute.xlu1 %1666  ;;  %v6896_v24 = vmul.f32 %v6789_v8, %v6664_v32  ;;  %v10233_v48 = vrot.slane %v6866_v54, 1 }
  0xc0   :  { %v1758_v33 = vmul.f32 %v6789_v8, %v6660_v31  ;;  %v1141_v29 = vrot.slane %v1133_v27, 1  ;;  %v6902_v55 = vmul.f32 %v977_v45, %v6694_v43  ;;  %v1794_v47 = vrot.slane %v6870_v35, 1 }
  0xc1   :  { %v1025_v20 = vsel %vm356_vm0, %v10601_v1, %v1024_v19  ;;  %v1027_v62 = vsel %vm356_vm0, %v1024_v19, %v10602_v44  ;;  %10603 = vst [vmem:[#allocation18_spill] sm:$0xff] %v6896_v24  ;;  %v1068_v5 = vmax.f32 %v1064_v13, 0.0  ;;  %v1106_v37 = vadd.f32 %v1102_v17, %v6708_v49 }
  0xc2   :  { %v6909_v22 = vmul.f32 %v978_v11, %v6694_v43  ;;  %v6912_v6 = vmul.f32 %v1067_v15, %v6694_v43  ;;  %v1034_v21 = vadd.f32 %v1025_v20, %v6768_v63  ;;  %v1035_v8 = vadd.f32 %v1027_v62, %v1012_v50 }
  0xc3   :  { %v10604_v34 = vmov 1   ;;  %v6918_v56 = vadd.f32 %v967_v0, %v6685_v40  ;;  %v6921_v49 = vadd.f32 %v968_v30, %v6685_v40  ;;  %v1778_v9 = vmul.f32 %v1767_v53, %v6664_v32  ;;  %v1675_v13 = vpop.permute.xlu1 %1674 }
  0xc4   :  { %6066 = vset.pattern.permute.xlu1 %v10604_v34  ;;  %v10605_v19 = vrot.slane %v6738_v7, 1  ;;  %v6929_v17 = vmul.f32 %v1767_v53, %v6647_v26  ;;  %v1103_v27 = vmul.f32 %v1095_v51, %v6664_v32  ;;  %v1134_v11 = vmul.f32 %v1095_v51, %v6647_v26 }
  0xc5   :  { %321 = vperm.xlu1 %6066, %v6540_v3   ;;  %v6934_v15 = vmul.f32 %v1068_v5, %v6694_v43  ;;  %v1129_v50 = vadd.f32 %v6758_v39, %v1106_v37  ;;  %v1848_v0 = vmul.f32 %v1767_v53, %v6660_v31  ;;  %v6939_v3 = vmul.f32 %v1767_v53, %v6652_v28  ;;  %v6954_v5 = vpop.permute.xlu0 %1860 }
  0xc6   :  { %v1142_v63 = vsel %vm356_vm0, %v10605_v19, %v1141_v29  ;;  %v6942_v7 = vadd.f32 %v6785_v14, %v1034_v21  ;;  %v1058_v30 = vadd.f32 %v6750_v25, %v1035_v8  ;;  %v1107_v1 = vadd.f32 %v1103_v27, %v6723_v59 }
  0xc7   :  { %v1143_v20 = vrot.slane %v1134_v11, 1  ;;  %v1151_v51 = vadd.f32 %v1142_v63, %v6815_v4  ;;  %v1782_v44 = vadd.f32 %v1778_v9, %v1758_v33  ;;  %v10606_v39 = vrot.slane %v6691_v42, 1 }
  0xc8   :  { %v1712_v53 = vmul.f32 %v6892_v10, %v6647_v26  ;;  %v10607_v14 = vrot.slane %v6742_v12, 1  ;;  %v1868_v16 = vmul.f32 %v6906_v38, %v6664_v32  ;;  %v1763_v42 = vpop.permute.xlu1 %1762  ;;  %v6966_v33 = vmul.f32 %v6906_v38, %v6647_v26 }
  0xc9   :  { %v1123_v62 = vsel %vm356_vm0, %v10606_v39, %v1122_v58  ;;  %325 = vperm.xlu1 %6066, %v6535_v2   ;;  %v1144_v58 = vsel %vm356_vm0, %v1141_v29, %v1143_v20  ;;  %v6970_v2 = vmul.f32 %v6906_v38, %v6652_v28  ;;  %v1785_v37 = vmul.f32 %v6892_v10, %v6652_v28 }
  0xca   :  { %v1130_v59 = vadd.f32 %v1123_v62, %v1107_v1  ;;  %v1146_v4 = vsel %vm356_vm0, %v1143_v20, %v10607_v14  ;;  %v6975_v12 = vadd.f32 %v1058_v30, %v6685_v40  ;;  %v6980_v29 = vmul.f32 %v6954_v5, %v6647_v26 }
  0xcb   :  { %v6983_v9 = vadd.f32 %v1151_v51, %v6685_v40  ;;  %v6987_v19 = vmul.f32 %v6892_v10, %v6664_v32  ;;  %v1720_v63 = vrot.slane %v1712_v53, 1  ;;  %v6990_v27 = vmul.f32 %v1675_v13, %v6647_v26 }
  0xcc   :  { %v1153_v8 = vadd.f32 %v1146_v4, %v1130_v59  ;;  %v10229_v11 = vmov 2   ;;  %v1152_v30 = vadd.f32 %v1144_v58, %v1129_v50  ;;  %v6994_v20 = vadd.f32 %v1868_v16, %v1848_v0  ;;  %v6999_v51 = vpop.permute.xlu1 %1770  ;;  %v1947_v4 = vpop.permute.xlu0 %1946 }
  0xcd   :  { %6067 = vset.pattern.permute.xlu1 %v10229_v11  ;;  %v6997_v39 = vmul.f32 %v1675_v13, %v6652_v28  ;;  %v10236_v62 = vrot.slane %v6966_v33, 1  ;;  %v1757_v59 = vmul.f32 %v6892_v10, %v6660_v31  ;;  %v1793_v14 = vrot.slane %v1785_v37, 1 }
  0xce   :  { %v1157_v1 = vadd.f32 %v1153_v8, %v6685_v40  ;;  %v10235_v50 = vrot.slane %v6980_v29, 1  ;;  %v1777_v0 = vmul.f32 %v1763_v42, %v6664_v32  ;;  %v1808_v16 = vmul.f32 %v1763_v42, %v6647_v26 }
  0xcf   :  { %v10234_v58 = vrot.slane %v6997_v39, 1  ;;  %v7012_v8 = vsel %vm356_vm0, %v1720_v63, %v10233_v48  ;;  %v7016_v52 = vmul.f32 %v6954_v5, %v6664_v32  ;;  %v7020_v10 = vmul.f32 %v6954_v5, %v6652_v28 }
  0xd0   :  { %10608 = vst [vmem:[#allocation19_spill] sm:$0xff] %v7012_v8  ;;  %v1156_v53 = vadd.f32 %v1152_v30, %v6685_v40  ;;  %v1161_v11 = vmax.f32 %v1157_v1, 0.0  ;;  %v7025_v41 = vmul.f32 %v1675_v13, %v6664_v32  ;;  %v7028_v45 = vmul.f32 %v1675_v13, %v6660_v31 }
  0xd1   :  { %v1797_v63 = vsel %vm356_vm0, %v1794_v47, %v10234_v58  ;;  %v7036_v21 = vmul.f32 %v1947_v4, %v6664_v32  ;;  %v1781_v25 = vadd.f32 %v1777_v0, %v1757_v59  ;;  %v1816_v48 = vrot.slane %v1808_v16, 1  ;;  %v7038_v37 = vpop.permute.xlu1 %1852 }
  0xd2   :  { %10609 = vst [vmem:[#allocation20_spill] sm:$0xff] %v7025_v41  ;;  %v7045_v13 = vsel %vm356_vm0, %v10236_v62, %v10235_v50  ;;  %v7048_v30 = vmul.f32 %v1947_v4, %v6647_v26  ;;  %v1795_v1 = vsel %vm356_vm0, %v1793_v14, %v1794_v47  ;;  %v7055_v59 = vmul.f32 %v6999_v51, %v6647_v26  ;;  %v1959_v4 = vpop.permute.xlu0 %1958 }
  0xd3   :  { %10610 = vst [vmem:[#allocation21_spill] sm:$0xff] %v7045_v13  ;;  %v10611_v0 = vrot.slane %v6990_v27, 1  ;;  %v10612_v16 = vrot.slane %v6866_v54, 1  ;;  %v7065_v50 = vmul.f32 %v1763_v42, %v6660_v31  ;;  %v7069_v35 = vmul.f32 %v6999_v51, %v6652_v28 }
  0xd4   :  { %v975_v47 = vmax.f32 %v6918_v56, 0.0  ;;  %v7073_v14 = vmul.f32 %v1161_v11, %v6694_v43  ;;  %v1805_v62 = vadd.f32 %v1797_v63, %v1782_v44  ;;  %v7076_v41 = vmul.f32 %v1763_v42, %v6652_v28 }
  0xd5   :  { %v7062_v58 = vsel %vm356_vm0, %v10612_v16, %v10611_v0  ;;  %v976_v54 = vmax.f32 %v6921_v49, 0.0  ;;  %v7082_v0 = vld [vmem:[%s10200_s2 + $0x40] sm:$0xff]   ;;  %v10614_v56 = vrot.slane %v6929_v17, 1  ;;  %v1061_v42 = vadd.f32 %v6942_v7, %v6685_v40  ;;  %v6103_v49 = vld [vmem:[%s10200_s2 + $0x48] sm:$0xff]  }
  0xd6   :  { %10613 = vst [vmem:[#allocation22_spill] sm:$0xff] %v7062_v58  ;;  %v6102_v16 = vld [vmem:[%s10200_s2] sm:$0xff]   ;;  %v1804_v58 = vadd.f32 %v1795_v1, %v1781_v25  ;;  %v1066_v24 = vmax.f32 %v6975_v12, 0.0  ;;  %v1159_v25 = vmax.f32 %v6983_v9, 0.0  ;;  %v7100_v1 = vpop.permute.xlu1 %1678  ;;  %5842 = vmatprep.subr.bf16.mxu1 %v7082_v0  ;;  %5814 = vmatprep.subr.bf16.mxu0 %v7082_v0  ;;  %v7108_v7 = vmul.f32 %v1959_v4, %v6647_v26  ;;  %v6104_v12 = vld [vmem:[%s10200_s2 + $0x8] sm:$0xff]   ;;  %v627_v23 = vpop.permute.xlu0 %626 }
  0xd7   :  { %v1818_v11 = vsel %vm356_vm0, %v1816_v48, %v10614_v56  ;;  %v980_v8 = vmul.f32 %v976_v54, %v6694_v43  ;;  %v7105_v48 = vmul.f32 %v1959_v4, %v6664_v32  ;;  %v979_v56 = vmul.f32 %v975_v47, %v6694_v43  ;;  %5843 = vmatpush3.bf16.msra.mxu1 %v6102_v16  ;;  %v6105_v4 = vld [vmem:[%s10200_s2 + $0x50] sm:$0xff]  }
  0xd8   :  { %v1065_v63 = vmax.f32 %v1061_v42, 0.0  ;;  %5815 = vmatpush3.bf16.msra.mxu0 %v6102_v16  ;;  %v1779_v9 = vmul.f32 %v6999_v51, %v6664_v32  ;;  %v1070_v44 = vmul.f32 %v1066_v24, %v6694_v43  ;;  %v1160_v57 = vmax.f32 %v1156_v53, 0.0  ;;  %5844 = vmatprep.subr.bf16.mxu1 %v6103_v49 }
  0xd9   :  { %v984_v54 = vadd.f32 %v980_v8, %v6701_v46  ;;  %5816 = vmatprep.subr.bf16.mxu0 %v6103_v49  ;;  %v7121_v47 = vadd.f32 %v1818_v11, %v1804_v58  ;;  %v1849_v42 = vmul.f32 %v6999_v51, %v6660_v31  ;;  %v1163_v34 = vmul.f32 %v1159_v25, %v6694_v43 }
  0xda   :  { %v1069_v16 = vmul.f32 %v1065_v63, %v6694_v43  ;;  %v10616_v8 = vrot.slane %v7055_v59, 1  ;;  %v10617_v24 = vrot.slane %v6929_v17, 1  ;;  %v10618_v60 = vrot.slane %v7069_v35, 1 }
  0xdb   :  { %10615 = vst [vmem:[#allocation23_spill] sm:$0xff] %v7121_v47  ;;  %v10619_v49 = vrot.slane %v6939_v3, 1  ;;  %v1074_v11 = vadd.f32 %v1070_v44, %v6701_v46  ;;  %v1164_v51 = vmul.f32 %v1160_v57, %v6694_v43  ;;  %v983_v25 = vadd.f32 %v979_v56, %v6701_v46  ;;  %v7143_v47 = vpop.permute.xlu1 %1774  ;;  %5845 = vmatpush3.bf16.msra.mxu1 %v6104_v12  ;;  %v6106_v56 = vld [vmem:[%s10200_s2 + $0x10] sm:$0xff]  }
  0xdc   :  { %v1820_v53 = vsel %vm356_vm0, %v10617_v24, %v10616_v8  ;;  %v1073_v13 = vadd.f32 %v1069_v16, %v6701_v46  ;;  %v1167_v17 = vadd.f32 %v1163_v34, %v6701_v46  ;;  %5817 = vmatpush3.bf16.msra.mxu0 %v6104_v12  ;;  %v1883_v8 = vrot.slane %v7076_v41, 1  ;;  %5846 = vmatprep.subr.bf16.mxu1 %v6105_v4  ;;  %v6107_v34 = vld [vmem:[%s10200_s2 + $0x58] sm:$0xff]  }
  0xdd   :  { %v1887_v58 = vsel %vm356_vm0, %v10619_v49, %v10618_v60  ;;  %v7147_v60 = vadd.f32 %v1779_v9, %v7028_v45  ;;  %v1078_v44 = vmax.f32 %v984_v54, %v1074_v11  ;;  %v1168_v57 = vadd.f32 %v1164_v51, %v6701_v46  ;;  %5818 = vmatprep.subr.bf16.mxu0 %v6105_v4 }
  0xde   :  { %v7156_v16 = vadd.f32 %v1820_v53, %v1805_v62  ;;  %v7159_v41 = vadd.f32 %v7016_v52, %v1849_v42  ;;  %v1077_v45 = vmax.f32 %v983_v25, %v1073_v13  ;;  %v1867_v12 = vmul.f32 %v7038_v37, %v6664_v32  ;;  %v717_v42 = vpop.permute.xlu0 %716 }
  0xdf   :  { %v7164_v9 = vadd.f32 %v1887_v58, %v6994_v20  ;;  %v1172_v54 = vmax.f32 %v1078_v44, %v1168_v57  ;;  %v7167_v24 = vmul.f32 %v627_v23, %v6664_v32  ;;  %v1898_v49 = vmul.f32 %v7038_v37, %v6647_v26  ;;  %5847 = vmatpush3.bf16.msra.mxu1 %v6106_v56  ;;  %v6108_v20 = vld [vmem:[%s10200_s2 + $0x18] sm:$0xff]   ;;  %v6109_v44 = vld [vmem:[%s10200_s2 + $0x60] sm:$0xff]  }
  0xe0   :  { %v1171_v4 = vmax.f32 %v1077_v45, %v1167_v17  ;;  %v7173_v52 = vmul.f32 %v627_v23, %v6647_v26  ;;  %v708_v13 = vmul.f32 %v627_v23, %v6660_v31  ;;  %5819 = vmatpush3.bf16.msra.mxu0 %v6106_v56  ;;  %v7181_v58 = vmul.f32 %v627_v23, %v6652_v28  ;;  %v7188_v17 = vpop.permute.xlu1 %1864 }
  0xe1   :  { %v10620_v11 = vrot.slane %v6939_v3, 1  ;;  %v1941_v25 = vmul.f32 %v7038_v37, %v6660_v31  ;;  %5848 = vmatprep.subr.bf16.mxu1 %v6107_v34  ;;  %5820 = vmatprep.subr.bf16.mxu0 %v6107_v34  ;;  %v1871_v56 = vadd.f32 %v1867_v12, %v7065_v50  ;;  %v7196_v23 = vmul.f32 %v7038_v37, %v6652_v28 }
  0xe2   :  { %v1175_v57 = vpack.c.bf16 %v1172_v54, %v1171_v4  ;;  %v728_v3 = vmul.f32 %v717_v42, %v6664_v32  ;;  %v7200_v45 = vmul.f32 %v717_v42, %v6652_v28  ;;  %v1075_v62 = vadd.f32 %v6912_v6, %v6701_v46  ;;  %v721_v63 = vpop.permute.xlu0 %720 }
  0xe3   :  { %v1885_v51 = vsel %vm356_vm0, %v1883_v8, %v10620_v11  ;;  %v1906_v8 = vrot.slane %v1898_v49, 1  ;;  %v985_v11 = vadd.f32 %v6902_v55, %v6701_v46  ;;  %v986_v37 = vadd.f32 %v6909_v22, %v6701_v46  ;;  %5849 = vmatpush3.bf16.msra.mxu1 %v6108_v20  ;;  %v6110_v22 = vld [vmem:[%s10200_s2 + $0x20] sm:$0xff]  }
  0xe4   :  { %10621 = vst [vmem:[#allocation24_spill] sm:$0xff] %v7200_v45  ;;  %2264 = vrot.lane.b32.xlu1 %v1175_v57, %s6469_s9  ;;  %v2271_v50 = vshll.u32 %v1175_v57, 16  ;;  %v1076_v34 = vadd.f32 %v6934_v15, %v6701_v46  ;;  %v10622_v12 = vmax.f32 %v6882_v36, 0.0  ;;  %v7216_v49 = vmul.f32 %v717_v42, %v6647_v26  ;;  %5850 = vmatprep.subr.bf16.mxu1 %v6109_v44 }
  0xe5   :  { %v1079_v6 = vmax.f32 %v985_v11, %v1075_v62  ;;  %v1169_v4 = vadd.f32 %v7073_v14, %v6701_v46  ;;  %5821 = vmatpush3.bf16.msra.mxu0 %v6108_v20  ;;  %v1894_v15 = vadd.f32 %v1885_v51, %v1871_v56  ;;  %v7224_v36 = vadd.f32 %v7036_v21, %v1941_v25  ;;  %v7227_v53 = vpop.permute.xlu1 %1950  ;;  %v6111_v14 = vld [vmem:[%s10200_s2 + $0x68] sm:$0xff]  }
  0xe6   :  { %v1166_v54 = vmul.f32 %v10622_v12, %v6694_v43  ;;  %v1080_v12 = vmax.f32 %v986_v37, %v1076_v34  ;;  %5822 = vmatprep.subr.bf16.mxu0 %v6109_v44  ;;  %v7232_v62 = vadd.f32 %v728_v3, %v708_v13  ;;  %v802_v11 = vmul.f32 %v717_v42, %v6660_v31  ;;  %v6382_v56 = vld [vmem:[%s10198_s0 + $0x8] sm:$0xff] }
  0xe7   :  { %v1173_v20 = vmax.f32 %v1079_v6, %v1169_v4  ;;  %v1788_v21 = vmul.f32 %v7100_v1, %v6652_v28  ;;  %v10623_v51 = vrot.slane %v6966_v33, 1  ;;  %v2273_v13 = vrot.slane %v2271_v50, 1  ;;  %5851 = vmatpush3.bf16.msra.mxu1 %v6110_v22  ;;  %v6113_v6 = vld [vmem:[%s10200_s2 + $0x70] sm:$0xff]  }
  0xe8   :  { %v1170_v55 = vadd.f32 %v1166_v54, %v6701_v46  ;;  %436 = vperm.xlu1 %6067, %v6382_v56   ;;  %v2269_v3 = vshrl.u32 %v1175_v57, 16  ;;  %v7246_v42 = vmul.f32 %v7100_v1, %v6647_v26  ;;  %v1760_v34 = vmul.f32 %v7100_v1, %v6660_v31  ;;  %5852 = vmatprep.subr.bf16.mxu1 %v6111_v14 }
  0xe9   :  { %v1908_v25 = vsel %vm356_vm0, %v1906_v8, %v10623_v51  ;;  %v7251_v33 = vmul.f32 %v721_v63, %v6652_v28  ;;  %v6112_v8 = vld [vmem:[%s10200_s2 + $0x28] sm:$0xff]   ;;  %5823 = vmatpush3.bf16.msra.mxu0 %v6110_v22  ;;  %v1798_v50 = vrot.slane %v1788_v21, 1  ;;  %v1780_v57 = vmul.f32 %v7143_v47, %v6664_v32  ;;  %v7268_v21 = vpop.permute.xlu1 %1954 }
  0xea   :  { %v1174_v44 = vmax.f32 %v1080_v12, %v1170_v55  ;;  %10624 = vst [vmem:[#allocation25_spill] sm:$0xff] %v7246_v42  ;;  %v1811_v55 = vmul.f32 %v7143_v47, %v6647_v26  ;;  %5824 = vmatprep.subr.bf16.mxu0 %v6111_v14  ;;  %v1917_v4 = vadd.f32 %v1908_v25, %v1894_v15  ;;  %v10627_v15 = vrot.slane %v7200_v45, 1 }
  0xeb   :  { %10625 = vst [vmem:[#allocation26_spill] sm:$0xff] %v7251_v33  ;;  %v826_v22 = vadd.f32 %v6813_v61, %v802_v11  ;;  %v2274_v51 = vor.u32 %v2273_v13, %v2269_v3  ;;  %v7273_v37 = vmul.f32 %v721_v63, %v6647_v26  ;;  %v1784_v46 = vadd.f32 %v1780_v57, %v1760_v34  ;;  %v7284_v11 = vld [vmem:[%s10198_s0 + $0x18] sm:$0xff]  ;;  %v7289_v3 = vpop.permute.xlu0 %530 }
  0xec   :  { %v7256_v54 = vpack.c.bf16 %v1174_v44, %v1173_v20  ;;  %v10239_v20 = vrot.slane %v7251_v33, 1  ;;  %v10626_v44 = vmov 0   ;;  %v1821_v25 = vrot.slane %v1811_v55, 1  ;;  %10628 = vst [vmem:[#allocation27_spill] sm:$0xff] %v7289_v3  ;;  %5853 = vmatpush3.bf16.msra.mxu1 %v6112_v8 }
  0xed   :  { %6068 = vset.pattern.permute.xlu1 %v10626_v44  ;;  %v1878_v13 = vmul.f32 %v7143_v47, %v6652_v28  ;;  %v10629_v57 = vrot.slane %v6997_v39, 1  ;;  %5854 = vmatprep.subr.bf16.mxu1 %v6113_v6  ;;  %v7295_v14 = vadd.f32 %v1917_v4, %v6685_v40  ;;  %v7299_v55 = vmul.f32 %v7100_v1, %v6664_v32 }
  0xee   :  { %v2276_v56 = vshll.u32 %v7256_v54, 16  ;;  %v841_v61 = vsel %vm356_vm0, %v10627_v15, %v10239_v20  ;;  %305 = vperm.xlu1 %6068, %v7284_v11   ;;  %v1807_v20 = vadd.f32 %v1798_v50, %v1784_v46  ;;  %5825 = vmatpush3.bf16.msra.mxu0 %v6112_v8  ;;  %v7302_v33 = vmul.f32 %v721_v63, %v6664_v32  ;;  %v7305_v45 = vpop.permute.xlu1 %526  ;;  %v6114_v46 = vld [vmem:[%s10200_s2 + $0x30] sm:$0xff]  }
  0xef   :  { %v1799_v12 = vsel %vm356_vm0, %v10629_v57, %v1798_v50  ;;  %v849_v15 = vadd.f32 %v841_v61, %v826_v22  ;;  %10630 = vst [vmem:[#allocation28_spill] sm:$0xff] %v7299_v55  ;;  %5826 = vmatprep.subr.bf16.mxu0 %v6113_v6  ;;  %v10631_v50 = vrot.slane %v7055_v59, 1  ;;  %v1888_v4 = vrot.slane %v1878_v13, 1 }
  0xf0   :  { %v2278_v34 = vrot.slane %v2276_v56, 1  ;;  %v803_v56 = vmul.f32 %v721_v63, %v6660_v31  ;;  %v6115_v63 = vld [vmem:[%s10200_s2 + $0x78] sm:$0xff]   ;;  %v10632_v22 = vrot.slane %v7246_v42, 1  ;;  %v10633_v61 = vrot.slane %v6990_v27, 1  ;;  %5855 = vmatpush3.bf16.msra.mxu1 %v6114_v46 }
  0xf1   :  { %v872_v8 = vadd.f32 %v6862_v18, %v849_v15  ;;  %v1822_v1 = vsel %vm356_vm0, %v10631_v50, %v1821_v25  ;;  %v1806_v18 = vadd.f32 %v1799_v12, %v7147_v60  ;;  %v1850_v13 = vmul.f32 %v7143_v47, %v6660_v31  ;;  %5856 = vmatprep.subr.bf16.mxu1 %v6115_v63 }
  0xf2   :  { %v2279_v39 = vsel %vm2043_vm1, %v2274_v51, %v2278_v34  ;;  %v7324_v6 = vsel %vm356_vm0, %v10633_v61, %v10632_v22  ;;  %v10635_v51 = vmov 2   ;;  %v1830_v15 = vadd.f32 %v1821_v25, %v1807_v20  ;;  %v7346_v25 = vpop.permute.xlu0 %1386  ;;  %5827 = vmatpush3.bf16.msra.mxu0 %v6114_v46  ;;  %v7366_v59 = vpop.permute.xlu1 %534 }
  0xf3   :  { %2283 = vrot.lane.b32.xlu0 %v2279_v39, %s6469_s9  ;;  %10634 = vst [vmem:[#allocation29_spill] sm:$0xff] %v7324_v6  ;;  %6070 = vset.pattern.permute.xlu1 %v10635_v51  ;;  %v876_v57 = vadd.f32 %v872_v8, %v6685_v40  ;;  %v6384_v39 = vld [vmem:[%s10198_s0 + $0x10] sm:$0xff]  ;;  %v7337_v27 = vmul.f32 %v7289_v3, %v6647_v26  ;;  %v2280_v50 = vshrl.u32 %v7256_v54, 16  ;;  %10636 = vst [vmem:[#allocation30_spill] sm:$0xff] %v7346_v25 }
  0xf4   :  { %440 = vperm.xlu1 %6070, %v6384_v39   ;;  %v618_v60 = vmul.f32 %v7289_v3, %v6660_v31  ;;  %v1829_v12 = vadd.f32 %v1822_v1, %v1806_v18  ;;  %v1870_v47 = vmul.f32 %v7188_v17, %v6664_v32  ;;  %v1901_v20 = vmul.f32 %v7188_v17, %v6647_v26  ;;  %v6116_v39 = vld [vmem:[%s10200_s2 + $0x38] sm:$0xff]  }
  0xf5   :  { %v10637_v22 = vrot.slane %v7069_v35, 1  ;;  %v1944_v1 = vmul.f32 %v7188_v17, %v6660_v31  ;;  %v7356_v18 = vmul.f32 %v7188_v17, %v6652_v28  ;;  %5828 = vmatprep.subr.bf16.mxu0 %v6115_v63  ;;  %v7364_v35 = vmul.f32 %v7289_v3, %v6652_v28  ;;  %10638 = vst [vmem:[#allocation31_spill] sm:$0xff] %v7366_v59 }
  0xf6   :  { %v2282_v46 = vor.u32 %v2280_v50, %v2278_v34  ;;  %v1911_v8 = vrot.slane %v1901_v20, 1  ;;  %v880_v6 = vmax.f32 %v876_v57, 0.0  ;;  %v7369_v17 = vadd.f32 %v1830_v15, %v6685_v40  ;;  %5857 = vmatpush3.bf16.msra.mxu1 %v6116_v39  ;;  %5829 = vmatpush3.bf16.msra.mxu0 %v6116_v39 }
  0xf7   :  { %v1889_v61 = vsel %vm356_vm0, %v10637_v22, %v1888_v4  ;;  %329 = vperm.xlu0 %6065, %v7284_v11   ;;  %v1874_v22 = vadd.f32 %v1870_v47, %v1850_v13  ;;  %v1968_v42 = vadd.f32 %v7105_v48, %v1944_v1  ;;  %v1982_v55 = vrot.slane %v7356_v18, 1  ;;  %v10641_v13 = vld [vmem:[#allocation11_spill] sm:$0xff]  ;;  %5898 = vmatprep.subr.bf16.mxu1 %v7082_v0 }
  0xf8   :  { %6072 = vset.pattern.permute.xlu1 %v10626_v44  ;;  %v10639_v63 = vrot.slane %v7273_v37, 1  ;;  %v10640_v3 = vrot.slane %v7216_v49, 1  ;;  %v7382_v50 = vadd.f32 %v10641_v13, %v803_v56  ;;  %v7387_v48 = vmul.f32 %v7346_v25, %v6647_v26  ;;  %5870 = vmatprep.subr.bf16.mxu0 %v7082_v0 }
  0xf9   :  { %2285 = vrot.lane.b32.xlu1 %v2282_v46, %s6469_s9  ;;  %v1897_v57 = vadd.f32 %v1888_v4, %v1874_v22  ;;  %v1977_v15 = vrot.slane %v7196_v23, 1  ;;  %v7391_v47 = vadd.f32 %v7167_v24, %v618_v60  ;;  %v10642_v20 = vrot.slane %v6980_v29, 1  ;;  %v1573_v60 = vpop.permute.xlu0 %1572  ;;  %v7425_v46 = vpop.permute.xlu1 %622 }
  0xfa   :  { %v7379_v34 = vsel %vm356_vm0, %v10640_v3, %v10639_v63  ;;  %v7398_v56 = vmul.f32 %v7346_v25, %v6652_v28  ;;  %v7401_v4 = vadd.f32 %v1829_v12, %v6685_v40  ;;  %v1896_v1 = vadd.f32 %v1889_v61, %v7159_v41  ;;  %v6385_v12 = vld [vmem:[%s10198_s0] sm:$0xff] }
  0xfb   :  { %v1912_v3 = vsel %vm356_vm0, %v10642_v20, %v1911_v8  ;;  %v581_v23 = vrot.slane %v7337_v27, 1  ;;  %6069 = vset.pattern.permute.xlu0 %v10635_v51  ;;  %v1991_v24 = vadd.f32 %v1982_v55, %v1968_v42  ;;  %v7408_v29 = vmul.f32 %v880_v6, %v6694_v43 }
  0xfc   :  { %432 = vperm.xlu0 %6069, %v6385_v12   ;;  %v7417_v41 = vmul.f32 %v7346_v25, %v6660_v31  ;;  %v1919_v42 = vadd.f32 %v1912_v3, %v1896_v1  ;;  %v1920_v27 = vadd.f32 %v1911_v8, %v1897_v57  ;;  %v7423_v6 = vmul.f32 %v1573_v60, %v6664_v32 }
  0xfd   :  { %10643 = vst [vmem:[#allocation11_spill] sm:$0xff] %v7408_v29  ;;  %2266 = vrot.lane.b32.xlu1 %v7256_v54, %s6469_s9  ;;  %v7430_v63 = vmul.f32 %v1573_v60, %v6647_v26  ;;  %v1661_v13 = vmul.f32 %v1573_v60, %v6660_v31  ;;  %v10644_v8 = vrot.slane %v6970_v2, 1  ;;  %v10645_v54 = vrot.slane %v7108_v7, 1 }
  0xfe   :  { %v1942_v3 = vmul.f32 %v6906_v38, %v6660_v31  ;;  %v1962_v0 = vmul.f32 %v7227_v53, %v6664_v32  ;;  %v1993_v1 = vmul.f32 %v7227_v53, %v6647_v26  ;;  %v10646_v22 = vrot.slane %v7020_v10, 1  ;;  %v7473_v10 = vpop.permute.xlu1 %630 }
  0xff   :  { %v1979_v57 = vsel %vm356_vm0, %v1977_v15, %v10644_v8  ;;  %v2014_v20 = vadd.f32 %v10645_v54, %v1991_v24  ;;  %v10647_v61 = vmov %v10644_v8  ;;  %v1943_v24 = vmul.f32 %v6954_v5, %v6660_v31 }
 0x100   :  { %444 = vperm.xlu0 %6069, %v7284_v11   ;;  %v1981_v15 = vsel %vm356_vm0, %v10647_v61, %v10646_v22  ;;  %v1963_v38 = vmul.f32 %v7268_v21, %v6664_v32  ;;  %v1994_v8 = vmul.f32 %v7268_v21, %v6647_v26  ;;  %v1988_v54 = vadd.f32 %v1979_v57, %v7224_v36 }
 0x101   :  { %v1966_v53 = vadd.f32 %v1962_v0, %v1942_v3  ;;  %v2001_v18 = vrot.slane %v1993_v1, 1  ;;  %v572_v11 = vmul.f32 %v7305_v45, %v6647_v26  ;;  %v10648_v2 = vmov %v10646_v22 }
 0x102   :  { %v1983_v61 = vsel %vm356_vm0, %v10648_v2, %v1982_v55  ;;  %v1967_v22 = vadd.f32 %v1963_v38, %v1943_v24  ;;  %v2003_v39 = vrot.slane %v1994_v8, 1  ;;  %v645_v5 = vmul.f32 %v7305_v45, %v6652_v28 }
 0x103   :  { %v10649_v25 = vrot.slane %v7048_v30, 1  ;;  %v580_v29 = vrot.slane %v572_v11, 1  ;;  %v617_v36 = vmul.f32 %v7305_v45, %v6660_v31  ;;  %v7471_v57 = vmul.f32 %v7366_v59, %v6647_v26 }
 0x104   :  { %v1989_v55 = vadd.f32 %v1981_v15, %v1966_v53  ;;  %6071 = vset.pattern.permute.xlu0 %v10626_v44  ;;  %v1990_v0 = vadd.f32 %v1983_v61, %v1967_v22  ;;  %v2004_v1 = vsel %vm356_vm0, %v2001_v18, %v2003_v39  ;;  %v10650_v30 = vrot.slane %v7108_v7, 1 }
 0x105   :  { %v2002_v21 = vsel %vm356_vm0, %v10649_v25, %v2001_v18  ;;  %290 = vperm.xlu0 %6071, %v6385_v12   ;;  %v7481_v24 = vsel %vm356_vm0, %v580_v29, %v581_v23  ;;  %v653_v38 = vrot.slane %v645_v5, 1  ;;  %v10248_v8 = vrot.slane %v7471_v57, 1 }
 0x106   :  { %v2011_v3 = vadd.f32 %v2002_v21, %v1988_v54  ;;  %v2006_v25 = vsel %vm356_vm0, %v2003_v39, %v10650_v30  ;;  %10651 = vst [vmem:[#allocation32_spill] sm:$0xff] %v7481_v24  ;;  %v7485_v11 = vadd.f32 %v1919_v42, %v6685_v40  ;;  %v7488_v15 = vmul.f32 %v1573_v60, %v6652_v28  ;;  %v713_v21 = vpop.permute.xlu1 %712 }
 0x107   :  { %v2012_v54 = vadd.f32 %v2004_v1, %v1989_v55  ;;  %v7492_v18 = vmul.f32 %v7366_v59, %v6652_v28  ;;  %v7495_v7 = vadd.f32 %v1920_v27, %v6685_v40  ;;  %v7501_v39 = vsel %vm356_vm0, %v581_v23, %v10248_v8 }
 0x108   :  { %v2015_v29 = vadd.f32 %v2011_v3, %v6685_v40  ;;  %10652 = vst [vmem:[#allocation33_spill] sm:$0xff] %v7501_v39  ;;  %v637_v12 = vmul.f32 %v7425_v46, %v6664_v32  ;;  %v2013_v60 = vadd.f32 %v2006_v25, %v1990_v0  ;;  %v10653_v53 = vrot.slane %v7364_v35, 1 }
 0x109   :  { %v10245_v42 = vrot.slane %v7492_v18, 1  ;;  %v668_v27 = vmul.f32 %v7425_v46, %v6647_v26  ;;  %v7512_v61 = vadd.f32 %v2014_v20, %v6685_v40  ;;  %v7516_v23 = vadd.f32 %v6987_v19, %v1661_v13 }
 0x10a   :  { %v655_v2 = vsel %vm356_vm0, %v653_v38, %v10653_v53  ;;  %v641_v5 = vadd.f32 %v637_v12, %v617_v36  ;;  %v2016_v3 = vadd.f32 %v2012_v54, %v6685_v40  ;;  %v10654_v0 = vmov %v10653_v53 }
 0x10b   :  { %v657_v1 = vsel %vm356_vm0, %v10654_v0, %v10245_v42  ;;  %v676_v30 = vrot.slane %v668_v27, 1  ;;  %v2019_v25 = vmax.f32 %v2015_v29, 0.0  ;;  %v7528_v19 = vmul.f32 %v7473_v10, %v6647_v26  ;;  %v10657_v0 = vld [vmem:[#allocation21_spill] sm:$0xff] }
 0x10c   :  { %v664_v38 = vadd.f32 %v655_v2, %v641_v5  ;;  %v7531_v13 = vadd.f32 %v2013_v60, %v6685_v40  ;;  %v665_v36 = vadd.f32 %v657_v1, %v7391_v47  ;;  %v10655_v54 = vrot.slane %v7173_v52, 1  ;;  %v10656_v2 = vld [vmem:[#allocation23_spill] sm:$0xff] }
 0x10d   :  { %v7539_v12 = vmul.f32 %v7473_v10, %v6652_v28  ;;  %v10247_v29 = vrot.slane %v7528_v19, 1  ;;  %v1831_v27 = vadd.f32 %v10656_v2, %v6685_v40  ;;  %v1832_v60 = vadd.f32 %v7156_v16, %v6685_v40  ;;  %v7557_v16 = vpop.permute.xlu1 %538 }
 0x10e   :  { %v678_v35 = vsel %vm356_vm0, %v676_v30, %v10655_v54  ;;  %v2020_v5 = vmax.f32 %v2016_v3, 0.0  ;;  %v1918_v1 = vadd.f32 %v10657_v0, %v7164_v9  ;;  %v1925_v30 = vmax.f32 %v7295_v14, 0.0 }
 0x10f   :  { %v687_v53 = vadd.f32 %v678_v35, %v664_v38  ;;  %v10246_v47 = vrot.slane %v7539_v12, 1  ;;  %v735_v54 = vmul.f32 %v7425_v46, %v6652_v28  ;;  %v10658_v38 = vrot.slane %v7173_v52, 1 }
 0x110   :  { %v1835_v2 = vmax.f32 %v1831_v27, 0.0  ;;  %v1836_v55 = vmax.f32 %v1832_v60, 0.0  ;;  %v10659_v9 = vrot.slane %v7181_v58, 1  ;;  %v1922_v0 = vadd.f32 %v1918_v1, %v6685_v40 }
 0x111   :  { %v680_v35 = vsel %vm356_vm0, %v10658_v38, %v10247_v29  ;;  %v1929_v22 = vmul.f32 %v1925_v30, %v6694_v43  ;;  %v691_v42 = vadd.f32 %v687_v53, %v6685_v40  ;;  %v2021_v1 = vmax.f32 %v7531_v13, 0.0 }
 0x112   :  { %v688_v3 = vadd.f32 %v680_v35, %v665_v36  ;;  %v747_v14 = vsel %vm356_vm0, %v10659_v9, %v10246_v47  ;;  %v1839_v27 = vmul.f32 %v1835_v2, %v6694_v43  ;;  %v1840_v60 = vmul.f32 %v1836_v55, %v6694_v43  ;;  %v10660_v47 = vld [vmem:[#allocation12_spill] sm:$0xff] }
 0x113   :  { %v755_v52 = vadd.f32 %v747_v14, %v7232_v62  ;;  %v619_v36 = vmul.f32 %v7366_v59, %v6660_v31  ;;  %v1926_v35 = vmax.f32 %v1922_v0, 0.0  ;;  %v2023_v9 = vmul.f32 %v2019_v25, %v6694_v43 }
 0x114   :  { %v692_v38 = vadd.f32 %v688_v3, %v6685_v40  ;;  %v707_v30 = vmul.f32 %v7425_v46, %v6660_v31  ;;  %v743_v53 = vrot.slane %v735_v54, 1  ;;  %v1933_v62 = vadd.f32 %v1929_v22, %v10660_v47  ;;  %v7586_v46 = vpop.permute.xlu1 %634 }
 0x115   :  { %v639_v2 = vmul.f32 %v7473_v10, %v6664_v32  ;;  %v778_v55 = vadd.f32 %v7379_v34, %v755_v52  ;;  %v1930_v14 = vmul.f32 %v1926_v35, %v6694_v43  ;;  %v2024_v3 = vmul.f32 %v2020_v5, %v6694_v43 }
 0x116   :  { %v695_v0 = vmax.f32 %v691_v42, 0.0  ;;  %v1843_v25 = vadd.f32 %v1839_v27, %v10660_v47  ;;  %v1844_v13 = vadd.f32 %v1840_v60, %v10660_v47  ;;  %v2027_v29 = vadd.f32 %v2023_v9, %v10660_v47 }
 0x117   :  { %v696_v54 = vmax.f32 %v692_v38, 0.0  ;;  %v1934_v22 = vadd.f32 %v1930_v14, %v10660_v47  ;;  %v2028_v8 = vadd.f32 %v2024_v3, %v10660_v47  ;;  %v727_v34 = vmul.f32 %v713_v21, %v6664_v32  ;;  %v10662_v3 = vld [vmem:[#allocation15_spill] sm:$0xff] }
 0x118   :  { %v1937_v52 = vmax.f32 %v1843_v25, %v1933_v62  ;;  %v10661_v35 = vrot.slane %v7181_v58, 1  ;;  %v758_v5 = vmul.f32 %v713_v21, %v6647_v26  ;;  %v801_v27 = vmul.f32 %v713_v21, %v6660_v31 }
 0x119   :  { %v782_v60 = vadd.f32 %v778_v55, %v6685_v40  ;;  %v1938_v9 = vmax.f32 %v1844_v13, %v1934_v22  ;;  %v731_v20 = vadd.f32 %v727_v34, %v707_v30  ;;  %v829_v38 = vmul.f32 %v713_v21, %v6652_v28  ;;  %v7610_v22 = vpop.permute.xlu1 %724 }
 0x11a   :  { %v745_v42 = vsel %vm356_vm0, %v743_v53, %v10661_v35  ;;  %v2031_v14 = vmax.f32 %v1937_v52, %v2027_v29  ;;  %v766_v24 = vrot.slane %v758_v5, 1  ;;  %v825_v39 = vadd.f32 %v10662_v3, %v801_v27 }
 0x11b   :  { %v1837_v62 = vmax.f32 %v7401_v4, 0.0  ;;  %v2032_v25 = vmax.f32 %v1938_v9, %v2028_v8  ;;  %v754_v58 = vadd.f32 %v745_v42, %v731_v20  ;;  %v837_v59 = vrot.slane %v829_v38, 1  ;;  %v10668_v9 = vld [vmem:[#allocation14_spill] sm:$0xff] }
 0x11c   :  { %v10663_v53 = vmax.f32 %v7369_v17, 0.0  ;;  %v709_v55 = vmul.f32 %v7473_v10, %v6660_v31  ;;  %v10664_v30 = vrot.slane %v7216_v49, 1  ;;  %v1927_v13 = vmax.f32 %v7485_v11, 0.0  ;;  %v10665_v17 = vld [vmem:[#allocation24_spill] sm:$0xff] }
 0x11d   :  { %v1841_v29 = vmul.f32 %v1837_v62, %v6694_v43  ;;  %v699_v4 = vmul.f32 %v695_v0, %v6694_v43  ;;  %v700_v8 = vmul.f32 %v696_v54, %v6694_v43  ;;  %v2035_v20 = vpack.c.bf16 %v2032_v25, %v2031_v14  ;;  %v7629_v14 = vpop.permute.xlu1 %1390 }
 0x11e   :  { %v1842_v35 = vmul.f32 %v10663_v53, %v6694_v43  ;;  %v768_v21 = vsel %vm356_vm0, %v766_v24, %v10664_v30  ;;  %v10666_v34 = vrot.slane %v10665_v17, 1  ;;  %v786_v10 = vmax.f32 %v782_v60, 0.0  ;;  %10669 = vst [vmem:[#allocation23_spill] sm:$0xff] %v7629_v14 }
 0x11f   :  { %v1931_v49 = vmul.f32 %v1927_v13, %v6694_v43  ;;  %v10667_v24 = vmax.f32 %v7495_v7, 0.0  ;;  %2479 = vrot.lane.b32.xlu0 %v2035_v20, %s6469_s9  ;;  %v777_v11 = vadd.f32 %v768_v21, %v754_v58  ;;  %v2022_v54 = vmax.f32 %v7512_v61, 0.0 }
 0x120   :  { %v839_v52 = vsel %vm356_vm0, %v837_v59, %v10666_v34  ;;  %v1846_v0 = vadd.f32 %v1842_v35, %v10660_v47  ;;  %v2025_v27 = vmul.f32 %v2021_v1, %v6694_v43  ;;  %v1845_v59 = vadd.f32 %v1841_v29, %v10660_v47 }
 0x121   :  { %v848_v42 = vadd.f32 %v839_v52, %v825_v39  ;;  %v1932_v5 = vmul.f32 %v10667_v24, %v6694_v43  ;;  %v1935_v39 = vadd.f32 %v1931_v49, %v10660_v47  ;;  %v643_v7 = vadd.f32 %v639_v2, %v619_v36  ;;  %v7662_v49 = vpop.permute.xlu1 %1394 }
 0x122   :  { %v2486_v3 = vshll.u32 %v2035_v20, 16  ;;  %v2026_v62 = vmul.f32 %v2022_v54, %v6694_v43  ;;  %v2029_v25 = vadd.f32 %v2025_v27, %v10660_v47  ;;  %v7634_v61 = vadd.f32 %v699_v4, %v10660_v47  ;;  %10670 = vst [vmem:[#allocation21_spill] sm:$0xff] %v7662_v49 }
 0x123   :  { %v871_v38 = vadd.f32 %v10668_v9, %v848_v42  ;;  %v1936_v60 = vadd.f32 %v1932_v5, %v10660_v47  ;;  %v733_v1 = vadd.f32 %v7302_v33, %v709_v55  ;;  %v1939_v58 = vmax.f32 %v1845_v59, %v1935_v39 }
 0x124   :  { %v7638_v35 = vadd.f32 %v700_v8, %v10660_v47  ;;  %v7641_v30 = vmul.f32 %v786_v10, %v6694_v43  ;;  %v2030_v36 = vadd.f32 %v2026_v62, %v10660_v47  ;;  %v7646_v2 = vmul.f32 %v7557_v16, %v6647_v26 }
 0x125   :  { %v1940_v53 = vmax.f32 %v1846_v0, %v1936_v60  ;;  %v7649_v21 = vadd.f32 %v777_v11, %v6685_v40  ;;  %v2033_v29 = vmax.f32 %v1939_v58, %v2029_v25  ;;  %v620_v33 = vmul.f32 %v7557_v16, %v6660_v31 }
 0x126   :  { %v648_v55 = vmul.f32 %v7557_v16, %v6652_v28  ;;  %v2488_v4 = vrot.slane %v2486_v3, 1  ;;  %v10250_v8 = vrot.slane %v7646_v2, 1  ;;  %v640_v17 = vmul.f32 %v7586_v46, %v6664_v32 }
 0x127   :  { %v2034_v13 = vmax.f32 %v1940_v53, %v2030_v36  ;;  %v2484_v34 = vshrl.u32 %v2035_v20, 16  ;;  %v671_v10 = vmul.f32 %v7586_v46, %v6647_v26  ;;  %v710_v42 = vmul.f32 %v7586_v46, %v6660_v31 }
 0x128   :  { %v658_v52 = vrot.slane %v648_v55, 1  ;;  %v10671_v5 = vrot.slane %v7471_v57, 1  ;;  %v644_v0 = vadd.f32 %v640_v17, %v620_v33  ;;  %v738_v20 = vmul.f32 %v7586_v46, %v6652_v28  ;;  %v7692_v17 = vpop.permute.xlu1 %1486 }
 0x129   :  { %v2036_v24 = vpack.c.bf16 %v2034_v13, %v2033_v29  ;;  %v875_v54 = vadd.f32 %v871_v38, %v6685_v40  ;;  %v10672_v27 = vrot.slane %v7492_v18, 1  ;;  %v681_v59 = vrot.slane %v671_v10, 1 }
 0x12a   :  { %v7669_v11 = vsel %vm356_vm0, %v10671_v5, %v10250_v8  ;;  %v730_v39 = vmul.f32 %v7610_v22, %v6664_v32  ;;  %v2489_v57 = vor.u32 %v2488_v4, %v2484_v34  ;;  %v667_v62 = vadd.f32 %v658_v52, %v644_v0 }
 0x12b   :  { %v659_v9 = vsel %vm356_vm0, %v10672_v27, %v658_v52  ;;  %2481 = vrot.lane.b32.xlu0 %v2036_v24, %s6469_s9  ;;  %v2491_v60 = vshll.u32 %v2036_v24, 16  ;;  %v10673_v25 = vrot.slane %v7528_v19, 1  ;;  %v748_v58 = vrot.slane %v738_v20, 1  ;;  %v6386_v52 = vld [vmem:[%s10198_s0 + $0x28] sm:$0xff] }
 0x12c   :  { %v666_v3 = vadd.f32 %v659_v9, %v643_v7  ;;  %v734_v38 = vadd.f32 %v730_v39, %v710_v42  ;;  %v761_v18 = vmul.f32 %v7610_v22, %v6647_v26  ;;  %v690_v29 = vadd.f32 %v681_v59, %v667_v62  ;;  %v10676_v27 = vld [vmem:[#allocation16_spill] sm:$0xff] }
 0x12d   :  { %v682_v46 = vsel %vm356_vm0, %v10673_v25, %v681_v59  ;;  %v2493_v53 = vrot.slane %v2491_v60, 1  ;;  %v804_v33 = vmul.f32 %v7610_v22, %v6660_v31  ;;  %v10674_v55 = vrot.slane %v7539_v12, 1 }
 0x12e   :  { %v689_v36 = vadd.f32 %v682_v46, %v666_v3  ;;  %v757_v13 = vadd.f32 %v748_v58, %v734_v38  ;;  %v771_v4 = vrot.slane %v761_v18, 1  ;;  %v832_v19 = vmul.f32 %v7610_v22, %v6652_v28 }
 0x12f   :  { %v749_v7 = vsel %vm356_vm0, %v10674_v55, %v748_v58  ;;  %v2494_v34 = vsel %vm2043_vm1, %v2489_v57, %v2493_v53  ;;  %1184 = vperm.xlu0 %6071, %v6386_v52   ;;  %v2495_v10 = vshrl.u32 %v2036_v24, 16  ;;  %v694_v12 = vadd.f32 %v690_v29, %v6685_v40  ;;  %v10678_v58 = vld [vmem:[#allocation26_spill] sm:$0xff] }
 0x130   :  { %v693_v42 = vadd.f32 %v689_v36, %v6685_v40  ;;  %2498 = vrot.lane.b32.xlu1 %v2494_v34, %s6469_s9  ;;  %v756_v5 = vadd.f32 %v749_v7, %v733_v1  ;;  %v10675_v0 = vrot.slane %v7273_v37, 1  ;;  %v780_v20 = vadd.f32 %v771_v4, %v757_v13  ;;  %v10680_v13 = vld [vmem:[#allocation13_spill] sm:$0xff] }
 0x131   :  { %v828_v9 = vadd.f32 %v10676_v27, %v804_v33  ;;  %v785_v59 = vmax.f32 %v7649_v21, 0.0  ;;  %v879_v39 = vmax.f32 %v875_v54, 0.0  ;;  %v698_v57 = vmax.f32 %v694_v12, 0.0  ;;  %v7717_v33 = vpop.permute.xlu1 %1490  ;;  %v10682_v12 = vld [vmem:[#allocation17_spill] sm:$0xff] }
 0x132   :  { %v772_v22 = vsel %vm356_vm0, %v10675_v0, %v771_v4  ;;  %v842_v60 = vrot.slane %v832_v19, 1  ;;  %v2497_v24 = vor.u32 %v2495_v10, %v2493_v53  ;;  %v784_v62 = vadd.f32 %v780_v20, %v6685_v40 }
 0x133   :  { %v779_v3 = vadd.f32 %v772_v22, %v756_v5  ;;  %v1433_v25 = vmul.f32 %v7629_v14, %v6647_v26  ;;  %v10677_v1 = vmov 1   ;;  %v697_v37 = vmax.f32 %v693_v42, 0.0 }
 0x134   :  { %6074 = vset.pattern.permute.xlu0 %v10677_v1  ;;  %v702_v46 = vmul.f32 %v698_v57, %v6694_v43  ;;  %v10679_v38 = vrot.slane %v10678_v58, 1  ;;  %v851_v21 = vadd.f32 %v842_v60, %v828_v9  ;;  %2500 = vrot.lane.b32.xlu1 %v2497_v24, %s6469_s9  ;;  %v788_v53 = vmax.f32 %v784_v62, 0.0 }
 0x135   :  { %1206 = vperm.xlu0 %6074, %v6386_v52   ;;  %v783_v54 = vadd.f32 %v779_v3, %v6685_v40  ;;  %v1441_v29 = vrot.slane %v1433_v25, 1  ;;  %v789_v55 = vmul.f32 %v785_v59, %v6694_v43  ;;  %v883_v7 = vmul.f32 %v879_v39, %v6694_v43 }
 0x136   :  { %v843_v18 = vsel %vm356_vm0, %v10679_v38, %v842_v60  ;;  %v10681_v4 = vrot.slane %v10680_v13, 1  ;;  %v1506_v34 = vmul.f32 %v7629_v14, %v6652_v28  ;;  %v792_v42 = vmul.f32 %v788_v53, %v6694_v43  ;;  %v1577_v38 = vpop.permute.xlu1 %1576  ;;  %v1483_v13 = vpop.permute.xlu0 %1482 }
 0x137   :  { %v850_v36 = vadd.f32 %v843_v18, %v7382_v50  ;;  %v787_v10 = vmax.f32 %v783_v54, 0.0  ;;  %v10683_v50 = vrot.slane %v7387_v48, 1  ;;  %v701_v22 = vmul.f32 %v697_v37, %v6694_v43  ;;  %v7746_v48 = vld [vmem:[%s10198_s0 + $0x20] sm:$0xff] }
 0x138   :  { %v874_v19 = vadd.f32 %v10681_v4, %v851_v21  ;;  %v1478_v27 = vmul.f32 %v7629_v14, %v6660_v31  ;;  %v7738_v9 = vmul.f32 %v7662_v49, %v6647_v26  ;;  %v7741_v59 = vadd.f32 %v702_v46, %v10660_v47  ;;  %1179 = vperm.xlu1 %6072, %v7746_v48  }
 0x139   :  { %v873_v5 = vadd.f32 %v10682_v12, %v850_v36  ;;  %v7730_v0 = vsel %vm356_vm0, %v10683_v50, %v1441_v29  ;;  %6076 = vset.pattern.permute.xlu0 %v10635_v51  ;;  %v791_v39 = vmul.f32 %v787_v10, %v6694_v43  ;;  %v7752_v57 = vadd.f32 %v792_v42, %v10660_v47  ;;  %v6388_v36 = vld [vmem:[%s10198_s0 + $0x30] sm:$0xff] }
 0x13a   :  { %10684 = vst [vmem:[#allocation12_spill] sm:$0xff] %v7730_v0  ;;  %v878_v20 = vadd.f32 %v874_v19, %v6685_v40  ;;  %v1514_v60 = vrot.slane %v1506_v34, 1  ;;  %1296 = vperm.xlu0 %6076, %v6386_v52   ;;  %v10252_v62 = vrot.slane %v7738_v9, 1  ;;  %v7758_v25 = vmul.f32 %v7662_v49, %v6652_v28  ;;  %v1495_v14 = vpop.permute.xlu0 %1494 }
 0x13b   :  { %v877_v24 = vadd.f32 %v873_v5, %v6685_v40  ;;  %v7762_v37 = vadd.f32 %v7641_v30, %v10660_v47  ;;  %v7765_v46 = vadd.f32 %v789_v55, %v10660_v47  ;;  %v7768_v58 = vadd.f32 %v883_v7, %v10660_v47 }
 0x13c   :  { %v882_v3 = vmax.f32 %v878_v20, 0.0  ;;  %v1498_v52 = vmul.f32 %v7692_v17, %v6664_v32  ;;  %v7773_v18 = vadd.f32 %v701_v22, %v10660_v47  ;;  %v7778_v21 = vsel %vm356_vm0, %v1441_v29, %v10252_v62  ;;  %1189 = vperm.xlu1 %6072, %v6388_v36  }
 0x13d   :  { %10685 = vst [vmem:[#allocation15_spill] sm:$0xff] %v7778_v21  ;;  %v10251_v30 = vrot.slane %v7758_v25, 1  ;;  %v1529_v54 = vmul.f32 %v7692_v17, %v6647_v26  ;;  %v7784_v53 = vadd.f32 %v791_v39, %v10660_v47  ;;  %v1479_v55 = vmul.f32 %v7662_v49, %v6660_v31 }
 0x13e   :  { %v1502_v7 = vadd.f32 %v1498_v52, %v1478_v27  ;;  %v1596_v29 = vmul.f32 %v7692_v17, %v6652_v28  ;;  %v881_v19 = vmax.f32 %v877_v24, 0.0  ;;  %v886_v34 = vmul.f32 %v882_v3, %v6694_v43  ;;  %1300 = vperm.xlu0 %6076, %v6388_v36  }
 0x13f   :  { %v1517_v10 = vsel %vm356_vm0, %v1514_v60, %v10251_v30  ;;  %v1537_v12 = vrot.slane %v1529_v54, 1  ;;  %v1568_v5 = vmul.f32 %v7692_v17, %v6660_v31  ;;  %v7803_v50 = vmul.f32 %v7717_v33, %v6647_v26 }
 0x140   :  { %v1525_v42 = vadd.f32 %v1517_v10, %v1502_v7  ;;  %v1604_v22 = vrot.slane %v1596_v29, 1  ;;  %v7807_v20 = vmul.f32 %v7717_v33, %v6652_v28  ;;  %v1497_v27 = vmul.f32 %v1483_v13, %v6664_v32  ;;  %6073 = vset.pattern.permute.xlu1 %v10677_v1  ;;  %v7818_v7 = vpop.permute.xlu1 %1398 }
 0x141   :  { %v10686_v39 = vrot.slane %v7398_v56, 1  ;;  %v1539_v3 = vrot.slane %v7803_v50, 1  ;;  %v1528_v17 = vmul.f32 %v1483_v13, %v6647_v26  ;;  %v1567_v52 = vmul.f32 %v1483_v13, %v6660_v31  ;;  %1202 = vperm.xlu1 %6073, %v7746_v48  }
 0x142   :  { %v1595_v54 = vmul.f32 %v1483_v13, %v6652_v28  ;;  %v1501_v56 = vadd.f32 %v1497_v27, %v7417_v41  ;;  %v7825_v10 = vmul.f32 %v1577_v38, %v6647_v26  ;;  %v1499_v4 = vmul.f32 %v7717_v33, %v6664_v32 }
 0x143   :  { %v1515_v24 = vsel %vm356_vm0, %v10686_v39, %v1514_v60  ;;  %v1588_v60 = vmul.f32 %v1577_v38, %v6664_v32  ;;  %v10687_v39 = vmov 9   ;;  %v1540_v8 = vsel %vm356_vm0, %v1537_v12, %v1539_v3 }
 0x144   :  { %6100 = vset.pattern.permute.xlu0 %v10687_v39  ;;  %v1536_v13 = vrot.slane %v1528_v17, 1  ;;  %v1591_v30 = vadd.f32 %v7423_v6, %v1567_v52  ;;  %v1603_v62 = vrot.slane %v1595_v54, 1  ;;  %v1548_v29 = vadd.f32 %v1540_v8, %v1525_v42 }
 0x145   :  { %v1524_v41 = vadd.f32 %v1515_v24, %v1501_v56  ;;  %v1592_v27 = vadd.f32 %v1588_v60, %v1568_v5  ;;  %v1627_v39 = vrot.slane %v7825_v10, 1  ;;  %v1662_v49 = vmul.f32 %v1577_v38, %v6660_v31  ;;  %1210 = vperm.xlu1 %6073, %v6388_v36  }
 0x146   :  { %v1538_v0 = vsel %vm356_vm0, %v1536_v13, %v1537_v12  ;;  %v1605_v21 = vsel %vm356_vm0, %v1603_v62, %v1604_v22  ;;  %v885_v17 = vmul.f32 %v881_v19, %v6694_v43  ;;  %v10688_v54 = vrot.slane %v7807_v20, 1  ;;  %v10692_v13 = vld [vmem:[#allocation11_spill] sm:$0xff] }
 0x147   :  { %v1547_v6 = vadd.f32 %v1538_v0, %v1524_v41  ;;  %v1614_v52 = vadd.f32 %v1605_v21, %v1591_v30  ;;  %v890_v42 = vadd.f32 %v886_v34, %v10660_v47  ;;  %v1569_v12 = vmul.f32 %v7717_v33, %v6660_v31  ;;  %v7853_v0 = vpop.permute.xlu1 %1580  ;;  %v10690_v33 = vld [vmem:[#allocation18_spill] sm:$0xff] }
 0x148   :  { %v1607_v8 = vsel %vm356_vm0, %v1604_v22, %v10688_v54  ;;  %v10689_v62 = vrot.slane %v7430_v63, 1  ;;  %v7851_v19 = vmul.f32 %v1577_v38, %v6652_v28  ;;  %v1503_v21 = vadd.f32 %v1499_v4, %v1479_v55 }
 0x149   :  { %v7856_v30 = vadd.f32 %v1548_v29, %v6685_v40  ;;  %v1531_v34 = vmul.f32 %v1495_v14, %v6647_v26  ;;  %v7859_v22 = vadd.f32 %v1607_v8, %v1592_v27  ;;  %v7862_v24 = vadd.f32 %v10690_v33, %v1662_v49  ;;  %6075 = vset.pattern.permute.xlu1 %v10635_v51 }
 0x14a   :  { %v1628_v5 = vsel %vm356_vm0, %v10689_v62, %v1627_v39  ;;  %v1698_v63 = vrot.slane %v7851_v19, 1  ;;  %v797_v38 = vmax.f32 %v7634_v61, %v7765_v46  ;;  %v7869_v55 = vadd.f32 %v1547_v6, %v6685_v40  ;;  %1292 = vperm.xlu1 %6075, %v7746_v48  }
 0x14b   :  { %v1637_v36 = vadd.f32 %v1628_v5, %v1614_v52  ;;  %v1500_v4 = vmul.f32 %v1495_v14, %v6664_v32  ;;  %v7873_v29 = vmul.f32 %v1495_v14, %v6652_v28  ;;  %v798_v56 = vmax.f32 %v7638_v35, %v7762_v37 }
 0x14c   :  { %v10691_v61 = vrot.slane %v7488_v15, 1  ;;  %v799_v60 = vmax.f32 %v7773_v18, %v7784_v53  ;;  %v888_v41 = vadd.f32 %v10692_v13, %v10660_v47  ;;  %v1556_v27 = vmax.f32 %v7856_v30, 0.0  ;;  %v1585_v18 = vpop.permute.xlu1 %1584 }
 0x14d   :  { %v7879_v49 = vadd.f32 %v1637_v36, %v6685_v40  ;;  %v1541_v35 = vrot.slane %v1531_v34, 1  ;;  %v1570_v48 = vmul.f32 %v1495_v14, %v6660_v31  ;;  %v889_v37 = vadd.f32 %v885_v17, %v10660_v47 }
 0x14e   :  { %v1699_v46 = vsel %vm356_vm0, %v10691_v61, %v1698_v63  ;;  %v891_v52 = vmax.f32 %v797_v38, %v7768_v58  ;;  %v892_v15 = vmax.f32 %v798_v56, %v888_v41  ;;  %v10693_v54 = vmax.f32 %v7741_v59, %v7752_v57  ;;  %6077 = vset.pattern.permute.xlu1 %v10626_v44  ;;  %v6389_v57 = vld [vmem:[%s10198_s0 + $0x38] sm:$0xff] }
 0x14f   :  { %v1708_v6 = vadd.f32 %v1699_v46, %v7516_v23  ;;  %v1608_v53 = vrot.slane %v7873_v29, 1  ;;  %v893_v62 = vmax.f32 %v799_v60, %v889_v37  ;;  %v7901_v5 = vmul.f32 %v7818_v7, %v6647_v26  ;;  %1194 = vperm.xlu1 %6077, %v6389_v57   ;;  %v10694_v38 = vld [vmem:[#allocation19_spill] sm:$0xff] }
 0x150   :  { %v894_v8 = vmax.f32 %v10693_v54, %v890_v42  ;;  %v1480_v14 = vmul.f32 %v7818_v7, %v6660_v31  ;;  %v1555_v23 = vmax.f32 %v7869_v55, 0.0  ;;  %v1645_v58 = vmax.f32 %v7879_v49, 0.0  ;;  %v296_v60 = vpop.permute.xlu1 %295 }
 0x151   :  { %v7908_v17 = vpack.c.bf16 %v892_v15, %v891_v52  ;;  %v1508_v59 = vmul.f32 %v7818_v7, %v6652_v28  ;;  %v10255_v36 = vrot.slane %v7901_v5, 1  ;;  %v1589_v33 = vmul.f32 %v7853_v0, %v6664_v32 }
 0x152   :  { %v7915_v42 = vpack.c.bf16 %v894_v8, %v893_v62  ;;  %v1504_v34 = vadd.f32 %v1500_v4, %v1480_v14  ;;  %v1731_v29 = vadd.f32 %v10694_v38, %v1708_v6  ;;  %v1542_v56 = vsel %vm356_vm0, %v1539_v3, %v1541_v35 }
 0x153   :  { %v2062_v61 = vshll.u32 %v7908_v17, 16  ;;  %v1518_v46 = vrot.slane %v1508_v59, 1  ;;  %v10695_v41 = vrot.slane %v7738_v9, 1  ;;  %v10696_v37 = vrot.slane %v7807_v20, 1  ;;  %6078 = vset.pattern.permute.xlu1 %v10677_v1 }
 0x154   :  { %v2067_v13 = vshll.u32 %v7915_v42, 16  ;;  %v1620_v50 = vmul.f32 %v7853_v0, %v6647_v26  ;;  %v2060_v3 = vshrl.u32 %v7908_v17, 16  ;;  %v10697_v15 = vrot.slane %v7758_v25, 1  ;;  %1214 = vperm.xlu1 %6078, %v6389_v57  }
 0x155   :  { %v7931_v4 = vsel %vm356_vm0, %v10695_v41, %v10255_v36  ;;  %v1609_v6 = vsel %vm356_vm0, %v10696_v37, %v1608_v53  ;;  %v2064_v52 = vrot.slane %v2062_v61, 1  ;;  %v1527_v8 = vadd.f32 %v1518_v46, %v1504_v34 }
 0x156   :  { %v1519_v54 = vsel %vm356_vm0, %v10697_v15, %v1518_v46  ;;  %v2069_v9 = vrot.slane %v2067_v13, 1  ;;  %v1593_v14 = vadd.f32 %v1589_v33, %v1569_v12  ;;  %v1629_v59 = vrot.slane %v1620_v50, 1  ;;  %v301_v46 = vpop.permute.xlu1 %300 }
 0x157   :  { %v1526_v62 = vadd.f32 %v1519_v54, %v1503_v21  ;;  %v2065_v20 = vor.u32 %v2064_v52, %v2060_v3  ;;  %v1550_v38 = vadd.f32 %v1541_v35, %v1527_v8  ;;  %v1691_v41 = vmul.f32 %v7853_v0, %v6652_v28 }
 0x158   :  { %v1590_v37 = vmul.f32 %v1585_v18, %v6664_v32  ;;  %v2071_v25 = vshrl.u32 %v7915_v42, 16  ;;  %v1630_v34 = vsel %vm356_vm0, %v1627_v39, %v1629_v59  ;;  %v1663_v1 = vmul.f32 %v7853_v0, %v6660_v31  ;;  %6079 = vset.pattern.permute.xlu1 %v10635_v51 }
 0x159   :  { %v1549_v61 = vadd.f32 %v1542_v56, %v1526_v62  ;;  %v7953_v12 = vsel %vm2043_vm1, %v2065_v20, %v2069_v9  ;;  %v1554_v21 = vadd.f32 %v1550_v38, %v6685_v40  ;;  %v1638_v35 = vadd.f32 %v1630_v34, %v7859_v22  ;;  %1304 = vperm.xlu1 %6079, %v6389_v57   ;;  %v10698_v62 = vld [vmem:[#allocation20_spill] sm:$0xff] }
 0x15a   :  { %v1700_v33 = vrot.slane %v1691_v41, 1  ;;  %2074 = vrot.lane.b32.xlu0 %v7953_v12, %s6469_s9  ;;  %v1594_v10 = vadd.f32 %v1590_v37, %v1570_v48  ;;  %v1621_v39 = vmul.f32 %v1585_v18, %v6647_v26  ;;  %v1664_v0 = vmul.f32 %v1585_v18, %v6660_v31  ;;  %v10699_v20 = vld [vmem:[#allocation28_spill] sm:$0xff]  ;;  %v10700_v41 = vld [vmem:[#allocation22_spill] sm:$0xff] }
 0x15b   :  { %v7960_v56 = vadd.f32 %v1549_v61, %v6685_v40  ;;  %v7965_v13 = vadd.f32 %v1731_v29, %v6685_v40  ;;  %v1616_v50 = vadd.f32 %v1609_v6, %v1593_v14  ;;  %v1692_v3 = vmul.f32 %v1585_v18, %v6652_v28  ;;  %v322_v14 = vpop.permute.xlu1 %321 }
 0x15c   :  { %v1701_v22 = vsel %vm356_vm0, %v1698_v63, %v1700_v33  ;;  %v7972_v52 = vor.u32 %v2071_v25, %v2069_v9  ;;  %v1617_v15 = vadd.f32 %v1608_v53, %v1594_v10  ;;  %v1631_v54 = vrot.slane %v1621_v39, 1 }
 0x15d   :  { %v1709_v48 = vadd.f32 %v1701_v22, %v7862_v24  ;;  %v1558_v8 = vmax.f32 %v1554_v21, 0.0  ;;  %v1687_v29 = vadd.f32 %v10698_v62, %v1663_v1  ;;  %v1688_v38 = vadd.f32 %v10699_v20, %v1664_v0  ;;  %2039 = vrot.lane.b32.xlu1 %v7908_v17, %s6469_s9  ;;  %v10701_v1 = vld [vmem:[#allocation25_spill] sm:$0xff] }
 0x15e   :  { %v1702_v51 = vrot.slane %v1692_v3, 1  ;;  %v1557_v6 = vmax.f32 %v7960_v56, 0.0  ;;  %2076 = vrot.lane.b32.xlu0 %v7972_v52, %s6469_s9  ;;  %v1642_v19 = vadd.f32 %v1638_v35, %v6685_v40  ;;  %v1632_v63 = vsel %vm356_vm0, %v1629_v59, %v1631_v54  ;;  %v10703_v0 = vld [vmem:[#allocation29_spill] sm:$0xff] }
 0x15f   :  { %v1640_v18 = vadd.f32 %v1631_v54, %v1617_v15  ;;  %v1639_v57 = vadd.f32 %v1632_v63, %v1616_v50  ;;  %v7984_v9 = vmul.f32 %v6652_v28, %v296_v60  ;;  %v1732_v37 = vadd.f32 %v10700_v41, %v1709_v48 }
 0x160   :  { %v1703_v24 = vsel %vm356_vm0, %v1700_v33, %v1702_v51  ;;  %v1711_v53 = vadd.f32 %v1702_v51, %v1688_v38  ;;  %v313_v34 = vmul.f32 %v6660_v31, %v296_v60  ;;  %v10702_v21 = vrot.slane %v10701_v1, 1 }
 0x161   :  { %v1644_v61 = vadd.f32 %v1640_v18, %v6685_v40  ;;  %v1710_v25 = vadd.f32 %v1703_v24, %v1687_v29  ;;  %v1643_v59 = vadd.f32 %v1639_v57, %v6685_v40  ;;  %v10256_v33 = vrot.slane %v7984_v9, 1  ;;  %2041 = vrot.lane.b32.xlu1 %v7915_v42, %s6469_s9  ;;  %v8022_v18 = vpop.permute.xlu0 %317  ;;  %v8024_v57 = vpop.permute.xlu1 %325 }
 0x162   :  { %v1734_v35 = vadd.f32 %v10702_v21, %v1711_v53  ;;  %v7996_v10 = vmul.f32 %v6652_v28, %v301_v46  ;;  %v337_v22 = vmul.f32 %v6664_v32, %v322_v14  ;;  %v8001_v3 = vmul.f32 %v6647_v26, %v322_v14 }
 0x163   :  { %v1648_v39 = vmax.f32 %v1644_v61, 0.0  ;;  %v1733_v50 = vadd.f32 %v10703_v0, %v1710_v25  ;;  %v1562_v60 = vmul.f32 %v1558_v8, %v6694_v43  ;;  %v1646_v48 = vmax.f32 %v1642_v19, 0.0 }
 0x164   :  { %v1738_v15 = vadd.f32 %v1734_v35, %v6685_v40  ;;  %v360_v54 = vrot.slane %v7996_v10, 1  ;;  %v1736_v62 = vadd.f32 %v1732_v37, %v6685_v40  ;;  %v1647_v29 = vmax.f32 %v1643_v59, 0.0 }
 0x165   :  { %v314_v20 = vmul.f32 %v6660_v31, %v301_v46  ;;  %v341_v38 = vadd.f32 %v337_v22, %v313_v34  ;;  %v1652_v51 = vmul.f32 %v1648_v39, %v6694_v43  ;;  %v8017_v19 = vmul.f32 %v322_v14, %v6660_v31 }
 0x166   :  { %v361_v8 = vsel %vm356_vm0, %v10256_v33, %v360_v54  ;;  %v8020_v63 = vmul.f32 %v6652_v28, %v322_v14  ;;  %v1737_v46 = vadd.f32 %v1733_v50, %v6685_v40  ;;  %v385_v53 = vrot.slane %v8001_v3, 1 }
 0x167   :  { %v369_v24 = vadd.f32 %v361_v8, %v341_v38  ;;  %v1559_v41 = vmul.f32 %v1555_v23, %v6694_v43  ;;  %v1742_v37 = vmax.f32 %v1738_v15, 0.0  ;;  %v8033_v61 = vmul.f32 %v6647_v26, %v8022_v18  ;;  %v2265_v15 = vpop.permute.xlu1 %2264 }
 0x168   :  { %v1560_v14 = vmul.f32 %v1556_v27, %v6694_v43  ;;  %v1649_v25 = vmul.f32 %v1645_v58, %v6694_v43  ;;  %v464_v34 = vrot.slane %v8020_v63, 1  ;;  %v8044_v59 = vmul.f32 %v6652_v28, %v8022_v18 }
 0x169   :  { %v1650_v55 = vmul.f32 %v1646_v48, %v6694_v43  ;;  %v1739_v23 = vmax.f32 %v7965_v13, 0.0  ;;  %v1563_v1 = vadd.f32 %v1559_v41, %v10660_v47  ;;  %v1740_v30 = vmax.f32 %v1736_v62, 0.0  ;;  %v2284_v48 = vpop.permute.xlu0 %2283 }
 0x16a   :  { %v1653_v21 = vadd.f32 %v1649_v25, %v10660_v47  ;;  %v338_v27 = vmul.f32 %v6664_v32, %v8024_v57  ;;  %v1564_v49 = vadd.f32 %v1560_v14, %v10660_v47  ;;  %v8057_v39 = vmul.f32 %v6647_v26, %v8024_v57 }
 0x16b   :  { %v1654_v58 = vadd.f32 %v1650_v55, %v10660_v47  ;;  %v1743_v35 = vmul.f32 %v1739_v23, %v6694_v43  ;;  %v1744_v13 = vmul.f32 %v1740_v30, %v6694_v43  ;;  %v8064_v22 = vmul.f32 %v6652_v28, %v8024_v57  ;;  %v437_v56 = vpop.permute.xlu1 %436 }
 0x16c   :  { %v1657_v0 = vmax.f32 %v1563_v1, %v1653_v21  ;;  %v8060_v50 = vadd.f32 %v338_v27, %v314_v20  ;;  %v10258_v8 = vrot.slane %v8057_v39, 1  ;;  %v2295_v41 = vsel %vm2078_vm2, %v7953_v12, %v2284_v48 }
 0x16d   :  { %v1658_v62 = vmax.f32 %v1564_v49, %v1654_v58  ;;  %v1747_v38 = vadd.f32 %v1743_v35, %v10660_v47  ;;  %v1748_v14 = vadd.f32 %v1744_v13, %v10660_v47  ;;  %v10257_v25 = vrot.slane %v8064_v22, 1  ;;  %2333 = vmatprep.mubr.bf16.mxu1 %v2295_v41 }
 0x16e   :  { %v1561_v20 = vmul.f32 %v1557_v6, %v6694_v43  ;;  %v1566_v55 = vadd.f32 %v1562_v60, %v10660_v47  ;;  %v388_v1 = vsel %vm356_vm0, %v385_v53, %v10258_v8  ;;  %v1651_v12 = vmul.f32 %v1647_v29, %v6694_v43  ;;  %v8229_v8 = vld [vmem:[%s10200_s2 + $0x60] sm:$0xff]  }
 0x16f   :  { %v1751_v23 = vmax.f32 %v1657_v0, %v1747_v38  ;;  %v1656_v21 = vadd.f32 %v1652_v51, %v10660_v47  ;;  %v1752_v30 = vmax.f32 %v1658_v62, %v1748_v14  ;;  %v396_v27 = vadd.f32 %v388_v1, %v369_v24  ;;  %v8114_v14 = vld [vmem:[%s10200_s2 + $0x48] sm:$0xff]   ;;  %v306_v1 = vpop.permute.xlu1 %305 }
 0x170   :  { %v1565_v49 = vadd.f32 %v1561_v20, %v10660_v47  ;;  %v1741_v58 = vmax.f32 %v1737_v46, 0.0  ;;  %v1655_v6 = vadd.f32 %v1651_v12, %v10660_v47  ;;  %v1746_v35 = vmul.f32 %v1742_v37, %v6694_v43  ;;  %v10704_v37 = vld [vmem:[#allocation27_spill] sm:$0xff] }
 0x171   :  { %v1660_v60 = vmax.f32 %v1566_v55, %v1656_v21  ;;  %v2288_v0 = vsel %vm2078_vm2, %v7908_v17, %v2265_v15  ;;  %v8088_v13 = vpack.c.bf16 %v1752_v30, %v1751_v23  ;;  %v467_v51 = vsel %vm356_vm0, %v464_v34, %v10257_v25  ;;  %v8101_v17 = vld [vmem:[%s10200_s2] sm:$0xff]  }
 0x172   :  { %v1745_v29 = vmul.f32 %v1741_v58, %v6694_v43  ;;  %2334 = vmatmul.mubr.bf16.vlgmr.msra.gmra.mrb[0].mxu1 %v2288_v0  ;;  %v1659_v46 = vmax.f32 %v1565_v49, %v1655_v6  ;;  %v1750_v24 = vadd.f32 %v1746_v35, %v10660_v47  ;;  %v448_v48 = vmul.f32 %v437_v56, %v6664_v32  ;;  %v8140_v35 = vld [vmem:[%s10200_s2 + $0x50] sm:$0xff]  }
 0x173   :  { %5899 = vmatpush3.bf16.msra.mxu1 %v8101_v17  ;;  %v542_v15 = vmul.f32 %v10704_v37, %v6664_v32  ;;  %v384_v62 = vrot.slane %v8033_v61, 1  ;;  %2364 = vrot.lane.b32.xlu1 %v8088_v13, %s6469_s9  ;;  %v2386_v41 = vshll.u32 %v8088_v13, 16  ;;  %v463_v20 = vrot.slane %v8044_v59, 1  ;;  %v8128_v59 = vld [vmem:[%s10200_s2 + $0x8] sm:$0xff]   ;;  %v8164_v37 = vpop.permute.xlu1 %440 }
 0x174   :  { %v1749_v38 = vadd.f32 %v1745_v29, %v10660_v47  ;;  %5900 = vmatprep.subr.bf16.mxu1 %v8114_v14  ;;  %v1754_v55 = vmax.f32 %v1660_v60, %v1750_v24  ;;  %v452_v23 = vadd.f32 %v448_v48, %v8017_v19  ;;  %v522_v61 = vmul.f32 %v437_v56, %v6660_v31 }
 0x175   :  { %v404_v12 = vadd.f32 %v6685_v40, %v396_v27  ;;  %v8122_v49 = vmul.f32 %v437_v56, %v6647_v26  ;;  %v351_v6 = vmul.f32 %v6652_v28, %v306_v1  ;;  %v8133_v19 = vmul.f32 %v7305_v45, %v6664_v32 }
 0x176   :  { %v1753_v21 = vmax.f32 %v1659_v46, %v1749_v38  ;;  %v475_v30 = vadd.f32 %v467_v51, %v452_v23  ;;  %v546_v58 = vadd.f32 %v542_v15, %v522_v61  ;;  %v2388_v60 = vrot.slane %v2386_v41, 1  ;;  %v10705_v46 = vld [vmem:[#allocation31_spill] sm:$0xff]  ;;  %v330_v61 = vpop.permute.xlu0 %329 }
 0x177   :  { %5901 = vmatpush3.bf16.msra.mxu1 %v8128_v59  ;;  %v8144_v0 = vmul.f32 %v437_v56, %v6652_v28  ;;  %v362_v29 = vrot.slane %v351_v6, 1  ;;  %v8149_v51 = vsel %vm356_vm0, %v463_v20, %v464_v34  ;;  %v8154_v45 = vsel %vm356_vm0, %v384_v62, %v385_v53  ;;  %v8178_v62 = vld [vmem:[%s10200_s2 + $0x10] sm:$0xff]  }
 0x178   :  { %v8135_v27 = vpack.c.bf16 %v1754_v55, %v1753_v21  ;;  %5902 = vmatprep.subr.bf16.mxu1 %v8140_v35  ;;  %v8158_v24 = vmul.f32 %v10705_v46, %v6664_v32  ;;  %v408_v48 = vmax.f32 %v404_v12, 0.0  ;;  %v2384_v56 = vshrl.u32 %v8088_v13, 16  ;;  %v2286_v46 = vpop.permute.xlu1 %2285 }
 0x179   :  { %v10260_v34 = vrot.slane %v8122_v49, 1  ;;  %v315_v3 = vmul.f32 %v6660_v31, %v306_v1  ;;  %v363_v53 = vsel %vm356_vm0, %v360_v54, %v362_v29  ;;  %v8173_v15 = vmul.f32 %v8164_v37, %v6647_v26  ;;  %v8189_v54 = vld [vmem:[%s10200_s2 + $0x58] sm:$0xff]  }
 0x17a   :  { %2366 = vrot.lane.b32.xlu1 %v8135_v27, %s6469_s9  ;;  %v2391_v63 = vshll.u32 %v8135_v27, 16  ;;  %v2389_v38 = vor.u32 %v2388_v60, %v2384_v56  ;;  %v370_v20 = vadd.f32 %v363_v53, %v8060_v50  ;;  %v8184_v10 = vmul.f32 %v8164_v37, %v6652_v28  ;;  %v8221_v53 = vld [vmem:[%s10200_s2 + $0x18] sm:$0xff]  }
 0x17b   :  { %5903 = vmatpush3.bf16.msra.mxu1 %v8178_v62  ;;  %v8194_v55 = vmul.f32 %v7557_v16, %v6664_v32  ;;  %v427_v23 = vmul.f32 %v8022_v18, %v6660_v31  ;;  %v10263_v50 = vrot.slane %v8144_v0, 1  ;;  %v10259_v1 = vrot.slane %v8173_v15, 1 }
 0x17c   :  { %v2393_v41 = vrot.slane %v2391_v63, 1  ;;  %5904 = vmatprep.subr.bf16.mxu1 %v8189_v54  ;;  %v416_v12 = vmul.f32 %v6694_v43, %v408_v48  ;;  %v339_v6 = vmul.f32 %v6664_v32, %v330_v61  ;;  %v379_v60 = vmul.f32 %v6647_v26, %v330_v61 }
 0x17d   :  { %v2395_v16 = vshrl.u32 %v8135_v27, 16  ;;  %v8210_v56 = vmul.f32 %v6652_v28, %v330_v61  ;;  %v490_v48 = vsel %vm356_vm0, %v10260_v34, %v10259_v1  ;;  %v10262_v63 = vrot.slane %v8184_v10, 1 }
 0x17e   :  { %v8202_v21 = vsel %vm2043_vm1, %v2389_v38, %v2393_v41  ;;  %v343_v38 = vadd.f32 %v339_v6, %v315_v3  ;;  %v389_v36 = vrot.slane %v379_v60, 1  ;;  %v498_v33 = vadd.f32 %v490_v48, %v475_v30 }
 0x17f   :  { %2398 = vrot.lane.b32.xlu0 %v8202_v21, %s6469_s9  ;;  %5905 = vmatpush3.bf16.msra.mxu1 %v8221_v53  ;;  %v2299_v25 = vsel %vm2078_vm2, %v7972_v52, %v2286_v46  ;;  %v429_v1 = vmul.f32 %v8024_v57, %v6660_v31  ;;  %v8234_v34 = vor.u32 %v2395_v16, %v2393_v41  ;;  %v10706_v6 = vrot.slane %v8057_v39, 1  ;;  %v433_v41 = vpop.permute.xlu0 %432 }
 0x180   :  { %5906 = vmatprep.subr.bf16.mxu1 %v8229_v8  ;;  %v449_v3 = vmul.f32 %v8164_v37, %v6664_v32  ;;  %v561_v52 = vsel %vm356_vm0, %v10263_v50, %v10262_v63  ;;  %2341 = vmatprep.mubr.bf16.mxu1 %v2299_v25  ;;  %v371_v30 = vadd.f32 %v362_v29, %v343_v38  ;;  %v468_v29 = vrot.slane %v8210_v56, 1  ;;  %v10707_v38 = vld [vmem:[#allocation33_spill] sm:$0xff] }
 0x181   :  { %v390_v60 = vsel %vm356_vm0, %v10706_v6, %v389_v36  ;;  %v502_v46 = vadd.f32 %v498_v33, %v6685_v40  ;;  %v569_v57 = vadd.f32 %v561_v52, %v546_v58  ;;  %v8248_v16 = vadd.f32 %v10660_v47, %v416_v12  ;;  %v8263_v58 = vld [vmem:[%s10200_s2 + $0x20] sm:$0xff]   ;;  %v8270_v56 = vld [vmem:[%s10200_s2 + $0x68] sm:$0xff]  }
 0x182   :  { %v397_v48 = vadd.f32 %v390_v60, %v370_v20  ;;  %v447_v44 = vmul.f32 %v433_v41, %v6664_v32  ;;  %v478_v25 = vmul.f32 %v433_v41, %v6647_v26  ;;  %v8258_v33 = vmul.f32 %v6664_v32, %v8022_v18  ;;  %10708 = vst [vmem:[#allocation24_spill] sm:$0xff] %v8263_v58 }
 0x183   :  { %2400 = vrot.lane.b32.xlu0 %v8234_v34, %s6469_s9  ;;  %v506_v39 = vmax.f32 %v502_v46, 0.0  ;;  %v592_v6 = vadd.f32 %v10707_v38, %v569_v57  ;;  %5907 = vmatpush3.bf16.msra.mxu1 %v8263_v58  ;;  %v398_v20 = vadd.f32 %v389_v36, %v371_v30  ;;  %v521_v60 = vmul.f32 %v433_v41, %v6660_v31  ;;  %v445_v36 = vpop.permute.xlu0 %444 }
 0x184   :  { %v451_v12 = vadd.f32 %v447_v44, %v427_v23  ;;  %v486_v52 = vrot.slane %v478_v25, 1  ;;  %10709 = vst [vmem:[#allocation14_spill] sm:$0xff] %v8270_v56  ;;  %5908 = vmatprep.subr.bf16.mxu1 %v8270_v56  ;;  %v405_v18 = vadd.f32 %v6685_v40, %v397_v48  ;;  %v453_v46 = vadd.f32 %v449_v3, %v429_v1  ;;  %v8291_v48 = vld [vmem:[%s10200_s2 + $0x28] sm:$0xff]  }
 0x185   :  { %v523_v57 = vmul.f32 %v8164_v37, %v6660_v31  ;;  %v549_v38 = vmul.f32 %v433_v41, %v6652_v28  ;;  %v596_v44 = vadd.f32 %v592_v6, %v6685_v40  ;;  %v10710_v30 = vrot.slane %v8122_v49, 1  ;;  %10712 = vst [vmem:[#allocation16_spill] sm:$0xff] %v8291_v48 }
 0x186   :  { %v474_v23 = vadd.f32 %v8149_v51, %v451_v12  ;;  %v545_v63 = vadd.f32 %v8133_v19, %v521_v60  ;;  %v430_v50 = vmul.f32 %v330_v61, %v6660_v31  ;;  %v10711_v1 = vrot.slane %v8064_v22, 1  ;;  %v2267_v22 = vpop.permute.xlu1 %2266 }
 0x187   :  { %v488_v25 = vsel %vm356_vm0, %v486_v52, %v10710_v30  ;;  %v510_v37 = vmul.f32 %v506_v39, %v6694_v43  ;;  %v557_v41 = vrot.slane %v549_v38, 1  ;;  %5909 = vmatpush3.bf16.msra.mxu1 %v8291_v48  ;;  %v406_v49 = vadd.f32 %v6685_v40, %v398_v20  ;;  %v8300_v39 = vld [vmem:[%s10200_s2 + $0x70] sm:$0xff]  }
 0x188   :  { %v469_v3 = vsel %vm356_vm0, %v10711_v1, %v468_v29  ;;  %v497_v51 = vadd.f32 %v488_v25, %v474_v23  ;;  %v450_v19 = vmul.f32 %v445_v36, %v6664_v32  ;;  %v481_v61 = vmul.f32 %v445_v36, %v6647_v26  ;;  %5910 = vmatprep.subr.bf16.mxu1 %v8300_v39  ;;  %v291_v1 = vpop.permute.xlu0 %290 }
 0x189   :  { %v409_v6 = vmax.f32 %v405_v18, 0.0  ;;  %v476_v12 = vadd.f32 %v469_v3, %v453_v46  ;;  %v10713_v52 = vrot.slane %v8144_v0, 1  ;;  %v524_v20 = vmul.f32 %v445_v36, %v6660_v31  ;;  %v8315_v0 = vld [vmem:[%s10200_s2 + $0x30] sm:$0xff]  }
 0x18a   :  { %v600_v38 = vmax.f32 %v596_v44, 0.0  ;;  %v454_v30 = vadd.f32 %v450_v19, %v430_v50  ;;  %v491_v25 = vrot.slane %v481_v61, 1  ;;  %v514_v48 = vadd.f32 %v510_v37, %v10660_v47  ;;  %v10714_v50 = vld [vmem:[#allocation32_spill] sm:$0xff] }
 0x18b   :  { %v559_v60 = vsel %vm356_vm0, %v557_v41, %v10713_v52  ;;  %v548_v56 = vadd.f32 %v8194_v55, %v524_v20  ;;  %v552_v58 = vmul.f32 %v445_v36, %v6652_v28  ;;  %v2291_v18 = vsel %vm2078_vm2, %v7915_v42, %v2267_v22  ;;  %5911 = vmatpush3.bf16.msra.mxu1 %v8315_v0  ;;  %v8325_v42 = vld [vmem:[%s10200_s2 + $0x78] sm:$0xff]  }
 0x18c   :  { %v568_v23 = vadd.f32 %v559_v60, %v545_v63  ;;  %v410_v63 = vmax.f32 %v406_v49, 0.0  ;;  %v477_v44 = vadd.f32 %v468_v29, %v454_v30  ;;  %v10715_v3 = vrot.slane %v8173_v15, 1  ;;  %2342 = vmatmul.mubr.bf16.gmra.mrb[4].mxu1 %v2291_v18  ;;  %5912 = vmatprep.subr.bf16.mxu1 %v8325_v42 }
 0x18d   :  { %v562_v37 = vrot.slane %v552_v58, 1  ;;  %v312_v41 = vmul.f32 %v6660_v31, %v291_v1  ;;  %v348_v49 = vmul.f32 %v6652_v28, %v291_v1  ;;  %v417_v29 = vmul.f32 %v6694_v43, %v409_v6 }
 0x18e   :  { %v591_v46 = vadd.f32 %v10714_v50, %v568_v23  ;;  %v492_v55 = vsel %vm356_vm0, %v10715_v3, %v491_v25  ;;  %v547_v15 = vadd.f32 %v8158_v24, %v523_v57  ;;  %v604_v19 = vmul.f32 %v600_v38, %v6694_v43 }
 0x18f   :  { %v499_v36 = vadd.f32 %v492_v55, %v476_v12  ;;  %v500_v61 = vadd.f32 %v491_v25, %v477_v44  ;;  %v10716_v52 = vrot.slane %v8184_v10, 1  ;;  %v571_v20 = vadd.f32 %v562_v37, %v548_v56  ;;  %v8341_v12 = vld [vmem:[%s10200_s2 + $0x38] sm:$0xff]  }
 0x190   :  { %v340_v58 = vadd.f32 %v8258_v33, %v312_v41  ;;  %5913 = vmatpush3.bf16.msra.mxu1 %v8341_v12  ;;  %v501_v24 = vadd.f32 %v497_v51, %v6685_v40  ;;  %v357_v38 = vrot.slane %v348_v49, 1  ;;  %v418_v10 = vmul.f32 %v6694_v43, %v410_v63 }
 0x191   :  { %v503_v22 = vadd.f32 %v499_v36, %v6685_v40  ;;  %v563_v60 = vsel %vm356_vm0, %v10716_v52, %v562_v37  ;;  %v504_v57 = vadd.f32 %v500_v61, %v6685_v40  ;;  %v10717_v56 = vrot.slane %v7646_v2, 1 }
 0x192   :  { %v570_v6 = vadd.f32 %v563_v60, %v547_v15  ;;  %v518_v33 = vmax.f32 %v8248_v16, %v514_v48  ;;  %v595_v25 = vadd.f32 %v591_v46, %v6685_v40  ;;  %v10718_v50 = vrot.slane %v7984_v9, 1 }
 0x193   :  { %v507_v23 = vmax.f32 %v503_v22, 0.0  ;;  %v594_v30 = vadd.f32 %v10717_v56, %v571_v20  ;;  %v508_v1 = vmax.f32 %v504_v57, 0.0  ;;  %v608_v55 = vadd.f32 %v604_v19, %v10660_v47 }
 0x194   :  { %v593_v18 = vadd.f32 %v7669_v11, %v570_v6  ;;  %v359_v51 = vsel %vm356_vm0, %v357_v38, %v10718_v50  ;;  %v505_v2 = vmax.f32 %v501_v24, 0.0  ;;  %v425_v48 = vadd.f32 %v10660_v47, %v417_v29  ;;  %v2480_v50 = vpop.permute.xlu0 %2479 }
 0x195   :  { %v511_v44 = vmul.f32 %v507_v23, %v6694_v43  ;;  %v598_v3 = vadd.f32 %v594_v30, %v6685_v40  ;;  %v368_v63 = vadd.f32 %v359_v51, %v340_v58  ;;  %v512_v36 = vmul.f32 %v508_v1, %v6694_v43 }
 0x196   :  { %v597_v16 = vadd.f32 %v593_v18, %v6685_v40  ;;  %v612_v37 = vmax.f32 %v518_v33, %v608_v55  ;;  %v426_v41 = vadd.f32 %v10660_v47, %v418_v10  ;;  %v599_v61 = vmax.f32 %v595_v25, 0.0 }
 0x197   :  { %v602_v46 = vmax.f32 %v598_v3, 0.0  ;;  %v395_v11 = vadd.f32 %v8154_v45, %v368_v63  ;;  %v515_v9 = vadd.f32 %v511_v44, %v10660_v47  ;;  %v516_v49 = vadd.f32 %v512_v36, %v10660_v47 }
 0x198   :  { %v601_v15 = vmax.f32 %v597_v16, 0.0  ;;  %v509_v20 = vmul.f32 %v505_v2, %v6694_v43  ;;  %v603_v57 = vmul.f32 %v599_v61, %v6694_v43  ;;  %v2503_v55 = vsel %vm2078_vm2, %v8088_v13, %v2480_v50 }
 0x199   :  { %v606_v19 = vmul.f32 %v602_v46, %v6694_v43  ;;  %v403_v22 = vadd.f32 %v6685_v40, %v395_v11  ;;  %v519_v52 = vmax.f32 %v425_v48, %v515_v9  ;;  %v520_v60 = vmax.f32 %v426_v41, %v516_v49 }
 0x19a   :  { %v605_v29 = vmul.f32 %v601_v15, %v6694_v43  ;;  %v513_v56 = vadd.f32 %v509_v20, %v10660_v47  ;;  %v607_v25 = vadd.f32 %v603_v57, %v10660_v47 }
 0x19b   :  { %v407_v45 = vmax.f32 %v403_v22, 0.0  ;;  %v610_v58 = vadd.f32 %v606_v19, %v10660_v47 }
 0x19c   :  { %v609_v24 = vadd.f32 %v605_v29, %v10660_v47  ;;  %v10721_v29 = vld [vmem:[#allocation21_spill] sm:$0xff] }
 0x19d   :  { %v415_v6 = vmul.f32 %v6694_v43, %v407_v45  ;;  %v614_v38 = vmax.f32 %v520_v60, %v610_v58  ;;  %v8410_v45 = vmul.f32 %v7818_v7, %v6664_v32 }
 0x19e   :  { %v613_v10 = vmax.f32 %v519_v52, %v609_v24  ;;  %v10720_v52 = vld [vmem:[#allocation23_spill] sm:$0xff] }
 0x19f   :  { %v423_v23 = vadd.f32 %v10660_v47, %v415_v6  ;;  %v1402_v60 = vmul.f32 %v10720_v52, %v6664_v32 }
 0x1a0   :  { %v8375_v30 = vpack.c.bf16 %v614_v38, %v613_v10 }
 0x1a1   :  { %v517_v33 = vmax.f32 %v423_v23, %v513_v56 }
 0x1a2   :  { %v2499_v51 = vpop.permute.xlu1 %2498  ;;  %v2052_v3 = vshll.u32 %v8375_v30, 16  ;;  %v2056_v6 = vshrl.u32 %v8375_v30, 16 }
 0x1a3   :  { %v611_v1 = vmax.f32 %v517_v33, %v607_v25  ;;  %v2510_v63 = vsel %vm2078_vm2, %v8202_v21, %v2499_v51 }
 0x1a4   :  { %2548 = vmatprep.mubr.bf16.mxu1 %v2510_v63  ;;  %v2054_v46 = vrot.slane %v2052_v3, 1 }
 0x1a5   :  { %v8378_v18 = vpack.c.bf16 %v612_v37, %v611_v1  ;;  %2549 = vmatmul.mubr.bf16.vlgmr.msra.gmra.mrb[8].mxu1 %v2503_v55  ;;  %v2482_v37 = vpop.permute.xlu0 %2481 }
 0x1a6   :  { %v2501_v16 = vpop.permute.xlu1 %2500  ;;  %v2506_v21 = vsel %vm2078_vm2, %v8135_v27, %v2482_v37  ;;  %v8406_v27 = vmul.f32 %v10721_v29, %v6664_v32  ;;  %v8425_v1 = vor.u32 %v2056_v6, %v2054_v46 }
 0x1a7   :  { %v2047_v44 = vshll.u32 %v8378_v18, 16  ;;  %v2045_v2 = vshrl.u32 %v8378_v18, 16  ;;  %v2514_v11 = vsel %vm2078_vm2, %v8234_v34, %v2501_v16  ;;  %v10719_v34 = vld [vmem:[#allocation30_spill] sm:$0xff] }
 0x1a8   :  { %2556 = vmatprep.mubr.bf16.mxu1 %v2514_v11  ;;  %v8400_v22 = vmul.f32 %v10719_v34, %v6664_v32 }
 0x1a9   :  { %v2049_v36 = vrot.slane %v2047_v44, 1 }
 0x1ab   :  { %v2050_v48 = vor.u32 %v2049_v36, %v2045_v2 }
 0x1ad   :  { %v8390_v9 = vsel %vm2043_vm1, %v2050_v48, %v2054_v46  ;;  %2557 = vmatmul.mubr.bf16.gmra.mrb[12].mxu1 %v2506_v21 }
 0x1ae   :  { %v1185_v13 = vpop.permute.xlu0 %1184 }
 0x1af   :  { %v1226_v19 = vmul.f32 %v1185_v13, %v6652_v28  ;;  %v1198_v7 = vmul.f32 %v1185_v13, %v6660_v31 }
 0x1b1   :  { %v1234_v33 = vrot.slane %v1226_v19, 1 }
 0x1b4   :  { %v1207_v41 = vpop.permute.xlu0 %1206 }
 0x1b5   :  { %v1249_v38 = vmul.f32 %v1207_v41, %v6647_v26  ;;  %v1218_v25 = vmul.f32 %v1207_v41, %v6664_v32  ;;  %v1316_v50 = vmul.f32 %v1207_v41, %v6652_v28  ;;  %v1288_v63 = vmul.f32 %v1207_v41, %v6660_v31 }
 0x1b7   :  { %v1180_v49 = vpop.permute.xlu1 %1179  ;;  %v1257_v48 = vrot.slane %v1249_v38, 1  ;;  %v1222_v19 = vadd.f32 %v1218_v25, %v1198_v7  ;;  %v1324_v34 = vrot.slane %v1316_v50, 1 }
 0x1b8   :  { %v1225_v58 = vmul.f32 %v1180_v49, %v6652_v28  ;;  %v1197_v51 = vmul.f32 %v1180_v49, %v6660_v31 }
 0x1b9   :  { %v1297_v15 = vpop.permute.xlu0 %1296 }
 0x1ba   :  { %v8395_v61 = vmul.f32 %v1297_v15, %v6652_v28  ;;  %v1382_v24 = vmul.f32 %v1297_v15, %v6660_v31  ;;  %v8430_v44 = vmul.f32 %v1297_v15, %v6647_v26  ;;  %v1233_v55 = vrot.slane %v1225_v58, 1 }
 0x1bb   :  { %v1190_v20 = vpop.permute.xlu1 %1189  ;;  %v1308_v21 = vmul.f32 %v1297_v15, %v6664_v32 }
 0x1bc   :  { %v10272_v10 = vrot.slane %v8395_v61, 1  ;;  %v8418_v23 = vmul.f32 %v1190_v20, %v6652_v28  ;;  %v1406_v2 = vadd.f32 %v1402_v60, %v1382_v24  ;;  %v1347_v52 = vrot.slane %v8430_v44, 1  ;;  %v10722_v24 = vld [vmem:[#allocation15_spill] sm:$0xff] }
 0x1bd   :  { %v1301_v57 = vpop.permute.xlu0 %1300  ;;  %v1235_v29 = vsel %vm356_vm0, %v1233_v55, %v1234_v33  ;;  %v1312_v25 = vadd.f32 %v1308_v21, %v1288_v63  ;;  %v1199_v50 = vmul.f32 %v1190_v20, %v6660_v31 }
 0x1be   :  { %v8421_v56 = vmul.f32 %v1301_v57, %v6652_v28  ;;  %v8435_v36 = vmul.f32 %v1301_v57, %v6647_v26  ;;  %v10270_v46 = vrot.slane %v8418_v23, 1  ;;  %v1309_v55 = vmul.f32 %v1301_v57, %v6664_v32 }
 0x1c0   :  { %v10267_v3 = vrot.slane %v8421_v56, 1  ;;  %v1203_v16 = vpop.permute.xlu1 %1202  ;;  %v10268_v58 = vrot.slane %v8435_v36, 1  ;;  %v1237_v15 = vsel %vm356_vm0, %v1234_v33, %v10270_v46 }
 0x1c1   :  { %v1217_v37 = vmul.f32 %v1203_v16, %v6664_v32  ;;  %v1248_v41 = vmul.f32 %v1203_v16, %v6647_v26  ;;  %v1315_v49 = vmul.f32 %v1203_v16, %v6652_v28  ;;  %v1287_v63 = vmul.f32 %v1203_v16, %v6660_v31 }
 0x1c2   :  { %v1421_v11 = vsel %vm356_vm0, %v10272_v10, %v10267_v3 }
 0x1c3   :  { %v1429_v13 = vadd.f32 %v1421_v11, %v1406_v2  ;;  %v1221_v60 = vadd.f32 %v1217_v37, %v1197_v51  ;;  %v1256_v38 = vrot.slane %v1248_v41, 1  ;;  %v1323_v11 = vrot.slane %v1315_v49, 1 }
 0x1c4   :  { %v1211_v3 = vpop.permute.xlu1 %1210  ;;  %v1383_v37 = vmul.f32 %v1301_v57, %v6660_v31  ;;  %v1245_v41 = vadd.f32 %v1237_v15, %v1222_v19  ;;  %v1350_v49 = vsel %vm356_vm0, %v1347_v52, %v10268_v58 }
 0x1c5   :  { %v1452_v6 = vadd.f32 %v10722_v24, %v1429_v13  ;;  %v1244_v2 = vadd.f32 %v1235_v29, %v1221_v60  ;;  %v8455_v7 = vmul.f32 %v1211_v3, %v6647_v26  ;;  %v1258_v51 = vsel %vm356_vm0, %v1256_v38, %v1257_v48 }
 0x1c6   :  { %v8460_v44 = vmul.f32 %v1211_v3, %v6652_v28  ;;  %v1325_v57 = vsel %vm356_vm0, %v1323_v11, %v1324_v34 }
 0x1c7   :  { %v1267_v13 = vadd.f32 %v1258_v51, %v1244_v2  ;;  %v10269_v33 = vrot.slane %v8455_v7, 1  ;;  %v1456_v19 = vadd.f32 %v1452_v6, %v6685_v40 }
 0x1c8   :  { %v10271_v20 = vrot.slane %v8460_v44, 1 }
 0x1c9   :  { %v1271_v21 = vadd.f32 %v1267_v13, %v6685_v40  ;;  %v1260_v60 = vsel %vm356_vm0, %v1257_v48, %v10269_v33  ;;  %v1293_v24 = vpop.permute.xlu1 %1292 }
 0x1ca   :  { %v1268_v38 = vadd.f32 %v1260_v60, %v1245_v41  ;;  %v1327_v15 = vsel %vm356_vm0, %v1324_v34, %v10271_v20  ;;  %v1307_v16 = vmul.f32 %v1293_v24, %v6664_v32  ;;  %v1338_v2 = vmul.f32 %v1293_v24, %v6647_v26 }
 0x1cb   :  { %v1275_v51 = vmax.f32 %v1271_v21, 0.0  ;;  %v1335_v13 = vadd.f32 %v1327_v15, %v1312_v25  ;;  %v1381_v58 = vmul.f32 %v1293_v24, %v6660_v31  ;;  %v1409_v48 = vmul.f32 %v1293_v24, %v6652_v28 }
 0x1cc   :  { %v2075_v29 = vpop.permute.xlu0 %2074  ;;  %v1272_v11 = vadd.f32 %v1268_v38, %v6685_v40  ;;  %v1311_v33 = vadd.f32 %v1307_v16, %v1287_v63  ;;  %v1346_v46 = vrot.slane %v1338_v2, 1  ;;  %v1219_v41 = vmul.f32 %v1211_v3, %v6664_v32 }
 0x1cd   :  { %v2087_v6 = vsel %vm2078_vm2, %v8390_v9, %v2075_v29  ;;  %v1358_v34 = vadd.f32 %v1350_v49, %v1335_v13  ;;  %v1405_v60 = vadd.f32 %v8400_v22, %v1381_v58  ;;  %v1417_v20 = vrot.slane %v1409_v48, 1 }
 0x1ce   :  { %2225 = vmatprep.mubr.bf16.mxu0 %v2087_v6  ;;  %v1276_v21 = vmax.f32 %v1272_v11, 0.0  ;;  %v1289_v25 = vmul.f32 %v1211_v3, %v6660_v31  ;;  %v1334_v15 = vadd.f32 %v1325_v57, %v1311_v33  ;;  %v1348_v24 = vsel %vm356_vm0, %v1346_v46, %v1347_v52  ;;  %v1195_v10 = vpop.permute.xlu1 %1194 }
 0x1cf   :  { %v1362_v63 = vadd.f32 %v1358_v34, %v6685_v40  ;;  %v10723_v38 = vrot.slane %v8395_v61, 1  ;;  %v1228_v29 = vmul.f32 %v1195_v10, %v6652_v28  ;;  %v1460_v49 = vmax.f32 %v1456_v19, 0.0 }
 0x1d0   :  { %v8496_v22 = vadd.f32 %v8406_v27, %v1383_v37  ;;  %v1357_v58 = vadd.f32 %v1348_v24, %v1334_v15  ;;  %v2077_v2 = vpop.permute.xlu0 %2076  ;;  %v1279_v3 = vmul.f32 %v1275_v51, %v6694_v43  ;;  %v1223_v33 = vadd.f32 %v1219_v41, %v1199_v50 }
 0x1d1   :  { %v1419_v9 = vsel %vm356_vm0, %v1417_v20, %v10723_v38  ;;  %v1238_v46 = vrot.slane %v1228_v29, 1  ;;  %v1280_v52 = vmul.f32 %v1276_v21, %v6694_v43  ;;  %v1366_v57 = vmax.f32 %v1362_v63, 0.0  ;;  %v10724_v20 = vld [vmem:[#allocation12_spill] sm:$0xff] }
 0x1d2   :  { %v1428_v16 = vadd.f32 %v1419_v9, %v1405_v60  ;;  %v1313_v13 = vadd.f32 %v1309_v55, %v1289_v25  ;;  %v1361_v61 = vadd.f32 %v1357_v58, %v6685_v40  ;;  %v1200_v19 = vmul.f32 %v1195_v10, %v6660_v31 }
 0x1d3   :  { %v10725_v27 = vrot.slane %v8418_v23, 1  ;;  %v1215_v11 = vpop.permute.xlu1 %1214  ;;  %v2091_v51 = vsel %vm2078_vm2, %v8425_v1, %v2077_v2  ;;  %v1370_v50 = vmul.f32 %v1366_v57, %v6694_v43  ;;  %v1464_v6 = vmul.f32 %v1460_v49, %v6694_v43 }
 0x1d4   :  { %v1451_v48 = vadd.f32 %v10724_v20, %v1428_v16  ;;  %v1365_v41 = vmax.f32 %v1361_v61, 0.0  ;;  %v1220_v34 = vmul.f32 %v1215_v11, %v6664_v32  ;;  %v1283_v60 = vadd.f32 %v1279_v3, %v10660_v47 }
 0x1d5   :  { %v1239_v37 = vsel %vm356_vm0, %v10725_v27, %v1238_v46  ;;  %v1251_v10 = vmul.f32 %v1215_v11, %v6647_v26  ;;  %v1318_v23 = vmul.f32 %v1215_v11, %v6652_v28  ;;  %v1284_v21 = vadd.f32 %v1280_v52, %v10660_v47 }
 0x1d6   :  { %v1455_v55 = vadd.f32 %v1451_v48, %v6685_v40  ;;  %v1374_v25 = vadd.f32 %v1370_v50, %v10660_v47  ;;  %v1246_v1 = vadd.f32 %v1239_v37, %v1223_v33  ;;  %v1224_v15 = vadd.f32 %v1220_v34, %v1200_v19 }
 0x1d7   :  { %v1369_v24 = vmul.f32 %v1365_v41, %v6694_v43  ;;  %v1261_v38 = vrot.slane %v1251_v10, 1  ;;  %v1290_v9 = vmul.f32 %v1215_v11, %v6660_v31  ;;  %v1328_v29 = vrot.slane %v1318_v23, 1 }
 0x1d8   :  { %v1459_v63 = vmax.f32 %v1455_v55, 0.0  ;;  %v1468_v49 = vadd.f32 %v1464_v6, %v10660_v47  ;;  %v1247_v58 = vadd.f32 %v1238_v46, %v1224_v15  ;;  %v1305_v16 = vpop.permute.xlu1 %1304  ;;  %v1378_v3 = vmax.f32 %v1284_v21, %v1374_v25 }
 0x1d9   :  { %v1373_v2 = vadd.f32 %v1369_v24, %v10660_v47  ;;  %v10726_v57 = vrot.slane %v8455_v7, 1  ;;  %v10727_v61 = vrot.slane %v8460_v44, 1  ;;  %v1310_v48 = vmul.f32 %v1305_v16, %v6664_v32 }
 0x1da   :  { %v1463_v52 = vmul.f32 %v1459_v63, %v6694_v43  ;;  %v1341_v19 = vmul.f32 %v1305_v16, %v6647_v26  ;;  %v1270_v46 = vadd.f32 %v1261_v38, %v1247_v58  ;;  %v1384_v11 = vmul.f32 %v1305_v16, %v6660_v31 }
 0x1db   :  { %v1262_v33 = vsel %vm356_vm0, %v10726_v57, %v1261_v38  ;;  %v1329_v20 = vsel %vm356_vm0, %v10727_v61, %v1328_v29  ;;  %v1314_v50 = vadd.f32 %v1310_v48, %v1290_v9  ;;  %v1412_v41 = vmul.f32 %v1305_v16, %v6652_v28 }
 0x1dc   :  { %v1269_v27 = vadd.f32 %v1262_v33, %v1246_v1  ;;  %v1336_v37 = vadd.f32 %v1329_v20, %v1313_v13  ;;  %v1351_v6 = vrot.slane %v1341_v19, 1  ;;  %v1377_v7 = vmax.f32 %v1283_v60, %v1373_v2  ;;  %v2040_v10 = vpop.permute.xlu1 %2039 }
 0x1dd   :  { %v1274_v44 = vadd.f32 %v1270_v46, %v6685_v40  ;;  %v1408_v34 = vadd.f32 %v8410_v45, %v1384_v11  ;;  %v1467_v32 = vadd.f32 %v1463_v52, %v10660_v47  ;;  %v1337_v26 = vadd.f32 %v1328_v29, %v1314_v50 }
 0x1de   :  { %v1273_v55 = vadd.f32 %v1269_v27, %v6685_v40  ;;  %v10728_v23 = vrot.slane %v8435_v36, 1  ;;  %v1422_v31 = vrot.slane %v1412_v41, 1  ;;  %v2080_v21 = vsel %vm2078_vm2, %v8378_v18, %v2040_v10 }
 0x1df   :  { %v1278_v60 = vmax.f32 %v1274_v44, 0.0  ;;  %2226 = vmatmul.mubr.bf16.vlgmr.msra.gmra.mrb[0].mxu0 %v2080_v21  ;;  %v1471_v1 = vmax.f32 %v1377_v7, %v1467_v32  ;;  %v1360_v15 = vadd.f32 %v1351_v6, %v1337_v26  ;;  %v10729_v45 = vrot.slane %v8421_v56, 1 }
 0x1e0   :  { %v1352_v13 = vsel %vm356_vm0, %v10728_v23, %v1351_v6  ;;  %v1277_v28 = vmax.f32 %v1273_v55, 0.0  ;;  %v1431_v63 = vadd.f32 %v1422_v31, %v1408_v34  ;;  %5871 = vmatpush3.bf16.msra.mxu0 %v8101_v17  ;;  %2233 = vmatprep.mubr.bf16.mxu0 %v2091_v51  ;;  %v10730_v56 = vrot.slane %v7901_v5, 1  ;;  %v2042_v51 = vpop.permute.xlu1 %2041  ;;  %v10733_v34 = vld [vmem:[#allocation16_spill] sm:$0xff] }
 0x1e1   :  { %v1359_v25 = vadd.f32 %v1352_v13, %v1336_v37  ;;  %v1423_v24 = vsel %vm356_vm0, %v10729_v45, %v1422_v31  ;;  %5872 = vmatprep.subr.bf16.mxu0 %v8114_v14  ;;  %v1282_v9 = vmul.f32 %v1278_v60, %v6694_v43  ;;  %v1364_v29 = vadd.f32 %v1360_v15, %v6685_v40 }
 0x1e2   :  { %v1281_v36 = vmul.f32 %v1277_v28, %v6694_v43  ;;  %v1430_v18 = vadd.f32 %v1423_v24, %v8496_v22  ;;  %v1454_v58 = vadd.f32 %v10730_v56, %v1431_v63  ;;  %v1472_v16 = vmax.f32 %v1378_v3, %v1468_v49  ;;  %v6405_v24 = vld [vmem:[%s10199_s1] sm:$0xff] }
 0x1e3   :  { %v1363_v38 = vadd.f32 %v1359_v25, %v6685_v40  ;;  %v1368_v52 = vmax.f32 %v1364_v29, 0.0  ;;  %v1286_v5 = vadd.f32 %v1282_v9, %v10660_v47  ;;  %v2083_v3 = vsel %vm2078_vm2, %v8375_v30, %v2042_v51 }
 0x1e4   :  { %v1453_v17 = vadd.f32 %v7931_v4, %v1430_v18  ;;  %v1458_v57 = vadd.f32 %v1454_v58, %v6685_v40  ;;  %5873 = vmatpush3.bf16.msra.mxu0 %v8128_v59  ;;  %v1475_v22 = vpack.c.bf16 %v1472_v16, %v1471_v1  ;;  %v1285_v14 = vadd.f32 %v1281_v36, %v10660_v47  ;;  %v8599_v18 = vld [vmem:[%s10199_s1 + $0x20] sm:$0xff] }
 0x1e5   :  { %v1367_v2 = vmax.f32 %v1363_v38, 0.0  ;;  %5874 = vmatprep.subr.bf16.mxu0 %v8140_v35  ;;  %v1372_v49 = vmul.f32 %v1368_v52, %v6694_v43  ;;  %v2365_v32 = vpop.permute.xlu1 %2364  ;;  %v10734_v28 = vmov 0  }
 0x1e6   :  { %v1457_v61 = vadd.f32 %v1453_v17, %v6685_v40  ;;  %v1462_v4 = vmax.f32 %v1458_v57, 0.0  ;;  %v2371_v37 = vshll.u32 %v1475_v22, 16  ;;  %v2403_v23 = vsel %vm2078_vm2, %v1475_v22, %v2365_v32 }
 0x1e7   :  { %v1371_v33 = vmul.f32 %v1367_v2, %v6694_v43  ;;  %2234 = vmatmul.mubr.bf16.gmra.mrb[4].mxu0 %v2083_v3  ;;  %v1376_v48 = vadd.f32 %v1372_v49, %v10660_v47 }
 0x1e8   :  { %v1461_v59 = vmax.f32 %v1457_v61, 0.0  ;;  %v1466_v19 = vmul.f32 %v1462_v4, %v6694_v43  ;;  %5875 = vmatpush3.bf16.msra.mxu0 %v8178_v62  ;;  %v2373_v41 = vrot.slane %v2371_v37, 1  ;;  %v10731_v62 = vld [vmem:[#allocation24_spill] sm:$0xff] }
 0x1e9   :  { %v1375_v20 = vadd.f32 %v1371_v33, %v10660_v47  ;;  %5876 = vmatprep.subr.bf16.mxu0 %v8189_v54  ;;  %v1380_v27 = vmax.f32 %v1286_v5, %v1376_v48  ;;  %v2369_v54 = vshrl.u32 %v1475_v22, 16 }
 0x1ea   :  { %v1465_v40 = vmul.f32 %v1461_v59, %v6694_v43  ;;  %v1470_v46 = vadd.f32 %v1466_v19, %v10660_v47  ;;  %v10732_v43 = vld [vmem:[#allocation14_spill] sm:$0xff] }
 0x1eb   :  { %v1379_v35 = vmax.f32 %v1285_v14, %v1375_v20  ;;  %v2374_v55 = vor.u32 %v2373_v41, %v2369_v54 }
 0x1ec   :  { %v1469_v30 = vadd.f32 %v1465_v40, %v10660_v47  ;;  %5877 = vmatpush3.bf16.msra.mxu0 %v8221_v53  ;;  %v1474_v11 = vmax.f32 %v1380_v27, %v1470_v46  ;;  %v2367_v31 = vpop.permute.xlu1 %2366 }
 0x1ed   :  { %5878 = vmatprep.subr.bf16.mxu0 %v8229_v8 }
 0x1ee   :  { %v1473_v50 = vmax.f32 %v1379_v35, %v1469_v30 }
 0x1f0   :  { %v1476_v6 = vpack.c.bf16 %v1474_v11, %v1473_v50  ;;  %5879 = vmatpush3.bf16.msra.mxu0 %v10731_v62 }
 0x1f1   :  { %5880 = vmatprep.subr.bf16.mxu0 %v10732_v43  ;;  %v2399_v10 = vpop.permute.xlu0 %2398 }
 0x1f2   :  { %v2376_v7 = vshll.u32 %v1476_v6, 16  ;;  %v2380_v53 = vshrl.u32 %v1476_v6, 16  ;;  %v2406_v21 = vsel %vm2078_vm2, %v1476_v6, %v2367_v31 }
 0x1f4   :  { %v2378_v44 = vrot.slane %v2376_v7, 1  ;;  %5881 = vmatpush3.bf16.msra.mxu0 %v10733_v34 }
 0x1f5   :  { %5882 = vmatprep.subr.bf16.mxu0 %v8300_v39  ;;  %v2401_v13 = vpop.permute.xlu0 %2400 }
 0x1f6   :  { %v2379_v47 = vsel %vm2043_vm1, %v2374_v55, %v2378_v44  ;;  %v2382_v26 = vor.u32 %v2380_v53, %v2378_v44 }
 0x1f7   :  { %v2410_v8 = vsel %vm2078_vm2, %v2379_v47, %v2399_v10 }
 0x1f8   :  { %2448 = vmatprep.mubr.bf16.mxu0 %v2410_v8  ;;  %5883 = vmatpush3.bf16.msra.mxu0 %v8315_v0  ;;  %v2414_v39 = vsel %vm2078_vm2, %v2382_v26, %v2401_v13 }
 0x1f9   :  { %5884 = vmatprep.subr.bf16.mxu0 %v8325_v42 }
 0x1fc   :  { %5885 = vmatpush3.bf16.msra.mxu0 %v8341_v12  ;;  %v10735_v12 = vld [vmem:[#allocation8_spill] sm:$0xff] }
 0x1fd   :  { %v10273_v45 = vsub.s32 7, %v10735_v12  ;;  %v10736_v2 = vsub.s32 0, %v10735_v12  ;;  %v10737_v14 = vsub.s32 1, %v10735_v12 }
 0x1ff   :  { %2449 = vmatmul.mubr.bf16.vlgmr.msra.gmra.mrb[8].mxu0 %v2403_v23  ;;  %v8593_v63 = vrot.slane %v6405_v24, %v10273_v45  ;;  %v8604_v17 = vrot.slane %v8599_v18, %v10736_v2  ;;  %v8611_v33 = vrot.slane %v8599_v18, %v10737_v14  ;;  %v8641_v24 = vld [vmem:[%s10201_s3 + $0x40] sm:$0xff]  }
 0x200   :  { %2456 = vmatprep.mubr.bf16.mxu0 %v2414_v39  ;;  %5926 = vmatprep.subr.bf16.mxu1 %v8641_v24  ;;  %v228_v45 = vld [vmem:[#allocation2 + $0x300] sm:$0xff] }
 0x207   :  { %2457 = vmatmul.mubr.bf16.gmra.mrb[12].mxu0 %v2406_v21 }
 0x208   :  { %2734 = vmatprep.mubr.bf16.mxu0 %v10734_v28 }
 0x245   :  { %v5858_v0 = vpop.f32.mrb[0].mxu1 }
 0x246   :  { %v5859_v42 = vpop.f32.mrb[1].mxu1 }
 0x247   :  { %v5860_v60 = vadd.f32 %v5859_v42, %v5858_v0  ;;  %v5861_v25 = vpop.f32.mrb[2].mxu1 }
 0x248   :  { %v5862_v1 = vpop.f32.mrb[3].mxu1 }
 0x249   :  { %v5863_v15 = vadd.f32 %v5862_v1, %v5861_v25  ;;  %v2336_v27 = vadd.f32 %v5860_v60, %v8593_v63 }
 0x24b   :  { %v2339_v36 = vadd.f32 %v5863_v15, %v8593_v63  ;;  %v2350_v62 = vmax.f32 %v2336_v27, 0.0 }
 0x24d   :  { %v2351_v29 = vmax.f32 %v2339_v36, 0.0  ;;  %v2354_v53 = vmul.f32 %v2350_v62, %v8604_v17  ;;  %v8646_v36 = vld [vmem:[%s10201_s3] sm:$0xff]  }
 0x24e   :  { %5927 = vmatpush3.bf16.msra.mxu1 %v8646_v36 }
 0x24f   :  { %v2355_v57 = vmul.f32 %v2351_v29, %v8604_v17  ;;  %v2358_v21 = vadd.f32 %v2354_v53, %v8611_v33  ;;  %v8664_v29 = vld [vmem:[%s10201_s3 + $0x50] sm:$0xff]  }
 0x251   :  { %v2359_v5 = vadd.f32 %v2355_v57, %v8611_v33 }
 0x25f   :  { %v5864_v38 = vpop.f32.mrb[4].mxu1 }
 0x260   :  { %v5865_v9 = vpop.f32.mrb[5].mxu1 }
 0x261   :  { %v5866_v56 = vadd.f32 %v5865_v9, %v5864_v38  ;;  %v5867_v58 = vpop.f32.mrb[6].mxu1  ;;  %v8651_v38 = vld [vmem:[%s10201_s3 + $0x48] sm:$0xff]  }
 0x262   :  { %v5868_v16 = vpop.f32.mrb[7].mxu1  ;;  %v8658_v9 = vld [vmem:[%s10201_s3 + $0x8] sm:$0xff]   ;;  %5928 = vmatprep.subr.bf16.mxu1 %v8651_v38 }
 0x263   :  { %v2344_v51 = vadd.f32 %v5866_v56, %v8593_v63  ;;  %v5869_v52 = vadd.f32 %v5868_v16, %v5867_v58  ;;  %5929 = vmatpush3.bf16.msra.mxu1 %v8658_v9  ;;  %v8670_v56 = vld [vmem:[%s10201_s3 + $0x10] sm:$0xff]   ;;  %v8676_v58 = vld [vmem:[%s10201_s3 + $0x58] sm:$0xff]  }
 0x264   :  { %5930 = vmatprep.subr.bf16.mxu1 %v8664_v29  ;;  %v8682_v16 = vld [vmem:[%s10201_s3 + $0x18] sm:$0xff]  }
 0x265   :  { %v2352_v22 = vmax.f32 %v2344_v51, 0.0  ;;  %v2347_v30 = vadd.f32 %v5869_v52, %v8593_v63 }
 0x267   :  { %v2356_v61 = vmul.f32 %v2352_v22, %v8604_v17  ;;  %v2353_v55 = vmax.f32 %v2347_v30, 0.0  ;;  %5931 = vmatpush3.bf16.msra.mxu1 %v8670_v56 }
 0x268   :  { %5932 = vmatprep.subr.bf16.mxu1 %v8676_v58 }
 0x269   :  { %v2360_v49 = vadd.f32 %v2356_v61, %v8611_v33  ;;  %v2357_v13 = vmul.f32 %v2353_v55, %v8604_v17 }
 0x26b   :  { %v6085_v4 = vpack.i.bf16 %v2360_v49, %v2359_v5  ;;  %v2361_v60 = vadd.f32 %v2357_v13, %v8611_v33  ;;  %5933 = vmatpush3.bf16.msra.mxu1 %v8682_v16 }
 0x278   :  { %v5914_v3 = vpop.f32.mrb[8].mxu1 }
 0x279   :  { %v5915_v20 = vpop.f32.mrb[9].mxu1 }
 0x27a   :  { %v5916_v59 = vadd.f32 %v5915_v20, %v5914_v3  ;;  %v5917_v48 = vpop.f32.mrb[10].mxu1 }
 0x27b   :  { %v5918_v19 = vpop.f32.mrb[11].mxu1 }
 0x27c   :  { %v2551_v40 = vadd.f32 %v5916_v59, %v8593_v63  ;;  %v5919_v35 = vadd.f32 %v5918_v19, %v5917_v48 }
 0x27e   :  { %v2565_v46 = vmax.f32 %v2551_v40, 0.0  ;;  %v2554_v37 = vadd.f32 %v5919_v35, %v8593_v63 }
 0x280   :  { %v2569_v11 = vmul.f32 %v2565_v46, %v8604_v17  ;;  %v2566_v50 = vmax.f32 %v2554_v37, 0.0  ;;  %v5920_v6 = vpop.f32.mrb[12].mxu1 }
 0x281   :  { %v5921_v41 = vpop.f32.mrb[13].mxu1 }
 0x282   :  { %v2570_v43 = vmul.f32 %v2566_v50, %v8604_v17  ;;  %v5922_v54 = vadd.f32 %v5921_v41, %v5920_v6  ;;  %v5923_v7 = vpop.f32.mrb[14].mxu1  ;;  %v2573_v47 = vadd.f32 %v2569_v11, %v8611_v33 }
 0x283   :  { %v5924_v44 = vpop.f32.mrb[15].mxu1 }
 0x284   :  { %v2559_v34 = vadd.f32 %v5922_v54, %v8593_v63  ;;  %v5925_v10 = vadd.f32 %v5924_v44, %v5923_v7  ;;  %v2574_v8 = vadd.f32 %v2570_v43, %v8611_v33 }
 0x286   :  { %v2567_v32 = vmax.f32 %v2559_v34, 0.0  ;;  %v2562_v26 = vadd.f32 %v5925_v10, %v8593_v63  ;;  %v6080_v23 = vpack.i.bf16 %v2574_v8, %v2573_v47 }
 0x288   :  { %v2571_v39 = vmul.f32 %v2567_v32, %v8604_v17  ;;  %v2568_v31 = vmax.f32 %v2562_v26, 0.0  ;;  %6081 = vrot.lane.b32.xlu0 %v6080_v23, %s6469_s9 }
 0x28a   :  { %v2575_v0 = vadd.f32 %v2571_v39, %v8611_v33  ;;  %v2572_v42 = vmul.f32 %v2568_v31, %v8604_v17 }
 0x28c   :  { %v2576_v25 = vadd.f32 %v2572_v42, %v8611_v33  ;;  %6086 = vrot.lane.b32.xlu0 %v6085_v4, %s6469_s9  ;;  %v6090_v1 = vpack.i.bf16 %v2358_v21, %v2575_v0 }
 0x28e   :  { %6091 = vrot.lane.b32.xlu1 %v6090_v1, %s6469_s9  ;;  %v6095_v15 = vpack.i.bf16 %v2361_v60, %v2576_v25 }
 0x292   :  { %6096 = vrot.lane.b32.xlu1 %v6095_v15, %s6469_s9 }
 0x2b2   :  { %v5830_v2 = vpop.f32.mrb[0].mxu0 }
 0x2b3   :  { %v5831_v51 = vpop.f32.mrb[1].mxu0 }
 0x2b4   :  { %v5832_v52 = vadd.f32 %v5831_v51, %v5830_v2  ;;  %v5833_v57 = vpop.f32.mrb[2].mxu0 }
 0x2b5   :  { %v5834_v22 = vpop.f32.mrb[3].mxu0 }
 0x2b6   :  { %v5835_v14 = vadd.f32 %v5834_v22, %v5833_v57  ;;  %v2228_v7 = vadd.f32 %v5832_v52, %v8593_v63 }
 0x2b8   :  { %v2231_v43 = vadd.f32 %v5835_v14, %v8593_v63  ;;  %v2242_v53 = vmax.f32 %v2228_v7, 0.0 }
 0x2ba   :  { %v5836_v61 = vpop.f32.mrb[4].mxu0  ;;  %v2243_v10 = vmax.f32 %v2231_v43, 0.0  ;;  %v2250_v25 = vmul.f32 %v8604_v17, %v2242_v53 }
 0x2bb   :  { %v5837_v5 = vpop.f32.mrb[5].mxu0 }
 0x2bc   :  { %v5838_v49 = vadd.f32 %v5837_v5, %v5836_v61  ;;  %v5839_v4 = vpop.f32.mrb[6].mxu0  ;;  %v2251_v39 = vmul.f32 %v8604_v17, %v2243_v10 }
 0x2bd   :  { %v5840_v3 = vpop.f32.mrb[7].mxu0 }
 0x2be   :  { %v5841_v20 = vadd.f32 %v5840_v3, %v5839_v4  ;;  %v2236_v54 = vadd.f32 %v5838_v49, %v8593_v63  ;;  %v2258_v4 = vadd.f32 %v8611_v33, %v2250_v25 }
 0x2c0   :  { %v2244_v47 = vmax.f32 %v2236_v54, 0.0  ;;  %v2239_v8 = vadd.f32 %v5841_v20, %v8593_v63 }
 0x2c2   :  { %v2252_v31 = vmul.f32 %v8604_v17, %v2244_v47  ;;  %v2245_v0 = vmax.f32 %v2239_v8, 0.0 }
 0x2c4   :  { %v2260_v52 = vadd.f32 %v8611_v33, %v2252_v31  ;;  %v2253_v14 = vmul.f32 %v8604_v17, %v2245_v0  ;;  %v278_v31 = vadd.s32 8, %v10735_v12 }
 0x2d2   :  { %v5886_v59 = vpop.f32.mrb[8].mxu0 }
 0x2d3   :  { %v5887_v48 = vpop.f32.mrb[9].mxu0 }
 0x2d4   :  { %v5888_v19 = vadd.f32 %v5887_v48, %v5886_v59  ;;  %v5889_v40 = vpop.f32.mrb[10].mxu0 }
 0x2d5   :  { %v5890_v35 = vpop.f32.mrb[11].mxu0 }
 0x2d6   :  { %v5891_v27 = vadd.f32 %v5890_v35, %v5889_v40  ;;  %v2451_v41 = vadd.f32 %v5888_v19, %v8593_v63 }
 0x2d8   :  { %v2454_v62 = vadd.f32 %v5891_v27, %v8593_v63  ;;  %v2465_v55 = vmax.f32 %v2451_v41, 0.0 }
 0x2da   :  { %v5892_v46 = vpop.f32.mrb[12].mxu0  ;;  %v2466_v34 = vmax.f32 %v2454_v62, 0.0  ;;  %v2469_v32 = vmul.f32 %v2465_v55, %v8604_v17 }
 0x2db   :  { %v5893_v37 = vpop.f32.mrb[13].mxu0 }
 0x2dc   :  { %v5894_v30 = vadd.f32 %v5893_v37, %v5892_v46  ;;  %v5895_v11 = vpop.f32.mrb[14].mxu0  ;;  %v2470_v13 = vmul.f32 %v2466_v34, %v8604_v17  ;;  %v2473_v1 = vadd.f32 %v2469_v32, %v8611_v33 }
 0x2dd   :  { %v5896_v50 = vpop.f32.mrb[15].mxu0 }
 0x2de   :  { %v5897_v6 = vadd.f32 %v5896_v50, %v5895_v11  ;;  %v2459_v44 = vadd.f32 %v5894_v30, %v8593_v63  ;;  %v2474_v51 = vadd.f32 %v2470_v13, %v8611_v33  ;;  %v2261_v11 = vadd.f32 %v8611_v33, %v2253_v14 }
 0x2e0   :  { %v2467_v26 = vmax.f32 %v2459_v44, 0.0  ;;  %v2462_v23 = vadd.f32 %v5897_v6, %v8593_v63  ;;  %v2259_v63 = vadd.f32 %v8611_v33, %v2251_v39 }
 0x2e2   :  { %v2471_v15 = vmul.f32 %v2467_v26, %v8604_v17  ;;  %v2468_v2 = vmax.f32 %v2462_v23, 0.0 }
 0x2e4   :  { %v2475_v3 = vadd.f32 %v2471_v15, %v8611_v33  ;;  %v2472_v20 = vmul.f32 %v2468_v2, %v8604_v17 }
 0x2e6   :  { %v2476_v6 = vadd.f32 %v2472_v20, %v8611_v33 }
 0x2fa   :  { %v6082_v21 = vpop.permute.xlu0 %6081 }
 0x2fb   :  { %v6084_v42 = vunpack.i.h.bf16 %v6082_v21  ;;  %v6083_v60 = vunpack.i.l.bf16 %v6082_v21 }
 0x2fd   :  { %v8705_v57 = vsel %vm2078_vm2, %v2473_v1, %v6083_v60  ;;  %v2614_v61 = vsel %vm2078_vm2, %v2474_v51, %v6084_v42 }
 0x2fe   :  { %v6087_v22 = vpop.permute.xlu0 %6086  ;;  %v2628_v48 = vrot.slane %v8705_v57, 1  ;;  %v2629_v27 = vrot.slane %v2614_v61, 1 }
 0x2ff   :  { %v6089_v5 = vunpack.i.h.bf16 %v6087_v22  ;;  %v6088_v49 = vunpack.i.l.bf16 %v6087_v22  ;;  %v10738_v22 = vlaneseq }
 0x300   :  { %v6092_v59 = vpop.permute.xlu1 %6091  ;;  %v2630_v34 = vsel %vm356_vm0, %v2628_v48, %v2629_v27 }
 0x301   :  { %v2610_v19 = vsel %vm2078_vm2, %v2259_v63, %v6088_v49  ;;  %v2611_v40 = vsel %vm2078_vm2, %v2260_v52, %v6089_v5  ;;  %v6094_v35 = vunpack.i.h.bf16 %v6092_v59  ;;  %v6093_v30 = vunpack.i.l.bf16 %v6092_v59 }
 0x302   :  { %v2626_v46 = vrot.slane %v2610_v19, 1  ;;  %v2631_v37 = vrot.slane %v2611_v40, 1  ;;  %v2648_v23 = vmax.f32 %v8705_v57, %v2630_v34  ;;  %v280_v14 = vand.u32 127, %v10738_v22 }
 0x303   :  { %v8717_v50 = vsel %vm2078_vm2, %v2258_v4, %v6094_v35  ;;  %v2615_v62 = vsel %vm2078_vm2, %v2475_v3, %v6093_v30  ;;  %v281_v49 = vmul.u32 2, %v10735_v12  ;;  %v282_v4 = vmul.u32 2, %v278_v31 }
 0x304   :  { %v2632_v17 = vsel %vm356_vm0, %v2626_v46, %v2631_v37  ;;  %v2625_v41 = vrot.slane %v8717_v50, 1  ;;  %v6097_v43 = vpop.permute.xlu1 %6096  ;;  %v2633_v7 = vrot.slane %v2615_v62, 1 }
 0x305   :  { %v2649_v54 = vmax.f32 %v2610_v19, %v2632_v17  ;;  %v6099_v55 = vunpack.i.h.bf16 %v6097_v43  ;;  %v6098_v44 = vunpack.i.l.bf16 %v6097_v43  ;;  %vm283_vm3 = vcmp.eq.s32.totalorder %v280_v14, %v281_v49 }
 0x306   :  { %v2627_v10 = vsel %vm356_vm0, %v2625_v41, %v2626_v46  ;;  %v2634_v8 = vsel %vm356_vm0, %v2629_v27, %v2633_v7  ;;  %vm284_vm4 = vcmp.eq.s32.totalorder %v280_v14, %v282_v4  ;;  %v10274_v41 = vmov 0.0  }
 0x307   :  { %v2647_v47 = vmax.f32 %v8717_v50, %v2627_v10  ;;  %v8728_v33 = vsel %vm2078_vm2, %v2261_v11, %v6099_v55  ;;  %v8731_v53 = vsel %vm2078_vm2, %v2476_v6, %v6098_v44  ;;  %v2650_v39 = vmax.f32 %v2614_v61, %v2634_v8 }
 0x308   :  { %v2635_v32 = vrot.slane %v8728_v33, 1  ;;  %v2637_v26 = vrot.slane %v8731_v53, 1  ;;  %v286_v43 = vsel %vm284_vm4, 1.0, %v10274_v41 }
 0x309   :  { %v2655_v13 = vpack.c.bf16 %v2649_v54, %v2647_v47  ;;  %v2656_v1 = vpack.c.bf16 %v2650_v39, %v2648_v23 }
 0x30a   :  { %v2636_v21 = vsel %vm356_vm0, %v2631_v37, %v2635_v32  ;;  %v2653_v0 = vmax.f32 %v8728_v33, %v2635_v32  ;;  %v2654_v42 = vmax.f32 %v8731_v53, %v2637_v26  ;;  %v2638_v60 = vsel %vm356_vm0, %v2633_v7, %v2637_v26 }
 0x30b   :  { %v2652_v25 = vmax.f32 %v2615_v62, %v2638_v60  ;;  %v2651_v15 = vmax.f32 %v2611_v40, %v2636_v21  ;;  %v2662_v2 = vshll.u32 %v2655_v13, 16  ;;  %v2674_v63 = vshll.u32 %v2656_v1, 16 }
 0x30c   :  { %v2660_v61 = vshrl.u32 %v2655_v13, 16  ;;  %v2672_v3 = vshrl.u32 %v2656_v1, 16  ;;  %v285_v62 = vsel %vm283_vm3, 1.0, %v10274_v41  ;;  %v2760_v26 = vrot.slane %v8728_v33, 6 }
 0x30d   :  { %v2658_v51 = vpack.c.bf16 %v2654_v42, %v2652_v25  ;;  %v2657_v52 = vpack.c.bf16 %v2653_v0, %v2651_v15  ;;  %v2664_v5 = vrot.slane %v2662_v2, 1  ;;  %v2676_v20 = vrot.slane %v2674_v63, 1 }
 0x30e   :  { %v287_v7 = vpack.c.bf16 %v286_v43, %v285_v62  ;;  %v2761_v13 = vrot.slane %v8731_v53, 6  ;;  %v10741_v62 = vsub.s32 4, %v10735_v12 }
 0x30f   :  { %v2679_v59 = vshll.u32 %v2658_v51, 16  ;;  %v2667_v48 = vshll.u32 %v2657_v52, 16  ;;  %v2686_v19 = vshrl.u32 %v2658_v51, 16  ;;  %v2677_v35 = vor.u32 %v2676_v20, %v2672_v3 }
 0x310   :  { %v2665_v46 = vor.u32 %v2664_v5, %v2660_v61  ;;  %v2683_v37 = vshrl.u32 %v2657_v52, 16  ;;  %v10739_v61 = vsub.s32 2, %v10735_v12  ;;  %v2932_v43 = vrot.slane %v8599_v18, %v10741_v62  ;;  %v153_v62 = vld [vmem:[#allocation2 + $0xa8] sm:$0xff] }
 0x311   :  { %v2681_v27 = vrot.slane %v2679_v59, 1  ;;  %v2669_v40 = vrot.slane %v2667_v48, 1 }
 0x312   :  { %v2783_v5 = vrot.slane %v8599_v18, %v10739_v61 }
 0x313   :  { %v2682_v30 = vsel %vm2043_vm1, %v2677_v35, %v2681_v27  ;;  %v2670_v11 = vsel %vm2043_vm1, %v2665_v46, %v2669_v40  ;;  %v2688_v6 = vor.u32 %v2686_v19, %v2681_v27  ;;  %v2685_v17 = vor.u32 %v2683_v37, %v2669_v40 }
 0x314   :  { %2702 = vmatprep.subr.bf16.mxu0 %v2682_v30  ;;  %v10740_v46 = vsub.s32 3, %v10735_v12  ;;  %v233_v12 = vld [vmem:[#allocation2 + $0x328] sm:$0xff] }
 0x315   :  { %2703 = vmatpush1.bf16.msra.mxu0 %v2670_v11  ;;  %v2697_v54 = vsel %vm2695_vm5, %v2685_v17, 0 }
 0x316   :  { %5606 = vmatprep.subr.msk.bf16.mxu0 %vm2695_vm5, %v2688_v6  ;;  %v2926_v40 = vrot.slane %v8599_v18, %v10740_v46 }
 0x319   :  { %2705 = vmatpush1.bf16.msra.mxu0 %v2697_v54 }
 0x31a   :  { %5948 = vmatprep.subr.bf16.mxu0 %v8641_v24  ;;  %v6125_v24 = vld [vmem:[%s10201_s3 + $0x60] sm:$0xff]  }
 0x31b   :  { %5934 = vmatprep.subr.bf16.mxu1 %v6125_v24 }
 0x31c   :  { %5607 = vmatmul.mubr.msk.bf16.vlgmr.msra.gmra.mrb[16].mxu0 %vm2691_vm6, %v287_v7 }
 0x31d   :  { %5949 = vmatpush3.bf16.msra.mxu0 %v8646_v36  ;;  %v6126_v36 = vld [vmem:[%s10201_s3 + $0x20] sm:$0xff]  }
 0x31e   :  { %5950 = vmatprep.subr.bf16.mxu0 %v8651_v38  ;;  %5935 = vmatpush3.bf16.msra.mxu1 %v6126_v36  ;;  %v6127_v38 = vld [vmem:[%s10201_s3 + $0x68] sm:$0xff]  }
 0x31f   :  { %5936 = vmatprep.subr.bf16.mxu1 %v6127_v38 }
 0x321   :  { %5951 = vmatpush3.bf16.msra.mxu0 %v8658_v9  ;;  %v6128_v9 = vld [vmem:[%s10201_s3 + $0x28] sm:$0xff]  }
 0x322   :  { %5952 = vmatprep.subr.bf16.mxu0 %v8664_v29  ;;  %v6129_v29 = vld [vmem:[%s10201_s3 + $0x70] sm:$0xff]   ;;  %5937 = vmatpush3.bf16.msra.mxu1 %v6128_v9 }
 0x323   :  { %5938 = vmatprep.subr.bf16.mxu1 %v6129_v29 }
 0x325   :  { %5953 = vmatpush3.bf16.msra.mxu0 %v8670_v56  ;;  %v6130_v56 = vld [vmem:[%s10201_s3 + $0x30] sm:$0xff]  }
 0x326   :  { %5954 = vmatprep.subr.bf16.mxu0 %v8676_v58  ;;  %v6131_v58 = vld [vmem:[%s10201_s3 + $0x78] sm:$0xff]   ;;  %5939 = vmatpush3.bf16.msra.mxu1 %v6130_v56 }
 0x327   :  { %5940 = vmatprep.subr.bf16.mxu1 %v6131_v58 }
 0x329   :  { %5955 = vmatpush3.bf16.msra.mxu0 %v8682_v16  ;;  %v6132_v16 = vld [vmem:[%s10201_s3 + $0x38] sm:$0xff]  }
 0x32a   :  { %5956 = vmatprep.subr.bf16.mxu0 %v6125_v24  ;;  %5941 = vmatpush3.bf16.msra.mxu1 %v6132_v16 }
 0x32d   :  { %5957 = vmatpush3.bf16.msra.mxu0 %v6126_v36 }
 0x32e   :  { %5958 = vmatprep.subr.bf16.mxu0 %v6127_v38 }
 0x331   :  { %5959 = vmatpush3.bf16.msra.mxu0 %v6128_v9 }
 0x332   :  { %5960 = vmatprep.subr.bf16.mxu0 %v6129_v29 }
 0x335   :  { %5961 = vmatpush3.bf16.msra.mxu0 %v6130_v56 }
 0x336   :  { %5962 = vmatprep.subr.bf16.mxu0 %v6131_v58 }
 0x339   :  { %5963 = vmatpush3.bf16.msra.mxu0 %v6132_v16 }
 0x33a   :  { %5982 = vmatprep.subr.bf16.mxu0 %v10274_v41 }
 0x3ef   :  { %v2736_v55 = vpop.f32.mrb[16].mxu0 }
 0x3f0   :  { %v2738_v44 = vpop.f32.mrb[17].mxu0  ;;  %v2750_v34 = vrot.slane %v2736_v55, 7 }
 0x3f1   :  { %v2740_v10 = vpop.f32.mrb[18].mxu0  ;;  %v2751_v47 = vrot.slane %v2738_v44, 7 }
 0x3f2   :  { %v2752_v8 = vrot.slane %v2740_v10, 7  ;;  %v2742_v32 = vpop.f32.mrb[19].mxu0  ;;  %v2764_v31 = vsel %vm2749_vm7, %v8717_v50, %v2750_v34  ;;  %v6136_v50 = vld [vmem:[%s10203_s5 + $0x4] ss:$16 sps:$4 sm:$0xff]  }
 0x3f3   :  { %v2754_v23 = vrot.slane %v2742_v32, 7  ;;  %v2765_v42 = vsel %vm2749_vm7, %v8705_v57, %v2751_v47  ;;  %v6134_v57 = vld [vmem:[%s10203_s5] ss:$16 sps:$4 sm:$0xff]   ;;  %3134 = vmatprep.subr.bf16.mxu1 %v6136_v50  ;;  %v133_v50 = vld [vmem:[#allocation2 + $0x8] sm:$0xff] }
 0x3f4   :  { %v2753_v39 = vsel %vm2749_vm7, %v2750_v34, %v2752_v8 }
 0x3f5   :  { %v2766_v21 = vsel %vm356_vm0, %v2753_v39, %v2760_v26  ;;  %v2755_v0 = vsel %vm2749_vm7, %v2751_v47, %v2754_v23 }
 0x3f6   :  { %v2768_v60 = vpack.c.bf16 %v2766_v21, %v2764_v31  ;;  %v2767_v25 = vsel %vm356_vm0, %v2755_v0, %v2761_v13 }
 0x3f7   :  { %v2769_v1 = vpack.c.bf16 %v2767_v25, %v2765_v42 }
 0x3f8   :  { %v2773_v15 = vshll.u32 %v2768_v60, 16  ;;  %v2771_v51 = vshrl.u32 %v2768_v60, 16 }
 0x3f9   :  { %v2947_v2 = vshll.u32 %v2769_v1, 16  ;;  %v2945_v33 = vshrl.u32 %v2769_v1, 16 }
 0x3fa   :  { %v2775_v63 = vrot.slane %v2773_v15, 1 }
 0x3fb   :  { %v2949_v52 = vrot.slane %v2947_v2, 1  ;;  %v6133_v2 = vld [vmem:[%s10202_s4] sm:$0x7f]  }
 0x3fc   :  { %v2776_v22 = vor.u32 %v2775_v63, %v2771_v51  ;;  %v6137_v51 = vld [vmem:[%s10203_s5 + $0x20] ss:$16 sps:$4 sm:$0xff]   ;;  %v6139_v63 = vld [vmem:[%s10203_s5 + $0x24] ss:$16 sps:$4 sm:$0xff]  }
 0x3fd   :  { %v2950_v53 = vor.u32 %v2949_v52, %v2945_v33  ;;  %v6140_v33 = vld [vmem:[%s10203_s5 + $0x8] ss:$16 sps:$4 sm:$0xff]   ;;  %v6142_v52 = vld [vmem:[%s10203_s5 + $0xc] ss:$16 sps:$4 sm:$0xff]  }
 0x3fe   :  { %2912 = vmatprep.mubr.bf16.mxu1 %v2776_v22  ;;  %v6145_v22 = vld [vmem:[%s10203_s5 + $0x2c] ss:$16 sps:$4 sm:$0xff]  }
 0x3ff   :  { %2913 = vmatmul.mubr.bf16.vlgmr.msra.gmra.mrb[16].mxu1 %v2768_v60  ;;  %2986 = vmatprep.mubr.bf16.mxu0 %v2950_v53  ;;  %v132_v53 = vld [vmem:[#allocation2] sm:$0xff] }
 0x400   :  { %2987 = vmatmul.mubr.bf16.vlgmr.msra.gmra.mrb[20].mxu0 %v2769_v1  ;;  %3166 = vmatprep.mubr.bf16.mxu1 %v10734_v28 }
 0x401   :  { %5986 = vmatprep.mubr.msk.bf16.mxu0 %vm6471_vm8, %v10274_v41  ;;  %3135 = vmatpush1.bf16.msra.mxu1 %v6134_v57  ;;  %v136_v57 = vld [vmem:[#allocation2 + $0x20] sm:$0xff] }
 0x402   :  { %3136 = vmatprep.subr.bf16.mxu1 %v6139_v63  ;;  %v8836_v61 = vcombine.high %v132_v53, %v136_v57 }
 0x404   :  { %10742 = vst [vmem:[#allocation26_spill] sm:$0xff] %v8836_v61 }
 0x405   :  { %3137 = vmatpush1.bf16.msra.mxu1 %v6137_v51  ;;  %v181_v51 = vld [vmem:[#allocation2 + $0x188] sm:$0xff] }
 0x406   :  { %3886 = vmatprep.subr.bf16.mxu1 %v8836_v61 }
 0x4d2   :  { %v5942_v14 = vpop.f32.mrb[16].mxu1 }
 0x4d3   :  { %v5943_v49 = vpop.f32.mrb[17].mxu1  ;;  %v5964_v4 = vpop.f32.mrb[20].mxu0 }
 0x4d4   :  { %v5944_v3 = vadd.f32 %v5943_v49, %v5942_v14  ;;  %v5945_v20 = vpop.f32.mrb[18].mxu1  ;;  %v5965_v59 = vpop.f32.mrb[21].mxu0  ;;  %v137_v14 = vld [vmem:[#allocation2 + $0x28] sm:$0xff]  ;;  %v8840_v49 = vcombine.low %v132_v53, %v136_v57  ;;  %v192_v53 = vld [vmem:[#allocation2 + $0x1e0] sm:$0xff] }
 0x4d5   :  { %v5966_v48 = vadd.f32 %v5965_v59, %v5964_v4  ;;  %v5946_v19 = vpop.f32.mrb[19].mxu1  ;;  %v5967_v35 = vpop.f32.mrb[22].mxu0  ;;  %v8842_v4 = vcombine.low %v133_v50, %v137_v14  ;;  %v144_v59 = vld [vmem:[#allocation2 + $0x60] sm:$0xff]  ;;  %v189_v57 = vld [vmem:[#allocation2 + $0x1c8] sm:$0xff] }
 0x4d6   :  { %v2915_v27 = vadd.f32 %v5944_v3, %v2783_v5  ;;  %v5947_v37 = vadd.f32 %v5946_v19, %v5945_v20  ;;  %v5968_v30 = vpop.f32.mrb[23].mxu0  ;;  %10744 = vst [vmem:[#allocation17_spill] sm:$0xff] %v8840_v49  ;;  %v140_v3 = vld [vmem:[#allocation2 + $0x40] sm:$0xff]  ;;  %v145_v19 = vld [vmem:[#allocation2 + $0x68] sm:$0xff] }
 0x4d7   :  { %v2989_v11 = vadd.f32 %v5966_v48, %v2783_v5  ;;  %v5969_v6 = vadd.f32 %v5968_v30, %v5967_v35  ;;  %10745 = vst [vmem:[#allocation18_spill] sm:$0xff] %v8842_v4  ;;  %v141_v48 = vld [vmem:[#allocation2 + $0x48] sm:$0xff] }
 0x4d8   :  { %v2921_v17 = vmax.f32 %v2915_v27, 0.0  ;;  %v2918_v54 = vadd.f32 %v5947_v37, %v2783_v5  ;;  %v8846_v37 = vcombine.high %v140_v3, %v144_v59  ;;  %v8848_v30 = vcombine.high %v141_v48, %v145_v19 }
 0x4d9   :  { %v2995_v7 = vmax.f32 %v2989_v11, 0.0  ;;  %v2992_v24 = vadd.f32 %v5969_v6, %v2783_v5  ;;  %v8838_v5 = vcombine.high %v133_v50, %v137_v14  ;;  %v148_v11 = vld [vmem:[#allocation2 + $0x80] sm:$0xff]  ;;  %v193_v50 = vld [vmem:[#allocation2 + $0x1e8] sm:$0xff] }
 0x4da   :  { %v2927_v36 = vmul.f32 %v2926_v40, %v2921_v17  ;;  %v2922_v38 = vmax.f32 %v2918_v54, 0.0  ;;  %10746 = vst [vmem:[#allocation11_spill] sm:$0xff] %v8846_v37  ;;  %10747 = vst [vmem:[#allocation19_spill] sm:$0xff] %v8848_v30  ;;  %v152_v6 = vld [vmem:[#allocation2 + $0xa0] sm:$0xff]  ;;  %v149_v17 = vld [vmem:[#allocation2 + $0x88] sm:$0xff]  ;;  %v8854_v54 = vcombine.low %v141_v48, %v145_v19 }
 0x4db   :  { %v2997_v9 = vmul.f32 %v2995_v7, %v2926_v40  ;;  %v2996_v29 = vmax.f32 %v2992_v24, 0.0  ;;  %10743 = vst [vmem:[#allocation13_spill] sm:$0xff] %v8838_v5  ;;  %v8858_v7 = vcombine.high %v148_v11, %v152_v6  ;;  %v8860_v24 = vcombine.high %v149_v17, %v153_v62  ;;  %v196_v48 = vld [vmem:[#allocation2 + $0x200] sm:$0xff] }
 0x4dc   :  { %v2933_v56 = vadd.f32 %v2932_v43, %v2927_v36  ;;  %v2928_v58 = vmul.f32 %v2926_v40, %v2922_v38  ;;  %10749 = vst [vmem:[#allocation28_spill] sm:$0xff] %v8854_v54  ;;  %v156_v36 = vld [vmem:[#allocation2 + $0xc0] sm:$0xff] }
 0x4dd   :  { %v2999_v16 = vadd.f32 %v2997_v9, %v2932_v43  ;;  %v2998_v55 = vmul.f32 %v2996_v29, %v2926_v40  ;;  %10750 = vst [vmem:[#allocation22_spill] sm:$0xff] %v8858_v7  ;;  %10751 = vst [vmem:[#allocation25_spill] sm:$0xff] %v8860_v24  ;;  %v160_v38 = vld [vmem:[#allocation2 + $0xe0] sm:$0xff]  ;;  %v157_v9 = vld [vmem:[#allocation2 + $0xc8] sm:$0xff] }
 0x4de   :  { %v2934_v44 = vadd.f32 %v2932_v43, %v2928_v58  ;;  %v2937_v10 = vrot.slane %v2933_v56, 1  ;;  %v161_v29 = vld [vmem:[#allocation2 + $0xe8] sm:$0xff]  ;;  %v8866_v58 = vcombine.low %v149_v17, %v153_v62  ;;  %v200_v19 = vld [vmem:[#allocation2 + $0x220] sm:$0xff] }
 0x4df   :  { %v3000_v34 = vadd.f32 %v2998_v55, %v2932_v43  ;;  %v3003_v8 = vrot.slane %v2999_v16, 1  ;;  %v8852_v43 = vcombine.low %v140_v3, %v144_v59  ;;  %v8872_v55 = vcombine.high %v157_v9, %v161_v29  ;;  %v204_v17 = vld [vmem:[#allocation2 + $0x240] sm:$0xff] }
 0x4e0   :  { %v2938_v47 = vrot.slane %v2934_v44, 1  ;;  %10753 = vst [vmem:[#allocation27_spill] sm:$0xff] %v8866_v58  ;;  %v8922_v59 = vcombine.high %v189_v57, %v193_v50  ;;  %v208_v62 = vld [vmem:[#allocation2 + $0x260] sm:$0xff] }
 0x4e1   :  { %v3004_v32 = vrot.slane %v3000_v34, 1  ;;  %10748 = vst [vmem:[#allocation20_spill] sm:$0xff] %v8852_v43  ;;  %10755 = vst [vmem:[#allocation33_spill] sm:$0xff] %v8872_v55 }
 0x4e2   :  { %v2939_v26 = vsel %vm356_vm0, %v2937_v10, %v2938_v47  ;;  %v2943_v21 = vmax.f32 %v2934_v44, %v2938_v47  ;;  %v8876_v44 = vcombine.low %v156_v36, %v160_v38  ;;  %v164_v10 = vld [vmem:[#allocation2 + $0x100] sm:$0xff]  ;;  %10771 = vst [vmem:[#allocation40_spill] sm:$0xff] %v8922_v59 }
 0x4e3   :  { %v3005_v18 = vsel %vm356_vm0, %v3003_v8, %v3004_v32  ;;  %v2942_v23 = vmax.f32 %v2933_v56, %v2939_v26  ;;  %v3009_v13 = vmax.f32 %v3000_v34, %v3004_v32  ;;  %v8864_v56 = vcombine.low %v148_v11, %v152_v6  ;;  %v168_v47 = vld [vmem:[#allocation2 + $0x120] sm:$0xff]  ;;  %v165_v8 = vld [vmem:[#allocation2 + $0x108] sm:$0xff] }
 0x4e4   :  { %v3008_v39 = vmax.f32 %v2999_v16, %v3005_v18  ;;  %v8870_v16 = vcombine.high %v156_v36, %v160_v38  ;;  %10756 = vst [vmem:[#allocation32_spill] sm:$0xff] %v8876_v44  ;;  %v8878_v34 = vcombine.low %v157_v9, %v161_v29  ;;  %v8884_v32 = vcombine.high %v164_v10, %v168_v47  ;;  %v169_v26 = vld [vmem:[#allocation2 + $0x128] sm:$0xff] }
 0x4e5   :  { %v3013_v31 = vrot.slane %v3009_v13, 2  ;;  %10752 = vst [vmem:[#allocation29_spill] sm:$0xff] %v8864_v56  ;;  %v8886_v18 = vcombine.high %v165_v8, %v169_v26  ;;  %v8892_v13 = vcombine.low %v165_v8, %v169_v26  ;;  %v8932_v11 = vcombine.high %v196_v48, %v200_v19  ;;  %v205_v36 = vld [vmem:[#allocation2 + $0x248] sm:$0xff]  ;;  %v212_v8 = vld [vmem:[#allocation2 + $0x280] sm:$0xff] }
 0x4e6   :  { %v3012_v0 = vrot.slane %v3008_v39, 2  ;;  %10754 = vst [vmem:[#allocation31_spill] sm:$0xff] %v8870_v16  ;;  %10757 = vst [vmem:[#allocation30_spill] sm:$0xff] %v8878_v34  ;;  %v172_v39 = vld [vmem:[#allocation2 + $0x140] sm:$0xff]  ;;  %v209_v38 = vld [vmem:[#allocation2 + $0x268] sm:$0xff]  ;;  %v8938_v9 = vcombine.low %v196_v48, %v200_v19 }
 0x4e7   :  { %10758 = vst [vmem:[#allocation23_spill] sm:$0xff] %v8884_v32  ;;  %10759 = vst [vmem:[#allocation21_spill] sm:$0xff] %v8886_v18  ;;  %v216_v26 = vld [vmem:[#allocation2 + $0x2a0] sm:$0xff]  ;;  %v221_v19 = vld [vmem:[#allocation2 + $0x2c8] sm:$0xff] }
 0x4e8   :  { %v3018_v42 = vsel %vm2695_vm5, %v2943_v21, %v3012_v0  ;;  %v3014_v60 = vsel %vm2695_vm5, %v3012_v0, %v3013_v31  ;;  %10761 = vst [vmem:[#allocation12_spill] sm:$0xff] %v8892_v13  ;;  %v173_v0 = vld [vmem:[#allocation2 + $0x148] sm:$0xff]  ;;  %10774 = vst [vmem:[#allocation43_spill] sm:$0xff] %v8932_v11  ;;  %v224_v48 = vld [vmem:[#allocation2 + $0x2e0] sm:$0xff] }
 0x4e9   :  { %v3019_v25 = vpack.c.bf16 %v3018_v42, %v2942_v23  ;;  %v3020_v1 = vpack.c.bf16 %v3013_v31, %v3014_v60  ;;  %v8890_v23 = vcombine.low %v164_v10, %v168_v47  ;;  %v176_v31 = vld [vmem:[#allocation2 + $0x160] sm:$0xff]  ;;  %v177_v42 = vld [vmem:[#allocation2 + $0x168] sm:$0xff]  ;;  %v10276_v60 = vmov 0.0|0.0   ;;  %10776 = vst [vmem:[#allocation45_spill] sm:$0xff] %v8938_v9 }
 0x4ea   :  { %v8894_v21 = vcombine.high %v172_v39, %v176_v31  ;;  %v8904_v63 = vcombine.low %v173_v0, %v177_v42  ;;  %v8944_v10 = vcombine.high %v204_v17, %v208_v62  ;;  %v8946_v47 = vcombine.high %v205_v36, %v209_v38 }
 0x4eb   :  { %5983 = vmatpush3.bf16.msra.mxu0 %v3019_v25  ;;  %v3030_v15 = vsel %vm2695_vm5, %v3020_v1, 0  ;;  %10760 = vst [vmem:[#allocation15_spill] sm:$0xff] %v8890_v23  ;;  %v8899_v25 = vcombine.high %v173_v0, %v177_v42  ;;  %v8901_v1 = vcombine.low %v172_v39, %v176_v31  ;;  %v213_v39 = vld [vmem:[#allocation2 + $0x288] sm:$0xff]  ;;  %v8948_v0 = vld [vmem:[#allocation2 + $0x10] sm:$0xff] }
 0x4ec   :  { %5984 = vmatprep.subr.bf16.mxu0 %v10274_v41  ;;  %10762 = vst [vmem:[#allocation24_spill] sm:$0xff] %v8894_v21  ;;  %10765 = vst [vmem:[#allocation34_spill] sm:$0xff] %v8904_v63  ;;  %v217_v31 = vld [vmem:[#allocation2 + $0x2a8] sm:$0xff]  ;;  %v8950_v42 = vld [vmem:[#allocation2 + $0x30] sm:$0xff] }
 0x4ed   :  { %10763 = vst [vmem:[#allocation14_spill] sm:$0xff] %v8899_v25  ;;  %10764 = vst [vmem:[#allocation16_spill] sm:$0xff] %v8901_v1  ;;  %v232_v41 = vld [vmem:[#allocation2 + $0x320] sm:$0xff] }
 0x4ee   :  { %10778 = vst [vmem:[#allocation47_spill] sm:$0xff] %v8944_v10  ;;  %10779 = vst [vmem:[#allocation48_spill] sm:$0xff] %v8946_v47 }
 0x4ef   :  { %5985 = vmatpush3.bf16.msra.mxu0 %v3030_v15  ;;  %v180_v15 = vld [vmem:[#allocation2 + $0x180] sm:$0xff] }
 0x4f0   :  { %3177 = vmatprep.subr.bf16.mxu0 %v6142_v52  ;;  %v185_v52 = vld [vmem:[#allocation2 + $0x1a8] sm:$0xff] }
 0x4f1   :  { %v8916_v3 = vcombine.low %v181_v51, %v185_v52 }
 0x4f2   :  { %5987 = vmatmul.mubr.msk.bf16.vlgmr.msra.gmra.mrb[24].mxu0 %vm2691_vm6, %v6133_v2  ;;  %v184_v2 = vld [vmem:[#allocation2 + $0x1a0] sm:$0xff] }
 0x4f3   :  { %3209 = vmatprep.mubr.bf16.mxu0 %v10734_v28  ;;  %3178 = vmatpush1.bf16.msra.mxu0 %v6140_v33  ;;  %v6143_v28 = vld [vmem:[%s10203_s5 + $0x28] ss:$16 sps:$4 sm:$0xff]   ;;  %v8906_v33 = vcombine.high %v180_v15, %v184_v2  ;;  %v8914_v14 = vcombine.low %v180_v15, %v184_v2  ;;  %10769 = vst [vmem:[#allocation38_spill] sm:$0xff] %v8916_v3 }
 0x4f4   :  { %3179 = vmatprep.subr.bf16.mxu0 %v6145_v22  ;;  %v8910_v22 = vcombine.high %v181_v51, %v185_v52  ;;  %v8952_v15 = vld [vmem:[#allocation2 + $0x18] sm:$0xff]  ;;  %v8958_v51 = vcombine.low %v204_v17, %v208_v62  ;;  %v8960_v52 = vcombine.low %v205_v36, %v209_v38  ;;  %v8978_v17 = vcombine.low %v212_v8, %v216_v26 }
 0x4f5   :  { %10766 = vst [vmem:[#allocation35_spill] sm:$0xff] %v8906_v33  ;;  %10768 = vst [vmem:[#allocation37_spill] sm:$0xff] %v8914_v14  ;;  %v8954_v2 = vld [vmem:[#allocation2 + $0x38] sm:$0xff]  ;;  %v8980_v62 = vcombine.low %v213_v39, %v217_v31 }
 0x4f6   :  { %10767 = vst [vmem:[#allocation36_spill] sm:$0xff] %v8910_v22  ;;  %10780 = vst [vmem:[#allocation49_spill] sm:$0xff] %v8958_v51 }
 0x4f7   :  { %3180 = vmatpush1.bf16.msra.mxu0 %v6143_v28  ;;  %v188_v28 = vld [vmem:[#allocation2 + $0x1c0] sm:$0xff]  ;;  %10781 = vst [vmem:[#allocation50_spill] sm:$0xff] %v8960_v52  ;;  %10785 = vst [vmem:[#allocation54_spill] sm:$0xff] %v8978_v17 }
 0x4f8   :  { %3927 = vmatprep.subr.bf16.mxu0 %v8838_v5  ;;  %10786 = vst [vmem:[#allocation55_spill] sm:$0xff] %v8980_v62 }
 0x5c5   :  { %v3066_v20 = vpop.f32.mrb[24].mxu0 }
 0x5c6   :  { %v5988_v35 = vpop.f32.mrb[25].mxu0 }
 0x5c7   :  { %v3069_v27 = vpop.f32.mrb[26].mxu0  ;;  %v197_v35 = vld [vmem:[#allocation2 + $0x208] sm:$0xff] }
 0x5c8   :  { %v3073_v46 = vpack.c.bf16 %v3069_v27, %v3066_v20  ;;  %v5989_v40 = vpop.f32.mrb[27].mxu0  ;;  %v8920_v20 = vcombine.high %v188_v28, %v192_v53  ;;  %v201_v27 = vld [vmem:[#allocation2 + $0x228] sm:$0xff] }
 0x5c9   :  { %v8928_v40 = vcombine.low %v189_v57, %v193_v50  ;;  %v8934_v6 = vcombine.high %v197_v35, %v201_v27  ;;  %v8940_v29 = vcombine.low %v197_v35, %v201_v27  ;;  %v220_v57 = vld [vmem:[#allocation2 + $0x2c0] sm:$0xff]  ;;  %v8970_v50 = vcombine.low %v8948_v0, %v8950_v42  ;;  %v225_v35 = vld [vmem:[#allocation2 + $0x2e8] sm:$0xff] }
 0x5ca   :  { %5634 = vmatmul.mubr.msk.bf16.vlgmr.msra.gmra.mrb[20].mxu1 %vm3130_vm9, %v3073_v46  ;;  %5635 = vmatmul.mubr.msk.bf16.vlgmr.msra.gmra.mrb[28].mxu0 %vm3130_vm9, %v3073_v46  ;;  %10770 = vst [vmem:[#allocation39_spill] sm:$0xff] %v8920_v20  ;;  %v8926_v46 = vcombine.low %v188_v28, %v192_v53  ;;  %v8964_v28 = vcombine.high %v212_v8, %v216_v26 }
 0x5cb   :  { %3887 = vmatpush1.bf16.msra.mxu1 %v8840_v49  ;;  %3928 = vmatpush1.bf16.msra.mxu0 %v8842_v4  ;;  %10773 = vst [vmem:[#allocation42_spill] sm:$0xff] %v8928_v40  ;;  %10775 = vst [vmem:[#allocation44_spill] sm:$0xff] %v8934_v6  ;;  %v8966_v53 = vcombine.high %v213_v39, %v217_v31  ;;  %v8974_v27 = vcombine.low %v8952_v15, %v8954_v2 }
 0x5cc   :  { %3888 = vmatprep.subr.bf16.mxu1 %v8846_v37  ;;  %3929 = vmatprep.subr.bf16.mxu0 %v8848_v30  ;;  %10772 = vst [vmem:[#allocation41_spill] sm:$0xff] %v8926_v46  ;;  %10777 = vst [vmem:[#allocation46_spill] sm:$0xff] %v8940_v29  ;;  %v8984_v36 = vcombine.high %v220_v57, %v224_v48  ;;  %v8986_v38 = vcombine.high %v221_v19, %v225_v35 }
 0x5cd   :  { %3918 = vmatprep.mubr.bf16.mxu1 %v10276_v60  ;;  %3959 = vmatprep.mubr.bf16.mxu0 %v10276_v60  ;;  %10782 = vst [vmem:[#allocation51_spill] sm:$0xff] %v8964_v28  ;;  %10783 = vst [vmem:[#allocation52_spill] sm:$0xff] %v8966_v53  ;;  %v229_v60 = vld [vmem:[#allocation2 + $0x308] sm:$0xff]  ;;  %v8990_v8 = vcombine.low %v220_v57, %v224_v48  ;;  %v8992_v26 = vcombine.low %v221_v19, %v225_v35 }
 0x5ce   :  { %10784 = vst [vmem:[#allocation53_spill] sm:$0xff] %v8974_v27  ;;  %10787 = vst [vmem:[#allocation56_spill] sm:$0xff] %v8984_v36  ;;  %v8996_v39 = vcombine.high %v228_v45, %v232_v41  ;;  %v8998_v31 = vcombine.high %v229_v60, %v233_v12  ;;  %v9002_v57 = vcombine.low %v228_v45, %v232_v41 }
 0x5cf   :  { %3889 = vmatpush1.bf16.msra.mxu1 %v8852_v43  ;;  %3930 = vmatpush1.bf16.msra.mxu0 %v8854_v54  ;;  %10788 = vst [vmem:[#allocation57_spill] sm:$0xff] %v8986_v38  ;;  %10789 = vst [vmem:[#allocation58_spill] sm:$0xff] %v8990_v8  ;;  %v9004_v48 = vcombine.low %v229_v60, %v233_v12 }
 0x5d0   :  { %3890 = vmatprep.subr.bf16.mxu1 %v8858_v7  ;;  %3931 = vmatprep.subr.bf16.mxu0 %v8860_v24  ;;  %10790 = vst [vmem:[#allocation59_spill] sm:$0xff] %v8992_v26  ;;  %10791 = vst [vmem:[#allocation60_spill] sm:$0xff] %v8996_v39 }
 0x5d1   :  { %10792 = vst [vmem:[#allocation61_spill] sm:$0xff] %v8998_v31  ;;  %10793 = vst [vmem:[#allocation62_spill] sm:$0xff] %v9002_v57 }
 0x5d2   :  { %10794 = vst [vmem:[#allocation63_spill] sm:$0xff] %v9004_v48 }
 0x5d3   :  { %3891 = vmatpush1.bf16.msra.mxu1 %v8864_v56  ;;  %3932 = vmatpush1.bf16.msra.mxu0 %v8866_v58 }
 0x5d4   :  { %3892 = vmatprep.subr.bf16.mxu1 %v8870_v16  ;;  %3933 = vmatprep.subr.bf16.mxu0 %v8872_v55 }
 0x5d7   :  { %3893 = vmatpush1.bf16.msra.mxu1 %v8876_v44  ;;  %3934 = vmatpush1.bf16.msra.mxu0 %v8878_v34 }
 0x5d8   :  { %3894 = vmatprep.subr.bf16.mxu1 %v8884_v32  ;;  %3935 = vmatprep.subr.bf16.mxu0 %v8886_v18 }
 0x5db   :  { %3895 = vmatpush1.bf16.msra.mxu1 %v8890_v23  ;;  %3936 = vmatpush1.bf16.msra.mxu0 %v8892_v13 }
 0x5dc   :  { %3896 = vmatprep.subr.bf16.mxu1 %v8894_v21  ;;  %3937 = vmatprep.subr.bf16.mxu0 %v8899_v25 }
 0x5df   :  { %3897 = vmatpush1.bf16.msra.mxu1 %v8901_v1  ;;  %3938 = vmatpush1.bf16.msra.mxu0 %v8904_v63 }
 0x5e0   :  { %3898 = vmatprep.subr.bf16.mxu1 %v8906_v33  ;;  %3939 = vmatprep.subr.bf16.mxu0 %v8910_v22 }
 0x5e3   :  { %3899 = vmatpush1.bf16.msra.mxu1 %v8914_v14  ;;  %3940 = vmatpush1.bf16.msra.mxu0 %v8916_v3 }
 0x5e4   :  { %3900 = vmatprep.subr.bf16.mxu1 %v8920_v20  ;;  %3941 = vmatprep.subr.bf16.mxu0 %v8922_v59 }
 0x5e7   :  { %3901 = vmatpush1.bf16.msra.mxu1 %v8926_v46  ;;  %3942 = vmatpush1.bf16.msra.mxu0 %v8928_v40 }
 0x5e8   :  { %3902 = vmatprep.subr.bf16.mxu1 %v8932_v11  ;;  %3943 = vmatprep.subr.bf16.mxu0 %v8934_v6 }
 0x5eb   :  { %3903 = vmatpush1.bf16.msra.mxu1 %v8938_v9  ;;  %3944 = vmatpush1.bf16.msra.mxu0 %v8940_v29 }
 0x5ec   :  { %3904 = vmatprep.subr.bf16.mxu1 %v8944_v10  ;;  %3945 = vmatprep.subr.bf16.mxu0 %v8946_v47 }
 0x5ef   :  { %3905 = vmatpush1.bf16.msra.mxu1 %v8958_v51  ;;  %3946 = vmatpush1.bf16.msra.mxu0 %v8960_v52  ;;  %v237_v52 = vld [vmem:[#allocation2 + $0x348] sm:$0xff] }
 0x5f0   :  { %3906 = vmatprep.subr.bf16.mxu1 %v8964_v28  ;;  %3947 = vmatprep.subr.bf16.mxu0 %v8966_v53  ;;  %v236_v53 = vld [vmem:[#allocation2 + $0x340] sm:$0xff]  ;;  %v241_v51 = vld [vmem:[#allocation2 + $0x368] sm:$0xff] }
 0x5f1   :  { %v240_v28 = vld [vmem:[#allocation2 + $0x360] sm:$0xff]  ;;  %v9010_v35 = vcombine.high %v237_v52, %v241_v51  ;;  %v9016_v12 = vcombine.low %v237_v52, %v241_v51 }
 0x5f2   :  { %v9008_v19 = vcombine.high %v236_v53, %v240_v28  ;;  %v9014_v45 = vcombine.low %v236_v53, %v240_v28 }
 0x5f3   :  { %3907 = vmatpush1.bf16.msra.mxu1 %v8978_v17  ;;  %3948 = vmatpush1.bf16.msra.mxu0 %v8980_v62  ;;  %10796 = vst [vmem:[#allocation65_spill] sm:$0xff] %v9010_v35  ;;  %v245_v62 = vld [vmem:[#allocation2 + $0x388] sm:$0xff]  ;;  %10798 = vst [vmem:[#allocation67_spill] sm:$0xff] %v9016_v12 }
 0x5f4   :  { %3908 = vmatprep.subr.bf16.mxu1 %v8984_v36  ;;  %3949 = vmatprep.subr.bf16.mxu0 %v8986_v38  ;;  %10795 = vst [vmem:[#allocation64_spill] sm:$0xff] %v9008_v19  ;;  %v244_v38 = vld [vmem:[#allocation2 + $0x380] sm:$0xff]  ;;  %v249_v17 = vld [vmem:[#allocation2 + $0x3a8] sm:$0xff]  ;;  %10797 = vst [vmem:[#allocation66_spill] sm:$0xff] %v9014_v45 }
 0x5f5   :  { %v248_v36 = vld [vmem:[#allocation2 + $0x3a0] sm:$0xff]  ;;  %v9022_v60 = vcombine.high %v245_v62, %v249_v17  ;;  %v9028_v51 = vcombine.low %v245_v62, %v249_v17  ;;  %v9046_v17 = vcombine.high %v8948_v0, %v8950_v42  ;;  %v9050_v62 = vcombine.high %v8952_v15, %v8954_v2  ;;  %v10811_v42 = vld [vmem:[#allocation9_spill] sm:$0xff] }
 0x5f6   :  { %v9020_v41 = vcombine.high %v244_v38, %v248_v36  ;;  %v9026_v28 = vcombine.low %v244_v38, %v248_v36  ;;  %v9059_v36 = vld [vmem:[%s10199_s1 + $0x28] sm:$0xff]  ;;  %v9064_v0 = vld [vmem:[%s10199_s1 + $0x20] sm:$0xff]  ;;  %v9073_v38 = vld [vmem:[%s10199_s1 + $0x30] sm:$0xff] }
 0x5f7   :  { %3909 = vmatpush1.bf16.msra.mxu1 %v8990_v8  ;;  %3950 = vmatpush1.bf16.msra.mxu0 %v8992_v26  ;;  %10800 = vst [vmem:[#allocation69_spill] sm:$0xff] %v9022_v60  ;;  %v253_v26 = vld [vmem:[#allocation2 + $0x3c8] sm:$0xff]  ;;  %10802 = vst [vmem:[#allocation71_spill] sm:$0xff] %v9028_v51  ;;  %v3077_v15 = vrot.slane %v9064_v0, %v10811_v42  ;;  %v3081_v2 = vrot.slane %v9059_v36, %v10811_v42 }
 0x5f8   :  { %3910 = vmatprep.subr.bf16.mxu1 %v8996_v39  ;;  %3951 = vmatprep.subr.bf16.mxu0 %v8998_v31  ;;  %10799 = vst [vmem:[#allocation68_spill] sm:$0xff] %v9020_v41  ;;  %v252_v31 = vld [vmem:[#allocation2 + $0x3c0] sm:$0xff]  ;;  %v257_v8 = vld [vmem:[#allocation2 + $0x3e8] sm:$0xff]  ;;  %10801 = vst [vmem:[#allocation70_spill] sm:$0xff] %v9026_v28 }
 0x5f9   :  { %v256_v39 = vld [vmem:[#allocation2 + $0x3e0] sm:$0xff]  ;;  %v9034_v53 = vcombine.high %v253_v26, %v257_v8  ;;  %10807 = vst [vmem:[#allocation76_spill] sm:$0xff] %v9046_v17  ;;  %10808 = vst [vmem:[#allocation77_spill] sm:$0xff] %v9050_v62 }
 0x5fa   :  { %v9032_v52 = vcombine.high %v252_v31, %v256_v39  ;;  %10809 = vst [vmem:[#allocation78_spill] sm:$0xff] %v9059_v36  ;;  %10810 = vst [vmem:[#allocation79_spill] sm:$0xff] %v9064_v0  ;;  %v3085_v0 = vrot.slane %v9073_v38, %v10811_v42 }
 0x5fb   :  { %3911 = vmatpush1.bf16.msra.mxu1 %v9002_v57  ;;  %3952 = vmatpush1.bf16.msra.mxu0 %v9004_v48  ;;  %10804 = vst [vmem:[#allocation73_spill] sm:$0xff] %v9034_v53  ;;  %10812 = vst [vmem:[#allocation9_spill] sm:$0xff] %v9073_v38 }
 0x5fc   :  { %3912 = vmatprep.subr.bf16.mxu1 %v9008_v19  ;;  %3953 = vmatprep.subr.bf16.mxu0 %v9010_v35  ;;  %10803 = vst [vmem:[#allocation72_spill] sm:$0xff] %v9032_v52  ;;  %v9038_v35 = vcombine.low %v252_v31, %v256_v39 }
 0x5fe   :  { %10805 = vst [vmem:[#allocation74_spill] sm:$0xff] %v9038_v35 }
 0x5ff   :  { %3913 = vmatpush1.bf16.msra.mxu1 %v9014_v45  ;;  %3954 = vmatpush1.bf16.msra.mxu0 %v9016_v12  ;;  %v9040_v45 = vcombine.low %v253_v26, %v257_v8  ;;  %v9078_v8 = vld [vmem:[%s10199_s1 + $0x38] sm:$0xff] }
 0x600   :  { %3914 = vmatprep.subr.bf16.mxu1 %v9020_v41  ;;  %3955 = vmatprep.subr.bf16.mxu0 %v9022_v60  ;;  %10813 = vst [vmem:[#allocation80_spill] sm:$0xff] %v9078_v8 }
 0x601   :  { %10806 = vst [vmem:[#allocation75_spill] sm:$0xff] %v9040_v45 }
 0x603   :  { %3915 = vmatpush1.bf16.msra.mxu1 %v9026_v28  ;;  %3956 = vmatpush1.bf16.msra.mxu0 %v9028_v51 }
 0x604   :  { %3916 = vmatprep.subr.bf16.mxu1 %v9032_v52  ;;  %3957 = vmatprep.subr.bf16.mxu0 %v9034_v53 }
 0x607   :  { %3917 = vmatpush1.bf16.msra.mxu1 %v9038_v35  ;;  %3958 = vmatpush1.bf16.msra.mxu0 %v9040_v45  ;;  %v3089_v45 = vrot.slane %v9078_v8, %v10811_v42 }
 0x608   :  { %3968 = vmatprep.subr.bf16.mxu1 %v9046_v17  ;;  %4009 = vmatprep.subr.bf16.mxu0 %v9050_v62 }
 0x69d   :  { %v3168_v26 = vpop.f32.mrb[20].mxu1  ;;  %v3211_v39 = vpop.f32.mrb[28].mxu0 }
 0x69e   :  { %v9080_v31 = vadd.f32 %v3168_v26, %v3077_v15  ;;  %v3170_v62 = vpop.f32.mrb[21].mxu1  ;;  %v3213_v17 = vpop.f32.mrb[29].mxu0 }
 0x69f   :  { %v9084_v36 = vadd.f32 %v3170_v62, %v3081_v2  ;;  %v3172_v35 = vpop.f32.mrb[22].mxu1  ;;  %v3215_v53 = vpop.f32.mrb[30].mxu0  ;;  %v9098_v62 = vadd.f32 %v3211_v39, %v3085_v0  ;;  %v9101_v8 = vadd.f32 %v3213_v17, %v3089_v45  ;;  %v142_v17 = vld [vmem:[#allocation2 + $0x50] sm:$0xff] }
 0x6a0   :  { %v5636_v52 = vmul.f32 -1.442695, %v9080_v31  ;;  %v9089_v51 = vadd.f32 %v3172_v35, %v3077_v15  ;;  %v9091_v28 = vadd.f32 %v3215_v53, %v3085_v0  ;;  %v3174_v26 = vpop.f32.mrb[23].mxu1  ;;  %v3217_v60 = vpop.f32.mrb[31].mxu0 }
 0x6a1   :  { %10814 = vst [vmem:[#allocation81_spill] sm:$0xff] %v9084_v36  ;;  %v5637_v41 = vmul.f32 -1.442695, %v9084_v36  ;;  %v9094_v12 = vadd.f32 %v3174_v26, %v3081_v2  ;;  %v9096_v38 = vadd.f32 %v3217_v60, %v3089_v45  ;;  %10819 = vst [vmem:[#allocation86_spill] sm:$0xff] %v9098_v62  ;;  %v5638_v42 = vmul.f32 -1.442695, %v9098_v62 }
 0x6a2   :  { %10815 = vst [vmem:[#allocation82_spill] sm:$0xff] %v9089_v51  ;;  %10816 = vst [vmem:[#allocation83_spill] sm:$0xff] %v9091_v28  ;;  %6154 = vpow2.f32 %v5636_v52  ;;  %v163_v62 = vld [vmem:[#allocation2 + $0xf8] sm:$0xff]  ;;  %v10828_v36 = vmov 0.0|0.0  }
 0x6a3   :  { %10817 = vst [vmem:[#allocation84_spill] sm:$0xff] %v9094_v12  ;;  %10818 = vst [vmem:[#allocation85_spill] sm:$0xff] %v9096_v38  ;;  %6156 = vpow2.f32 %v5637_v41  ;;  %v147_v12 = vld [vmem:[#allocation2 + $0x78] sm:$0xff] }
 0x6a4   :  { %10820 = vst [vmem:[#allocation87_spill] sm:$0xff] %v9101_v8  ;;  %6158 = vpow2.f32 %v5638_v42 }
 0x6a5   :  { %6160 = vtanh.f32 %v9101_v8 }
 0x6ac   :  { %v6155_v35 = vpop.eup %6154 }
 0x6ad   :  { %v6157_v15 = vpop.eup %6156  ;;  %v3229_v53 = vadd.f32 1.0, %v6155_v35  ;;  %v146_v35 = vld [vmem:[#allocation2 + $0x70] sm:$0xff] }
 0x6ae   :  { %v3230_v28 = vadd.f32 1.0, %v6157_v15  ;;  %v6159_v2 = vpop.eup %6158  ;;  %v143_v15 = vld [vmem:[#allocation2 + $0x58] sm:$0xff]  ;;  %v9109_v51 = vcombine.high %v142_v17, %v146_v35 }
 0x6af   :  { %6162 = vrcp.f32 %v3229_v53  ;;  %v6161_v60 = vpop.eup %6160  ;;  %v3231_v41 = vadd.f32 1.0, %v6159_v2  ;;  %v9111_v8 = vcombine.high %v143_v15, %v147_v12  ;;  %v150_v2 = vld [vmem:[#allocation2 + $0x90] sm:$0xff] }
 0x6b0   :  { %6164 = vrcp.f32 %v3230_v28  ;;  %10822 = vst [vmem:[#allocation89_spill] sm:$0xff] %v9109_v51 }
 0x6b1   :  { %6166 = vrcp.f32 %v3231_v41  ;;  %10823 = vst [vmem:[#allocation90_spill] sm:$0xff] %v9111_v8  ;;  %v9117_v41 = vcombine.low %v142_v17, %v146_v35 }
 0x6b3   :  { %10824 = vst [vmem:[#allocation91_spill] sm:$0xff] %v9117_v41 }
 0x6b9   :  { %v6163_v26 = vpop.eup %6162 }
 0x6ba   :  { %v6165_v52 = vpop.eup %6164  ;;  %v3240_v0 = vmul.f32 %v6163_v26, %v6161_v60  ;;  %v154_v60 = vld [vmem:[#allocation2 + $0xb0] sm:$0xff]  ;;  %v151_v26 = vld [vmem:[#allocation2 + $0x98] sm:$0xff] }
 0x6bb   :  { %v3239_v39 = vmul.f32 0.0, %v6165_v52  ;;  %v6167_v45 = vpop.eup %6166  ;;  %v155_v52 = vld [vmem:[#allocation2 + $0xb8] sm:$0xff] }
 0x6bc   :  { %v9133_v17 = vcombine.low %v151_v26, %v155_v52 }
 0x6bd   :  { %v9104_v38 = vadd.f32 %v3240_v0, %v3239_v39  ;;  %v9119_v0 = vcombine.low %v143_v15, %v147_v12  ;;  %v9123_v39 = vcombine.high %v150_v2, %v154_v60  ;;  %v9131_v12 = vcombine.low %v150_v2, %v154_v60 }
 0x6be   :  { %10830 = vst [vmem:[#allocation96_spill] sm:$0xff] %v9133_v17 }
 0x6bf   :  { %10821 = vst [vmem:[#allocation88_spill] sm:$0xff] %v9104_v38  ;;  %6168 = vtanh.f32 %v9104_v38  ;;  %10825 = vst [vmem:[#allocation92_spill] sm:$0xff] %v9119_v0  ;;  %v159_v38 = vld [vmem:[#allocation2 + $0xd8] sm:$0xff] }
 0x6c0   :  { %10826 = vst [vmem:[#allocation93_spill] sm:$0xff] %v9123_v39  ;;  %10829 = vst [vmem:[#allocation95_spill] sm:$0xff] %v9131_v12  ;;  %v9139_v15 = vcombine.high %v159_v38, %v163_v62  ;;  %v9145_v60 = vcombine.low %v159_v38, %v163_v62 }
 0x6c2   :  { %10832 = vst [vmem:[#allocation98_spill] sm:$0xff] %v9139_v15  ;;  %10834 = vst [vmem:[#allocation100_spill] sm:$0xff] %v9145_v60 }
 0x6c9   :  { %v6169_v42 = vpop.eup %6168 }
 0x6ca   :  { %v3243_v53 = vmul.f32 %v6169_v42, %v6167_v45  ;;  %v9125_v45 = vcombine.high %v151_v26, %v155_v52  ;;  %v158_v42 = vld [vmem:[#allocation2 + $0xd0] sm:$0xff] }
 0x6cc   :  { %v9107_v28 = vpack.c.bf16 %v3243_v53, %v3243_v53  ;;  %10827 = vst [vmem:[#allocation94_spill] sm:$0xff] %v9125_v45  ;;  %v162_v53 = vld [vmem:[#allocation2 + $0xf0] sm:$0xff] }
 0x6cd   :  { %v9137_v35 = vcombine.high %v158_v42, %v162_v53  ;;  %v9143_v2 = vcombine.low %v158_v42, %v162_v53 }
 0x6ce   :  { %3919 = vmatmul.mubr.bf16.vlgmr.msra.gmra.mrb[24].mxu1 %v9107_v28  ;;  %3960 = vmatmul.mubr.bf16.vlgmr.msra.gmra.mrb[32].mxu0 %v9107_v28 }
 0x6cf   :  { %3969 = vmatpush1.bf16.msra.mxu1 %v8970_v50  ;;  %4010 = vmatpush1.bf16.msra.mxu0 %v8974_v27  ;;  %10831 = vst [vmem:[#allocation97_spill] sm:$0xff] %v9137_v35  ;;  %v167_v27 = vld [vmem:[#allocation2 + $0x118] sm:$0xff]  ;;  %10833 = vst [vmem:[#allocation99_spill] sm:$0xff] %v9143_v2 }
 0x6d0   :  { %3970 = vmatprep.subr.bf16.mxu1 %v9109_v51  ;;  %4011 = vmatprep.subr.bf16.mxu0 %v9111_v8  ;;  %v166_v8 = vld [vmem:[#allocation2 + $0x110] sm:$0xff] }
 0x6d1   :  { %4000 = vmatprep.mubr.bf16.mxu1 %v10828_v36  ;;  %4041 = vmatprep.mubr.bf16.mxu0 %v10828_v36  ;;  %v170_v51 = vld [vmem:[#allocation2 + $0x130] sm:$0xff]  ;;  %v171_v36 = vld [vmem:[#allocation2 + $0x138] sm:$0xff] }
 0x6d2   :  { %v9149_v26 = vcombine.high %v166_v8, %v170_v51  ;;  %v9151_v52 = vcombine.high %v167_v27, %v171_v36  ;;  %v9155_v42 = vcombine.low %v166_v8, %v170_v51  ;;  %v9157_v38 = vcombine.low %v167_v27, %v171_v36 }
 0x6d3   :  { %3971 = vmatpush1.bf16.msra.mxu1 %v9117_v41  ;;  %4012 = vmatpush1.bf16.msra.mxu0 %v9119_v0  ;;  %v175_v0 = vld [vmem:[#allocation2 + $0x158] sm:$0xff] }
 0x6d4   :  { %3972 = vmatprep.subr.bf16.mxu1 %v9123_v39  ;;  %4013 = vmatprep.subr.bf16.mxu0 %v9125_v45  ;;  %10835 = vst [vmem:[#allocation101_spill] sm:$0xff] %v9149_v26  ;;  %10836 = vst [vmem:[#allocation102_spill] sm:$0xff] %v9151_v52  ;;  %v174_v45 = vld [vmem:[#allocation2 + $0x150] sm:$0xff]  ;;  %v179_v41 = vld [vmem:[#allocation2 + $0x178] sm:$0xff] }
 0x6d5   :  { %v178_v39 = vld [vmem:[#allocation2 + $0x170] sm:$0xff]  ;;  %10837 = vst [vmem:[#allocation103_spill] sm:$0xff] %v9155_v42  ;;  %10838 = vst [vmem:[#allocation104_spill] sm:$0xff] %v9157_v38  ;;  %v9163_v53 = vcombine.high %v175_v0, %v179_v41  ;;  %v9169_v27 = vcombine.low %v175_v0, %v179_v41 }
 0x6d6   :  { %v9161_v62 = vcombine.high %v174_v45, %v178_v39  ;;  %v9167_v51 = vcombine.low %v174_v45, %v178_v39 }
 0x6d7   :  { %3973 = vmatpush1.bf16.msra.mxu1 %v9131_v12  ;;  %4014 = vmatpush1.bf16.msra.mxu0 %v9133_v17  ;;  %10840 = vst [vmem:[#allocation106_spill] sm:$0xff] %v9163_v53  ;;  %v183_v17 = vld [vmem:[#allocation2 + $0x198] sm:$0xff]  ;;  %10842 = vst [vmem:[#allocation108_spill] sm:$0xff] %v9169_v27 }
 0x6d8   :  { %3974 = vmatprep.subr.bf16.mxu1 %v9137_v35  ;;  %4015 = vmatprep.subr.bf16.mxu0 %v9139_v15  ;;  %10839 = vst [vmem:[#allocation105_spill] sm:$0xff] %v9161_v62  ;;  %v182_v15 = vld [vmem:[#allocation2 + $0x190] sm:$0xff]  ;;  %v187_v12 = vld [vmem:[#allocation2 + $0x1b8] sm:$0xff]  ;;  %10841 = vst [vmem:[#allocation107_spill] sm:$0xff] %v9167_v51 }
 0x6d9   :  { %v186_v35 = vld [vmem:[#allocation2 + $0x1b0] sm:$0xff]  ;;  %v9175_v36 = vcombine.high %v183_v17, %v187_v12  ;;  %v9181_v41 = vcombine.low %v183_v17, %v187_v12 }
 0x6da   :  { %v9173_v8 = vcombine.high %v182_v15, %v186_v35  ;;  %v9179_v39 = vcombine.low %v182_v15, %v186_v35 }
 0x6db   :  { %3975 = vmatpush1.bf16.msra.mxu1 %v9143_v2  ;;  %4016 = vmatpush1.bf16.msra.mxu0 %v9145_v60  ;;  %10844 = vst [vmem:[#allocation110_spill] sm:$0xff] %v9175_v36  ;;  %v191_v60 = vld [vmem:[#allocation2 + $0x1d8] sm:$0xff]  ;;  %10846 = vst [vmem:[#allocation112_spill] sm:$0xff] %v9181_v41 }
 0x6dc   :  { %3976 = vmatprep.subr.bf16.mxu1 %v9149_v26  ;;  %4017 = vmatprep.subr.bf16.mxu0 %v9151_v52  ;;  %10843 = vst [vmem:[#allocation109_spill] sm:$0xff] %v9173_v8  ;;  %v190_v52 = vld [vmem:[#allocation2 + $0x1d0] sm:$0xff]  ;;  %v195_v2 = vld [vmem:[#allocation2 + $0x1f8] sm:$0xff]  ;;  %10845 = vst [vmem:[#allocation111_spill] sm:$0xff] %v9179_v39 }
 0x6dd   :  { %v194_v26 = vld [vmem:[#allocation2 + $0x1f0] sm:$0xff]  ;;  %v9187_v45 = vcombine.high %v191_v60, %v195_v2  ;;  %v9193_v12 = vcombine.low %v191_v60, %v195_v2 }
 0x6de   :  { %v9185_v0 = vcombine.high %v190_v52, %v194_v26  ;;  %v9191_v35 = vcombine.low %v190_v52, %v194_v26 }
 0x6df   :  { %3977 = vmatpush1.bf16.msra.mxu1 %v9155_v42  ;;  %4018 = vmatpush1.bf16.msra.mxu0 %v9157_v38  ;;  %10848 = vst [vmem:[#allocation114_spill] sm:$0xff] %v9187_v45  ;;  %v199_v38 = vld [vmem:[#allocation2 + $0x218] sm:$0xff]  ;;  %10850 = vst [vmem:[#allocation116_spill] sm:$0xff] %v9193_v12 }
 0x6e0   :  { %3978 = vmatprep.subr.bf16.mxu1 %v9161_v62  ;;  %4019 = vmatprep.subr.bf16.mxu0 %v9163_v53  ;;  %10847 = vst [vmem:[#allocation113_spill] sm:$0xff] %v9185_v0  ;;  %v198_v53 = vld [vmem:[#allocation2 + $0x210] sm:$0xff]  ;;  %v203_v42 = vld [vmem:[#allocation2 + $0x238] sm:$0xff]  ;;  %10849 = vst [vmem:[#allocation115_spill] sm:$0xff] %v9191_v35 }
 0x6e1   :  { %v202_v62 = vld [vmem:[#allocation2 + $0x230] sm:$0xff]  ;;  %v9199_v15 = vcombine.high %v199_v38, %v203_v42  ;;  %v9205_v2 = vcombine.low %v199_v38, %v203_v42 }
 0x6e2   :  { %v9197_v17 = vcombine.high %v198_v53, %v202_v62  ;;  %v9203_v26 = vcombine.low %v198_v53, %v202_v62 }
 0x6e3   :  { %3979 = vmatpush1.bf16.msra.mxu1 %v9167_v51  ;;  %4020 = vmatpush1.bf16.msra.mxu0 %v9169_v27  ;;  %10852 = vst [vmem:[#allocation118_spill] sm:$0xff] %v9199_v15  ;;  %v207_v27 = vld [vmem:[#allocation2 + $0x258] sm:$0xff]  ;;  %10854 = vst [vmem:[#allocation120_spill] sm:$0xff] %v9205_v2 }
 0x6e4   :  { %3980 = vmatprep.subr.bf16.mxu1 %v9173_v8  ;;  %4021 = vmatprep.subr.bf16.mxu0 %v9175_v36  ;;  %10851 = vst [vmem:[#allocation117_spill] sm:$0xff] %v9197_v17  ;;  %v206_v36 = vld [vmem:[#allocation2 + $0x250] sm:$0xff]  ;;  %v211_v51 = vld [vmem:[#allocation2 + $0x278] sm:$0xff]  ;;  %10853 = vst [vmem:[#allocation119_spill] sm:$0xff] %v9203_v26 }
 0x6e5   :  { %v210_v8 = vld [vmem:[#allocation2 + $0x270] sm:$0xff]  ;;  %v9211_v52 = vcombine.high %v207_v27, %v211_v51  ;;  %v9217_v42 = vcombine.low %v207_v27, %v211_v51 }
 0x6e6   :  { %v9209_v60 = vcombine.high %v206_v36, %v210_v8  ;;  %v9215_v62 = vcombine.low %v206_v36, %v210_v8 }
 0x6e7   :  { %3981 = vmatpush1.bf16.msra.mxu1 %v9179_v39  ;;  %4022 = vmatpush1.bf16.msra.mxu0 %v9181_v41  ;;  %10856 = vst [vmem:[#allocation122_spill] sm:$0xff] %v9211_v52  ;;  %v215_v41 = vld [vmem:[#allocation2 + $0x298] sm:$0xff]  ;;  %10858 = vst [vmem:[#allocation124_spill] sm:$0xff] %v9217_v42 }
 0x6e8   :  { %3982 = vmatprep.subr.bf16.mxu1 %v9185_v0  ;;  %4023 = vmatprep.subr.bf16.mxu0 %v9187_v45  ;;  %10855 = vst [vmem:[#allocation121_spill] sm:$0xff] %v9209_v60  ;;  %v214_v45 = vld [vmem:[#allocation2 + $0x290] sm:$0xff]  ;;  %v219_v39 = vld [vmem:[#allocation2 + $0x2b8] sm:$0xff]  ;;  %10857 = vst [vmem:[#allocation123_spill] sm:$0xff] %v9215_v62 }
 0x6e9   :  { %v218_v0 = vld [vmem:[#allocation2 + $0x2b0] sm:$0xff]  ;;  %v9223_v53 = vcombine.high %v215_v41, %v219_v39  ;;  %v9229_v51 = vcombine.low %v215_v41, %v219_v39 }
 0x6ea   :  { %v9221_v38 = vcombine.high %v214_v45, %v218_v0  ;;  %v9227_v8 = vcombine.low %v214_v45, %v218_v0 }
 0x6eb   :  { %3983 = vmatpush1.bf16.msra.mxu1 %v9191_v35  ;;  %4024 = vmatpush1.bf16.msra.mxu0 %v9193_v12  ;;  %10860 = vst [vmem:[#allocation126_spill] sm:$0xff] %v9223_v53  ;;  %v223_v12 = vld [vmem:[#allocation2 + $0x2d8] sm:$0xff]  ;;  %10862 = vst [vmem:[#allocation128_spill] sm:$0xff] %v9229_v51 }
 0x6ec   :  { %3984 = vmatprep.subr.bf16.mxu1 %v9197_v17  ;;  %4025 = vmatprep.subr.bf16.mxu0 %v9199_v15  ;;  %10859 = vst [vmem:[#allocation125_spill] sm:$0xff] %v9221_v38  ;;  %v222_v15 = vld [vmem:[#allocation2 + $0x2d0] sm:$0xff]  ;;  %v227_v35 = vld [vmem:[#allocation2 + $0x2f8] sm:$0xff]  ;;  %10861 = vst [vmem:[#allocation127_spill] sm:$0xff] %v9227_v8 }
 0x6ed   :  { %v226_v17 = vld [vmem:[#allocation2 + $0x2f0] sm:$0xff]  ;;  %v9235_v36 = vcombine.high %v223_v12, %v227_v35  ;;  %v9241_v39 = vcombine.low %v223_v12, %v227_v35 }
 0x6ee   :  { %v9233_v27 = vcombine.high %v222_v15, %v226_v17  ;;  %v9239_v0 = vcombine.low %v222_v15, %v226_v17 }
 0x6ef   :  { %3985 = vmatpush1.bf16.msra.mxu1 %v9203_v26  ;;  %4026 = vmatpush1.bf16.msra.mxu0 %v9205_v2  ;;  %10864 = vst [vmem:[#allocation130_spill] sm:$0xff] %v9235_v36  ;;  %v231_v2 = vld [vmem:[#allocation2 + $0x318] sm:$0xff]  ;;  %10866 = vst [vmem:[#allocation132_spill] sm:$0xff] %v9241_v39 }
 0x6f0   :  { %3986 = vmatprep.subr.bf16.mxu1 %v9209_v60  ;;  %4027 = vmatprep.subr.bf16.mxu0 %v9211_v52  ;;  %10863 = vst [vmem:[#allocation129_spill] sm:$0xff] %v9233_v27  ;;  %v230_v52 = vld [vmem:[#allocation2 + $0x310] sm:$0xff]  ;;  %v235_v26 = vld [vmem:[#allocation2 + $0x338] sm:$0xff]  ;;  %10865 = vst [vmem:[#allocation131_spill] sm:$0xff] %v9239_v0 }
 0x6f1   :  { %v234_v60 = vld [vmem:[#allocation2 + $0x330] sm:$0xff]  ;;  %v9247_v45 = vcombine.high %v231_v2, %v235_v26  ;;  %v9253_v35 = vcombine.low %v231_v2, %v235_v26 }
 0x6f2   :  { %v9245_v41 = vcombine.high %v230_v52, %v234_v60  ;;  %v9251_v17 = vcombine.low %v230_v52, %v234_v60 }
 0x6f3   :  { %3987 = vmatpush1.bf16.msra.mxu1 %v9215_v62  ;;  %4028 = vmatpush1.bf16.msra.mxu0 %v9217_v42  ;;  %10868 = vst [vmem:[#allocation134_spill] sm:$0xff] %v9247_v45  ;;  %v239_v42 = vld [vmem:[#allocation2 + $0x358] sm:$0xff]  ;;  %10870 = vst [vmem:[#allocation136_spill] sm:$0xff] %v9253_v35 }
 0x6f4   :  { %3988 = vmatprep.subr.bf16.mxu1 %v9221_v38  ;;  %4029 = vmatprep.subr.bf16.mxu0 %v9223_v53  ;;  %10867 = vst [vmem:[#allocation133_spill] sm:$0xff] %v9245_v41  ;;  %v238_v53 = vld [vmem:[#allocation2 + $0x350] sm:$0xff]  ;;  %v243_v62 = vld [vmem:[#allocation2 + $0x378] sm:$0xff]  ;;  %10869 = vst [vmem:[#allocation135_spill] sm:$0xff] %v9251_v17 }
 0x6f5   :  { %v242_v38 = vld [vmem:[#allocation2 + $0x370] sm:$0xff]  ;;  %v9259_v15 = vcombine.high %v239_v42, %v243_v62  ;;  %v9265_v26 = vcombine.low %v239_v42, %v243_v62 }
 0x6f6   :  { %v9257_v12 = vcombine.high %v238_v53, %v242_v38  ;;  %v9263_v60 = vcombine.low %v238_v53, %v242_v38 }
 0x6f7   :  { %3989 = vmatpush1.bf16.msra.mxu1 %v9227_v8  ;;  %4030 = vmatpush1.bf16.msra.mxu0 %v9229_v51  ;;  %10872 = vst [vmem:[#allocation138_spill] sm:$0xff] %v9259_v15  ;;  %v247_v51 = vld [vmem:[#allocation2 + $0x398] sm:$0xff]  ;;  %10874 = vst [vmem:[#allocation140_spill] sm:$0xff] %v9265_v26 }
 0x6f8   :  { %3990 = vmatprep.subr.bf16.mxu1 %v9233_v27  ;;  %4031 = vmatprep.subr.bf16.mxu0 %v9235_v36  ;;  %10871 = vst [vmem:[#allocation137_spill] sm:$0xff] %v9257_v12  ;;  %v246_v36 = vld [vmem:[#allocation2 + $0x390] sm:$0xff]  ;;  %v251_v8 = vld [vmem:[#allocation2 + $0x3b8] sm:$0xff]  ;;  %10873 = vst [vmem:[#allocation139_spill] sm:$0xff] %v9263_v60 }
 0x6f9   :  { %v250_v27 = vld [vmem:[#allocation2 + $0x3b0] sm:$0xff]  ;;  %v9271_v52 = vcombine.high %v247_v51, %v251_v8  ;;  %v9277_v62 = vcombine.low %v247_v51, %v251_v8  ;;  %v10885_v51 = vld [vmem:[#allocation51_spill] sm:$0xff] }
 0x6fa   :  { %v9269_v2 = vcombine.high %v246_v36, %v250_v27  ;;  %v9275_v38 = vcombine.low %v246_v36, %v250_v27  ;;  %v10884_v8 = vld [vmem:[#allocation50_spill] sm:$0xff]  ;;  %v10886_v27 = vld [vmem:[#allocation52_spill] sm:$0xff] }
 0x6fb   :  { %3991 = vmatpush1.bf16.msra.mxu1 %v9239_v0  ;;  %4032 = vmatpush1.bf16.msra.mxu0 %v9241_v39  ;;  %10876 = vst [vmem:[#allocation142_spill] sm:$0xff] %v9271_v52  ;;  %v255_v39 = vld [vmem:[#allocation2 + $0x3d8] sm:$0xff]  ;;  %10878 = vst [vmem:[#allocation144_spill] sm:$0xff] %v9277_v62 }
 0x6fc   :  { %3992 = vmatprep.subr.bf16.mxu1 %v9245_v41  ;;  %4033 = vmatprep.subr.bf16.mxu0 %v9247_v45  ;;  %10875 = vst [vmem:[#allocation141_spill] sm:$0xff] %v9269_v2  ;;  %v254_v45 = vld [vmem:[#allocation2 + $0x3d0] sm:$0xff]  ;;  %v259_v0 = vld [vmem:[#allocation2 + $0x3f8] sm:$0xff]  ;;  %10877 = vst [vmem:[#allocation143_spill] sm:$0xff] %v9275_v38 }
 0x6fd   :  { %v258_v41 = vld [vmem:[#allocation2 + $0x3f0] sm:$0xff]  ;;  %v9283_v53 = vcombine.high %v255_v39, %v259_v0 }
 0x6fe   :  { %v9281_v42 = vcombine.high %v254_v45, %v258_v41  ;;  %v10887_v36 = vld [vmem:[#allocation54_spill] sm:$0xff] }
 0x6ff   :  { %3993 = vmatpush1.bf16.msra.mxu1 %v9251_v17  ;;  %4034 = vmatpush1.bf16.msra.mxu0 %v9253_v35  ;;  %10880 = vst [vmem:[#allocation146_spill] sm:$0xff] %v9283_v53 }
 0x700   :  { %3994 = vmatprep.subr.bf16.mxu1 %v9257_v12  ;;  %4035 = vmatprep.subr.bf16.mxu0 %v9259_v15  ;;  %10879 = vst [vmem:[#allocation145_spill] sm:$0xff] %v9281_v42  ;;  %v9287_v15 = vcombine.low %v254_v45, %v258_v41  ;;  %v10890_v41 = vld [vmem:[#allocation57_spill] sm:$0xff]  ;;  %v10891_v45 = vld [vmem:[#allocation58_spill] sm:$0xff] }
 0x702   :  { %10881 = vst [vmem:[#allocation147_spill] sm:$0xff] %v9287_v15 }
 0x703   :  { %3995 = vmatpush1.bf16.msra.mxu1 %v9263_v60  ;;  %4036 = vmatpush1.bf16.msra.mxu0 %v9265_v26  ;;  %v9289_v60 = vcombine.low %v255_v39, %v259_v0  ;;  %v10888_v0 = vld [vmem:[#allocation55_spill] sm:$0xff]  ;;  %v10889_v39 = vld [vmem:[#allocation56_spill] sm:$0xff] }
 0x704   :  { %3996 = vmatprep.subr.bf16.mxu1 %v9269_v2  ;;  %4037 = vmatprep.subr.bf16.mxu0 %v9271_v52 }
 0x705   :  { %10882 = vst [vmem:[#allocation148_spill] sm:$0xff] %v9289_v60 }
 0x707   :  { %3997 = vmatpush1.bf16.msra.mxu1 %v9275_v38  ;;  %4038 = vmatpush1.bf16.msra.mxu0 %v9277_v62 }
 0x708   :  { %3998 = vmatprep.subr.bf16.mxu1 %v9281_v42  ;;  %4039 = vmatprep.subr.bf16.mxu0 %v9283_v53 }
 0x70b   :  { %3999 = vmatpush1.bf16.msra.mxu1 %v9287_v15  ;;  %4040 = vmatpush1.bf16.msra.mxu0 %v9289_v60 }
 0x70c   :  { %4148 = vmatprep.subr.bf16.mxu1 %v8836_v61  ;;  %4189 = vmatprep.subr.bf16.mxu0 %v8838_v5 }
 0x70e   :  { %4001 = vmatmul.mubr.bf16.vlgmr.msra.gmra.mrb[28].mxu1 %v9107_v28  ;;  %4042 = vmatmul.mubr.bf16.vlgmr.msra.gmra.mrb[36].mxu0 %v9107_v28  ;;  %v10883_v28 = vld [vmem:[#allocation49_spill] sm:$0xff] }
 0x70f   :  { %4149 = vmatpush1.bf16.msra.mxu1 %v8840_v49  ;;  %4190 = vmatpush1.bf16.msra.mxu0 %v8842_v4 }
 0x710   :  { %4150 = vmatprep.subr.bf16.mxu1 %v8846_v37  ;;  %4191 = vmatprep.subr.bf16.mxu0 %v8848_v30 }
 0x713   :  { %4151 = vmatpush1.bf16.msra.mxu1 %v8852_v43  ;;  %4192 = vmatpush1.bf16.msra.mxu0 %v8854_v54 }
 0x714   :  { %4152 = vmatprep.subr.bf16.mxu1 %v8858_v7  ;;  %4193 = vmatprep.subr.bf16.mxu0 %v8860_v24 }
 0x717   :  { %4153 = vmatpush1.bf16.msra.mxu1 %v8864_v56  ;;  %4194 = vmatpush1.bf16.msra.mxu0 %v8866_v58 }
 0x718   :  { %4154 = vmatprep.subr.bf16.mxu1 %v8870_v16  ;;  %4195 = vmatprep.subr.bf16.mxu0 %v8872_v55 }
 0x71b   :  { %4155 = vmatpush1.bf16.msra.mxu1 %v8876_v44  ;;  %4196 = vmatpush1.bf16.msra.mxu0 %v8878_v34 }
 0x71c   :  { %4156 = vmatprep.subr.bf16.mxu1 %v8884_v32  ;;  %4197 = vmatprep.subr.bf16.mxu0 %v8886_v18 }
 0x71f   :  { %4157 = vmatpush1.bf16.msra.mxu1 %v8890_v23  ;;  %4198 = vmatpush1.bf16.msra.mxu0 %v8892_v13 }
 0x720   :  { %4158 = vmatprep.subr.bf16.mxu1 %v8894_v21  ;;  %4199 = vmatprep.subr.bf16.mxu0 %v8899_v25 }
 0x723   :  { %4159 = vmatpush1.bf16.msra.mxu1 %v8901_v1  ;;  %4200 = vmatpush1.bf16.msra.mxu0 %v8904_v63 }
 0x724   :  { %4160 = vmatprep.subr.bf16.mxu1 %v8906_v33  ;;  %4201 = vmatprep.subr.bf16.mxu0 %v8910_v22 }
 0x727   :  { %4161 = vmatpush1.bf16.msra.mxu1 %v8914_v14  ;;  %4202 = vmatpush1.bf16.msra.mxu0 %v8916_v3 }
 0x728   :  { %4162 = vmatprep.subr.bf16.mxu1 %v8920_v20  ;;  %4203 = vmatprep.subr.bf16.mxu0 %v8922_v59 }
 0x72b   :  { %4163 = vmatpush1.bf16.msra.mxu1 %v8926_v46  ;;  %4204 = vmatpush1.bf16.msra.mxu0 %v8928_v40 }
 0x72c   :  { %4164 = vmatprep.subr.bf16.mxu1 %v8932_v11  ;;  %4205 = vmatprep.subr.bf16.mxu0 %v8934_v6  ;;  %v10909_v11 = vld [vmem:[#allocation86_spill] sm:$0xff] }
 0x72f   :  { %4165 = vmatpush1.bf16.msra.mxu1 %v8938_v9  ;;  %4206 = vmatpush1.bf16.msra.mxu0 %v8940_v29  ;;  %v10908_v9 = vld [vmem:[#allocation81_spill] sm:$0xff] }
 0x730   :  { %4166 = vmatprep.subr.bf16.mxu1 %v8944_v10  ;;  %4207 = vmatprep.subr.bf16.mxu0 %v8946_v47  ;;  %v10892_v10 = vld [vmem:[#allocation59_spill] sm:$0xff]  ;;  %v10893_v47 = vld [vmem:[#allocation60_spill] sm:$0xff] }
 0x733   :  { %4167 = vmatpush1.bf16.msra.mxu1 %v10883_v28  ;;  %4208 = vmatpush1.bf16.msra.mxu0 %v10884_v8  ;;  %v10894_v28 = vld [vmem:[#allocation61_spill] sm:$0xff] }
 0x734   :  { %4168 = vmatprep.subr.bf16.mxu1 %v10885_v51  ;;  %4209 = vmatprep.subr.bf16.mxu0 %v10886_v27 }
 0x737   :  { %4169 = vmatpush1.bf16.msra.mxu1 %v10887_v36  ;;  %4210 = vmatpush1.bf16.msra.mxu0 %v10888_v0  ;;  %v10895_v36 = vld [vmem:[#allocation65_spill] sm:$0xff]  ;;  %v10896_v0 = vld [vmem:[#allocation66_spill] sm:$0xff] }
 0x738   :  { %4170 = vmatprep.subr.bf16.mxu1 %v10889_v39  ;;  %4211 = vmatprep.subr.bf16.mxu0 %v10890_v41  ;;  %v10897_v39 = vld [vmem:[#allocation67_spill] sm:$0xff]  ;;  %v10898_v41 = vld [vmem:[#allocation68_spill] sm:$0xff] }
 0x73b   :  { %4171 = vmatpush1.bf16.msra.mxu1 %v10891_v45  ;;  %4212 = vmatpush1.bf16.msra.mxu0 %v10892_v10  ;;  %v10899_v45 = vld [vmem:[#allocation69_spill] sm:$0xff]  ;;  %v10900_v10 = vld [vmem:[#allocation70_spill] sm:$0xff] }
 0x73c   :  { %4172 = vmatprep.subr.bf16.mxu1 %v10893_v47  ;;  %4213 = vmatprep.subr.bf16.mxu0 %v10894_v28  ;;  %v10901_v47 = vld [vmem:[#allocation71_spill] sm:$0xff]  ;;  %v10902_v28 = vld [vmem:[#allocation72_spill] sm:$0xff] }
 0x73f   :  { %4173 = vmatpush1.bf16.msra.mxu1 %v9002_v57  ;;  %4214 = vmatpush1.bf16.msra.mxu0 %v9004_v48  ;;  %v10903_v57 = vld [vmem:[#allocation73_spill] sm:$0xff]  ;;  %v10904_v48 = vld [vmem:[#allocation74_spill] sm:$0xff] }
 0x740   :  { %4174 = vmatprep.subr.bf16.mxu1 %v9008_v19  ;;  %4215 = vmatprep.subr.bf16.mxu0 %v10895_v36  ;;  %v10905_v19 = vld [vmem:[#allocation75_spill] sm:$0xff]  ;;  %v10906_v36 = vld [vmem:[#allocation76_spill] sm:$0xff] }
 0x743   :  { %4175 = vmatpush1.bf16.msra.mxu1 %v10896_v0  ;;  %4216 = vmatpush1.bf16.msra.mxu0 %v10897_v39  ;;  %v10907_v0 = vld [vmem:[#allocation77_spill] sm:$0xff] }
 0x744   :  { %4176 = vmatprep.subr.bf16.mxu1 %v10898_v41  ;;  %4217 = vmatprep.subr.bf16.mxu0 %v10899_v45 }
 0x747   :  { %4177 = vmatpush1.bf16.msra.mxu1 %v10900_v10  ;;  %4218 = vmatpush1.bf16.msra.mxu0 %v10901_v47 }
 0x748   :  { %4178 = vmatprep.subr.bf16.mxu1 %v10902_v28  ;;  %4219 = vmatprep.subr.bf16.mxu0 %v10903_v57 }
 0x74b   :  { %4179 = vmatpush1.bf16.msra.mxu1 %v10904_v48  ;;  %4220 = vmatpush1.bf16.msra.mxu0 %v10905_v19 }
 0x74c   :  { %4230 = vmatprep.subr.bf16.mxu1 %v10906_v36  ;;  %4271 = vmatprep.subr.bf16.mxu0 %v10907_v0 }
 0x7a1   :  { %v3920_v39 = vpop.f32.mrb[24].mxu1  ;;  %v3961_v41 = vpop.f32.mrb[32].mxu0 }
 0x7a2   :  { %v4098_v27 = vrot.slane %v3920_v39, 6  ;;  %v3922_v45 = vpop.f32.mrb[25].mxu1  ;;  %v3963_v51 = vpop.f32.mrb[33].mxu0  ;;  %v4100_v36 = vrot.slane %v3961_v41, 6  ;;  %v10910_v39 = vld [vmem:[#allocation87_spill] sm:$0xff] }
 0x7a3   :  { %v4099_v10 = vrot.slane %v3922_v45, 6  ;;  %v3924_v8 = vpop.f32.mrb[26].mxu1  ;;  %v3965_v47 = vpop.f32.mrb[34].mxu0  ;;  %v4101_v0 = vrot.slane %v3963_v51, 6 }
 0x7a4   :  { %v4106_v28 = vadd.f32 %v4098_v27, %v9080_v31  ;;  %v3925_v29 = vpop.f32.mrb[27].mxu1  ;;  %v3966_v57 = vpop.f32.mrb[35].mxu0  ;;  %v4108_v40 = vadd.f32 %v4100_v36, %v10909_v11 }
 0x7a5   :  { %v4107_v48 = vadd.f32 %v4099_v10, %v10908_v9  ;;  %v4109_v46 = vadd.f32 %v4101_v0, %v10910_v39  ;;  %v10913_v0 = vld [vmem:[#allocation10_spill] sm:$0xff] }
 0x7a6   :  { %v5770_v6 = vmul.f32 -1.442695, %v4106_v28  ;;  %v5772_v59 = vmul.f32 -1.442695, %v4108_v40 }
 0x7a7   :  { %v5771_v19 = vmul.f32 -1.442695, %v4107_v48 }
 0x7a8   :  { %6170 = vpow2.f32 %v5770_v6  ;;  %v10911_v6 = vld [vmem:[#allocation88_spill] sm:$0xff] }
 0x7a9   :  { %6172 = vpow2.f32 %v5771_v19  ;;  %v4130_v28 = vrot.slane %v10911_v6, 6 }
 0x7aa   :  { %6174 = vtanh.f32 %v4109_v46 }
 0x7ab   :  { %6176 = vpow2.f32 %v5772_v59 }
 0x7b2   :  { %v6171_v45 = vpop.eup %6170 }
 0x7b3   :  { %v4119_v8 = vadd.f32 1.0, %v6171_v45  ;;  %v6173_v47 = vpop.eup %6172  ;;  %v10914_v45 = vld [vmem:[#allocation79_spill] sm:$0xff] }
 0x7b4   :  { %v4120_v29 = vadd.f32 1.0, %v6173_v47  ;;  %v6175_v10 = vpop.eup %6174  ;;  %v10916_v47 = vld [vmem:[#allocation78_spill] sm:$0xff] }
 0x7b5   :  { %6178 = vrcp.f32 %v4119_v8  ;;  %v6177_v57 = vpop.eup %6176  ;;  %v9373_v8 = vrot.slane %v10914_v45, %v10913_v0  ;;  %v10918_v45 = vld [vmem:[#allocation9_spill] sm:$0xff] }
 0x7b6   :  { %6180 = vrcp.f32 %v4120_v29  ;;  %v4121_v27 = vadd.f32 1.0, %v6177_v57  ;;  %v9377_v29 = vrot.slane %v10916_v47, %v10913_v0  ;;  %v9383_v39 = vrot.slane %v10918_v45, %v10913_v0  ;;  %v10920_v47 = vld [vmem:[#allocation80_spill] sm:$0xff] }
 0x7b7   :  { %10915 = vst [vmem:[#allocation88_spill] sm:$0xff] %v9373_v8  ;;  %v9387_v11 = vrot.slane %v10920_v47, %v10913_v0 }
 0x7b8   :  { %6182 = vrcp.f32 %v4121_v27  ;;  %10917 = vst [vmem:[#allocation10_spill] sm:$0xff] %v9377_v29  ;;  %10919 = vst [vmem:[#allocation79_spill] sm:$0xff] %v9383_v39 }
 0x7b9   :  { %10921 = vst [vmem:[#allocation78_spill] sm:$0xff] %v9387_v11 }
 0x7bf   :  { %v6179_v48 = vpop.eup %6178 }
 0x7c0   :  { %v4133_v19 = vmul.f32 %v6179_v48, %v6175_v10  ;;  %v6181_v51 = vpop.eup %6180 }
 0x7c1   :  { %v4132_v36 = vmul.f32 %v6181_v51, %v4130_v28 }
 0x7c2   :  { %v6183_v46 = vpop.eup %6182 }
 0x7c3   :  { %v9368_v41 = vadd.f32 %v4133_v19, %v4132_v36 }
 0x7c5   :  { %10912 = vst [vmem:[#allocation81_spill] sm:$0xff] %v9368_v41  ;;  %6184 = vtanh.f32 %v9368_v41 }
 0x7cf   :  { %v6185_v40 = vpop.eup %6184 }
 0x7d0   :  { %v4136_v59 = vmul.f32 %v6185_v40, %v6183_v46 }
 0x7e1   :  { %v4002_v10 = vpop.f32.mrb[28].mxu1  ;;  %v4043_v48 = vpop.f32.mrb[36].mxu0 }
 0x7e2   :  { %v4066_v57 = vadd.f32 %v9373_v8, %v4002_v10  ;;  %v4004_v6 = vpop.f32.mrb[29].mxu1  ;;  %v4045_v28 = vpop.f32.mrb[37].mxu0  ;;  %v4068_v10 = vadd.f32 %v9383_v39, %v4043_v48 }
 0x7e3   :  { %v4067_v19 = vadd.f32 %v9377_v29, %v4004_v6  ;;  %v4006_v51 = vpop.f32.mrb[30].mxu1  ;;  %v4047_v27 = vpop.f32.mrb[38].mxu0  ;;  %v4069_v6 = vadd.f32 %v9387_v11, %v4045_v28 }
 0x7e4   :  { %v5767_v36 = vmul.f32 -1.442695, %v4066_v57  ;;  %v4007_v46 = vpop.f32.mrb[31].mxu1  ;;  %v4048_v40 = vpop.f32.mrb[39].mxu0  ;;  %v5769_v51 = vmul.f32 -1.442695, %v4068_v10 }
 0x7e5   :  { %v5768_v41 = vmul.f32 -1.442695, %v4067_v19 }
 0x7e6   :  { %6186 = vpow2.f32 %v5767_v36 }
 0x7e7   :  { %6188 = vpow2.f32 %v5768_v41 }
 0x7e8   :  { %6190 = vtanh.f32 %v4069_v6 }
 0x7e9   :  { %6192 = vpow2.f32 %v5769_v51  ;;  %v4140_v51 = vpack.c.bf16 %v4136_v59, %v4136_v59  ;;  %v10925_v59 = vld [vmem:[#allocation91_spill] sm:$0xff] }
 0x7f0   :  { %v6187_v27 = vpop.eup %6186 }
 0x7f1   :  { %v4079_v57 = vadd.f32 1.0, %v6187_v27  ;;  %v6189_v46 = vpop.eup %6188 }
 0x7f2   :  { %v4080_v19 = vadd.f32 1.0, %v6189_v46  ;;  %v6191_v40 = vpop.eup %6190  ;;  %v9394_v46 = vrot.slane %v4140_v51, 1  ;;  %v10935_v51 = vld [vmem:[#allocation101_spill] sm:$0xff] }
 0x7f3   :  { %6194 = vrcp.f32 %v4079_v57  ;;  %v6193_v36 = vpop.eup %6192 }
 0x7f4   :  { %6196 = vrcp.f32 %v4080_v19  ;;  %v4081_v0 = vadd.f32 1.0, %v6193_v36  ;;  %v10923_v19 = vld [vmem:[#allocation89_spill] sm:$0xff]  ;;  %v10926_v36 = vld [vmem:[#allocation92_spill] sm:$0xff] }
 0x7f6   :  { %6198 = vrcp.f32 %v4081_v0  ;;  %v10929_v0 = vld [vmem:[#allocation95_spill] sm:$0xff] }
 0x7fd   :  { %v6195_v41 = vpop.eup %6194 }
 0x7fe   :  { %v4090_v45 = vmul.f32 %v6195_v41, %v6191_v40  ;;  %v6197_v29 = vpop.eup %6196  ;;  %v10924_v40 = vld [vmem:[#allocation90_spill] sm:$0xff]  ;;  %v10927_v41 = vld [vmem:[#allocation93_spill] sm:$0xff] }
 0x7ff   :  { %v4089_v47 = vmul.f32 0.0, %v6197_v29  ;;  %v10922_v29 = vld [vmem:[#allocation53_spill] sm:$0xff] }
 0x800   :  { %v6199_v48 = vpop.eup %6198 }
 0x801   :  { %v9391_v8 = vadd.f32 %v4090_v45, %v4089_v47  ;;  %v10928_v45 = vld [vmem:[#allocation94_spill] sm:$0xff]  ;;  %v10930_v47 = vld [vmem:[#allocation96_spill] sm:$0xff] }
 0x803   :  { %6200 = vtanh.f32 %v9391_v8 }
 0x80d   :  { %v6201_v28 = vpop.eup %6200 }
 0x80e   :  { %v4093_v10 = vmul.f32 %v6201_v28, %v6199_v48  ;;  %v10931_v48 = vld [vmem:[#allocation97_spill] sm:$0xff]  ;;  %v10932_v28 = vld [vmem:[#allocation98_spill] sm:$0xff] }
 0x810   :  { %v4138_v6 = vrot.slane %v4093_v10, 6  ;;  %v10933_v10 = vld [vmem:[#allocation99_spill] sm:$0xff] }
 0x812   :  { %v4141_v27 = vpack.c.bf16 %v4138_v6, %v4138_v6  ;;  %v10934_v6 = vld [vmem:[#allocation100_spill] sm:$0xff] }
 0x814   :  { %v4145_v57 = vrot.slane %v4141_v27, 1  ;;  %v10936_v27 = vld [vmem:[#allocation102_spill] sm:$0xff] }
 0x816   :  { %4180 = vmatprep.mubr.bf16.mxu1 %v4145_v57  ;;  %4221 = vmatprep.mubr.bf16.mxu0 %v4145_v57 }
 0x817   :  { %4181 = vmatmul.mubr.bf16.vlgmr.msra.gmra.mrb[32].mxu1 %v9394_v46  ;;  %4222 = vmatmul.mubr.bf16.vlgmr.msra.gmra.mrb[40].mxu0 %v9394_v46 }
 0x818   :  { %4231 = vmatpush1.bf16.msra.mxu1 %v8970_v50  ;;  %4272 = vmatpush1.bf16.msra.mxu0 %v10922_v29 }
 0x819   :  { %4262 = vmatprep.mubr.bf16.mxu1 %v4145_v57  ;;  %4303 = vmatprep.mubr.bf16.mxu0 %v4145_v57  ;;  %v10937_v57 = vld [vmem:[#allocation103_spill] sm:$0xff] }
 0x81a   :  { %4232 = vmatprep.subr.bf16.mxu1 %v10923_v19  ;;  %4273 = vmatprep.subr.bf16.mxu0 %v10924_v40 }
 0x81c   :  { %4233 = vmatpush1.bf16.msra.mxu1 %v10925_v59  ;;  %4274 = vmatpush1.bf16.msra.mxu0 %v10926_v36 }
 0x81d   :  { %4234 = vmatprep.subr.bf16.mxu1 %v10927_v41  ;;  %4275 = vmatprep.subr.bf16.mxu0 %v10928_v45  ;;  %v10938_v41 = vld [vmem:[#allocation104_spill] sm:$0xff]  ;;  %v10939_v45 = vld [vmem:[#allocation105_spill] sm:$0xff] }
 0x820   :  { %4235 = vmatpush1.bf16.msra.mxu1 %v10929_v0  ;;  %4276 = vmatpush1.bf16.msra.mxu0 %v10930_v47  ;;  %v10940_v0 = vld [vmem:[#allocation106_spill] sm:$0xff]  ;;  %v10941_v47 = vld [vmem:[#allocation107_spill] sm:$0xff] }
 0x821   :  { %4236 = vmatprep.subr.bf16.mxu1 %v10931_v48  ;;  %4277 = vmatprep.subr.bf16.mxu0 %v10932_v28  ;;  %v10942_v48 = vld [vmem:[#allocation108_spill] sm:$0xff]  ;;  %v10943_v28 = vld [vmem:[#allocation109_spill] sm:$0xff] }
 0x824   :  { %4237 = vmatpush1.bf16.msra.mxu1 %v10933_v10  ;;  %4278 = vmatpush1.bf16.msra.mxu0 %v10934_v6  ;;  %v10944_v10 = vld [vmem:[#allocation110_spill] sm:$0xff]  ;;  %v10945_v6 = vld [vmem:[#allocation111_spill] sm:$0xff] }
 0x825   :  { %4238 = vmatprep.subr.bf16.mxu1 %v10935_v51  ;;  %4279 = vmatprep.subr.bf16.mxu0 %v10936_v27  ;;  %v10946_v51 = vld [vmem:[#allocation112_spill] sm:$0xff]  ;;  %v10947_v27 = vld [vmem:[#allocation113_spill] sm:$0xff] }
 0x828   :  { %4239 = vmatpush1.bf16.msra.mxu1 %v10937_v57  ;;  %4280 = vmatpush1.bf16.msra.mxu0 %v10938_v41  ;;  %v10948_v57 = vld [vmem:[#allocation114_spill] sm:$0xff]  ;;  %v10949_v41 = vld [vmem:[#allocation115_spill] sm:$0xff] }
 0x829   :  { %4240 = vmatprep.subr.bf16.mxu1 %v10939_v45  ;;  %4281 = vmatprep.subr.bf16.mxu0 %v10940_v0  ;;  %v10950_v45 = vld [vmem:[#allocation116_spill] sm:$0xff]  ;;  %v10951_v0 = vld [vmem:[#allocation117_spill] sm:$0xff] }
 0x82c   :  { %4241 = vmatpush1.bf16.msra.mxu1 %v10941_v47  ;;  %4282 = vmatpush1.bf16.msra.mxu0 %v10942_v48  ;;  %v10952_v47 = vld [vmem:[#allocation118_spill] sm:$0xff]  ;;  %v10953_v48 = vld [vmem:[#allocation119_spill] sm:$0xff] }
 0x82d   :  { %4242 = vmatprep.subr.bf16.mxu1 %v10943_v28  ;;  %4283 = vmatprep.subr.bf16.mxu0 %v10944_v10  ;;  %v10954_v28 = vld [vmem:[#allocation120_spill] sm:$0xff]  ;;  %v10955_v10 = vld [vmem:[#allocation121_spill] sm:$0xff] }
 0x830   :  { %4243 = vmatpush1.bf16.msra.mxu1 %v10945_v6  ;;  %4284 = vmatpush1.bf16.msra.mxu0 %v10946_v51  ;;  %v10956_v6 = vld [vmem:[#allocation122_spill] sm:$0xff]  ;;  %v10957_v51 = vld [vmem:[#allocation123_spill] sm:$0xff] }
 0x831   :  { %4244 = vmatprep.subr.bf16.mxu1 %v10947_v27  ;;  %4285 = vmatprep.subr.bf16.mxu0 %v10948_v57  ;;  %v10958_v27 = vld [vmem:[#allocation124_spill] sm:$0xff]  ;;  %v10959_v57 = vld [vmem:[#allocation125_spill] sm:$0xff] }
 0x834   :  { %4245 = vmatpush1.bf16.msra.mxu1 %v10949_v41  ;;  %4286 = vmatpush1.bf16.msra.mxu0 %v10950_v45  ;;  %v10960_v41 = vld [vmem:[#allocation126_spill] sm:$0xff]  ;;  %v10961_v45 = vld [vmem:[#allocation127_spill] sm:$0xff] }
 0x835   :  { %4246 = vmatprep.subr.bf16.mxu1 %v10951_v0  ;;  %4287 = vmatprep.subr.bf16.mxu0 %v10952_v47  ;;  %v10962_v0 = vld [vmem:[#allocation128_spill] sm:$0xff]  ;;  %v10963_v47 = vld [vmem:[#allocation129_spill] sm:$0xff] }
 0x838   :  { %4247 = vmatpush1.bf16.msra.mxu1 %v10953_v48  ;;  %4288 = vmatpush1.bf16.msra.mxu0 %v10954_v28  ;;  %v10964_v48 = vld [vmem:[#allocation130_spill] sm:$0xff]  ;;  %v10965_v28 = vld [vmem:[#allocation131_spill] sm:$0xff] }
 0x839   :  { %4248 = vmatprep.subr.bf16.mxu1 %v10955_v10  ;;  %4289 = vmatprep.subr.bf16.mxu0 %v10956_v6  ;;  %v10966_v10 = vld [vmem:[#allocation132_spill] sm:$0xff]  ;;  %v10967_v6 = vld [vmem:[#allocation133_spill] sm:$0xff] }
 0x83c   :  { %4249 = vmatpush1.bf16.msra.mxu1 %v10957_v51  ;;  %4290 = vmatpush1.bf16.msra.mxu0 %v10958_v27  ;;  %v10968_v51 = vld [vmem:[#allocation134_spill] sm:$0xff] }
 0x83d   :  { %4250 = vmatprep.subr.bf16.mxu1 %v10959_v57  ;;  %4291 = vmatprep.subr.bf16.mxu0 %v10960_v41 }
 0x840   :  { %4251 = vmatpush1.bf16.msra.mxu1 %v10961_v45  ;;  %4292 = vmatpush1.bf16.msra.mxu0 %v10962_v0  ;;  %v10969_v45 = vld [vmem:[#allocation138_spill] sm:$0xff]  ;;  %v10970_v0 = vld [vmem:[#allocation139_spill] sm:$0xff] }
 0x841   :  { %4252 = vmatprep.subr.bf16.mxu1 %v10963_v47  ;;  %4293 = vmatprep.subr.bf16.mxu0 %v10964_v48 }
 0x844   :  { %4253 = vmatpush1.bf16.msra.mxu1 %v10965_v28  ;;  %4294 = vmatpush1.bf16.msra.mxu0 %v10966_v10 }
 0x845   :  { %4254 = vmatprep.subr.bf16.mxu1 %v10967_v6  ;;  %4295 = vmatprep.subr.bf16.mxu0 %v10968_v51 }
 0x848   :  { %4255 = vmatpush1.bf16.msra.mxu1 %v9251_v17  ;;  %4296 = vmatpush1.bf16.msra.mxu0 %v9253_v35 }
 0x849   :  { %4256 = vmatprep.subr.bf16.mxu1 %v9257_v12  ;;  %4297 = vmatprep.subr.bf16.mxu0 %v10969_v45 }
 0x84c   :  { %4257 = vmatpush1.bf16.msra.mxu1 %v10970_v0  ;;  %4298 = vmatpush1.bf16.msra.mxu0 %v9265_v26 }
 0x84d   :  { %4258 = vmatprep.subr.bf16.mxu1 %v9269_v2  ;;  %4299 = vmatprep.subr.bf16.mxu0 %v9271_v52 }
 0x850   :  { %4259 = vmatpush1.bf16.msra.mxu1 %v9275_v38  ;;  %4300 = vmatpush1.bf16.msra.mxu0 %v9277_v62 }
 0x851   :  { %4260 = vmatprep.subr.bf16.mxu1 %v9281_v42  ;;  %4301 = vmatprep.subr.bf16.mxu0 %v9283_v53 }
 0x854   :  { %4261 = vmatpush1.bf16.msra.mxu1 %v9287_v15  ;;  %4302 = vmatpush1.bf16.msra.mxu0 %v9289_v60 }
 0x855   :  { %4394 = vmatprep.subr.bf16.mxu1 %v8836_v61  ;;  %4435 = vmatprep.subr.bf16.mxu0 %v8838_v5 }
 0x857   :  { %4263 = vmatmul.mubr.bf16.vlgmr.msra.gmra.mrb[36].mxu1 %v9394_v46  ;;  %4304 = vmatmul.mubr.bf16.vlgmr.msra.gmra.mrb[44].mxu0 %v9394_v46  ;;  %v10971_v46 = vld [vmem:[#allocation40_spill] sm:$0xff] }
 0x858   :  { %4395 = vmatpush1.bf16.msra.mxu1 %v8840_v49  ;;  %4436 = vmatpush1.bf16.msra.mxu0 %v8842_v4 }
 0x859   :  { %4396 = vmatprep.subr.bf16.mxu1 %v8846_v37  ;;  %4437 = vmatprep.subr.bf16.mxu0 %v8848_v30 }
 0x85c   :  { %4397 = vmatpush1.bf16.msra.mxu1 %v8852_v43  ;;  %4438 = vmatpush1.bf16.msra.mxu0 %v8854_v54 }
 0x85d   :  { %4398 = vmatprep.subr.bf16.mxu1 %v8858_v7  ;;  %4439 = vmatprep.subr.bf16.mxu0 %v8860_v24 }
 0x860   :  { %4399 = vmatpush1.bf16.msra.mxu1 %v8864_v56  ;;  %4440 = vmatpush1.bf16.msra.mxu0 %v8866_v58 }
 0x861   :  { %4400 = vmatprep.subr.bf16.mxu1 %v8870_v16  ;;  %4441 = vmatprep.subr.bf16.mxu0 %v8872_v55  ;;  %v11008_v55 = vld [vmem:[#allocation86_spill] sm:$0xff] }
 0x864   :  { %4401 = vmatpush1.bf16.msra.mxu1 %v8876_v44  ;;  %4442 = vmatpush1.bf16.msra.mxu0 %v8878_v34 }
 0x865   :  { %4402 = vmatprep.subr.bf16.mxu1 %v8884_v32  ;;  %4443 = vmatprep.subr.bf16.mxu0 %v8886_v18 }
 0x868   :  { %4403 = vmatpush1.bf16.msra.mxu1 %v8890_v23  ;;  %4444 = vmatpush1.bf16.msra.mxu0 %v8892_v13  ;;  %v10972_v13 = vld [vmem:[#allocation41_spill] sm:$0xff] }
 0x869   :  { %4404 = vmatprep.subr.bf16.mxu1 %v8894_v21  ;;  %4445 = vmatprep.subr.bf16.mxu0 %v8899_v25  ;;  %v10973_v21 = vld [vmem:[#allocation42_spill] sm:$0xff]  ;;  %v10974_v25 = vld [vmem:[#allocation43_spill] sm:$0xff] }
 0x86c   :  { %4405 = vmatpush1.bf16.msra.mxu1 %v8901_v1  ;;  %4446 = vmatpush1.bf16.msra.mxu0 %v8904_v63  ;;  %v10975_v1 = vld [vmem:[#allocation44_spill] sm:$0xff]  ;;  %v10976_v63 = vld [vmem:[#allocation45_spill] sm:$0xff] }
 0x86d   :  { %4406 = vmatprep.subr.bf16.mxu1 %v8906_v33  ;;  %4447 = vmatprep.subr.bf16.mxu0 %v8910_v22  ;;  %v10977_v33 = vld [vmem:[#allocation46_spill] sm:$0xff]  ;;  %v10978_v22 = vld [vmem:[#allocation47_spill] sm:$0xff] }
 0x870   :  { %4407 = vmatpush1.bf16.msra.mxu1 %v8914_v14  ;;  %4448 = vmatpush1.bf16.msra.mxu0 %v8916_v3  ;;  %v10979_v14 = vld [vmem:[#allocation48_spill] sm:$0xff]  ;;  %v10980_v3 = vld [vmem:[#allocation49_spill] sm:$0xff] }
 0x871   :  { %4408 = vmatprep.subr.bf16.mxu1 %v8920_v20  ;;  %4449 = vmatprep.subr.bf16.mxu0 %v10971_v46  ;;  %v10981_v20 = vld [vmem:[#allocation50_spill] sm:$0xff]  ;;  %v10982_v46 = vld [vmem:[#allocation51_spill] sm:$0xff] }
 0x874   :  { %4409 = vmatpush1.bf16.msra.mxu1 %v10972_v13  ;;  %4450 = vmatpush1.bf16.msra.mxu0 %v10973_v21  ;;  %v10983_v13 = vld [vmem:[#allocation52_spill] sm:$0xff]  ;;  %v10984_v21 = vld [vmem:[#allocation54_spill] sm:$0xff] }
 0x875   :  { %4410 = vmatprep.subr.bf16.mxu1 %v10974_v25  ;;  %4451 = vmatprep.subr.bf16.mxu0 %v10975_v1  ;;  %v10985_v25 = vld [vmem:[#allocation55_spill] sm:$0xff]  ;;  %v10986_v1 = vld [vmem:[#allocation56_spill] sm:$0xff] }
 0x878   :  { %4411 = vmatpush1.bf16.msra.mxu1 %v10976_v63  ;;  %4452 = vmatpush1.bf16.msra.mxu0 %v10977_v33  ;;  %v10987_v63 = vld [vmem:[#allocation57_spill] sm:$0xff]  ;;  %v10988_v33 = vld [vmem:[#allocation58_spill] sm:$0xff] }
 0x879   :  { %4412 = vmatprep.subr.bf16.mxu1 %v10978_v22  ;;  %4453 = vmatprep.subr.bf16.mxu0 %v10979_v14  ;;  %v10989_v22 = vld [vmem:[#allocation59_spill] sm:$0xff]  ;;  %v10990_v14 = vld [vmem:[#allocation60_spill] sm:$0xff] }
 0x87c   :  { %4413 = vmatpush1.bf16.msra.mxu1 %v10980_v3  ;;  %4454 = vmatpush1.bf16.msra.mxu0 %v10981_v20  ;;  %v10991_v3 = vld [vmem:[#allocation61_spill] sm:$0xff]  ;;  %v10992_v20 = vld [vmem:[#allocation62_spill] sm:$0xff] }
 0x87d   :  { %4414 = vmatprep.subr.bf16.mxu1 %v10982_v46  ;;  %4455 = vmatprep.subr.bf16.mxu0 %v10983_v13  ;;  %v10993_v46 = vld [vmem:[#allocation63_spill] sm:$0xff]  ;;  %v10994_v13 = vld [vmem:[#allocation64_spill] sm:$0xff] }
 0x880   :  { %4415 = vmatpush1.bf16.msra.mxu1 %v10984_v21  ;;  %4456 = vmatpush1.bf16.msra.mxu0 %v10985_v25  ;;  %v10995_v21 = vld [vmem:[#allocation65_spill] sm:$0xff]  ;;  %v10996_v25 = vld [vmem:[#allocation66_spill] sm:$0xff] }
 0x881   :  { %4416 = vmatprep.subr.bf16.mxu1 %v10986_v1  ;;  %4457 = vmatprep.subr.bf16.mxu0 %v10987_v63  ;;  %v10997_v1 = vld [vmem:[#allocation67_spill] sm:$0xff]  ;;  %v10998_v63 = vld [vmem:[#allocation68_spill] sm:$0xff] }
 0x884   :  { %4417 = vmatpush1.bf16.msra.mxu1 %v10988_v33  ;;  %4458 = vmatpush1.bf16.msra.mxu0 %v10989_v22  ;;  %v10999_v33 = vld [vmem:[#allocation69_spill] sm:$0xff]  ;;  %v11000_v22 = vld [vmem:[#allocation70_spill] sm:$0xff] }
 0x885   :  { %4418 = vmatprep.subr.bf16.mxu1 %v10990_v14  ;;  %4459 = vmatprep.subr.bf16.mxu0 %v10991_v3  ;;  %v11001_v14 = vld [vmem:[#allocation71_spill] sm:$0xff]  ;;  %v11002_v3 = vld [vmem:[#allocation72_spill] sm:$0xff] }
 0x888   :  { %4419 = vmatpush1.bf16.msra.mxu1 %v10992_v20  ;;  %4460 = vmatpush1.bf16.msra.mxu0 %v10993_v46  ;;  %v11003_v20 = vld [vmem:[#allocation73_spill] sm:$0xff]  ;;  %v11004_v46 = vld [vmem:[#allocation74_spill] sm:$0xff] }
 0x889   :  { %4420 = vmatprep.subr.bf16.mxu1 %v10994_v13  ;;  %4461 = vmatprep.subr.bf16.mxu0 %v10995_v21  ;;  %v11005_v13 = vld [vmem:[#allocation75_spill] sm:$0xff]  ;;  %v11006_v21 = vld [vmem:[#allocation76_spill] sm:$0xff] }
 0x88c   :  { %4421 = vmatpush1.bf16.msra.mxu1 %v10996_v25  ;;  %4462 = vmatpush1.bf16.msra.mxu0 %v10997_v1  ;;  %v11007_v25 = vld [vmem:[#allocation77_spill] sm:$0xff] }
 0x88d   :  { %4422 = vmatprep.subr.bf16.mxu1 %v10998_v63  ;;  %4463 = vmatprep.subr.bf16.mxu0 %v10999_v33 }
 0x890   :  { %4423 = vmatpush1.bf16.msra.mxu1 %v11000_v22  ;;  %4464 = vmatpush1.bf16.msra.mxu0 %v11001_v14 }
 0x891   :  { %4424 = vmatprep.subr.bf16.mxu1 %v11002_v3  ;;  %4465 = vmatprep.subr.bf16.mxu0 %v11003_v20 }
 0x894   :  { %4425 = vmatpush1.bf16.msra.mxu1 %v11004_v46  ;;  %4466 = vmatpush1.bf16.msra.mxu0 %v11005_v13 }
 0x895   :  { %4476 = vmatprep.subr.bf16.mxu1 %v11006_v21  ;;  %4517 = vmatprep.subr.bf16.mxu0 %v11007_v25 }
 0x8ea   :  { %v4182_v1 = vpop.f32.mrb[32].mxu1  ;;  %v4223_v63 = vpop.f32.mrb[40].mxu0 }
 0x8eb   :  { %v4344_v23 = vrot.slane %v4182_v1, 4  ;;  %v4184_v33 = vpop.f32.mrb[33].mxu1  ;;  %v4225_v18 = vpop.f32.mrb[41].mxu0  ;;  %v4346_v21 = vrot.slane %v4223_v63, 4  ;;  %v11009_v1 = vld [vmem:[#allocation87_spill] sm:$0xff] }
 0x8ec   :  { %v4345_v22 = vrot.slane %v4184_v33, 4  ;;  %v4186_v32 = vpop.f32.mrb[34].mxu1  ;;  %v4227_v14 = vpop.f32.mrb[42].mxu0  ;;  %v4347_v25 = vrot.slane %v4225_v18, 4 }
 0x8ed   :  { %v4352_v3 = vadd.f32 %v4344_v23, %v9080_v31  ;;  %v4187_v34 = vpop.f32.mrb[35].mxu1  ;;  %v4228_v20 = vpop.f32.mrb[43].mxu0  ;;  %v4354_v16 = vadd.f32 %v4346_v21, %v11008_v55  ;;  %v11013_v55 = vld [vmem:[#allocation10_spill] sm:$0xff] }
 0x8ee   :  { %v4353_v46 = vadd.f32 %v4345_v22, %v10908_v9  ;;  %v4355_v58 = vadd.f32 %v4347_v25, %v11009_v1 }
 0x8ef   :  { %v5776_v44 = vmul.f32 -1.442695, %v4352_v3  ;;  %v5778_v56 = vmul.f32 -1.442695, %v4354_v16 }
 0x8f0   :  { %v5777_v13 = vmul.f32 -1.442695, %v4353_v46 }
 0x8f1   :  { %6202 = vpow2.f32 %v5776_v44  ;;  %v11010_v44 = vld [vmem:[#allocation81_spill] sm:$0xff] }
 0x8f2   :  { %6204 = vpow2.f32 %v5777_v13  ;;  %v4376_v63 = vrot.slane %v11010_v44, 6 }
 0x8f3   :  { %6206 = vtanh.f32 %v4355_v58 }
 0x8f4   :  { %6208 = vpow2.f32 %v5778_v56 }
 0x8fb   :  { %v6203_v33 = vpop.eup %6202 }
 0x8fc   :  { %v4365_v32 = vadd.f32 1.0, %v6203_v33  ;;  %v6205_v14 = vpop.eup %6204 }
 0x8fd   :  { %v4366_v34 = vadd.f32 1.0, %v6205_v14  ;;  %v6207_v23 = vpop.eup %6206 }
 0x8fe   :  { %6210 = vrcp.f32 %v4365_v32  ;;  %v6209_v22 = vpop.eup %6208  ;;  %v11012_v32 = vld [vmem:[#allocation88_spill] sm:$0xff] }
 0x8ff   :  { %6212 = vrcp.f32 %v4366_v34  ;;  %v4367_v20 = vadd.f32 1.0, %v6209_v22 }
 0x901   :  { %6214 = vrcp.f32 %v4367_v20 }
 0x908   :  { %v6211_v3 = vpop.eup %6210 }
 0x909   :  { %v4379_v13 = vmul.f32 %v6211_v3, %v6207_v23  ;;  %v6213_v18 = vpop.eup %6212 }
 0x90a   :  { %v4378_v21 = vmul.f32 %v6213_v18, %v4376_v63 }
 0x90b   :  { %v6215_v58 = vpop.eup %6214 }
 0x90c   :  { %v9533_v46 = vadd.f32 %v4379_v13, %v4378_v21 }
 0x90e   :  { %11011 = vst [vmem:[#allocation9_spill] sm:$0xff] %v9533_v46  ;;  %6216 = vtanh.f32 %v9533_v46 }
 0x918   :  { %v6217_v16 = vpop.eup %6216 }
 0x919   :  { %v4382_v56 = vmul.f32 %v6217_v16, %v6215_v58 }
 0x92a   :  { %v4264_v25 = vpop.f32.mrb[36].mxu1  ;;  %v4305_v33 = vpop.f32.mrb[44].mxu0 }
 0x92b   :  { %v4312_v14 = vadd.f32 %v4264_v25, %v11012_v32  ;;  %v4266_v34 = vpop.f32.mrb[37].mxu1  ;;  %v4307_v1 = vpop.f32.mrb[45].mxu0  ;;  %v4314_v20 = vadd.f32 %v4305_v33, %v9383_v39 }
 0x92c   :  { %v4313_v44 = vadd.f32 %v4266_v34, %v11013_v55  ;;  %v4268_v23 = vpop.f32.mrb[38].mxu1  ;;  %v4309_v3 = vpop.f32.mrb[46].mxu0  ;;  %v4315_v21 = vadd.f32 %v4307_v1, %v9387_v11 }
 0x92d   :  { %v5773_v22 = vmul.f32 -1.442695, %v4312_v14  ;;  %v4269_v63 = vpop.f32.mrb[39].mxu1  ;;  %v4310_v13 = vpop.f32.mrb[47].mxu0  ;;  %v5775_v58 = vmul.f32 -1.442695, %v4314_v20 }
 0x92e   :  { %v5774_v18 = vmul.f32 -1.442695, %v4313_v44 }
 0x92f   :  { %6218 = vpow2.f32 %v5773_v22 }
 0x930   :  { %6220 = vpow2.f32 %v5774_v18 }
 0x931   :  { %6222 = vtanh.f32 %v4315_v21 }
 0x932   :  { %6224 = vpow2.f32 %v5775_v58 }
 0x939   :  { %v6219_v16 = vpop.eup %6218 }
 0x93a   :  { %v4325_v46 = vadd.f32 1.0, %v6219_v16  ;;  %v6221_v25 = vpop.eup %6220 }
 0x93b   :  { %v4326_v34 = vadd.f32 1.0, %v6221_v25  ;;  %v6223_v23 = vpop.eup %6222 }
 0x93c   :  { %6226 = vrcp.f32 %v4325_v46  ;;  %v6225_v14 = vpop.eup %6224  ;;  %v4386_v46 = vpack.c.bf16 %v4382_v56, %v4382_v56  ;;  %v11015_v56 = vld [vmem:[#allocation94_spill] sm:$0xff] }
 0x93d   :  { %6228 = vrcp.f32 %v4326_v34  ;;  %v4327_v22 = vadd.f32 1.0, %v6225_v14  ;;  %v11016_v34 = vld [vmem:[#allocation95_spill] sm:$0xff]  ;;  %v11018_v14 = vld [vmem:[#allocation97_spill] sm:$0xff] }
 0x93e   :  { %v9544_v25 = vrot.slane %v4386_v46, 2  ;;  %v11028_v46 = vld [vmem:[#allocation107_spill] sm:$0xff] }
 0x93f   :  { %6230 = vrcp.f32 %v4327_v22  ;;  %v11022_v22 = vld [vmem:[#allocation101_spill] sm:$0xff] }
 0x946   :  { %v6227_v3 = vpop.eup %6226 }
 0x947   :  { %v4336_v63 = vmul.f32 %v6227_v3, %v6223_v23  ;;  %v6229_v44 = vpop.eup %6228  ;;  %v11017_v23 = vld [vmem:[#allocation96_spill] sm:$0xff]  ;;  %v11019_v3 = vld [vmem:[#allocation98_spill] sm:$0xff] }
 0x948   :  { %v4335_v13 = vmul.f32 %v6229_v44, %v9391_v8  ;;  %v11014_v8 = vld [vmem:[#allocation93_spill] sm:$0xff]  ;;  %v11021_v44 = vld [vmem:[#allocation100_spill] sm:$0xff] }
 0x949   :  { %v6231_v1 = vpop.eup %6230 }
 0x94a   :  { %v9541_v33 = vadd.f32 %v4336_v63, %v4335_v13  ;;  %v11020_v63 = vld [vmem:[#allocation99_spill] sm:$0xff]  ;;  %v11023_v13 = vld [vmem:[#allocation102_spill] sm:$0xff] }
 0x94c   :  { %6232 = vtanh.f32 %v9541_v33 }
 0x956   :  { %v6233_v18 = vpop.eup %6232 }
 0x957   :  { %v4339_v20 = vmul.f32 %v6233_v18, %v6231_v1  ;;  %v11024_v1 = vld [vmem:[#allocation103_spill] sm:$0xff]  ;;  %v11025_v18 = vld [vmem:[#allocation104_spill] sm:$0xff] }
 0x959   :  { %v4384_v21 = vrot.slane %v4339_v20, 4  ;;  %v11026_v20 = vld [vmem:[#allocation105_spill] sm:$0xff] }
 0x95b   :  { %v4387_v58 = vpack.c.bf16 %v4384_v21, %v4384_v21  ;;  %v11027_v21 = vld [vmem:[#allocation106_spill] sm:$0xff] }
 0x95d   :  { %v4391_v16 = vrot.slane %v4387_v58, 2  ;;  %v11029_v58 = vld [vmem:[#allocation108_spill] sm:$0xff] }
 0x95f   :  { %4426 = vmatprep.mubr.bf16.mxu1 %v4391_v16  ;;  %4467 = vmatprep.mubr.bf16.mxu0 %v4391_v16 }
 0x960   :  { %4427 = vmatmul.mubr.bf16.vlgmr.msra.gmra.mrb[40].mxu1 %v9544_v25  ;;  %4468 = vmatmul.mubr.bf16.vlgmr.msra.gmra.mrb[48].mxu0 %v9544_v25 }
 0x961   :  { %4477 = vmatpush1.bf16.msra.mxu1 %v8970_v50  ;;  %4518 = vmatpush1.bf16.msra.mxu0 %v10922_v29 }
 0x962   :  { %4508 = vmatprep.mubr.bf16.mxu1 %v4391_v16  ;;  %4549 = vmatprep.mubr.bf16.mxu0 %v4391_v16  ;;  %v11030_v16 = vld [vmem:[#allocation109_spill] sm:$0xff] }
 0x963   :  { %4478 = vmatprep.subr.bf16.mxu1 %v10923_v19  ;;  %4519 = vmatprep.subr.bf16.mxu0 %v10924_v40 }
 0x965   :  { %4479 = vmatpush1.bf16.msra.mxu1 %v10925_v59  ;;  %4520 = vmatpush1.bf16.msra.mxu0 %v10926_v36 }
 0x966   :  { %4480 = vmatprep.subr.bf16.mxu1 %v11014_v8  ;;  %4521 = vmatprep.subr.bf16.mxu0 %v11015_v56 }
 0x969   :  { %4481 = vmatpush1.bf16.msra.mxu1 %v11016_v34  ;;  %4522 = vmatpush1.bf16.msra.mxu0 %v11017_v23 }
 0x96a   :  { %4482 = vmatprep.subr.bf16.mxu1 %v11018_v14  ;;  %4523 = vmatprep.subr.bf16.mxu0 %v11019_v3 }
 0x96d   :  { %4483 = vmatpush1.bf16.msra.mxu1 %v11020_v63  ;;  %4524 = vmatpush1.bf16.msra.mxu0 %v11021_v44  ;;  %v11031_v63 = vld [vmem:[#allocation110_spill] sm:$0xff]  ;;  %v11032_v44 = vld [vmem:[#allocation111_spill] sm:$0xff] }
 0x96e   :  { %4484 = vmatprep.subr.bf16.mxu1 %v11022_v22  ;;  %4525 = vmatprep.subr.bf16.mxu0 %v11023_v13  ;;  %v11033_v22 = vld [vmem:[#allocation112_spill] sm:$0xff]  ;;  %v11034_v13 = vld [vmem:[#allocation113_spill] sm:$0xff] }
 0x971   :  { %4485 = vmatpush1.bf16.msra.mxu1 %v11024_v1  ;;  %4526 = vmatpush1.bf16.msra.mxu0 %v11025_v18  ;;  %v11035_v1 = vld [vmem:[#allocation114_spill] sm:$0xff]  ;;  %v11036_v18 = vld [vmem:[#allocation115_spill] sm:$0xff] }
 0x972   :  { %4486 = vmatprep.subr.bf16.mxu1 %v11026_v20  ;;  %4527 = vmatprep.subr.bf16.mxu0 %v11027_v21  ;;  %v11037_v20 = vld [vmem:[#allocation116_spill] sm:$0xff]  ;;  %v11038_v21 = vld [vmem:[#allocation117_spill] sm:$0xff] }
 0x975   :  { %4487 = vmatpush1.bf16.msra.mxu1 %v11028_v46  ;;  %4528 = vmatpush1.bf16.msra.mxu0 %v11029_v58  ;;  %v11039_v46 = vld [vmem:[#allocation118_spill] sm:$0xff]  ;;  %v11040_v58 = vld [vmem:[#allocation119_spill] sm:$0xff] }
 0x976   :  { %4488 = vmatprep.subr.bf16.mxu1 %v11030_v16  ;;  %4529 = vmatprep.subr.bf16.mxu0 %v11031_v63  ;;  %v11041_v16 = vld [vmem:[#allocation120_spill] sm:$0xff]  ;;  %v11042_v63 = vld [vmem:[#allocation121_spill] sm:$0xff] }
 0x979   :  { %4489 = vmatpush1.bf16.msra.mxu1 %v11032_v44  ;;  %4530 = vmatpush1.bf16.msra.mxu0 %v11033_v22  ;;  %v11043_v44 = vld [vmem:[#allocation122_spill] sm:$0xff]  ;;  %v11044_v22 = vld [vmem:[#allocation123_spill] sm:$0xff] }
 0x97a   :  { %4490 = vmatprep.subr.bf16.mxu1 %v11034_v13  ;;  %4531 = vmatprep.subr.bf16.mxu0 %v11035_v1 }
 0x97d   :  { %4491 = vmatpush1.bf16.msra.mxu1 %v11036_v18  ;;  %4532 = vmatpush1.bf16.msra.mxu0 %v11037_v20  ;;  %v11045_v20 = vld [vmem:[#allocation127_spill] sm:$0xff] }
 0x97e   :  { %4492 = vmatprep.subr.bf16.mxu1 %v11038_v21  ;;  %4533 = vmatprep.subr.bf16.mxu0 %v11039_v46  ;;  %v11046_v21 = vld [vmem:[#allocation128_spill] sm:$0xff] }
 0x981   :  { %4493 = vmatpush1.bf16.msra.mxu1 %v11040_v58  ;;  %4534 = vmatpush1.bf16.msra.mxu0 %v11041_v16 }
 0x982   :  { %4494 = vmatprep.subr.bf16.mxu1 %v11042_v63  ;;  %4535 = vmatprep.subr.bf16.mxu0 %v11043_v44 }
 0x985   :  { %4495 = vmatpush1.bf16.msra.mxu1 %v11044_v22  ;;  %4536 = vmatpush1.bf16.msra.mxu0 %v10958_v27 }
 0x986   :  { %4496 = vmatprep.subr.bf16.mxu1 %v10959_v57  ;;  %4537 = vmatprep.subr.bf16.mxu0 %v10960_v41 }
 0x989   :  { %4497 = vmatpush1.bf16.msra.mxu1 %v11045_v20  ;;  %4538 = vmatpush1.bf16.msra.mxu0 %v11046_v21 }
 0x98a   :  { %4498 = vmatprep.subr.bf16.mxu1 %v10963_v47  ;;  %4539 = vmatprep.subr.bf16.mxu0 %v10964_v48 }
 0x98d   :  { %4499 = vmatpush1.bf16.msra.mxu1 %v10965_v28  ;;  %4540 = vmatpush1.bf16.msra.mxu0 %v10966_v10 }
 0x98e   :  { %4500 = vmatprep.subr.bf16.mxu1 %v10967_v6  ;;  %4541 = vmatprep.subr.bf16.mxu0 %v10968_v51 }
 0x991   :  { %4501 = vmatpush1.bf16.msra.mxu1 %v9251_v17  ;;  %4542 = vmatpush1.bf16.msra.mxu0 %v9253_v35 }
 0x992   :  { %4502 = vmatprep.subr.bf16.mxu1 %v9257_v12  ;;  %4543 = vmatprep.subr.bf16.mxu0 %v10969_v45 }
 0x995   :  { %4503 = vmatpush1.bf16.msra.mxu1 %v10970_v0  ;;  %4544 = vmatpush1.bf16.msra.mxu0 %v9265_v26 }
 0x996   :  { %4504 = vmatprep.subr.bf16.mxu1 %v9269_v2  ;;  %4545 = vmatprep.subr.bf16.mxu0 %v9271_v52 }
 0x999   :  { %4505 = vmatpush1.bf16.msra.mxu1 %v9275_v38  ;;  %4546 = vmatpush1.bf16.msra.mxu0 %v9277_v62  ;;  %v11103_v38 = vld [vmem:[#allocation86_spill] sm:$0xff] }
 0x99a   :  { %4506 = vmatprep.subr.bf16.mxu1 %v9281_v42  ;;  %4547 = vmatprep.subr.bf16.mxu0 %v9283_v53 }
 0x99d   :  { %4507 = vmatpush1.bf16.msra.mxu1 %v9287_v15  ;;  %4548 = vmatpush1.bf16.msra.mxu0 %v9289_v60 }
 0x99e   :  { %4640 = vmatprep.subr.bf16.mxu1 %v8836_v61  ;;  %4681 = vmatprep.subr.bf16.mxu0 %v8838_v5  ;;  %v11047_v5 = vld [vmem:[#allocation29_spill] sm:$0xff]  ;;  %v11048_v61 = vld [vmem:[#allocation27_spill] sm:$0xff] }
 0x9a0   :  { %4509 = vmatmul.mubr.bf16.vlgmr.msra.gmra.mrb[44].mxu1 %v9544_v25  ;;  %4550 = vmatmul.mubr.bf16.vlgmr.msra.gmra.mrb[52].mxu0 %v9544_v25  ;;  %v11049_v25 = vld [vmem:[#allocation31_spill] sm:$0xff] }
 0x9a1   :  { %4641 = vmatpush1.bf16.msra.mxu1 %v8840_v49  ;;  %4682 = vmatpush1.bf16.msra.mxu0 %v8842_v4  ;;  %v11050_v49 = vld [vmem:[#allocation33_spill] sm:$0xff]  ;;  %v11051_v4 = vld [vmem:[#allocation32_spill] sm:$0xff] }
 0x9a2   :  { %4642 = vmatprep.subr.bf16.mxu1 %v8846_v37  ;;  %4683 = vmatprep.subr.bf16.mxu0 %v8848_v30  ;;  %v11052_v37 = vld [vmem:[#allocation30_spill] sm:$0xff]  ;;  %v11053_v30 = vld [vmem:[#allocation23_spill] sm:$0xff] }
 0x9a5   :  { %4643 = vmatpush1.bf16.msra.mxu1 %v8852_v43  ;;  %4684 = vmatpush1.bf16.msra.mxu0 %v8854_v54  ;;  %v11054_v43 = vld [vmem:[#allocation21_spill] sm:$0xff]  ;;  %v11055_v54 = vld [vmem:[#allocation15_spill] sm:$0xff] }
 0x9a6   :  { %4644 = vmatprep.subr.bf16.mxu1 %v8858_v7  ;;  %4685 = vmatprep.subr.bf16.mxu0 %v8860_v24  ;;  %v11056_v7 = vld [vmem:[#allocation12_spill] sm:$0xff] }
 0x9a7   :  { %v11057_v24 = vld [vmem:[#allocation24_spill] sm:$0xff] }
 0x9a9   :  { %4645 = vmatpush1.bf16.msra.mxu1 %v11047_v5  ;;  %4686 = vmatpush1.bf16.msra.mxu0 %v11048_v61  ;;  %v11058_v5 = vld [vmem:[#allocation14_spill] sm:$0xff]  ;;  %v11059_v61 = vld [vmem:[#allocation16_spill] sm:$0xff] }
 0x9aa   :  { %4646 = vmatprep.subr.bf16.mxu1 %v11049_v25  ;;  %4687 = vmatprep.subr.bf16.mxu0 %v11050_v49  ;;  %v11060_v25 = vld [vmem:[#allocation34_spill] sm:$0xff]  ;;  %v11061_v49 = vld [vmem:[#allocation35_spill] sm:$0xff] }
 0x9ad   :  { %4647 = vmatpush1.bf16.msra.mxu1 %v11051_v4  ;;  %4688 = vmatpush1.bf16.msra.mxu0 %v11052_v37  ;;  %v11062_v4 = vld [vmem:[#allocation36_spill] sm:$0xff]  ;;  %v11063_v37 = vld [vmem:[#allocation37_spill] sm:$0xff] }
 0x9ae   :  { %4648 = vmatprep.subr.bf16.mxu1 %v11053_v30  ;;  %4689 = vmatprep.subr.bf16.mxu0 %v11054_v43  ;;  %v11064_v30 = vld [vmem:[#allocation38_spill] sm:$0xff]  ;;  %v11065_v43 = vld [vmem:[#allocation39_spill] sm:$0xff] }
 0x9b1   :  { %4649 = vmatpush1.bf16.msra.mxu1 %v11055_v54  ;;  %4690 = vmatpush1.bf16.msra.mxu0 %v11056_v7  ;;  %v11066_v54 = vld [vmem:[#allocation40_spill] sm:$0xff]  ;;  %v11067_v7 = vld [vmem:[#allocation41_spill] sm:$0xff] }
 0x9b2   :  { %4650 = vmatprep.subr.bf16.mxu1 %v11057_v24  ;;  %4691 = vmatprep.subr.bf16.mxu0 %v11058_v5  ;;  %v11068_v24 = vld [vmem:[#allocation42_spill] sm:$0xff]  ;;  %v11069_v5 = vld [vmem:[#allocation43_spill] sm:$0xff] }
 0x9b5   :  { %4651 = vmatpush1.bf16.msra.mxu1 %v11059_v61  ;;  %4692 = vmatpush1.bf16.msra.mxu0 %v11060_v25  ;;  %v11070_v61 = vld [vmem:[#allocation44_spill] sm:$0xff]  ;;  %v11071_v25 = vld [vmem:[#allocation45_spill] sm:$0xff] }
 0x9b6   :  { %4652 = vmatprep.subr.bf16.mxu1 %v11061_v49  ;;  %4693 = vmatprep.subr.bf16.mxu0 %v11062_v4  ;;  %v11072_v49 = vld [vmem:[#allocation46_spill] sm:$0xff]  ;;  %v11073_v4 = vld [vmem:[#allocation47_spill] sm:$0xff] }
 0x9b9   :  { %4653 = vmatpush1.bf16.msra.mxu1 %v11063_v37  ;;  %4694 = vmatpush1.bf16.msra.mxu0 %v11064_v30  ;;  %v11074_v37 = vld [vmem:[#allocation48_spill] sm:$0xff]  ;;  %v11075_v30 = vld [vmem:[#allocation49_spill] sm:$0xff] }
 0x9ba   :  { %4654 = vmatprep.subr.bf16.mxu1 %v11065_v43  ;;  %4695 = vmatprep.subr.bf16.mxu0 %v11066_v54  ;;  %v11076_v43 = vld [vmem:[#allocation50_spill] sm:$0xff]  ;;  %v11077_v54 = vld [vmem:[#allocation51_spill] sm:$0xff] }
 0x9bd   :  { %4655 = vmatpush1.bf16.msra.mxu1 %v11067_v7  ;;  %4696 = vmatpush1.bf16.msra.mxu0 %v11068_v24  ;;  %v11078_v7 = vld [vmem:[#allocation52_spill] sm:$0xff]  ;;  %v11079_v24 = vld [vmem:[#allocation54_spill] sm:$0xff] }
 0x9be   :  { %4656 = vmatprep.subr.bf16.mxu1 %v11069_v5  ;;  %4697 = vmatprep.subr.bf16.mxu0 %v11070_v61  ;;  %v11080_v5 = vld [vmem:[#allocation55_spill] sm:$0xff]  ;;  %v11081_v61 = vld [vmem:[#allocation56_spill] sm:$0xff] }
 0x9c1   :  { %4657 = vmatpush1.bf16.msra.mxu1 %v11071_v25  ;;  %4698 = vmatpush1.bf16.msra.mxu0 %v11072_v49  ;;  %v11082_v25 = vld [vmem:[#allocation57_spill] sm:$0xff]  ;;  %v11083_v49 = vld [vmem:[#allocation58_spill] sm:$0xff] }
 0x9c2   :  { %4658 = vmatprep.subr.bf16.mxu1 %v11073_v4  ;;  %4699 = vmatprep.subr.bf16.mxu0 %v11074_v37  ;;  %v11084_v4 = vld [vmem:[#allocation59_spill] sm:$0xff]  ;;  %v11085_v37 = vld [vmem:[#allocation60_spill] sm:$0xff] }
 0x9c5   :  { %4659 = vmatpush1.bf16.msra.mxu1 %v11075_v30  ;;  %4700 = vmatpush1.bf16.msra.mxu0 %v11076_v43  ;;  %v11086_v30 = vld [vmem:[#allocation61_spill] sm:$0xff]  ;;  %v11087_v43 = vld [vmem:[#allocation62_spill] sm:$0xff] }
 0x9c6   :  { %4660 = vmatprep.subr.bf16.mxu1 %v11077_v54  ;;  %4701 = vmatprep.subr.bf16.mxu0 %v11078_v7  ;;  %v11088_v54 = vld [vmem:[#allocation63_spill] sm:$0xff]  ;;  %v11089_v7 = vld [vmem:[#allocation64_spill] sm:$0xff] }
 0x9c9   :  { %4661 = vmatpush1.bf16.msra.mxu1 %v11079_v24  ;;  %4702 = vmatpush1.bf16.msra.mxu0 %v11080_v5  ;;  %v11090_v24 = vld [vmem:[#allocation65_spill] sm:$0xff]  ;;  %v11091_v5 = vld [vmem:[#allocation66_spill] sm:$0xff] }
 0x9ca   :  { %4662 = vmatprep.subr.bf16.mxu1 %v11081_v61  ;;  %4703 = vmatprep.subr.bf16.mxu0 %v11082_v25  ;;  %v11092_v61 = vld [vmem:[#allocation67_spill] sm:$0xff]  ;;  %v11093_v25 = vld [vmem:[#allocation68_spill] sm:$0xff] }
 0x9cd   :  { %4663 = vmatpush1.bf16.msra.mxu1 %v11083_v49  ;;  %4704 = vmatpush1.bf16.msra.mxu0 %v11084_v4  ;;  %v11094_v49 = vld [vmem:[#allocation69_spill] sm:$0xff]  ;;  %v11095_v4 = vld [vmem:[#allocation70_spill] sm:$0xff] }
 0x9ce   :  { %4664 = vmatprep.subr.bf16.mxu1 %v11085_v37  ;;  %4705 = vmatprep.subr.bf16.mxu0 %v11086_v30  ;;  %v11096_v37 = vld [vmem:[#allocation71_spill] sm:$0xff]  ;;  %v11097_v30 = vld [vmem:[#allocation72_spill] sm:$0xff] }
 0x9d1   :  { %4665 = vmatpush1.bf16.msra.mxu1 %v11087_v43  ;;  %4706 = vmatpush1.bf16.msra.mxu0 %v11088_v54  ;;  %v11098_v43 = vld [vmem:[#allocation73_spill] sm:$0xff]  ;;  %v11099_v54 = vld [vmem:[#allocation74_spill] sm:$0xff] }
 0x9d2   :  { %4666 = vmatprep.subr.bf16.mxu1 %v11089_v7  ;;  %4707 = vmatprep.subr.bf16.mxu0 %v11090_v24  ;;  %v11100_v7 = vld [vmem:[#allocation75_spill] sm:$0xff]  ;;  %v11101_v24 = vld [vmem:[#allocation76_spill] sm:$0xff] }
 0x9d5   :  { %4667 = vmatpush1.bf16.msra.mxu1 %v11091_v5  ;;  %4708 = vmatpush1.bf16.msra.mxu0 %v11092_v61  ;;  %v11102_v5 = vld [vmem:[#allocation77_spill] sm:$0xff] }
 0x9d6   :  { %4668 = vmatprep.subr.bf16.mxu1 %v11093_v25  ;;  %4709 = vmatprep.subr.bf16.mxu0 %v11094_v49 }
 0x9d9   :  { %4669 = vmatpush1.bf16.msra.mxu1 %v11095_v4  ;;  %4710 = vmatpush1.bf16.msra.mxu0 %v11096_v37 }
 0x9da   :  { %4670 = vmatprep.subr.bf16.mxu1 %v11097_v30  ;;  %4711 = vmatprep.subr.bf16.mxu0 %v11098_v43 }
 0x9dd   :  { %4671 = vmatpush1.bf16.msra.mxu1 %v11099_v54  ;;  %4712 = vmatpush1.bf16.msra.mxu0 %v11100_v7 }
 0x9de   :  { %4722 = vmatprep.subr.bf16.mxu1 %v11101_v24  ;;  %4763 = vmatprep.subr.bf16.mxu0 %v11102_v5 }
 0xa33   :  { %v4428_v61 = vpop.f32.mrb[40].mxu1  ;;  %v4469_v25 = vpop.f32.mrb[48].mxu0 }
 0xa34   :  { %v4590_v60 = vrot.slane %v4428_v61, 2  ;;  %v4430_v49 = vpop.f32.mrb[41].mxu1  ;;  %v4471_v15 = vpop.f32.mrb[49].mxu0  ;;  %v4592_v24 = vrot.slane %v4469_v25, 2  ;;  %v11104_v61 = vld [vmem:[#allocation87_spill] sm:$0xff] }
 0xa35   :  { %v4591_v4 = vrot.slane %v4430_v49, 2  ;;  %v4432_v53 = vpop.f32.mrb[42].mxu1  ;;  %v4473_v37 = vpop.f32.mrb[50].mxu0  ;;  %v4593_v5 = vrot.slane %v4471_v15, 2 }
 0xa36   :  { %v4598_v30 = vadd.f32 %v4590_v60, %v9080_v31  ;;  %v4433_v42 = vpop.f32.mrb[43].mxu1  ;;  %v4474_v43 = vpop.f32.mrb[51].mxu0  ;;  %v4600_v52 = vadd.f32 %v4592_v24, %v11103_v38 }
 0xa37   :  { %v4599_v54 = vadd.f32 %v4591_v4, %v10908_v9  ;;  %v4601_v2 = vadd.f32 %v4593_v5, %v11104_v61  ;;  %v11105_v9 = vld [vmem:[#allocation9_spill] sm:$0xff] }
 0xa38   :  { %v5782_v62 = vmul.f32 -1.442695, %v4598_v30  ;;  %v5784_v26 = vmul.f32 -1.442695, %v4600_v52  ;;  %v4622_v31 = vrot.slane %v11105_v9, 6 }
 0xa39   :  { %v5783_v7 = vmul.f32 -1.442695, %v4599_v54 }
 0xa3a   :  { %6234 = vpow2.f32 %v5782_v62 }
 0xa3b   :  { %6236 = vpow2.f32 %v5783_v7 }
 0xa3c   :  { %6238 = vtanh.f32 %v4601_v2 }
 0xa3d   :  { %6240 = vpow2.f32 %v5784_v26 }
 0xa44   :  { %v6235_v49 = vpop.eup %6234 }
 0xa45   :  { %v4611_v53 = vadd.f32 1.0, %v6235_v49  ;;  %v6237_v37 = vpop.eup %6236 }
 0xa46   :  { %v4612_v43 = vadd.f32 1.0, %v6237_v37  ;;  %v6239_v4 = vpop.eup %6238 }
 0xa47   :  { %6242 = vrcp.f32 %v4611_v53  ;;  %v6241_v30 = vpop.eup %6240 }
 0xa48   :  { %6244 = vrcp.f32 %v4612_v43  ;;  %v4613_v60 = vadd.f32 1.0, %v6241_v30 }
 0xa4a   :  { %6246 = vrcp.f32 %v4613_v60 }
 0xa51   :  { %v6243_v54 = vpop.eup %6242 }
 0xa52   :  { %v4625_v7 = vmul.f32 %v6243_v54, %v6239_v4  ;;  %v6245_v15 = vpop.eup %6244 }
 0xa53   :  { %v4624_v24 = vmul.f32 %v6245_v15, %v4622_v31 }
 0xa54   :  { %v6247_v5 = vpop.eup %6246 }
 0xa55   :  { %v9683_v38 = vadd.f32 %v4625_v7, %v4624_v24 }
 0xa57   :  { %6248 = vtanh.f32 %v9683_v38 }
 0xa61   :  { %v6249_v2 = vpop.eup %6248 }
 0xa62   :  { %v4628_v26 = vmul.f32 %v6249_v2, %v6247_v5 }
 0xa73   :  { %v4510_v52 = vpop.f32.mrb[44].mxu1  ;;  %v4551_v62 = vpop.f32.mrb[52].mxu0 }
 0xa74   :  { %v4558_v42 = vadd.f32 %v4510_v52, %v11012_v32  ;;  %v4512_v25 = vpop.f32.mrb[45].mxu1  ;;  %v4553_v61 = vpop.f32.mrb[53].mxu0  ;;  %v4560_v9 = vadd.f32 %v4551_v62, %v9383_v39 }
 0xa75   :  { %v4559_v49 = vadd.f32 %v4512_v25, %v11013_v55  ;;  %v4514_v53 = vpop.f32.mrb[46].mxu1  ;;  %v4555_v37 = vpop.f32.mrb[54].mxu0  ;;  %v4561_v31 = vadd.f32 %v4553_v61, %v9387_v11 }
 0xa76   :  { %v5779_v43 = vmul.f32 -1.442695, %v4558_v42  ;;  %v4515_v4 = vpop.f32.mrb[47].mxu1  ;;  %v4556_v30 = vpop.f32.mrb[55].mxu0  ;;  %v5781_v7 = vmul.f32 -1.442695, %v4560_v9 }
 0xa77   :  { %v5780_v54 = vmul.f32 -1.442695, %v4559_v49 }
 0xa78   :  { %6250 = vpow2.f32 %v5779_v43 }
 0xa79   :  { %6252 = vpow2.f32 %v5780_v54  ;;  %v4632_v54 = vpack.c.bf16 %v4628_v26, %v4628_v26  ;;  %v11107_v26 = vld [vmem:[#allocation100_spill] sm:$0xff] }
 0xa7a   :  { %6254 = vtanh.f32 %v4561_v31 }
 0xa7b   :  { %6256 = vpow2.f32 %v5781_v7  ;;  %v9694_v7 = vrot.slane %v4632_v54, 3  ;;  %v11123_v54 = vld [vmem:[#allocation141_spill] sm:$0xff] }
 0xa82   :  { %v6251_v15 = vpop.eup %6250 }
 0xa83   :  { %v4571_v60 = vadd.f32 1.0, %v6251_v15  ;;  %v6253_v24 = vpop.eup %6252  ;;  %v11108_v15 = vld [vmem:[#allocation101_spill] sm:$0xff] }
 0xa84   :  { %v4572_v5 = vadd.f32 1.0, %v6253_v24  ;;  %v6255_v2 = vpop.eup %6254  ;;  %v11110_v24 = vld [vmem:[#allocation103_spill] sm:$0xff] }
 0xa85   :  { %6258 = vrcp.f32 %v4571_v60  ;;  %v6257_v52 = vpop.eup %6256  ;;  %v11109_v60 = vld [vmem:[#allocation102_spill] sm:$0xff] }
 0xa86   :  { %6260 = vrcp.f32 %v4572_v5  ;;  %v4573_v53 = vadd.f32 1.0, %v6257_v52  ;;  %v11111_v5 = vld [vmem:[#allocation104_spill] sm:$0xff]  ;;  %v11113_v52 = vld [vmem:[#allocation106_spill] sm:$0xff] }
 0xa88   :  { %6262 = vrcp.f32 %v4573_v53  ;;  %v11117_v53 = vld [vmem:[#allocation110_spill] sm:$0xff] }
 0xa8f   :  { %v6259_v42 = vpop.eup %6258 }
 0xa90   :  { %v4582_v25 = vmul.f32 %v6259_v42, %v6255_v2  ;;  %v6261_v49 = vpop.eup %6260  ;;  %v11112_v2 = vld [vmem:[#allocation105_spill] sm:$0xff]  ;;  %v11114_v42 = vld [vmem:[#allocation107_spill] sm:$0xff] }
 0xa91   :  { %v4581_v37 = vmul.f32 %v6261_v49, %v9541_v33  ;;  %v11106_v33 = vld [vmem:[#allocation99_spill] sm:$0xff]  ;;  %v11116_v49 = vld [vmem:[#allocation109_spill] sm:$0xff] }
 0xa92   :  { %v6263_v61 = vpop.eup %6262 }
 0xa93   :  { %v9691_v62 = vadd.f32 %v4582_v25, %v4581_v37  ;;  %v11115_v25 = vld [vmem:[#allocation108_spill] sm:$0xff]  ;;  %v11118_v37 = vld [vmem:[#allocation111_spill] sm:$0xff] }
 0xa95   :  { %6264 = vtanh.f32 %v9691_v62 }
 0xa9f   :  { %v6265_v43 = vpop.eup %6264 }
 0xaa0   :  { %v4585_v4 = vmul.f32 %v6265_v43, %v6263_v61  ;;  %v11119_v61 = vld [vmem:[#allocation112_spill] sm:$0xff] }
 0xaa1   :  { %v11120_v43 = vld [vmem:[#allocation116_spill] sm:$0xff] }
 0xaa2   :  { %v4630_v30 = vrot.slane %v4585_v4, 2  ;;  %v11121_v4 = vld [vmem:[#allocation117_spill] sm:$0xff] }
 0xaa4   :  { %v4633_v9 = vpack.c.bf16 %v4630_v30, %v4630_v30  ;;  %v11122_v30 = vld [vmem:[#allocation140_spill] sm:$0xff] }
 0xaa6   :  { %v4637_v31 = vrot.slane %v4633_v9, 3  ;;  %v11124_v9 = vld [vmem:[#allocation142_spill] sm:$0xff] }
 0xaa8   :  { %4672 = vmatprep.mubr.bf16.mxu1 %v4637_v31  ;;  %4713 = vmatprep.mubr.bf16.mxu0 %v4637_v31 }
 0xaa9   :  { %4673 = vmatmul.mubr.bf16.vlgmr.msra.gmra.mrb[48].mxu1 %v9694_v7  ;;  %4714 = vmatmul.mubr.bf16.vlgmr.msra.gmra.mrb[56].mxu0 %v9694_v7 }
 0xaaa   :  { %4723 = vmatpush1.bf16.msra.mxu1 %v8970_v50  ;;  %4764 = vmatpush1.bf16.msra.mxu0 %v10922_v29 }
 0xaab   :  { %4754 = vmatprep.mubr.bf16.mxu1 %v4637_v31  ;;  %4795 = vmatprep.mubr.bf16.mxu0 %v4637_v31  ;;  %v11125_v31 = vld [vmem:[#allocation143_spill] sm:$0xff] }
 0xaac   :  { %4724 = vmatprep.subr.bf16.mxu1 %v10923_v19  ;;  %4765 = vmatprep.subr.bf16.mxu0 %v10924_v40 }
 0xaae   :  { %4725 = vmatpush1.bf16.msra.mxu1 %v10925_v59  ;;  %4766 = vmatpush1.bf16.msra.mxu0 %v10926_v36 }
 0xaaf   :  { %4726 = vmatprep.subr.bf16.mxu1 %v11014_v8  ;;  %4767 = vmatprep.subr.bf16.mxu0 %v11015_v56 }
 0xab2   :  { %4727 = vmatpush1.bf16.msra.mxu1 %v11016_v34  ;;  %4768 = vmatpush1.bf16.msra.mxu0 %v11017_v23 }
 0xab3   :  { %4728 = vmatprep.subr.bf16.mxu1 %v11018_v14  ;;  %4769 = vmatprep.subr.bf16.mxu0 %v11019_v3 }
 0xab6   :  { %4729 = vmatpush1.bf16.msra.mxu1 %v11106_v33  ;;  %4770 = vmatpush1.bf16.msra.mxu0 %v11107_v26 }
 0xab7   :  { %4730 = vmatprep.subr.bf16.mxu1 %v11108_v15  ;;  %4771 = vmatprep.subr.bf16.mxu0 %v11109_v60 }
 0xaba   :  { %4731 = vmatpush1.bf16.msra.mxu1 %v11110_v24  ;;  %4772 = vmatpush1.bf16.msra.mxu0 %v11111_v5 }
 0xabb   :  { %4732 = vmatprep.subr.bf16.mxu1 %v11112_v2  ;;  %4773 = vmatprep.subr.bf16.mxu0 %v11113_v52 }
 0xabe   :  { %4733 = vmatpush1.bf16.msra.mxu1 %v11114_v42  ;;  %4774 = vmatpush1.bf16.msra.mxu0 %v11115_v25 }
 0xabf   :  { %4734 = vmatprep.subr.bf16.mxu1 %v11116_v49  ;;  %4775 = vmatprep.subr.bf16.mxu0 %v11117_v53 }
 0xac2   :  { %4735 = vmatpush1.bf16.msra.mxu1 %v11118_v37  ;;  %4776 = vmatpush1.bf16.msra.mxu0 %v11119_v61 }
 0xac3   :  { %4736 = vmatprep.subr.bf16.mxu1 %v11034_v13  ;;  %4777 = vmatprep.subr.bf16.mxu0 %v11035_v1 }
 0xac6   :  { %4737 = vmatpush1.bf16.msra.mxu1 %v11036_v18  ;;  %4778 = vmatpush1.bf16.msra.mxu0 %v11120_v43 }
 0xac7   :  { %4738 = vmatprep.subr.bf16.mxu1 %v11121_v4  ;;  %4779 = vmatprep.subr.bf16.mxu0 %v11039_v46 }
 0xaca   :  { %4739 = vmatpush1.bf16.msra.mxu1 %v11040_v58  ;;  %4780 = vmatpush1.bf16.msra.mxu0 %v11041_v16 }
 0xacb   :  { %4740 = vmatprep.subr.bf16.mxu1 %v11042_v63  ;;  %4781 = vmatprep.subr.bf16.mxu0 %v11043_v44 }
 0xace   :  { %4741 = vmatpush1.bf16.msra.mxu1 %v11044_v22  ;;  %4782 = vmatpush1.bf16.msra.mxu0 %v10958_v27 }
 0xacf   :  { %4742 = vmatprep.subr.bf16.mxu1 %v10959_v57  ;;  %4783 = vmatprep.subr.bf16.mxu0 %v10960_v41 }
 0xad2   :  { %4743 = vmatpush1.bf16.msra.mxu1 %v11045_v20  ;;  %4784 = vmatpush1.bf16.msra.mxu0 %v11046_v21  ;;  %v11200_v20 = vld [vmem:[#allocation85_spill] sm:$0xff] }
 0xad3   :  { %4744 = vmatprep.subr.bf16.mxu1 %v10963_v47  ;;  %4785 = vmatprep.subr.bf16.mxu0 %v10964_v48 }
 0xad6   :  { %4745 = vmatpush1.bf16.msra.mxu1 %v10965_v28  ;;  %4786 = vmatpush1.bf16.msra.mxu0 %v10966_v10  ;;  %v11198_v28 = vld [vmem:[#allocation84_spill] sm:$0xff] }
 0xad7   :  { %4746 = vmatprep.subr.bf16.mxu1 %v10967_v6  ;;  %4787 = vmatprep.subr.bf16.mxu0 %v10968_v51  ;;  %v11126_v6 = vld [vmem:[#allocation144_spill] sm:$0xff]  ;;  %v11127_v51 = vld [vmem:[#allocation145_spill] sm:$0xff] }
 0xada   :  { %4747 = vmatpush1.bf16.msra.mxu1 %v9251_v17  ;;  %4788 = vmatpush1.bf16.msra.mxu0 %v9253_v35  ;;  %v11128_v17 = vld [vmem:[#allocation146_spill] sm:$0xff]  ;;  %v11129_v35 = vld [vmem:[#allocation147_spill] sm:$0xff] }
 0xadb   :  { %4748 = vmatprep.subr.bf16.mxu1 %v9257_v12  ;;  %4789 = vmatprep.subr.bf16.mxu0 %v10969_v45  ;;  %v11130_v12 = vld [vmem:[#allocation148_spill] sm:$0xff]  ;;  %v11131_v45 = vld [vmem:[#allocation26_spill] sm:$0xff] }
 0xade   :  { %4749 = vmatpush1.bf16.msra.mxu1 %v10970_v0  ;;  %4790 = vmatpush1.bf16.msra.mxu0 %v11122_v30  ;;  %v11132_v0 = vld [vmem:[#allocation13_spill] sm:$0xff]  ;;  %v11197_v30 = vld [vmem:[#allocation82_spill] sm:$0xff] }
 0xadf   :  { %4750 = vmatprep.subr.bf16.mxu1 %v11123_v54  ;;  %4791 = vmatprep.subr.bf16.mxu0 %v11124_v9  ;;  %v11133_v9 = vld [vmem:[#allocation17_spill] sm:$0xff]  ;;  %v11142_v54 = vld [vmem:[#allocation27_spill] sm:$0xff] }
 0xae2   :  { %4751 = vmatpush1.bf16.msra.mxu1 %v11125_v31  ;;  %4792 = vmatpush1.bf16.msra.mxu0 %v11126_v6  ;;  %v11134_v31 = vld [vmem:[#allocation18_spill] sm:$0xff]  ;;  %v11135_v6 = vld [vmem:[#allocation11_spill] sm:$0xff] }
 0xae3   :  { %4752 = vmatprep.subr.bf16.mxu1 %v11127_v51  ;;  %4793 = vmatprep.subr.bf16.mxu0 %v11128_v17  ;;  %v11136_v51 = vld [vmem:[#allocation19_spill] sm:$0xff]  ;;  %v11137_v17 = vld [vmem:[#allocation20_spill] sm:$0xff] }
 0xae6   :  { %4753 = vmatpush1.bf16.msra.mxu1 %v11129_v35  ;;  %4794 = vmatpush1.bf16.msra.mxu0 %v11130_v12  ;;  %v11138_v35 = vld [vmem:[#allocation28_spill] sm:$0xff]  ;;  %v11139_v12 = vld [vmem:[#allocation22_spill] sm:$0xff] }
 0xae7   :  { %4865 = vmatprep.subr.bf16.mxu1 %v11131_v45  ;;  %4906 = vmatprep.subr.bf16.mxu0 %v11132_v0  ;;  %v11140_v45 = vld [vmem:[#allocation25_spill] sm:$0xff] }
 0xae8   :  { %v11141_v0 = vld [vmem:[#allocation29_spill] sm:$0xff] }
 0xae9   :  { %4755 = vmatmul.mubr.bf16.vlgmr.msra.gmra.mrb[52].mxu1 %v9694_v7  ;;  %4796 = vmatmul.mubr.bf16.vlgmr.msra.gmra.mrb[60].mxu0 %v9694_v7  ;;  %v11143_v7 = vld [vmem:[#allocation31_spill] sm:$0xff] }
 0xaea   :  { %4866 = vmatpush1.bf16.msra.mxu1 %v11133_v9  ;;  %4907 = vmatpush1.bf16.msra.mxu0 %v11134_v31  ;;  %v11144_v9 = vld [vmem:[#allocation33_spill] sm:$0xff]  ;;  %v11145_v31 = vld [vmem:[#allocation32_spill] sm:$0xff] }
 0xaeb   :  { %4867 = vmatprep.subr.bf16.mxu1 %v11135_v6  ;;  %4908 = vmatprep.subr.bf16.mxu0 %v11136_v51  ;;  %v11146_v6 = vld [vmem:[#allocation30_spill] sm:$0xff]  ;;  %v11147_v51 = vld [vmem:[#allocation23_spill] sm:$0xff] }
 0xaee   :  { %4868 = vmatpush1.bf16.msra.mxu1 %v11137_v17  ;;  %4909 = vmatpush1.bf16.msra.mxu0 %v11138_v35  ;;  %v11148_v17 = vld [vmem:[#allocation21_spill] sm:$0xff]  ;;  %v11149_v35 = vld [vmem:[#allocation15_spill] sm:$0xff] }
 0xaef   :  { %4869 = vmatprep.subr.bf16.mxu1 %v11139_v12  ;;  %4910 = vmatprep.subr.bf16.mxu0 %v11140_v45  ;;  %v11150_v12 = vld [vmem:[#allocation12_spill] sm:$0xff] }
 0xaf0   :  { %v11151_v45 = vld [vmem:[#allocation24_spill] sm:$0xff] }
 0xaf2   :  { %4870 = vmatpush1.bf16.msra.mxu1 %v11141_v0  ;;  %4911 = vmatpush1.bf16.msra.mxu0 %v11142_v54  ;;  %v11152_v0 = vld [vmem:[#allocation14_spill] sm:$0xff]  ;;  %v11153_v54 = vld [vmem:[#allocation16_spill] sm:$0xff] }
 0xaf3   :  { %4871 = vmatprep.subr.bf16.mxu1 %v11143_v7  ;;  %4912 = vmatprep.subr.bf16.mxu0 %v11144_v9  ;;  %v11154_v7 = vld [vmem:[#allocation34_spill] sm:$0xff]  ;;  %v11155_v9 = vld [vmem:[#allocation35_spill] sm:$0xff] }
 0xaf6   :  { %4872 = vmatpush1.bf16.msra.mxu1 %v11145_v31  ;;  %4913 = vmatpush1.bf16.msra.mxu0 %v11146_v6  ;;  %v11156_v31 = vld [vmem:[#allocation36_spill] sm:$0xff]  ;;  %v11157_v6 = vld [vmem:[#allocation37_spill] sm:$0xff] }
 0xaf7   :  { %4873 = vmatprep.subr.bf16.mxu1 %v11147_v51  ;;  %4914 = vmatprep.subr.bf16.mxu0 %v11148_v17  ;;  %v11158_v51 = vld [vmem:[#allocation38_spill] sm:$0xff]  ;;  %v11159_v17 = vld [vmem:[#allocation39_spill] sm:$0xff] }
 0xafa   :  { %4874 = vmatpush1.bf16.msra.mxu1 %v11149_v35  ;;  %4915 = vmatpush1.bf16.msra.mxu0 %v11150_v12  ;;  %v11160_v35 = vld [vmem:[#allocation40_spill] sm:$0xff]  ;;  %v11161_v12 = vld [vmem:[#allocation41_spill] sm:$0xff] }
 0xafb   :  { %4875 = vmatprep.subr.bf16.mxu1 %v11151_v45  ;;  %4916 = vmatprep.subr.bf16.mxu0 %v11152_v0  ;;  %v11162_v45 = vld [vmem:[#allocation42_spill] sm:$0xff]  ;;  %v11163_v0 = vld [vmem:[#allocation43_spill] sm:$0xff] }
 0xafe   :  { %4876 = vmatpush1.bf16.msra.mxu1 %v11153_v54  ;;  %4917 = vmatpush1.bf16.msra.mxu0 %v11154_v7  ;;  %v11164_v54 = vld [vmem:[#allocation44_spill] sm:$0xff]  ;;  %v11165_v7 = vld [vmem:[#allocation45_spill] sm:$0xff] }
 0xaff   :  { %4877 = vmatprep.subr.bf16.mxu1 %v11155_v9  ;;  %4918 = vmatprep.subr.bf16.mxu0 %v11156_v31  ;;  %v11166_v9 = vld [vmem:[#allocation46_spill] sm:$0xff]  ;;  %v11167_v31 = vld [vmem:[#allocation47_spill] sm:$0xff] }
 0xb02   :  { %4878 = vmatpush1.bf16.msra.mxu1 %v11157_v6  ;;  %4919 = vmatpush1.bf16.msra.mxu0 %v11158_v51  ;;  %v11168_v6 = vld [vmem:[#allocation48_spill] sm:$0xff]  ;;  %v11169_v51 = vld [vmem:[#allocation49_spill] sm:$0xff] }
 0xb03   :  { %4879 = vmatprep.subr.bf16.mxu1 %v11159_v17  ;;  %4920 = vmatprep.subr.bf16.mxu0 %v11160_v35  ;;  %v11170_v17 = vld [vmem:[#allocation50_spill] sm:$0xff]  ;;  %v11171_v35 = vld [vmem:[#allocation51_spill] sm:$0xff] }
 0xb06   :  { %4880 = vmatpush1.bf16.msra.mxu1 %v11161_v12  ;;  %4921 = vmatpush1.bf16.msra.mxu0 %v11162_v45  ;;  %v11172_v12 = vld [vmem:[#allocation52_spill] sm:$0xff]  ;;  %v11173_v45 = vld [vmem:[#allocation54_spill] sm:$0xff] }
 0xb07   :  { %4881 = vmatprep.subr.bf16.mxu1 %v11163_v0  ;;  %4922 = vmatprep.subr.bf16.mxu0 %v11164_v54  ;;  %v11174_v0 = vld [vmem:[#allocation55_spill] sm:$0xff]  ;;  %v11175_v54 = vld [vmem:[#allocation56_spill] sm:$0xff] }
 0xb0a   :  { %4882 = vmatpush1.bf16.msra.mxu1 %v11165_v7  ;;  %4923 = vmatpush1.bf16.msra.mxu0 %v11166_v9  ;;  %v11176_v7 = vld [vmem:[#allocation57_spill] sm:$0xff]  ;;  %v11177_v9 = vld [vmem:[#allocation58_spill] sm:$0xff] }
 0xb0b   :  { %4883 = vmatprep.subr.bf16.mxu1 %v11167_v31  ;;  %4924 = vmatprep.subr.bf16.mxu0 %v11168_v6  ;;  %v11178_v31 = vld [vmem:[#allocation59_spill] sm:$0xff]  ;;  %v11179_v6 = vld [vmem:[#allocation60_spill] sm:$0xff] }
 0xb0e   :  { %4884 = vmatpush1.bf16.msra.mxu1 %v11169_v51  ;;  %4925 = vmatpush1.bf16.msra.mxu0 %v11170_v17  ;;  %v11180_v51 = vld [vmem:[#allocation61_spill] sm:$0xff]  ;;  %v11181_v17 = vld [vmem:[#allocation62_spill] sm:$0xff] }
 0xb0f   :  { %4885 = vmatprep.subr.bf16.mxu1 %v11171_v35  ;;  %4926 = vmatprep.subr.bf16.mxu0 %v11172_v12  ;;  %v11182_v35 = vld [vmem:[#allocation63_spill] sm:$0xff]  ;;  %v11183_v12 = vld [vmem:[#allocation64_spill] sm:$0xff] }
 0xb12   :  { %4886 = vmatpush1.bf16.msra.mxu1 %v11173_v45  ;;  %4927 = vmatpush1.bf16.msra.mxu0 %v11174_v0  ;;  %v11184_v45 = vld [vmem:[#allocation65_spill] sm:$0xff]  ;;  %v11185_v0 = vld [vmem:[#allocation66_spill] sm:$0xff] }
 0xb13   :  { %4887 = vmatprep.subr.bf16.mxu1 %v11175_v54  ;;  %4928 = vmatprep.subr.bf16.mxu0 %v11176_v7  ;;  %v11186_v54 = vld [vmem:[#allocation67_spill] sm:$0xff]  ;;  %v11187_v7 = vld [vmem:[#allocation68_spill] sm:$0xff] }
 0xb16   :  { %4888 = vmatpush1.bf16.msra.mxu1 %v11177_v9  ;;  %4929 = vmatpush1.bf16.msra.mxu0 %v11178_v31  ;;  %v11188_v9 = vld [vmem:[#allocation69_spill] sm:$0xff]  ;;  %v11189_v31 = vld [vmem:[#allocation70_spill] sm:$0xff] }
 0xb17   :  { %4889 = vmatprep.subr.bf16.mxu1 %v11179_v6  ;;  %4930 = vmatprep.subr.bf16.mxu0 %v11180_v51  ;;  %v11190_v6 = vld [vmem:[#allocation71_spill] sm:$0xff]  ;;  %v11191_v51 = vld [vmem:[#allocation72_spill] sm:$0xff] }
 0xb1a   :  { %4890 = vmatpush1.bf16.msra.mxu1 %v11181_v17  ;;  %4931 = vmatpush1.bf16.msra.mxu0 %v11182_v35  ;;  %v11192_v17 = vld [vmem:[#allocation73_spill] sm:$0xff]  ;;  %v11193_v35 = vld [vmem:[#allocation74_spill] sm:$0xff] }
 0xb1b   :  { %4891 = vmatprep.subr.bf16.mxu1 %v11183_v12  ;;  %4932 = vmatprep.subr.bf16.mxu0 %v11184_v45  ;;  %v11194_v12 = vld [vmem:[#allocation75_spill] sm:$0xff]  ;;  %v11195_v45 = vld [vmem:[#allocation76_spill] sm:$0xff] }
 0xb1e   :  { %4892 = vmatpush1.bf16.msra.mxu1 %v11185_v0  ;;  %4933 = vmatpush1.bf16.msra.mxu0 %v11186_v54  ;;  %v11196_v0 = vld [vmem:[#allocation77_spill] sm:$0xff] }
 0xb1f   :  { %4893 = vmatprep.subr.bf16.mxu1 %v11187_v7  ;;  %4934 = vmatprep.subr.bf16.mxu0 %v11188_v9 }
 0xb22   :  { %4894 = vmatpush1.bf16.msra.mxu1 %v11189_v31  ;;  %4935 = vmatpush1.bf16.msra.mxu0 %v11190_v6 }
 0xb23   :  { %4895 = vmatprep.subr.bf16.mxu1 %v11191_v51  ;;  %4936 = vmatprep.subr.bf16.mxu0 %v11192_v17 }
 0xb26   :  { %4896 = vmatpush1.bf16.msra.mxu1 %v11193_v35  ;;  %4937 = vmatpush1.bf16.msra.mxu0 %v11194_v12  ;;  %v11199_v12 = vld [vmem:[#allocation83_spill] sm:$0xff] }
 0xb27   :  { %4947 = vmatprep.subr.bf16.mxu1 %v11195_v45  ;;  %4988 = vmatprep.subr.bf16.mxu0 %v11196_v0 }
 0xb7c   :  { %v4674_v54 = vpop.f32.mrb[48].mxu1  ;;  %v4715_v7 = vpop.f32.mrb[56].mxu0 }
 0xb7d   :  { %v4832_v9 = vadd.f32 %v4674_v54, %v11197_v30  ;;  %v4676_v10 = vpop.f32.mrb[49].mxu1  ;;  %v4717_v31 = vpop.f32.mrb[57].mxu0  ;;  %v4834_v45 = vadd.f32 %v4715_v7, %v11199_v12 }
 0xb7e   :  { %v4833_v6 = vadd.f32 %v4676_v10, %v11198_v28  ;;  %v4678_v48 = vpop.f32.mrb[50].mxu1  ;;  %v4719_v51 = vpop.f32.mrb[58].mxu0  ;;  %v4835_v0 = vadd.f32 %v4717_v31, %v11200_v20 }
 0xb7f   :  { %v5788_v47 = vmul.f32 -1.442695, %v4832_v9  ;;  %v4679_v17 = vpop.f32.mrb[51].mxu1  ;;  %v4720_v21 = vpop.f32.mrb[59].mxu0  ;;  %v5790_v41 = vmul.f32 -1.442695, %v4834_v45 }
 0xb80   :  { %v5789_v35 = vmul.f32 -1.442695, %v4833_v6  ;;  %v4856_v6 = vrot.slane %v9683_v38, 6 }
 0xb81   :  { %6266 = vpow2.f32 %v5788_v47 }
 0xb82   :  { %6268 = vpow2.f32 %v5789_v35 }
 0xb83   :  { %6270 = vtanh.f32 %v4835_v0 }
 0xb84   :  { %6272 = vpow2.f32 %v5790_v41 }
 0xb8b   :  { %v6267_v57 = vpop.eup %6266 }
 0xb8c   :  { %v4845_v27 = vadd.f32 1.0, %v6267_v57  ;;  %v6269_v54 = vpop.eup %6268 }
 0xb8d   :  { %v4846_v10 = vadd.f32 1.0, %v6269_v54  ;;  %v6271_v48 = vpop.eup %6270 }
 0xb8e   :  { %6274 = vrcp.f32 %v4845_v27  ;;  %v6273_v51 = vpop.eup %6272 }
 0xb8f   :  { %6276 = vrcp.f32 %v4846_v10  ;;  %v4847_v21 = vadd.f32 1.0, %v6273_v51 }
 0xb91   :  { %6278 = vrcp.f32 %v4847_v21 }
 0xb98   :  { %v6275_v17 = vpop.eup %6274 }
 0xb99   :  { %v4859_v47 = vmul.f32 %v6275_v17, %v6271_v48  ;;  %v6277_v35 = vpop.eup %6276 }
 0xb9a   :  { %v4858_v9 = vmul.f32 %v6277_v35, %v4856_v6 }
 0xb9b   :  { %v6279_v45 = vpop.eup %6278 }
 0xb9c   :  { %v9833_v7 = vadd.f32 %v4859_v47, %v4858_v9 }
 0xb9e   :  { %11201 = vst [vmem:[#allocation80_spill] sm:$0xff] %v9833_v7  ;;  %6280 = vtanh.f32 %v9833_v7 }
 0xba8   :  { %v6281_v0 = vpop.eup %6280 }
 0xba9   :  { %v4862_v41 = vmul.f32 %v6281_v0, %v6279_v45 }
 0xbbc   :  { %v4756_v27 = vpop.f32.mrb[52].mxu1  ;;  %v4797_v57 = vpop.f32.mrb[60].mxu0 }
 0xbbd   :  { %v4804_v31 = vadd.f32 %v4756_v27, %v11012_v32  ;;  %v4758_v54 = vpop.f32.mrb[53].mxu1  ;;  %v4799_v10 = vpop.f32.mrb[61].mxu0  ;;  %v4806_v21 = vadd.f32 %v4797_v57, %v9383_v39 }
 0xbbe   :  { %v4805_v38 = vadd.f32 %v4758_v54, %v11013_v55  ;;  %v4760_v48 = vpop.f32.mrb[54].mxu1  ;;  %v4801_v17 = vpop.f32.mrb[62].mxu0  ;;  %v4807_v9 = vadd.f32 %v4799_v10, %v9387_v11 }
 0xbbf   :  { %v5785_v51 = vmul.f32 -1.442695, %v4804_v31  ;;  %v4761_v6 = vpop.f32.mrb[55].mxu1  ;;  %v4802_v47 = vpop.f32.mrb[63].mxu0  ;;  %v5787_v45 = vmul.f32 -1.442695, %v4806_v21 }
 0xbc0   :  { %v5786_v35 = vmul.f32 -1.442695, %v4805_v38 }
 0xbc1   :  { %6282 = vpow2.f32 %v5785_v51 }
 0xbc2   :  { %6284 = vpow2.f32 %v5786_v35 }
 0xbc3   :  { %6286 = vtanh.f32 %v4807_v9 }
 0xbc4   :  { %6288 = vpow2.f32 %v5787_v45  ;;  %v11204_v45 = vld [vmem:[#allocation126_spill] sm:$0xff] }
 0xbcb   :  { %v6283_v0 = vpop.eup %6282 }
 0xbcc   :  { %v4817_v7 = vadd.f32 1.0, %v6283_v0  ;;  %v6285_v27 = vpop.eup %6284  ;;  %v11205_v0 = vld [vmem:[#allocation127_spill] sm:$0xff] }
 0xbcd   :  { %v4818_v54 = vadd.f32 1.0, %v6285_v27  ;;  %v6287_v48 = vpop.eup %6286  ;;  %v11206_v27 = vld [vmem:[#allocation128_spill] sm:$0xff] }
 0xbce   :  { %6290 = vrcp.f32 %v4817_v7  ;;  %v6289_v31 = vpop.eup %6288  ;;  %v9844_v7 = vpack.c.bf16 %v4862_v41, %v4862_v41  ;;  %v11203_v41 = vld [vmem:[#allocation125_spill] sm:$0xff] }
 0xbcf   :  { %6292 = vrcp.f32 %v4818_v54  ;;  %v4819_v51 = vadd.f32 1.0, %v6289_v31  ;;  %v11207_v54 = vld [vmem:[#allocation129_spill] sm:$0xff]  ;;  %v11209_v31 = vld [vmem:[#allocation131_spill] sm:$0xff] }
 0xbd1   :  { %6294 = vrcp.f32 %v4819_v51  ;;  %v11213_v51 = vld [vmem:[#allocation135_spill] sm:$0xff] }
 0xbd8   :  { %v6291_v17 = vpop.eup %6290 }
 0xbd9   :  { %v4828_v6 = vmul.f32 %v6291_v17, %v6287_v48  ;;  %v6293_v38 = vpop.eup %6292  ;;  %v11208_v48 = vld [vmem:[#allocation130_spill] sm:$0xff]  ;;  %v11210_v17 = vld [vmem:[#allocation132_spill] sm:$0xff] }
 0xbda   :  { %v4827_v47 = vmul.f32 %v6293_v38, %v9691_v62  ;;  %v11202_v62 = vld [vmem:[#allocation124_spill] sm:$0xff]  ;;  %v11212_v38 = vld [vmem:[#allocation134_spill] sm:$0xff] }
 0xbdb   :  { %v6295_v10 = vpop.eup %6294 }
 0xbdc   :  { %v9841_v57 = vadd.f32 %v4828_v6, %v4827_v47  ;;  %v11211_v6 = vld [vmem:[#allocation133_spill] sm:$0xff]  ;;  %v11214_v47 = vld [vmem:[#allocation136_spill] sm:$0xff] }
 0xbde   :  { %6296 = vtanh.f32 %v9841_v57 }
 0xbe8   :  { %v6297_v35 = vpop.eup %6296 }
 0xbe9   :  { %v4831_v21 = vmul.f32 %v6297_v35, %v6295_v10  ;;  %v11215_v10 = vld [vmem:[#allocation137_spill] sm:$0xff]  ;;  %v11216_v35 = vld [vmem:[#allocation138_spill] sm:$0xff] }
 0xbeb   :  { %v4864_v9 = vpack.c.bf16 %v4831_v21, %v4831_v21  ;;  %v11217_v21 = vld [vmem:[#allocation139_spill] sm:$0xff] }
 0xbed   :  { %4897 = vmatprep.mubr.bf16.mxu1 %v4864_v9  ;;  %4938 = vmatprep.mubr.bf16.mxu0 %v4864_v9 }
 0xbee   :  { %4898 = vmatmul.mubr.bf16.vlgmr.msra.gmra.mrb[56].mxu1 %v9844_v7  ;;  %4939 = vmatmul.mubr.bf16.vlgmr.msra.gmra.mrb[64].mxu0 %v9844_v7 }
 0xbef   :  { %4948 = vmatpush1.bf16.msra.mxu1 %v8970_v50  ;;  %4989 = vmatpush1.bf16.msra.mxu0 %v10922_v29 }
 0xbf0   :  { %4979 = vmatprep.mubr.bf16.mxu1 %v4864_v9  ;;  %5020 = vmatprep.mubr.bf16.mxu0 %v4864_v9  ;;  %v11218_v9 = vld [vmem:[#allocation140_spill] sm:$0xff] }
 0xbf1   :  { %4949 = vmatprep.subr.bf16.mxu1 %v10923_v19  ;;  %4990 = vmatprep.subr.bf16.mxu0 %v10924_v40 }
 0xbf3   :  { %4950 = vmatpush1.bf16.msra.mxu1 %v10925_v59  ;;  %4991 = vmatpush1.bf16.msra.mxu0 %v10926_v36 }
 0xbf4   :  { %4951 = vmatprep.subr.bf16.mxu1 %v11014_v8  ;;  %4992 = vmatprep.subr.bf16.mxu0 %v11015_v56 }
 0xbf7   :  { %4952 = vmatpush1.bf16.msra.mxu1 %v11016_v34  ;;  %4993 = vmatpush1.bf16.msra.mxu0 %v11017_v23 }
 0xbf8   :  { %4953 = vmatprep.subr.bf16.mxu1 %v11018_v14  ;;  %4994 = vmatprep.subr.bf16.mxu0 %v11019_v3 }
 0xbfb   :  { %4954 = vmatpush1.bf16.msra.mxu1 %v11106_v33  ;;  %4995 = vmatpush1.bf16.msra.mxu0 %v11107_v26 }
 0xbfc   :  { %4955 = vmatprep.subr.bf16.mxu1 %v11108_v15  ;;  %4996 = vmatprep.subr.bf16.mxu0 %v11109_v60 }
 0xbff   :  { %4956 = vmatpush1.bf16.msra.mxu1 %v11110_v24  ;;  %4997 = vmatpush1.bf16.msra.mxu0 %v11111_v5 }
 0xc00   :  { %4957 = vmatprep.subr.bf16.mxu1 %v11112_v2  ;;  %4998 = vmatprep.subr.bf16.mxu0 %v11113_v52 }
 0xc03   :  { %4958 = vmatpush1.bf16.msra.mxu1 %v11114_v42  ;;  %4999 = vmatpush1.bf16.msra.mxu0 %v11115_v25 }
 0xc04   :  { %4959 = vmatprep.subr.bf16.mxu1 %v11116_v49  ;;  %5000 = vmatprep.subr.bf16.mxu0 %v11117_v53 }
 0xc07   :  { %4960 = vmatpush1.bf16.msra.mxu1 %v11118_v37  ;;  %5001 = vmatpush1.bf16.msra.mxu0 %v11119_v61 }
 0xc08   :  { %4961 = vmatprep.subr.bf16.mxu1 %v11034_v13  ;;  %5002 = vmatprep.subr.bf16.mxu0 %v11035_v1 }
 0xc0b   :  { %4962 = vmatpush1.bf16.msra.mxu1 %v11036_v18  ;;  %5003 = vmatpush1.bf16.msra.mxu0 %v11120_v43 }
 0xc0c   :  { %4963 = vmatprep.subr.bf16.mxu1 %v11121_v4  ;;  %5004 = vmatprep.subr.bf16.mxu0 %v11039_v46 }
 0xc0f   :  { %4964 = vmatpush1.bf16.msra.mxu1 %v11040_v58  ;;  %5005 = vmatpush1.bf16.msra.mxu0 %v11041_v16 }
 0xc10   :  { %4965 = vmatprep.subr.bf16.mxu1 %v11042_v63  ;;  %5006 = vmatprep.subr.bf16.mxu0 %v11043_v44 }
 0xc13   :  { %4966 = vmatpush1.bf16.msra.mxu1 %v11044_v22  ;;  %5007 = vmatpush1.bf16.msra.mxu0 %v11202_v62 }
 0xc14   :  { %4967 = vmatprep.subr.bf16.mxu1 %v11203_v41  ;;  %5008 = vmatprep.subr.bf16.mxu0 %v11204_v45 }
 0xc17   :  { %4968 = vmatpush1.bf16.msra.mxu1 %v11205_v0  ;;  %5009 = vmatpush1.bf16.msra.mxu0 %v11206_v27 }
 0xc18   :  { %4969 = vmatprep.subr.bf16.mxu1 %v11207_v54  ;;  %5010 = vmatprep.subr.bf16.mxu0 %v11208_v48  ;;  %v11219_v48 = vld [vmem:[#allocation141_spill] sm:$0xff] }
 0xc1b   :  { %4970 = vmatpush1.bf16.msra.mxu1 %v11209_v31  ;;  %5011 = vmatpush1.bf16.msra.mxu0 %v11210_v17  ;;  %v11220_v31 = vld [vmem:[#allocation142_spill] sm:$0xff]  ;;  %v11221_v17 = vld [vmem:[#allocation143_spill] sm:$0xff] }
 0xc1c   :  { %4971 = vmatprep.subr.bf16.mxu1 %v11211_v6  ;;  %5012 = vmatprep.subr.bf16.mxu0 %v11212_v38  ;;  %v11222_v6 = vld [vmem:[#allocation144_spill] sm:$0xff]  ;;  %v11223_v38 = vld [vmem:[#allocation145_spill] sm:$0xff] }
 0xc1f   :  { %4972 = vmatpush1.bf16.msra.mxu1 %v11213_v51  ;;  %5013 = vmatpush1.bf16.msra.mxu0 %v11214_v47  ;;  %v11224_v51 = vld [vmem:[#allocation146_spill] sm:$0xff]  ;;  %v11225_v47 = vld [vmem:[#allocation147_spill] sm:$0xff] }
 0xc20   :  { %4973 = vmatprep.subr.bf16.mxu1 %v11215_v10  ;;  %5014 = vmatprep.subr.bf16.mxu0 %v11216_v35  ;;  %v11226_v10 = vld [vmem:[#allocation148_spill] sm:$0xff]  ;;  %v11227_v35 = vld [vmem:[#allocation26_spill] sm:$0xff] }
 0xc23   :  { %4974 = vmatpush1.bf16.msra.mxu1 %v11217_v21  ;;  %5015 = vmatpush1.bf16.msra.mxu0 %v11218_v9  ;;  %v11228_v21 = vld [vmem:[#allocation13_spill] sm:$0xff] }
 0xc24   :  { %4975 = vmatprep.subr.bf16.mxu1 %v11219_v48  ;;  %5016 = vmatprep.subr.bf16.mxu0 %v11220_v31  ;;  %v11229_v31 = vld [vmem:[#allocation17_spill] sm:$0xff]  ;;  %v11238_v48 = vld [vmem:[#allocation27_spill] sm:$0xff] }
 0xc27   :  { %4976 = vmatpush1.bf16.msra.mxu1 %v11221_v17  ;;  %5017 = vmatpush1.bf16.msra.mxu0 %v11222_v6  ;;  %v11230_v17 = vld [vmem:[#allocation18_spill] sm:$0xff]  ;;  %v11231_v6 = vld [vmem:[#allocation11_spill] sm:$0xff] }
 0xc28   :  { %4977 = vmatprep.subr.bf16.mxu1 %v11223_v38  ;;  %5018 = vmatprep.subr.bf16.mxu0 %v11224_v51  ;;  %v11232_v38 = vld [vmem:[#allocation19_spill] sm:$0xff]  ;;  %v11233_v51 = vld [vmem:[#allocation20_spill] sm:$0xff] }
 0xc2b   :  { %4978 = vmatpush1.bf16.msra.mxu1 %v11225_v47  ;;  %5019 = vmatpush1.bf16.msra.mxu0 %v11226_v10  ;;  %v11234_v47 = vld [vmem:[#allocation28_spill] sm:$0xff]  ;;  %v11235_v10 = vld [vmem:[#allocation22_spill] sm:$0xff] }
 0xc2c   :  { %5111 = vmatprep.subr.bf16.mxu1 %v11227_v35  ;;  %5152 = vmatprep.subr.bf16.mxu0 %v11228_v21  ;;  %v11236_v35 = vld [vmem:[#allocation25_spill] sm:$0xff] }
 0xc2d   :  { %v11237_v21 = vld [vmem:[#allocation29_spill] sm:$0xff] }
 0xc2e   :  { %4980 = vmatmul.mubr.bf16.vlgmr.msra.gmra.mrb[60].mxu1 %v9844_v7  ;;  %5021 = vmatmul.mubr.bf16.vlgmr.msra.gmra.mrb[68].mxu0 %v9844_v7  ;;  %v11239_v7 = vld [vmem:[#allocation31_spill] sm:$0xff] }
 0xc2f   :  { %5112 = vmatpush1.bf16.msra.mxu1 %v11229_v31  ;;  %5153 = vmatpush1.bf16.msra.mxu0 %v11230_v17  ;;  %v11240_v31 = vld [vmem:[#allocation33_spill] sm:$0xff]  ;;  %v11241_v17 = vld [vmem:[#allocation32_spill] sm:$0xff] }
 0xc30   :  { %5113 = vmatprep.subr.bf16.mxu1 %v11231_v6  ;;  %5154 = vmatprep.subr.bf16.mxu0 %v11232_v38  ;;  %v11242_v6 = vld [vmem:[#allocation30_spill] sm:$0xff]  ;;  %v11243_v38 = vld [vmem:[#allocation23_spill] sm:$0xff] }
 0xc33   :  { %5114 = vmatpush1.bf16.msra.mxu1 %v11233_v51  ;;  %5155 = vmatpush1.bf16.msra.mxu0 %v11234_v47  ;;  %v11244_v51 = vld [vmem:[#allocation21_spill] sm:$0xff]  ;;  %v11245_v47 = vld [vmem:[#allocation15_spill] sm:$0xff] }
 0xc34   :  { %5115 = vmatprep.subr.bf16.mxu1 %v11235_v10  ;;  %5156 = vmatprep.subr.bf16.mxu0 %v11236_v35  ;;  %v11246_v10 = vld [vmem:[#allocation12_spill] sm:$0xff] }
 0xc35   :  { %v11247_v35 = vld [vmem:[#allocation24_spill] sm:$0xff] }
 0xc37   :  { %5116 = vmatpush1.bf16.msra.mxu1 %v11237_v21  ;;  %5157 = vmatpush1.bf16.msra.mxu0 %v11238_v48  ;;  %v11248_v21 = vld [vmem:[#allocation14_spill] sm:$0xff]  ;;  %v11249_v48 = vld [vmem:[#allocation16_spill] sm:$0xff] }
 0xc38   :  { %5117 = vmatprep.subr.bf16.mxu1 %v11239_v7  ;;  %5158 = vmatprep.subr.bf16.mxu0 %v11240_v31  ;;  %v11250_v7 = vld [vmem:[#allocation34_spill] sm:$0xff]  ;;  %v11251_v31 = vld [vmem:[#allocation35_spill] sm:$0xff] }
 0xc3b   :  { %5118 = vmatpush1.bf16.msra.mxu1 %v11241_v17  ;;  %5159 = vmatpush1.bf16.msra.mxu0 %v11242_v6  ;;  %v11252_v17 = vld [vmem:[#allocation36_spill] sm:$0xff]  ;;  %v11253_v6 = vld [vmem:[#allocation37_spill] sm:$0xff] }
 0xc3c   :  { %5119 = vmatprep.subr.bf16.mxu1 %v11243_v38  ;;  %5160 = vmatprep.subr.bf16.mxu0 %v11244_v51  ;;  %v11254_v38 = vld [vmem:[#allocation38_spill] sm:$0xff]  ;;  %v11255_v51 = vld [vmem:[#allocation39_spill] sm:$0xff] }
 0xc3f   :  { %5120 = vmatpush1.bf16.msra.mxu1 %v11245_v47  ;;  %5161 = vmatpush1.bf16.msra.mxu0 %v11246_v10  ;;  %v11256_v47 = vld [vmem:[#allocation40_spill] sm:$0xff]  ;;  %v11257_v10 = vld [vmem:[#allocation41_spill] sm:$0xff] }
 0xc40   :  { %5121 = vmatprep.subr.bf16.mxu1 %v11247_v35  ;;  %5162 = vmatprep.subr.bf16.mxu0 %v11248_v21  ;;  %v11258_v35 = vld [vmem:[#allocation42_spill] sm:$0xff]  ;;  %v11259_v21 = vld [vmem:[#allocation43_spill] sm:$0xff] }
 0xc43   :  { %5122 = vmatpush1.bf16.msra.mxu1 %v11249_v48  ;;  %5163 = vmatpush1.bf16.msra.mxu0 %v11250_v7  ;;  %v11260_v48 = vld [vmem:[#allocation44_spill] sm:$0xff]  ;;  %v11261_v7 = vld [vmem:[#allocation45_spill] sm:$0xff] }
 0xc44   :  { %5123 = vmatprep.subr.bf16.mxu1 %v11251_v31  ;;  %5164 = vmatprep.subr.bf16.mxu0 %v11252_v17  ;;  %v11262_v31 = vld [vmem:[#allocation46_spill] sm:$0xff]  ;;  %v11263_v17 = vld [vmem:[#allocation47_spill] sm:$0xff] }
 0xc47   :  { %5124 = vmatpush1.bf16.msra.mxu1 %v11253_v6  ;;  %5165 = vmatpush1.bf16.msra.mxu0 %v11254_v38  ;;  %v11264_v6 = vld [vmem:[#allocation48_spill] sm:$0xff]  ;;  %v11265_v38 = vld [vmem:[#allocation49_spill] sm:$0xff] }
 0xc48   :  { %5125 = vmatprep.subr.bf16.mxu1 %v11255_v51  ;;  %5166 = vmatprep.subr.bf16.mxu0 %v11256_v47  ;;  %v11266_v51 = vld [vmem:[#allocation50_spill] sm:$0xff]  ;;  %v11267_v47 = vld [vmem:[#allocation51_spill] sm:$0xff] }
 0xc4b   :  { %5126 = vmatpush1.bf16.msra.mxu1 %v11257_v10  ;;  %5167 = vmatpush1.bf16.msra.mxu0 %v11258_v35  ;;  %v11268_v10 = vld [vmem:[#allocation52_spill] sm:$0xff]  ;;  %v11269_v35 = vld [vmem:[#allocation54_spill] sm:$0xff] }
 0xc4c   :  { %5127 = vmatprep.subr.bf16.mxu1 %v11259_v21  ;;  %5168 = vmatprep.subr.bf16.mxu0 %v11260_v48  ;;  %v11270_v21 = vld [vmem:[#allocation55_spill] sm:$0xff]  ;;  %v11271_v48 = vld [vmem:[#allocation56_spill] sm:$0xff] }
 0xc4f   :  { %5128 = vmatpush1.bf16.msra.mxu1 %v11261_v7  ;;  %5169 = vmatpush1.bf16.msra.mxu0 %v11262_v31  ;;  %v11272_v7 = vld [vmem:[#allocation57_spill] sm:$0xff]  ;;  %v11273_v31 = vld [vmem:[#allocation58_spill] sm:$0xff] }
 0xc50   :  { %5129 = vmatprep.subr.bf16.mxu1 %v11263_v17  ;;  %5170 = vmatprep.subr.bf16.mxu0 %v11264_v6  ;;  %v11274_v17 = vld [vmem:[#allocation59_spill] sm:$0xff]  ;;  %v11275_v6 = vld [vmem:[#allocation60_spill] sm:$0xff] }
 0xc53   :  { %5130 = vmatpush1.bf16.msra.mxu1 %v11265_v38  ;;  %5171 = vmatpush1.bf16.msra.mxu0 %v11266_v51  ;;  %v11276_v38 = vld [vmem:[#allocation61_spill] sm:$0xff]  ;;  %v11277_v51 = vld [vmem:[#allocation62_spill] sm:$0xff] }
 0xc54   :  { %5131 = vmatprep.subr.bf16.mxu1 %v11267_v47  ;;  %5172 = vmatprep.subr.bf16.mxu0 %v11268_v10  ;;  %v11278_v47 = vld [vmem:[#allocation63_spill] sm:$0xff]  ;;  %v11279_v10 = vld [vmem:[#allocation64_spill] sm:$0xff] }
 0xc57   :  { %5132 = vmatpush1.bf16.msra.mxu1 %v11269_v35  ;;  %5173 = vmatpush1.bf16.msra.mxu0 %v11270_v21  ;;  %v11280_v35 = vld [vmem:[#allocation65_spill] sm:$0xff]  ;;  %v11281_v21 = vld [vmem:[#allocation66_spill] sm:$0xff] }
 0xc58   :  { %5133 = vmatprep.subr.bf16.mxu1 %v11271_v48  ;;  %5174 = vmatprep.subr.bf16.mxu0 %v11272_v7  ;;  %v11282_v48 = vld [vmem:[#allocation67_spill] sm:$0xff]  ;;  %v11283_v7 = vld [vmem:[#allocation68_spill] sm:$0xff] }
 0xc5b   :  { %5134 = vmatpush1.bf16.msra.mxu1 %v11273_v31  ;;  %5175 = vmatpush1.bf16.msra.mxu0 %v11274_v17  ;;  %v11284_v31 = vld [vmem:[#allocation69_spill] sm:$0xff]  ;;  %v11285_v17 = vld [vmem:[#allocation70_spill] sm:$0xff] }
 0xc5c   :  { %5135 = vmatprep.subr.bf16.mxu1 %v11275_v6  ;;  %5176 = vmatprep.subr.bf16.mxu0 %v11276_v38  ;;  %v11286_v6 = vld [vmem:[#allocation71_spill] sm:$0xff]  ;;  %v11287_v38 = vld [vmem:[#allocation72_spill] sm:$0xff] }
 0xc5f   :  { %5136 = vmatpush1.bf16.msra.mxu1 %v11277_v51  ;;  %5177 = vmatpush1.bf16.msra.mxu0 %v11278_v47  ;;  %v11288_v51 = vld [vmem:[#allocation73_spill] sm:$0xff]  ;;  %v11289_v47 = vld [vmem:[#allocation74_spill] sm:$0xff] }
 0xc60   :  { %5137 = vmatprep.subr.bf16.mxu1 %v11279_v10  ;;  %5178 = vmatprep.subr.bf16.mxu0 %v11280_v35  ;;  %v11290_v10 = vld [vmem:[#allocation75_spill] sm:$0xff]  ;;  %v11291_v35 = vld [vmem:[#allocation76_spill] sm:$0xff] }
 0xc63   :  { %5138 = vmatpush1.bf16.msra.mxu1 %v11281_v21  ;;  %5179 = vmatpush1.bf16.msra.mxu0 %v11282_v48  ;;  %v11292_v21 = vld [vmem:[#allocation77_spill] sm:$0xff] }
 0xc64   :  { %5139 = vmatprep.subr.bf16.mxu1 %v11283_v7  ;;  %5180 = vmatprep.subr.bf16.mxu0 %v11284_v31 }
 0xc67   :  { %5140 = vmatpush1.bf16.msra.mxu1 %v11285_v17  ;;  %5181 = vmatpush1.bf16.msra.mxu0 %v11286_v6 }
 0xc68   :  { %5141 = vmatprep.subr.bf16.mxu1 %v11287_v38  ;;  %5182 = vmatprep.subr.bf16.mxu0 %v11288_v51 }
 0xc6b   :  { %5142 = vmatpush1.bf16.msra.mxu1 %v11289_v47  ;;  %5183 = vmatpush1.bf16.msra.mxu0 %v11290_v10 }
 0xc6c   :  { %5193 = vmatprep.subr.bf16.mxu1 %v11291_v35  ;;  %5234 = vmatprep.subr.bf16.mxu0 %v11292_v21 }
 0xcc1   :  { %v4899_v48 = vpop.f32.mrb[56].mxu1  ;;  %v4940_v7 = vpop.f32.mrb[64].mxu0 }
 0xcc2   :  { %v5061_v9 = vrot.slane %v4899_v48, 6  ;;  %v4901_v31 = vpop.f32.mrb[57].mxu1  ;;  %v4942_v54 = vpop.f32.mrb[65].mxu0  ;;  %v5063_v35 = vrot.slane %v4940_v7, 6 }
 0xcc3   :  { %v5062_v17 = vrot.slane %v4901_v31, 6  ;;  %v4903_v27 = vpop.f32.mrb[58].mxu1  ;;  %v4944_v6 = vpop.f32.mrb[66].mxu0  ;;  %v5064_v21 = vrot.slane %v4942_v54, 6 }
 0xcc4   :  { %v5069_v38 = vadd.f32 %v5061_v9, %v11197_v30  ;;  %v4904_v0 = vpop.f32.mrb[59].mxu1  ;;  %v4945_v51 = vpop.f32.mrb[67].mxu0  ;;  %v5071_v41 = vadd.f32 %v5063_v35, %v11199_v12  ;;  %v11319_v12 = vld [vmem:[#allocation147_spill] sm:$0xff]  ;;  %v11321_v30 = vld [vmem:[#allocation76_spill] sm:$0xff] }
 0xcc5   :  { %v5070_v47 = vadd.f32 %v5062_v17, %v11198_v28  ;;  %v5072_v48 = vadd.f32 %v5064_v21, %v11200_v20  ;;  %v11318_v20 = vld [vmem:[#allocation146_spill] sm:$0xff]  ;;  %v11320_v28 = vld [vmem:[#allocation148_spill] sm:$0xff] }
 0xcc6   :  { %v5794_v45 = vmul.f32 -1.442695, %v5069_v38  ;;  %v5796_v62 = vmul.f32 -1.442695, %v5071_v41 }
 0xcc7   :  { %v5795_v10 = vmul.f32 -1.442695, %v5070_v47 }
 0xcc8   :  { %6298 = vpow2.f32 %v5794_v45  ;;  %v11293_v45 = vld [vmem:[#allocation80_spill] sm:$0xff] }
 0xcc9   :  { %6300 = vpow2.f32 %v5795_v10  ;;  %v5093_v7 = vrot.slane %v11293_v45, 6 }
 0xcca   :  { %6302 = vtanh.f32 %v5072_v48 }
 0xccb   :  { %6304 = vpow2.f32 %v5796_v62 }
 0xcd2   :  { %v6299_v31 = vpop.eup %6298 }
 0xcd3   :  { %v5082_v27 = vadd.f32 1.0, %v6299_v31  ;;  %v6301_v6 = vpop.eup %6300 }
 0xcd4   :  { %v5083_v0 = vadd.f32 1.0, %v6301_v6  ;;  %v6303_v9 = vpop.eup %6302 }
 0xcd5   :  { %6306 = vrcp.f32 %v5082_v27  ;;  %v6305_v17 = vpop.eup %6304 }
 0xcd6   :  { %6308 = vrcp.f32 %v5083_v0  ;;  %v5084_v47 = vadd.f32 1.0, %v6305_v17 }
 0xcd8   :  { %6310 = vrcp.f32 %v5084_v47 }
 0xcdf   :  { %v6307_v38 = vpop.eup %6306 }
 0xce0   :  { %v5096_v51 = vmul.f32 %v6307_v38, %v6303_v9  ;;  %v6309_v54 = vpop.eup %6308 }
 0xce1   :  { %v5095_v35 = vmul.f32 %v6309_v54, %v5093_v7 }
 0xce2   :  { %v6311_v41 = vpop.eup %6310 }
 0xce3   :  { %v9983_v10 = vadd.f32 %v5096_v51, %v5095_v35 }
 0xce5   :  { %11294 = vst [vmem:[#allocation53_spill] sm:$0xff] %v9983_v10  ;;  %6312 = vtanh.f32 %v9983_v10 }
 0xcef   :  { %v6313_v21 = vpop.eup %6312 }
 0xcf0   :  { %v5099_v62 = vmul.f32 %v6313_v21, %v6311_v41 }
 0xd01   :  { %v4981_v48 = vpop.f32.mrb[60].mxu1  ;;  %v5022_v31 = vpop.f32.mrb[68].mxu0 }
 0xd02   :  { %v5029_v27 = vadd.f32 %v4981_v48, %v11012_v32  ;;  %v4983_v6 = vpop.f32.mrb[61].mxu1  ;;  %v5024_v0 = vpop.f32.mrb[69].mxu0  ;;  %v5031_v47 = vadd.f32 %v5022_v31, %v9383_v39  ;;  %v11315_v39 = vld [vmem:[#allocation143_spill] sm:$0xff]  ;;  %v11317_v32 = vld [vmem:[#allocation145_spill] sm:$0xff] }
 0xd03   :  { %v5030_v45 = vadd.f32 %v4983_v6, %v11013_v55  ;;  %v4985_v9 = vpop.f32.mrb[62].mxu1  ;;  %v5026_v38 = vpop.f32.mrb[70].mxu0  ;;  %v5032_v35 = vadd.f32 %v5024_v0, %v9387_v11  ;;  %v11314_v11 = vld [vmem:[#allocation142_spill] sm:$0xff]  ;;  %v11316_v55 = vld [vmem:[#allocation144_spill] sm:$0xff] }
 0xd04   :  { %v5791_v17 = vmul.f32 -1.442695, %v5029_v27  ;;  %v4986_v7 = vpop.f32.mrb[63].mxu1  ;;  %v5027_v51 = vpop.f32.mrb[71].mxu0  ;;  %v5793_v41 = vmul.f32 -1.442695, %v5031_v47 }
 0xd05   :  { %v5792_v54 = vmul.f32 -1.442695, %v5030_v45 }
 0xd06   :  { %6314 = vpow2.f32 %v5791_v17 }
 0xd07   :  { %6316 = vpow2.f32 %v5792_v54 }
 0xd08   :  { %6318 = vtanh.f32 %v5032_v35 }
 0xd09   :  { %6320 = vpow2.f32 %v5793_v41 }
 0xd10   :  { %v6315_v21 = vpop.eup %6314 }
 0xd11   :  { %v5042_v10 = vadd.f32 1.0, %v6315_v21  ;;  %v6317_v48 = vpop.eup %6316 }
 0xd12   :  { %v5043_v6 = vadd.f32 1.0, %v6317_v48  ;;  %v6319_v9 = vpop.eup %6318 }
 0xd13   :  { %6322 = vrcp.f32 %v5042_v10  ;;  %v6321_v27 = vpop.eup %6320  ;;  %v5103_v10 = vpack.c.bf16 %v5099_v62, %v5099_v62  ;;  %v11297_v62 = vld [vmem:[#allocation125_spill] sm:$0xff] }
 0xd14   :  { %6324 = vrcp.f32 %v5043_v6  ;;  %v5044_v17 = vadd.f32 1.0, %v6321_v27  ;;  %v11298_v6 = vld [vmem:[#allocation126_spill] sm:$0xff]  ;;  %v11300_v27 = vld [vmem:[#allocation128_spill] sm:$0xff] }
 0xd15   :  { %v9994_v48 = vrot.slane %v5103_v10, 1  ;;  %v11310_v10 = vld [vmem:[#allocation138_spill] sm:$0xff] }
 0xd16   :  { %6326 = vrcp.f32 %v5044_v17  ;;  %v11304_v17 = vld [vmem:[#allocation132_spill] sm:$0xff] }
 0xd1d   :  { %v6323_v38 = vpop.eup %6322 }
 0xd1e   :  { %v5053_v7 = vmul.f32 %v6323_v38, %v6319_v9  ;;  %v6325_v45 = vpop.eup %6324  ;;  %v11299_v9 = vld [vmem:[#allocation127_spill] sm:$0xff]  ;;  %v11301_v38 = vld [vmem:[#allocation129_spill] sm:$0xff] }
 0xd1f   :  { %v5052_v51 = vmul.f32 %v6325_v45, %v9841_v57  ;;  %v11296_v57 = vld [vmem:[#allocation124_spill] sm:$0xff]  ;;  %v11303_v45 = vld [vmem:[#allocation131_spill] sm:$0xff] }
 0xd20   :  { %v6327_v0 = vpop.eup %6326 }
 0xd21   :  { %v9991_v31 = vadd.f32 %v5053_v7, %v5052_v51  ;;  %v11302_v7 = vld [vmem:[#allocation130_spill] sm:$0xff]  ;;  %v11305_v51 = vld [vmem:[#allocation133_spill] sm:$0xff] }
 0xd23   :  { %11295 = vst [vmem:[#allocation89_spill] sm:$0xff] %v9991_v31  ;;  %6328 = vtanh.f32 %v9991_v31  ;;  %v11313_v31 = vld [vmem:[#allocation141_spill] sm:$0xff] }
 0xd2d   :  { %v6329_v54 = vpop.eup %6328 }
 0xd2e   :  { %v5056_v47 = vmul.f32 %v6329_v54, %v6327_v0  ;;  %v11306_v0 = vld [vmem:[#allocation134_spill] sm:$0xff]  ;;  %v11307_v54 = vld [vmem:[#allocation135_spill] sm:$0xff] }
 0xd30   :  { %v5101_v35 = vrot.slane %v5056_v47, 6  ;;  %v11308_v47 = vld [vmem:[#allocation136_spill] sm:$0xff] }
 0xd32   :  { %v5104_v41 = vpack.c.bf16 %v5101_v35, %v5101_v35  ;;  %v11309_v35 = vld [vmem:[#allocation137_spill] sm:$0xff] }
 0xd34   :  { %v5108_v21 = vrot.slane %v5104_v41, 1  ;;  %v11311_v41 = vld [vmem:[#allocation139_spill] sm:$0xff] }
 0xd36   :  { %5143 = vmatprep.mubr.bf16.mxu1 %v5108_v21  ;;  %5184 = vmatprep.mubr.bf16.mxu0 %v5108_v21 }
 0xd37   :  { %5144 = vmatmul.mubr.bf16.vlgmr.msra.gmra.mrb[64].mxu1 %v9994_v48  ;;  %5185 = vmatmul.mubr.bf16.vlgmr.msra.gmra.mrb[72].mxu0 %v9994_v48 }
 0xd38   :  { %5194 = vmatpush1.bf16.msra.mxu1 %v8970_v50  ;;  %5235 = vmatpush1.bf16.msra.mxu0 %v10922_v29 }
 0xd39   :  { %5225 = vmatprep.mubr.bf16.mxu1 %v5108_v21  ;;  %5266 = vmatprep.mubr.bf16.mxu0 %v5108_v21  ;;  %v11312_v21 = vld [vmem:[#allocation140_spill] sm:$0xff] }
 0xd3a   :  { %5195 = vmatprep.subr.bf16.mxu1 %v10923_v19  ;;  %5236 = vmatprep.subr.bf16.mxu0 %v10924_v40 }
 0xd3c   :  { %5196 = vmatpush1.bf16.msra.mxu1 %v10925_v59  ;;  %5237 = vmatpush1.bf16.msra.mxu0 %v10926_v36 }
 0xd3d   :  { %5197 = vmatprep.subr.bf16.mxu1 %v11014_v8  ;;  %5238 = vmatprep.subr.bf16.mxu0 %v11015_v56 }
 0xd40   :  { %5198 = vmatpush1.bf16.msra.mxu1 %v11016_v34  ;;  %5239 = vmatpush1.bf16.msra.mxu0 %v11017_v23 }
 0xd41   :  { %5199 = vmatprep.subr.bf16.mxu1 %v11018_v14  ;;  %5240 = vmatprep.subr.bf16.mxu0 %v11019_v3 }
 0xd44   :  { %5200 = vmatpush1.bf16.msra.mxu1 %v11106_v33  ;;  %5241 = vmatpush1.bf16.msra.mxu0 %v11107_v26 }
 0xd45   :  { %5201 = vmatprep.subr.bf16.mxu1 %v11108_v15  ;;  %5242 = vmatprep.subr.bf16.mxu0 %v11109_v60 }
 0xd48   :  { %5202 = vmatpush1.bf16.msra.mxu1 %v11110_v24  ;;  %5243 = vmatpush1.bf16.msra.mxu0 %v11111_v5 }
 0xd49   :  { %5203 = vmatprep.subr.bf16.mxu1 %v11112_v2  ;;  %5244 = vmatprep.subr.bf16.mxu0 %v11113_v52 }
 0xd4c   :  { %5204 = vmatpush1.bf16.msra.mxu1 %v11114_v42  ;;  %5245 = vmatpush1.bf16.msra.mxu0 %v11115_v25 }
 0xd4d   :  { %5205 = vmatprep.subr.bf16.mxu1 %v11116_v49  ;;  %5246 = vmatprep.subr.bf16.mxu0 %v11117_v53 }
 0xd50   :  { %5206 = vmatpush1.bf16.msra.mxu1 %v11118_v37  ;;  %5247 = vmatpush1.bf16.msra.mxu0 %v11119_v61 }
 0xd51   :  { %5207 = vmatprep.subr.bf16.mxu1 %v11034_v13  ;;  %5248 = vmatprep.subr.bf16.mxu0 %v11035_v1 }
 0xd54   :  { %5208 = vmatpush1.bf16.msra.mxu1 %v11036_v18  ;;  %5249 = vmatpush1.bf16.msra.mxu0 %v11120_v43 }
 0xd55   :  { %5209 = vmatprep.subr.bf16.mxu1 %v11121_v4  ;;  %5250 = vmatprep.subr.bf16.mxu0 %v11039_v46 }
 0xd58   :  { %5210 = vmatpush1.bf16.msra.mxu1 %v11040_v58  ;;  %5251 = vmatpush1.bf16.msra.mxu0 %v11041_v16 }
 0xd59   :  { %5211 = vmatprep.subr.bf16.mxu1 %v11042_v63  ;;  %5252 = vmatprep.subr.bf16.mxu0 %v11043_v44 }
 0xd5c   :  { %5212 = vmatpush1.bf16.msra.mxu1 %v11044_v22  ;;  %5253 = vmatpush1.bf16.msra.mxu0 %v11296_v57 }
 0xd5d   :  { %5213 = vmatprep.subr.bf16.mxu1 %v11297_v62  ;;  %5254 = vmatprep.subr.bf16.mxu0 %v11298_v6 }
 0xd60   :  { %5214 = vmatpush1.bf16.msra.mxu1 %v11299_v9  ;;  %5255 = vmatpush1.bf16.msra.mxu0 %v11300_v27 }
 0xd61   :  { %5215 = vmatprep.subr.bf16.mxu1 %v11301_v38  ;;  %5256 = vmatprep.subr.bf16.mxu0 %v11302_v7 }
 0xd64   :  { %5216 = vmatpush1.bf16.msra.mxu1 %v11303_v45  ;;  %5257 = vmatpush1.bf16.msra.mxu0 %v11304_v17 }
 0xd65   :  { %5217 = vmatprep.subr.bf16.mxu1 %v11305_v51  ;;  %5258 = vmatprep.subr.bf16.mxu0 %v11306_v0 }
 0xd68   :  { %5218 = vmatpush1.bf16.msra.mxu1 %v11307_v54  ;;  %5259 = vmatpush1.bf16.msra.mxu0 %v11308_v47 }
 0xd69   :  { %5219 = vmatprep.subr.bf16.mxu1 %v11309_v35  ;;  %5260 = vmatprep.subr.bf16.mxu0 %v11310_v10 }
 0xd6c   :  { %5220 = vmatpush1.bf16.msra.mxu1 %v11311_v41  ;;  %5261 = vmatpush1.bf16.msra.mxu0 %v11312_v21  ;;  %v11322_v41 = vld [vmem:[#allocation77_spill] sm:$0xff] }
 0xd6d   :  { %5221 = vmatprep.subr.bf16.mxu1 %v11313_v31  ;;  %5262 = vmatprep.subr.bf16.mxu0 %v11314_v11 }
 0xd70   :  { %5222 = vmatpush1.bf16.msra.mxu1 %v11315_v39  ;;  %5263 = vmatpush1.bf16.msra.mxu0 %v11316_v55 }
 0xd71   :  { %5223 = vmatprep.subr.bf16.mxu1 %v11317_v32  ;;  %5264 = vmatprep.subr.bf16.mxu0 %v11318_v20 }
 0xd74   :  { %5224 = vmatpush1.bf16.msra.mxu1 %v11319_v12  ;;  %5265 = vmatpush1.bf16.msra.mxu0 %v11320_v28 }
 0xd75   :  { %5357 = vmatprep.subr.bf16.mxu1 %v11321_v30  ;;  %5398 = vmatprep.subr.bf16.mxu0 %v11322_v41  ;;  %v11330_v30 = vld [vmem:[#allocation88_spill] sm:$0xff] }
 0xd77   :  { %5226 = vmatmul.mubr.bf16.vlgmr.msra.gmra.mrb[68].mxu1 %v9994_v48  ;;  %5267 = vmatmul.mubr.bf16.vlgmr.msra.gmra.mrb[76].mxu0 %v9994_v48 }
 0xd78   :  { %5358 = vmatpush1.bf16.msra.mxu1 %v8970_v50  ;;  %5399 = vmatpush1.bf16.msra.mxu0 %v10922_v29  ;;  %v11323_v50 = vld [vmem:[#allocation139_spill] sm:$0xff]  ;;  %v11324_v29 = vmov 0.0  }
 0xd79   :  { %5359 = vmatprep.subr.bf16.mxu1 %v10923_v19  ;;  %5400 = vmatprep.subr.bf16.mxu0 %v10924_v40 }
 0xd7c   :  { %5360 = vmatpush1.bf16.msra.mxu1 %v10925_v59  ;;  %5401 = vmatpush1.bf16.msra.mxu0 %v10926_v36 }
 0xd7d   :  { %5361 = vmatprep.subr.bf16.mxu1 %v11014_v8  ;;  %5402 = vmatprep.subr.bf16.mxu0 %v11015_v56 }
 0xd80   :  { %5362 = vmatpush1.bf16.msra.mxu1 %v11016_v34  ;;  %5403 = vmatpush1.bf16.msra.mxu0 %v11017_v23  ;;  %v11325_v34 = vld [vmem:[#allocation82_spill] sm:$0xff] }
 0xd81   :  { %5363 = vmatprep.subr.bf16.mxu1 %v11018_v14  ;;  %5404 = vmatprep.subr.bf16.mxu0 %v11019_v3  ;;  %v11326_v14 = vld [vmem:[#allocation84_spill] sm:$0xff] }
 0xd84   :  { %5364 = vmatpush1.bf16.msra.mxu1 %v11106_v33  ;;  %5405 = vmatpush1.bf16.msra.mxu0 %v11107_v26 }
 0xd85   :  { %5365 = vmatprep.subr.bf16.mxu1 %v11108_v15  ;;  %5406 = vmatprep.subr.bf16.mxu0 %v11109_v60 }
 0xd88   :  { %5366 = vmatpush1.bf16.msra.mxu1 %v11110_v24  ;;  %5407 = vmatpush1.bf16.msra.mxu0 %v11111_v5  ;;  %v11329_v24 = vld [vmem:[#allocation53_spill] sm:$0xff] }
 0xd89   :  { %5367 = vmatprep.subr.bf16.mxu1 %v11112_v2  ;;  %5408 = vmatprep.subr.bf16.mxu0 %v11113_v52  ;;  %v5339_v5 = vrot.slane %v11329_v24, 6 }
 0xd8c   :  { %5368 = vmatpush1.bf16.msra.mxu1 %v11114_v42  ;;  %5409 = vmatpush1.bf16.msra.mxu0 %v11115_v25 }
 0xd8d   :  { %5369 = vmatprep.subr.bf16.mxu1 %v11116_v49  ;;  %5410 = vmatprep.subr.bf16.mxu0 %v11117_v53 }
 0xd90   :  { %5370 = vmatpush1.bf16.msra.mxu1 %v11118_v37  ;;  %5411 = vmatpush1.bf16.msra.mxu0 %v11119_v61 }
 0xd91   :  { %5371 = vmatprep.subr.bf16.mxu1 %v11034_v13  ;;  %5412 = vmatprep.subr.bf16.mxu0 %v11035_v1  ;;  %v11328_v1 = vld [vmem:[#allocation85_spill] sm:$0xff] }
 0xd94   :  { %5372 = vmatpush1.bf16.msra.mxu1 %v11036_v18  ;;  %5413 = vmatpush1.bf16.msra.mxu0 %v11120_v43 }
 0xd95   :  { %5373 = vmatprep.subr.bf16.mxu1 %v11121_v4  ;;  %5414 = vmatprep.subr.bf16.mxu0 %v11039_v46 }
 0xd98   :  { %5374 = vmatpush1.bf16.msra.mxu1 %v11040_v58  ;;  %5415 = vmatpush1.bf16.msra.mxu0 %v11041_v16 }
 0xd99   :  { %5375 = vmatprep.subr.bf16.mxu1 %v11042_v63  ;;  %5416 = vmatprep.subr.bf16.mxu0 %v11043_v44 }
 0xd9c   :  { %5376 = vmatpush1.bf16.msra.mxu1 %v11044_v22  ;;  %5417 = vmatpush1.bf16.msra.mxu0 %v11296_v57  ;;  %v11327_v22 = vld [vmem:[#allocation83_spill] sm:$0xff] }
 0xd9d   :  { %5377 = vmatprep.subr.bf16.mxu1 %v11297_v62  ;;  %5418 = vmatprep.subr.bf16.mxu0 %v11298_v6  ;;  %v11331_v62 = vld [vmem:[#allocation10_spill] sm:$0xff] }
 0xda0   :  { %5378 = vmatpush1.bf16.msra.mxu1 %v11299_v9  ;;  %5419 = vmatpush1.bf16.msra.mxu0 %v11300_v27 }
 0xda1   :  { %5379 = vmatprep.subr.bf16.mxu1 %v11301_v38  ;;  %5420 = vmatprep.subr.bf16.mxu0 %v11302_v7 }
 0xda4   :  { %5380 = vmatpush1.bf16.msra.mxu1 %v11303_v45  ;;  %5421 = vmatpush1.bf16.msra.mxu0 %v11304_v17 }
 0xda5   :  { %5381 = vmatprep.subr.bf16.mxu1 %v11305_v51  ;;  %5422 = vmatprep.subr.bf16.mxu0 %v11306_v0  ;;  %v11332_v51 = vld [vmem:[#allocation79_spill] sm:$0xff] }
 0xda8   :  { %5382 = vmatpush1.bf16.msra.mxu1 %v11307_v54  ;;  %5423 = vmatpush1.bf16.msra.mxu0 %v11308_v47  ;;  %v11333_v54 = vld [vmem:[#allocation78_spill] sm:$0xff] }
 0xda9   :  { %5383 = vmatprep.subr.bf16.mxu1 %v11309_v35  ;;  %5424 = vmatprep.subr.bf16.mxu0 %v11310_v10 }
 0xdac   :  { %5384 = vmatpush1.bf16.msra.mxu1 %v11323_v50  ;;  %5425 = vmatpush1.bf16.msra.mxu0 %v11312_v21 }
 0xdad   :  { %5385 = vmatprep.subr.bf16.mxu1 %v11313_v31  ;;  %5426 = vmatprep.subr.bf16.mxu0 %v11314_v11 }
 0xdb0   :  { %5386 = vmatpush1.bf16.msra.mxu1 %v11315_v39  ;;  %5427 = vmatpush1.bf16.msra.mxu0 %v11316_v55 }
 0xdb1   :  { %5387 = vmatprep.subr.bf16.mxu1 %v11317_v32  ;;  %5428 = vmatprep.subr.bf16.mxu0 %v11318_v20 }
 0xdb4   :  { %5388 = vmatpush1.bf16.msra.mxu1 %v11319_v12  ;;  %5429 = vmatpush1.bf16.msra.mxu0 %v11320_v28 }
 0xdb5   :  { %5990 = vmatprep.subr.bf16.mxu1 %v11324_v29 }
 0xe0a   :  { %v5145_v19 = vpop.f32.mrb[64].mxu1  ;;  %v5186_v40 = vpop.f32.mrb[72].mxu0 }
 0xe0b   :  { %v5307_v59 = vrot.slane %v5145_v19, 4  ;;  %v5147_v36 = vpop.f32.mrb[65].mxu1  ;;  %v5188_v8 = vpop.f32.mrb[73].mxu0  ;;  %v5309_v28 = vrot.slane %v5186_v40, 4 }
 0xe0c   :  { %v5308_v11 = vrot.slane %v5147_v36, 4  ;;  %v5149_v56 = vpop.f32.mrb[66].mxu1  ;;  %v5190_v39 = vpop.f32.mrb[74].mxu0  ;;  %v5310_v44 = vrot.slane %v5188_v8, 4 }
 0xe0d   :  { %v5315_v55 = vadd.f32 %v5307_v59, %v11325_v34  ;;  %v5150_v23 = vpop.f32.mrb[67].mxu1  ;;  %v5191_v32 = vpop.f32.mrb[75].mxu0  ;;  %v5317_v13 = vadd.f32 %v5309_v28, %v11327_v22  ;;  %v11334_v56 = vld [vmem:[#allocation89_spill] sm:$0xff] }
 0xe0e   :  { %v5316_v3 = vadd.f32 %v5308_v11, %v11326_v14  ;;  %v5318_v18 = vadd.f32 %v5310_v44, %v11328_v1  ;;  %v6146_v44 = vld [vmem:[%s10205_s7] sm:$0xff]   ;;  %v6147_v22 = vld [vmem:[%s10205_s7 + $0x8] sm:$0xff]   ;;  %v6149_v1 = vld [vmem:[%s10205_s7 + $0x18] sm:$0xff]  }
 0xe0f   :  { %v5800_v63 = vmul.f32 -1.442695, %v5315_v55  ;;  %v5802_v20 = vmul.f32 -1.442695, %v5317_v13  ;;  %v6148_v13 = vld [vmem:[%s10205_s7 + $0x10] sm:$0xff]  }
 0xe10   :  { %v5801_v12 = vmul.f32 -1.442695, %v5316_v3 }
 0xe11   :  { %6330 = vpow2.f32 %v5800_v63 }
 0xe12   :  { %6332 = vpow2.f32 %v5801_v12 }
 0xe13   :  { %6334 = vtanh.f32 %v5318_v18  ;;  %v6150_v18 = vld [vmem:[%s10205_s7 + $0x20] sm:$0xff]  }
 0xe14   :  { %6336 = vpow2.f32 %v5802_v20  ;;  %v6151_v20 = vld [vmem:[%s10205_s7 + $0x28] sm:$0xff]  }
 0xe1b   :  { %v6331_v46 = vpop.eup %6330 }
 0xe1c   :  { %v5328_v58 = vadd.f32 1.0, %v6331_v46  ;;  %v6333_v16 = vpop.eup %6332  ;;  %v6152_v46 = vld [vmem:[%s10205_s7 + $0x30] sm:$0xff]  }
 0xe1d   :  { %v5329_v33 = vadd.f32 1.0, %v6333_v16  ;;  %v6335_v26 = vpop.eup %6334 }
 0xe1e   :  { %6338 = vrcp.f32 %v5328_v58  ;;  %v6337_v15 = vpop.eup %6336  ;;  %v6153_v58 = vld [vmem:[%s10205_s7 + $0x38] sm:$0xff]  }
 0xe1f   :  { %6340 = vrcp.f32 %v5329_v33  ;;  %v5330_v42 = vadd.f32 1.0, %v6337_v15 }
 0xe21   :  { %6342 = vrcp.f32 %v5330_v42 }
 0xe28   :  { %v6339_v60 = vpop.eup %6338 }
 0xe29   :  { %v5342_v2 = vmul.f32 %v6339_v60, %v6335_v26  ;;  %v6341_v52 = vpop.eup %6340 }
 0xe2a   :  { %v5341_v25 = vmul.f32 %v6341_v52, %v5339_v5 }
 0xe2b   :  { %v6343_v53 = vpop.eup %6342 }
 0xe2c   :  { %v5343_v49 = vadd.f32 %v5342_v2, %v5341_v25 }
 0xe2e   :  { %6344 = vtanh.f32 %v5343_v49 }
 0xe38   :  { %v6345_v37 = vpop.eup %6344 }
 0xe39   :  { %v5345_v61 = vmul.f32 %v6345_v37, %v6343_v53 }
 0xe3b   :  { %v5349_v3 = vpack.c.bf16 %v5345_v61, %v5345_v61 }
 0xe3d   :  { %v5353_v28 = vrot.slane %v5349_v3, 2 }
 0xe4a   :  { %v5227_v43 = vpop.f32.mrb[68].mxu1  ;;  %v5268_v4 = vpop.f32.mrb[76].mxu0 }
 0xe4b   :  { %v5275_v31 = vadd.f32 %v5227_v43, %v11330_v30  ;;  %v5229_v48 = vpop.f32.mrb[69].mxu1  ;;  %v5270_v57 = vpop.f32.mrb[77].mxu0  ;;  %v5277_v0 = vadd.f32 %v5268_v4, %v11332_v51 }
 0xe4c   :  { %v5276_v6 = vadd.f32 %v5229_v48, %v11331_v62  ;;  %v5231_v9 = vpop.f32.mrb[70].mxu1  ;;  %v5272_v27 = vpop.f32.mrb[78].mxu0  ;;  %v5278_v47 = vadd.f32 %v5270_v57, %v11333_v54 }
 0xe4d   :  { %v5797_v38 = vmul.f32 -1.442695, %v5275_v31  ;;  %v5232_v7 = vpop.f32.mrb[71].mxu1  ;;  %v5273_v45 = vpop.f32.mrb[79].mxu0  ;;  %v5799_v35 = vmul.f32 -1.442695, %v5277_v0 }
 0xe4e   :  { %v5798_v17 = vmul.f32 -1.442695, %v5276_v6  ;;  %v6407_v0 = vld [vmem:[%s10199_s1 + $0x20] sm:$0xff]  ;;  %s6473_s1 = smov [#allocation5]  }
 0xe4f   :  { %6346 = vpow2.f32 %v5797_v38  ;;  %s5581_s6 = sshll.u32 %s6473_s1, 4  ;;  %s5582_s6 = int_to_ptr.vmem [resolvable:$true] %s5581_s6 }
 0xe50   :  { %6348 = vpow2.f32 %v5798_v17  ;;  %s6430_s2 = scalar_lea.vmem %s5582_s6, 32  ;;  %p6435_p9 = scmp.lt.s32.totalorder %s5582_s6, %s5582_s6 }
 0xe51   :  { %6350 = vtanh.f32 %v5278_v47  ;;  %p6431_p8 = scmp.ne.s32.totalorder %s5582_s6, %s6430_s2  ;;  %p6436_p10 = scmp.lt.s32.totalorder %s6430_s2, %s6430_s2 }
 0xe52   :  { %6352 = vpow2.f32 %v5799_v35 }
 0xe53   :  { %p6437_p11 = por %p6436_p10, %p6435_p9 }
 0xe55   :  { %p6438_p12 = pnand %p6437_p11, %p6431_p8 }
 0xe59   :  { %v6347_v10 = vpop.eup %6346 }
 0xe5a   :  { %v5288_v41 = vadd.f32 1.0, %v6347_v10  ;;  %v6349_v21 = vpop.eup %6348 }
 0xe5b   :  { %v5289_v50 = vadd.f32 1.0, %v6349_v21  ;;  %v6351_v19 = vpop.eup %6350 }
 0xe5c   :  { %6354 = vrcp.f32 %v5288_v41  ;;  %v6353_v40 = vpop.eup %6352 }
 0xe5d   :  { %6356 = vrcp.f32 %v5289_v50  ;;  %v5290_v11 = vadd.f32 1.0, %v6353_v40 }
 0xe5f   :  { %6358 = vrcp.f32 %v5290_v11 }
 0xe66   :  { %v6355_v59 = vpop.eup %6354 }
 0xe67   :  { %v5299_v36 = vmul.f32 %v6355_v59, %v6351_v19  ;;  %v6357_v8 = vpop.eup %6356 }
 0xe68   :  { %v5298_v39 = vmul.f32 %v6357_v8, %v11334_v56 }
 0xe69   :  { %v6359_v55 = vpop.eup %6358 }
 0xe6a   :  { %v10137_v34 = vadd.f32 %v5299_v36, %v5298_v39 }
 0xe6c   :  { %6360 = vtanh.f32 %v10137_v34 }
 0xe76   :  { %v6361_v23 = vpop.eup %6360 }
 0xe77   :  { %v5302_v32 = vmul.f32 %v6361_v23, %v6359_v55 }
 0xe79   :  { %v5347_v14 = vrot.slane %v5302_v32, 4 }
 0xe7b   :  { %v5350_v63 = vpack.c.bf16 %v5347_v14, %v5347_v14 }
 0xe7d   :  { %v5354_v12 = vrot.slane %v5350_v63, 2 }
 0xe7f   :  { %5389 = vmatprep.mubr.bf16.mxu1 %v5354_v12  ;;  %5430 = vmatprep.mubr.bf16.mxu0 %v5354_v12 }
 0xe80   :  { %5390 = vmatmul.mubr.bf16.vlgmr.msra.gmra.mrb[72].mxu1 %v5353_v28  ;;  %5431 = vmatmul.mubr.bf16.vlgmr.msra.gmra.mrb[80].mxu0 %v5353_v28 }
 0xe81   :  { %6006 = vmatprep.mubr.msk.bf16.mxu1 %vm6471_vm8, %v11324_v29  ;;  %5991 = vmatpush3.bf16.msra.mxu1 %v6146_v44 }
 0xe82   :  { %5992 = vmatprep.subr.bf16.mxu1 %v11324_v29 }
 0xe85   :  { %5993 = vmatpush3.bf16.msra.mxu1 %v6147_v22 }
 0xe86   :  { %5994 = vmatprep.subr.bf16.mxu1 %v11324_v29 }
 0xe89   :  { %5995 = vmatpush3.bf16.msra.mxu1 %v6148_v13 }
 0xe8a   :  { %5996 = vmatprep.subr.bf16.mxu1 %v11324_v29 }
 0xe8d   :  { %5997 = vmatpush3.bf16.msra.mxu1 %v6149_v1 }
 0xe8e   :  { %5998 = vmatprep.subr.bf16.mxu1 %v11324_v29 }
 0xe91   :  { %5999 = vmatpush3.bf16.msra.mxu1 %v6150_v18 }
 0xe92   :  { %6000 = vmatprep.subr.bf16.mxu1 %v11324_v29 }
 0xe95   :  { %6001 = vmatpush3.bf16.msra.mxu1 %v6151_v20 }
 0xe96   :  { %6002 = vmatprep.subr.bf16.mxu1 %v11324_v29 }
 0xe99   :  { %6003 = vmatpush3.bf16.msra.mxu1 %v6152_v46 }
 0xe9a   :  { %6004 = vmatprep.subr.bf16.mxu1 %v11324_v29 }
 0xe9d   :  { %6005 = vmatpush3.bf16.msra.mxu1 %v6153_v58 }
 0xf53   :  { %v5391_v16 = vpop.f32.mrb[72].mxu1  ;;  %v5432_v33 = vpop.f32.mrb[80].mxu0 }
 0xf54   :  { %v5439_v26 = vadd.f32 %v5391_v16, %v11330_v30  ;;  %v5393_v15 = vpop.f32.mrb[73].mxu1  ;;  %v5434_v60 = vpop.f32.mrb[81].mxu0  ;;  %v5441_v53 = vadd.f32 %v5432_v33, %v11332_v51 }
 0xf55   :  { %v5440_v24 = vadd.f32 %v5393_v15, %v11331_v62  ;;  %v5395_v5 = vpop.f32.mrb[74].mxu1  ;;  %v5436_v2 = vpop.f32.mrb[82].mxu0  ;;  %v5442_v29 = vadd.f32 %v5434_v60, %v11333_v54  ;;  %v11335_v54 = vld [vmem:[#allocation8_spill] sm:$0xff] }
 0xf56   :  { %v5803_v52 = vmul.f32 -1.442695, %v5439_v26  ;;  %v5396_v42 = vpop.f32.mrb[75].mxu1  ;;  %v5437_v25 = vpop.f32.mrb[83].mxu0  ;;  %v5805_v37 = vmul.f32 -1.442695, %v5441_v53 }
 0xf57   :  { %v5804_v49 = vmul.f32 -1.442695, %v5440_v24  ;;  %v11336_v47 = vsub.s32 7, %v11335_v54 }
 0xf58   :  { %6362 = vpow2.f32 %v5803_v52 }
 0xf59   :  { %6364 = vpow2.f32 %v5804_v49  ;;  %v5471_v35 = vrot.slane %v6407_v0, %v11336_v47 }
 0xf5a   :  { %6366 = vtanh.f32 %v5442_v29 }
 0xf5b   :  { %6368 = vpow2.f32 %v5805_v37 }
 0xf62   :  { %v6363_v61 = vpop.eup %6362 }
 0xf63   :  { %v5452_v43 = vadd.f32 1.0, %v6363_v61  ;;  %v6365_v4 = vpop.eup %6364 }
 0xf64   :  { %v5453_v30 = vadd.f32 1.0, %v6365_v4  ;;  %v6367_v31 = vpop.eup %6366 }
 0xf65   :  { %6370 = vrcp.f32 %v5452_v43  ;;  %v6369_v48 = vpop.eup %6368 }
 0xf66   :  { %6372 = vrcp.f32 %v5453_v30  ;;  %v5454_v9 = vadd.f32 1.0, %v6369_v48 }
 0xf68   :  { %6374 = vrcp.f32 %v5454_v9 }
 0xf6f   :  { %v6371_v57 = vpop.eup %6370 }
 0xf70   :  { %v5463_v62 = vmul.f32 %v6371_v57, %v6367_v31  ;;  %v6373_v6 = vpop.eup %6372 }
 0xf71   :  { %v5462_v27 = vmul.f32 %v6373_v6, %v10137_v34 }
 0xf72   :  { %v6375_v7 = vpop.eup %6374 }
 0xf73   :  { %v5464_v38 = vadd.f32 %v5463_v62, %v5462_v27 }
 0xf75   :  { %6376 = vtanh.f32 %v5464_v38 }
 0xf7f   :  { %v6377_v45 = vpop.eup %6376 }
 0xf80   :  { %v5466_v17 = vmul.f32 %v6377_v45, %v6375_v7 }
 0xf82   :  { %v5467_v51 = vpack.c.bf16 %v5466_v17, %v5466_v17 }
 0xf84   :  { %6007 = vmatmul.mubr.bf16.vlgmr.msra.gmra.mrb[76].mxu1 %v5467_v51 }
0x1057   :  { %v5554_v10 = vpop.f32.mrb[76].mxu1 }
0x1058   :  { %v5555_v41 = vadd.f32 %v5554_v10, %v5471_v35  ;;  %v6008_v21 = vpop.f32.mrb[77].mxu1 }
0x1059   :  { %v5557_v50 = vpop.f32.mrb[78].mxu1 }
0x105a   :  { %v6009_v19 = vpop.f32.mrb[79].mxu1  ;;  %v5561_v40 = vsel %vm5560_vm10, %v5555_v41, -inf }
0x105b   :  { %5562 = vmax.xlane.f32.xlu0 %v5561_v40 }
0x10e8   :  { %v5563_v59 = vpop.xlane.xlu0 %5562 }
0x10e9   :  { %v5564_v36 = vsub.f32 %v5555_v41, %v5563_v59 }
0x10eb   :  { %v5565_v8 = vmul.f32 1.442695, %v5564_v36 }
0x10ed   :  { %6378 = vpow2.f32 %v5565_v8 }
0x10f7   :  { %v6379_v11 = vpop.eup %6378 }
0x10f8   :  { %v5567_v56 = vsel %vm5560_vm10, %v6379_v11, 0.0 }
0x10f9   :  { %5568 = vadd.xlane.f32.xlu1 %v5567_v56 }
0x1186   :  { %v5569_v39 = vpop.xlane.xlu1 %5568 }
0x1187   :  { %6380 = vlog2.f32 %v5569_v39 }
0x1191   :  { %v6381_v34 = vpop.eup %6380 }
0x1192   :  { %v5571_v55 = vmul.f32 0.6931472, %v6381_v34 }
0x1194   :  { %v5572_v23 = vadd.f32 %v5571_v55, %v5563_v59 }
0x1196   :  { %v5573_v32 = vsub.f32 %v5555_v41, %v5572_v23 }
0x1198   :  { %5574 = vst.msk [vmem:[#allocation5] sm:$0x3] %vm5560_vm10, %v5573_v32 }
0x1199   :  { %6441 = shalt.err (!%p6438_p12)
}
0x119a   :  { %s6442_s24 = scalar_lea.hbm %s10206_s8, 32 }
0x119b   :  { %p6443_p13 = scmp.ne.s32.totalorder %s10206_s8, %s6442_s24  ;;  %p6446_p0 = scmp.lt.u32.totalorder %s6442_s24, %s10206_s8 }
0x119d   :  { %p6448_p1 = pnand %p6446_p0, %p6443_p13 }
0x119f   :  { %6451 = shalt.err (!%p6448_p1)
}
0x11a0   :  { %5584 = dma.vmem_to_hbm [thread:$0]  %s5582_s6, 32, %s10206_s8, [#allocation4]  }
0x11a1   :  { %6454 = dma.done.wait [#allocation4], 32  }
0x11a2   :  { %6455 = vsyncadd [#allocation4], 4294967264 }
0x11a3   :  { %5588 = vsyncpa [#allocation3], 1 }
0x11a4   :  { %5589 = vsyncpa [#allocation4], 1 }

</bundles_post_ra>
